<compile_context>
chip_gen: v7x
topology: tpu7x:2x2x1
jax: 0.10.0
libtpu: 0.0.40
codegen_flags: <defaults>
</compile_context>

<pallas_src>
import functools

import jax
import jax.numpy as jnp
from jax.experimental import pallas as pl
from jax.experimental.pallas import tpu as pltpu

F32 = jnp.float32
BF16 = jnp.bfloat16
BN_EPS = 1e-5

TM_MAX = 512
TN_MAX = 512


def _round_up(v, m):
    return (v + m - 1) // m * m


def _pick_tile(dim, align, tmax):
    """Largest multiple of `align` dividing `dim`, capped at tmax."""
    best = align
    t = align
    lim = min(tmax, dim)
    while t <= lim:
        if dim % t == 0:
            best = t
        t += align
    return best


@functools.lru_cache(maxsize=None)
def _vmem_limit():
    # v5e/v6e: 128 MiB VMEM per TensorCore, v7x: 64 MiB.  Derive the scoped limit
    # from the actual chip so the enlarged tiles are safe on every generation.
    try:
        cap = int(pltpu.get_tpu_info().vmem_capacity_bytes)
    except Exception:
        cap = 64 * 1024 * 1024
    return max(32 * 1024 * 1024, cap * 3 // 4)


# ---------------------------------------------------------------------------
# Pallas kernels
# ---------------------------------------------------------------------------
def _gemm_bn_kernel(p_ref, w_ref, s_ref, b_ref, o_ref, *, relu):
    """Full-K bf16 MXU GEMM tile with fused BN scale/bias (+ReLU) epilogue (f32)."""
    y = jnp.dot(p_ref[...], w_ref[...], preferred_element_type=jnp.float32)
    y = y * s_ref[...] + b_ref[...]
    if relu:
        y = jnp.maximum(y, 0.0)
    o_ref[...] = y.astype(o_ref.dtype)


def _gemm_bn_res_kernel(p_ref, w_ref, s_ref, b_ref, r_ref, o_ref, *, relu):
    """Bottleneck conv3: GEMM + BN + residual add (+ReLU) fused in one epilogue."""
    y = jnp.dot(p_ref[...], w_ref[...], preferred_element_type=jnp.float32)
    y = y * s_ref[...] + b_ref[...] + r_ref[...].astype(jnp.float32)
    if relu:
        y = jnp.maximum(y, 0.0)
    o_ref[...] = y.astype(o_ref.dtype)


def _direct_conv_kernel(*refs, kh, kw, stride, dil, oh, ow, relu, nphase):
    """Direct (im2col-free) KxK conv: per-output-row tap accumulation on a
    VMEM-resident padded image band.  Stride handled via column-phase inputs so
    every in-kernel slice is contiguous and static."""
    phase_refs = refs[:nphase]
    w_ref, s_ref, b_ref, o_ref = refs[nphase:nphase + 4]
    scale = s_ref[...]            # (1, tn) f32
    bias = b_ref[...]
    tn = o_ref.shape[-1]
    for oy in range(oh):
        acc = jnp.zeros((ow, tn), jnp.float32)
        for ky in range(kh):
            iy = stride * oy + ky * dil
            for kx in range(kw):
                col = kx * dil
                ph = col % stride
                off = col // stride
                lhs = phase_refs[ph][0, iy, off:off + ow, :]      # (ow, cin_p) bf16
                acc = acc + jnp.dot(lhs, w_ref[ky * kw + kx],
                                    preferred_element_type=jnp.float32)
        y = acc * scale + bias
        if relu:
            y = jnp.maximum(y, 0.0)
        o_ref[0, oy, :, :] = y.astype(o_ref.dtype)


def _maxpool_kernel(*refs, k, stride, oh, ow, nphase):
    """3x3/stride-2 max pool on a VMEM-resident (-inf padded) image, phase inputs."""
    phase_refs = refs[:nphase]
    o_ref = refs[nphase]
    for oy in range(oh):
        row = None
        for ky in range(k):
            iy = stride * oy + ky
            for kx in range(k):
                ph = kx % stride
                off = kx // stride
                v = phase_refs[ph][0, iy, off:off + ow, :]
                row = v if row is None else jnp.maximum(row, v)
        o_ref[0, oy, :, :] = row


# ---------------------------------------------------------------------------
# Pallas wrappers
# ---------------------------------------------------------------------------
def _matmul_bn(patches, w2d, scale, bias, *, relu, residual=None):
    """Tiled (M,K)@(K,N) GEMM with fused BN (+residual +ReLU) epilogue.

    Full-K blocks (no K grid axis); weight block indexed only by the N tile with
    the N axis outermost, so weights are streamed from HBM once per N tile.
    """
    M, K = patches.shape
    Kw, N = w2d.shape
    assert K == Kw and K % 128 == 0 and N % 128 == 0

    # >=2 M tiles when M allows (keeps both v7x TensorCores busy); 16-row bf16 align.
    if M >= 32:
        tm = min(TM_MAX, _round_up(pl.cdiv(M, 2), 16))
    else:
        tm = _round_up(M, 16)
    Mp = _round_up(M, tm)
    tn = _pick_tile(N, 128, TN_MAX)

    if Mp != M:
        patches = jnp.pad(patches, ((0, Mp - M), (0, 0)))
        if residual is not None:
            residual = jnp.pad(residual, ((0, Mp - M), (0, 0)))

    gm, gn = Mp // tm, N // tn
    grid = (gn, gm)                       # N tiles outermost -> weights resident.

    in_specs = [
        pl.BlockSpec((tm, K), lambda j, i: (i, 0)),
        pl.BlockSpec((K, tn), lambda j, i: (0, j)),
        pl.BlockSpec((1, tn), lambda j, i: (0, j)),
        pl.BlockSpec((1, tn), lambda j, i: (0, j)),
    ]
    args = [patches, w2d, scale, bias]
    if residual is None:
        kernel = functools.partial(_gemm_bn_kernel, relu=relu)
        res_bytes = 0
    else:
        in_specs.append(pl.BlockSpec((tm, tn), lambda j, i: (i, j)))
        args.append(residual)
        kernel = functools.partial(_gemm_bn_res_kernel, relu=relu)
        res_bytes = Mp * N * 2

    cost = pl.CostEstimate(
        flops=2 * Mp * N * K,
        transcendentals=0,
        bytes_accessed=(Mp * K + K * N + Mp * N) * 2 + res_bytes + 8 * N)

    out = pl.pallas_call(
        kernel,
        out_shape=jax.ShapeDtypeStruct((Mp, N), BF16),
        grid=grid,
        in_specs=in_specs,
        out_specs=pl.BlockSpec((tm, tn), lambda j, i: (i, j)),
        compiler_params=pltpu.CompilerParams(
            dimension_semantics=("parallel", "parallel"),
            vmem_limit_bytes=_vmem_limit()),
        cost_estimate=cost,
    )(*args)
    return out[:M] if Mp != M else out


def conv1x1_bn(x, prm, stride=1, relu=True, residual=None):
    """1x1 conv + BN (+residual +ReLU): direct GEMM, no im2col."""
    if stride != 1:
        # TODO(synk): fold the stride into the GEMM's input index_map instead of
        # this wrapper-level strided slice (minor: reads 1/stride^2 of the input).
        x = x[:, ::stride, ::stride, :]
    n, h, w, _ = x.shape
    patches = x.reshape(n * h * w, x.shape[3])
    res2d = None if residual is None else residual.reshape(n * h * w, -1)
    y = _matmul_bn(patches, prm["w2d"], prm["scale"], prm["bias"],
                   relu=relu, residual=res2d)
    return y.reshape(n, h, w, -1)


def conv3x3_bn(x, prm, *, stride=1, dil=1, relu=True):
    """3x3 conv + BN (+ReLU) via the direct (im2col-free) Pallas conv kernel."""
    n, h, w, c = x.shape
    kh, kw = prm["kh"], prm["kw"]
    pad = dil                                  # Bottleneck convention: padding = dilation
    xp = jnp.pad(x, ((0, 0), (pad, pad), (pad, pad), (0, 0)))
    hp, wp = h + 2 * pad, w + 2 * pad
    oh = (hp - ((kh - 1) * dil + 1)) // stride + 1
    ow = (wp - ((kw - 1) * dil + 1)) // stride + 1
    # Column-phase split so stride-2 convs only need contiguous in-kernel slices.
    phases = [xp] if stride == 1 else [xp[:, :, p0::stride, :] for p0 in range(stride)]

    cout_p = prm["w3d"].shape[2]
    tn = _pick_tile(cout_p, 128, TN_MAX)
    gcout = cout_p // tn

    kernel = functools.partial(
        _direct_conv_kernel, kh=kh, kw=kw, stride=stride, dil=dil,
        oh=oh, ow=ow, relu=relu, nphase=len(phases))

    in_specs = [pl.BlockSpec((1, hp, phz.shape[2], c), lambda b, j: (b, 0, 0, 0))
                for phz in phases]
    in_specs += [
        pl.BlockSpec((kh * kw, c, tn), lambda b, j: (0, 0, j)),
        pl.BlockSpec((1, tn), lambda b, j: (0, j)),
        pl.BlockSpec((1, tn), lambda b, j: (0, j)),
    ]

    cost = pl.CostEstimate(
        flops=2 * n * oh * ow * kh * kw * c * cout_p,
        transcendentals=0,
        bytes_accessed=(sum(int(phz.size) for phz in phases)
                        + int(prm["w3d"].size) + n * oh * ow * cout_p) * 2)

    out = pl.pallas_call(
        kernel,
        out_shape=jax.ShapeDtypeStruct((n, oh, ow, cout_p), BF16),
        grid=(n, gcout),
        in_specs=in_specs,
        out_specs=pl.BlockSpec((1, oh, ow, tn), lambda b, j: (b, 0, 0, j)),
        compiler_params=pltpu.CompilerParams(
            dimension_semantics=("parallel", "parallel"),
            vmem_limit_bytes=_vmem_limit()),
        cost_estimate=cost,
    )(*phases, prm["w3d"], prm["scale"], prm["bias"])
    return out


def max_pool_3x3_s2(x):
    """3x3/stride-2/pad-1 max pool (PyTorch pads with -inf) as a Pallas kernel."""
    n, h, w, c = x.shape
    k, s, pad = 3, 2, 1
    xp = jnp.pad(x, ((0, 0), (pad, pad), (pad, pad), (0, 0)),
                 constant_values=-jnp.inf)
    hp, wp = h + 2 * pad, w + 2 * pad
    oh = (hp - k) // s + 1
    ow = (wp - k) // s + 1
    phases = [xp[:, :, p0::s, :] for p0 in range(s)]

    kernel = functools.partial(_maxpool_kernel, k=k, stride=s, oh=oh, ow=ow,
                               nphase=len(phases))
    in_specs = [pl.BlockSpec((1, hp, phz.shape[2], c), lambda b: (b, 0, 0, 0))
                for phz in phases]
    return pl.pallas_call(
        kernel,
        out_shape=jax.ShapeDtypeStruct((n, oh, ow, c), x.dtype),
        grid=(n,),
        in_specs=in_specs,
        out_specs=pl.BlockSpec((1, oh, ow, c), lambda b: (b, 0, 0, 0)),
        compiler_params=pltpu.CompilerParams(
            dimension_semantics=("parallel",),
            vmem_limit_bytes=_vmem_limit()),
        cost_estimate=pl.CostEstimate(
            flops=n * oh * ow * c * k * k, transcendentals=0,
            bytes_accessed=(sum(int(phz.size) for phz in phases)
                            + n * oh * ow * c) * 2),
    )(*phases)


def stem_conv(x, prm):
    """7x7/stride-2/pad-3 stem conv + BN + ReLU via im2col GEMM.
    TODO(synk): tap-folded direct conv would remove the patch tensor, but needs
    tiny-K (3-channel) MXU dots; keep the known-good GEMM path here."""
    n = x.shape[0]
    patches, oh, ow = _im2col(x, 7, 7, 2, 3, 1)
    kp = prm["w2d"].shape[0]
    patches = jnp.pad(patches, ((0, 0), (0, kp - patches.shape[1])))
    y = _matmul_bn(patches, prm["w2d"], prm["scale"], prm["bias"], relu=True)
    return y.reshape(n, oh, ow, -1)


def _im2col(x, kh, kw, stride, pad, dil):
    n, h, w, c = x.shape
    xp = jnp.pad(x, ((0, 0), (pad, pad), (pad, pad), (0, 0)))
    hp, wp = h + 2 * pad, w + 2 * pad
    ke_h, ke_w = (kh - 1) * dil + 1, (kw - 1) * dil + 1
    oh = (hp - ke_h) // stride + 1
    ow = (wp - ke_w) // stride + 1
    cols = []
    for i in range(kh):
        for j in range(kw):
            cols.append(xp[:, i * dil:i * dil + stride * (oh - 1) + 1:stride,
                           j * dil:j * dil + stride * (ow - 1) + 1:stride, :])
    patches = jnp.concatenate(cols, axis=-1)          # (N, OH, OW, kh*kw*C)
    return patches.reshape(n * oh * ow, kh * kw * c), oh, ow


# ---------------------------------------------------------------------------
# Parameters (deterministic; eval-mode BatchNorm folded; lane padding pre-applied)
# ---------------------------------------------------------------------------
def _fold_conv(key, kh, kw, cin, cout, *, cin_pad, fmt):
    fan_in = kh * kw * cin
    w = jax.random.normal(key, (kh, kw, cin, cout), F32) * jnp.sqrt(2.0 / fan_in)
    # BN eval mode: gamma=1, beta=0, running_mean=0, running_var=1.
    s_val = 1.0 / jnp.sqrt(1.0 + BN_EPS)
    cout_p = _round_up(cout, 128)
    scale = jnp.zeros((1, cout_p), F32).at[0, :cout].set(s_val)
    bias = jnp.zeros((1, cout_p), F32)                 # beta = 0
    w_pad = jnp.zeros((kh * kw, cin_pad, cout_p), F32).at[:, :cin, :cout].set(
        w.reshape(kh * kw, cin, cout))
    if fmt == "tap":                                   # direct-conv weights
        return {"kh": kh, "kw": kw, "w3d": w_pad.astype(BF16),
                "scale": scale, "bias": bias}
    k_rows = _round_up(kh * kw * cin_pad, 128)         # GEMM weights, K lane-padded
    w2d = jnp.zeros((k_rows, cout_p), F32).at[:kh * kw * cin_pad, :].set(
        w_pad.reshape(kh * kw * cin_pad, cout_p)).astype(BF16)
    return {"kh": kh, "kw": kw, "w2d": w2d, "scale": scale, "bias": bias}


def make_params(key, in_ch=3, stem=16, planes=(8, 16, 32, 64), expansion=4):
    cnt = [0]

    def nk():
        cnt[0] += 1
        return jax.random.fold_in(key, cnt[0])

    params = {"conv1": _fold_conv(nk(), 7, 7, in_ch, stem, cin_pad=in_ch, fmt="gemm")}
    inplanes = stem
    strides = (1, 2, 2, 1)
    dilations = (1, 1, 1, 2)
    layers = []
    for width, s, d in zip(planes, strides, dilations):
        out = width * expansion
        block = {
            "conv1": _fold_conv(nk(), 1, 1, inplanes, width,
                                cin_pad=_round_up(inplanes, 128), fmt="gemm"),
            "conv2": _fold_conv(nk(), 3, 3, width, width,
                                cin_pad=_round_up(width, 128), fmt="tap"),
            "conv3": _fold_conv(nk(), 1, 1, width, out,
                                cin_pad=_round_up(width, 128), fmt="gemm"),
            "stride": s,
            "dilation": d,
        }
        if s != 1 or inplanes != out:
            block["down"] = _fold_conv(nk(), 1, 1, inplanes, out,
                                       cin_pad=_round_up(inplanes, 128), fmt="gemm")
        layers.append([block])     # one Bottleneck per stage (see TODO above)
        inplanes = out
    params["layers"] = layers
    params["out_ch"] = inplanes
    return params


# ---------------------------------------------------------------------------
# Forward
# ---------------------------------------------------------------------------
def bottleneck(x, blk):
    s, d = blk["stride"], blk["dilation"]
    out = conv1x1_bn(x, blk["conv1"], relu=True)
    out = conv3x3_bn(out, blk["conv2"], stride=s, dil=d, relu=True)
    if "down" in blk:
        identity = conv1x1_bn(x, blk["down"], stride=s, relu=False)
    else:
        identity = x
    # conv3 GEMM with BN + residual add + ReLU fused in the Pallas epilogue.
    return conv1x1_bn(out, blk["conv3"], relu=True, residual=identity)


def discriminator_forward(params, x_nchw):
    """Matches Discriminator.forward: returns the high-level backbone feature x."""
    x = jnp.transpose(x_nchw, (0, 2, 3, 1)).astype(BF16)       # NCHW -> NHWC, bf16
    x = stem_conv(x, params["conv1"])                          # 7x7 s2 + BN + ReLU
    x = max_pool_3x3_s2(x)
    low_level_feat = None
    for li, layer in enumerate(params["layers"]):
        for blk in layer:
            x = bottleneck(x, blk)
        if li == 0:
            low_level_feat = x    # produced by the backbone, dropped by forward()
    del low_level_feat
    x = x[..., :params["out_ch"]]                              # drop lane padding
    return jnp.transpose(x, (0, 3, 1, 2)).astype(F32)          # NHWC -> NCHW


# ---------------------------------------------------------------------------
if __name__ == "__main__":
    key = jax.random.PRNGKey(0)
    pkey, xkey = jax.random.split(key)

    params = make_params(pkey)
    x = jax.random.normal(xkey, (2, 3, 16, 16), F32)           # NCHW, like PyTorch

    fwd = jax.jit(functools.partial(discriminator_forward, params))
    out = jax.block_until_ready(fwd(x))

    # 16x16 input with output_stride 16 -> 1x1 spatial, 64*4 = 256 channels.
    assert out.shape == (2, 256, 1, 1), out.shape
    assert jnp.all(jnp.isfinite(out))
    print("KERNEL_OK")
</pallas_src>

<mosaic_0001>
module attributes {stable_mosaic.version = 11 : i64} {
  func.func @_gemm_bn_kernel(%arg0: i32, %arg1: i32, %arg2: memref<64x256xbf16, #tpu.memory_space<vmem>>, %arg3: memref<256x128xbf16, #tpu.memory_space<vmem>>, %arg4: memref<1x128xf32, #tpu.memory_space<vmem>>, %arg5: memref<1x128xf32, #tpu.memory_space<vmem>>, %arg6: memref<64x128xbf16, #tpu.memory_space<vmem>>) attributes {dimension_semantics = [#tpu.dimension_semantics<parallel>, #tpu.dimension_semantics<parallel>], iteration_bounds = array<i64: 1, 2>, scalar_prefetch = 0 : i64, scratch_operands = 0 : i64, tpu.core_type = #tpu.core_type<tc>, window_params = [{transform_indices = @transform_0, window_bounds = array<i64: 64, 256>}, {transform_indices = @transform_1, window_bounds = array<i64: 256, 128>}, {transform_indices = @transform_2, window_bounds = array<i64: 1, 128>}, {transform_indices = @transform_3, window_bounds = array<i64: 1, 128>}, {transform_indices = @transform_4, window_bounds = array<i64: 64, 128>}]} {
    %c0 = arith.constant 0 : index
    %c0_0 = arith.constant 0 : index
    %0 = vector.load %arg2[%c0, %c0_0] : memref<64x256xbf16, #tpu.memory_space<vmem>>, vector<64x256xbf16>
    %c0_1 = arith.constant 0 : index
    %c0_2 = arith.constant 0 : index
    %1 = vector.load %arg3[%c0_1, %c0_2] : memref<256x128xbf16, #tpu.memory_space<vmem>>, vector<256x128xbf16>
    %cst = arith.constant dense<0.000000e+00> : vector<64x128xf32>
    %2 = tpu.matmul %0, %1, %cst {dimension_numbers = #tpu.dot_dimension_numbers<[1], [0], [0], [1], [0, 0, 1, 1], [], []>} : vector<64x256xbf16>, vector<256x128xbf16>, vector<64x128xf32> -> vector<64x128xf32>
    %c0_3 = arith.constant 0 : index
    %c0_4 = arith.constant 0 : index
    %3 = vector.load %arg4[%c0_3, %c0_4] : memref<1x128xf32, #tpu.memory_space<vmem>>, vector<1x128xf32>
    %4 = vector.broadcast %3 : vector<1x128xf32> to vector<64x128xf32>
    %5 = arith.mulf %2, %4 : vector<64x128xf32>
    %c0_5 = arith.constant 0 : index
    %c0_6 = arith.constant 0 : index
    %6 = vector.load %arg5[%c0_5, %c0_6] : memref<1x128xf32, #tpu.memory_space<vmem>>, vector<1x128xf32>
    %7 = vector.broadcast %6 : vector<1x128xf32> to vector<64x128xf32>
    %8 = arith.addf %5, %7 : vector<64x128xf32>
    %cst_7 = arith.constant 0.000000e+00 : f32
    %9 = vector.broadcast %cst_7 : f32 to vector<64x128xf32>
    %10 = arith.maximumf %8, %9 : vector<64x128xf32>
    %11 = arith.truncf %10 : vector<64x128xf32> to vector<64x128xbf16>
    %c0_8 = arith.constant 0 : index
    %c0_9 = arith.constant 0 : index
    %12 = vector.load %arg6[%c0_8, %c0_9] : memref<64x128xbf16, #tpu.memory_space<vmem>>, vector<64x128xbf16>
    tpu.vector_store %arg6[%c0_8, %c0_9], %11 {strides = array<i32>} : memref<64x128xbf16, #tpu.memory_space<vmem>>, vector<64x128xbf16>,
    return
  }
  func.func @transform_0(%arg0: i32, %arg1: i32) -> (i32, i32) {
    %c0_i32 = arith.constant 0 : i32
    %c0_i32_0 = arith.constant 0 : i32
    return %arg1, %c0_i32 : i32, i32
  }
  func.func @transform_1(%arg0: i32, %arg1: i32) -> (i32, i32) {
    %c0_i32 = arith.constant 0 : i32
    %c0_i32_0 = arith.constant 0 : i32
    return %c0_i32, %arg0 : i32, i32
  }
  func.func @transform_2(%arg0: i32, %arg1: i32) -> (i32, i32) {
    %c0_i32 = arith.constant 0 : i32
    %c0_i32_0 = arith.constant 0 : i32
    return %c0_i32, %arg0 : i32, i32
  }
  func.func @transform_3(%arg0: i32, %arg1: i32) -> (i32, i32) {
    %c0_i32 = arith.constant 0 : i32
    %c0_i32_0 = arith.constant 0 : i32
    return %c0_i32, %arg0 : i32, i32
  }
  func.func @transform_4(%arg0: i32, %arg1: i32) -> (i32, i32) {
    %c0_i32 = arith.constant 0 : i32
    return %arg1, %arg0 : i32, i32
  }
}

module attributes {stable_mosaic.version = 11 : i64} {
  func.func @_maxpool_kernel(%arg0: i32, %arg1: memref<1x10x5x128xbf16, #tpu.memory_space<vmem>>, %arg2: memref<1x10x5x128xbf16, #tpu.memory_space<vmem>>, %arg3: memref<1x4x4x128xbf16, #tpu.memory_space<vmem>>) attributes {dimension_semantics = [#tpu.dimension_semantics<parallel>], iteration_bounds = array<i64: 2>, scalar_prefetch = 0 : i64, scratch_operands = 0 : i64, tpu.core_type = #tpu.core_type<tc>, window_params = [{transform_indices = @transform_0, window_bounds = array<i64: 1, 10, 5, 128>}, {transform_indices = @transform_1, window_bounds = array<i64: 1, 10, 5, 128>}, {transform_indices = @transform_2, window_bounds = array<i64: 1, 4, 4, 128>}]} {
    %c0 = arith.constant 0 : index
    %c0_0 = arith.constant 0 : index
    %c0_1 = arith.constant 0 : index
    %c0_2 = arith.constant 0 : index
    %0 = vector.load %arg1[%c0, %c0_0, %c0_1, %c0_2] : memref<1x10x5x128xbf16, #tpu.memory_space<vmem>>, vector<1x1x4x128xbf16>
    %1 = vector.shape_cast %0 : vector<1x1x4x128xbf16> to vector<4x128xbf16>
    %c0_3 = arith.constant 0 : index
    %c0_4 = arith.constant 0 : index
    %c0_5 = arith.constant 0 : index
    %c0_6 = arith.constant 0 : index
    %2 = vector.load %arg2[%c0_3, %c0_4, %c0_5, %c0_6] : memref<1x10x5x128xbf16, #tpu.memory_space<vmem>>, vector<1x1x4x128xbf16>
    %3 = vector.shape_cast %2 : vector<1x1x4x128xbf16> to vector<4x128xbf16>
    %4 = arith.maximumf %1, %3 : vector<4x128xbf16>
    %c0_7 = arith.constant 0 : index
    %c0_8 = arith.constant 0 : index
    %c1 = arith.constant 1 : index
    %c0_9 = arith.constant 0 : index
    %5 = vector.load %arg1[%c0_7, %c0_8, %c1, %c0_9] : memref<1x10x5x128xbf16, #tpu.memory_space<vmem>>, vector<1x1x4x128xbf16>
    %6 = vector.shape_cast %5 : vector<1x1x4x128xbf16> to vector<4x128xbf16>
    %7 = arith.maximumf %4, %6 : vector<4x128xbf16>
    %c0_10 = arith.constant 0 : index
    %c1_11 = arith.constant 1 : index
    %c0_12 = arith.constant 0 : index
    %c0_13 = arith.constant 0 : index
    %8 = vector.load %arg1[%c0_10, %c1_11, %c0_12, %c0_13] : memref<1x10x5x128xbf16, #tpu.memory_space<vmem>>, vector<1x1x4x128xbf16>
    %9 = vector.shape_cast %8 : vector<1x1x4x128xbf16> to vector<4x128xbf16>
    %10 = arith.maximumf %7, %9 : vector<4x128xbf16>
    %c0_14 = arith.constant 0 : index
    %c1_15 = arith.constant 1 : index
    %c0_16 = arith.constant 0 : index
    %c0_17 = arith.constant 0 : index
    %11 = vector.load %arg2[%c0_14, %c1_15, %c0_16, %c0_17] : memref<1x10x5x128xbf16, #tpu.memory_space<vmem>>, vector<1x1x4x128xbf16>
    %12 = vector.shape_cast %11 : vector<1x1x4x128xbf16> to vector<4x128xbf16>
    %13 = arith.maximumf %10, %12 : vector<4x128xbf16>
    %c0_18 = arith.constant 0 : index
    %c1_19 = arith.constant 1 : index
    %c1_20 = arith.constant 1 : index
    %c0_21 = arith.constant 0 : index
    %14 = vector.load %arg1[%c0_18, %c1_19, %c1_20, %c0_21] : memref<1x10x5x128xbf16, #tpu.memory_space<vmem>>, vector<1x1x4x128xbf16>
    %15 = vector.shape_cast %14 : vector<1x1x4x128xbf16> to vector<4x128xbf16>
    %16 = arith.maximumf %13, %15 : vector<4x128xbf16>
    %c0_22 = arith.constant 0 : index
    %c2 = arith.constant 2 : index
    %c0_23 = arith.constant 0 : index
    %c0_24 = arith.constant 0 : index
    %17 = vector.load %arg1[%c0_22, %c2, %c0_23, %c0_24] : memref<1x10x5x128xbf16, #tpu.memory_space<vmem>>, vector<1x1x4x128xbf16>
    %18 = vector.shape_cast %17 : vector<1x1x4x128xbf16> to vector<4x128xbf16>
    %19 = arith.maximumf %16, %18 : vector<4x128xbf16>
    %c0_25 = arith.constant 0 : index
    %c2_26 = arith.constant 2 : index
    %c0_27 = arith.constant 0 : index
    %c0_28 = arith.constant 0 : index
    %20 = vector.load %arg2[%c0_25, %c2_26, %c0_27, %c0_28] : memref<1x10x5x128xbf16, #tpu.memory_space<vmem>>, vector<1x1x4x128xbf16>
    %21 = vector.shape_cast %20 : vector<1x1x4x128xbf16> to vector<4x128xbf16>
    %22 = arith.maximumf %19, %21 : vector<4x128xbf16>
    %c0_29 = arith.constant 0 : index
    %c2_30 = arith.constant 2 : index
    %c1_31 = arith.constant 1 : index
    %c0_32 = arith.constant 0 : index
    %23 = vector.load %arg1[%c0_29, %c2_30, %c1_31, %c0_32] : memref<1x10x5x128xbf16, #tpu.memory_space<vmem>>, vector<1x1x4x128xbf16>
    %24 = vector.shape_cast %23 : vector<1x1x4x128xbf16> to vector<4x128xbf16>
    %25 = arith.maximumf %22, %24 : vector<4x128xbf16>
    %c0_33 = arith.constant 0 : index
    %c0_34 = arith.constant 0 : index
    %c0_35 = arith.constant 0 : index
    %c0_36 = arith.constant 0 : index
    %26 = vector.load %arg3[%c0_33, %c0_34, %c0_35, %c0_36] : memref<1x4x4x128xbf16, #tpu.memory_space<vmem>>, vector<1x1x4x128xbf16>
    %27 = vector.shape_cast %26 : vector<1x1x4x128xbf16> to vector<4x128xbf16>
    %28 = vector.shape_cast %25 : vector<4x128xbf16> to vector<1x1x4x128xbf16>
    tpu.vector_store %arg3[%c0_33, %c0_34, %c0_35, %c0_36], %28 {strides = array<i32>} : memref<1x4x4x128xbf16, #tpu.memory_space<vmem>>, vector<1x1x4x128xbf16>,
    %c0_37 = arith.constant 0 : index
    %c2_38 = arith.constant 2 : index
    %c0_39 = arith.constant 0 : index
    %c0_40 = arith.constant 0 : index
    %29 = vector.load %arg1[%c0_37, %c2_38, %c0_39, %c0_40] : memref<1x10x5x128xbf16, #tpu.memory_space<vmem>>, vector<1x1x4x128xbf16>
    %30 = vector.shape_cast %29 : vector<1x1x4x128xbf16> to vector<4x128xbf16>
    %c0_41 = arith.constant 0 : index
    %c2_42 = arith.constant 2 : index
    %c0_43 = arith.constant 0 : index
    %c0_44 = arith.constant 0 : index
    %31 = vector.load %arg2[%c0_41, %c2_42, %c0_43, %c0_44] : memref<1x10x5x128xbf16, #tpu.memory_space<vmem>>, vector<1x1x4x128xbf16>
    %32 = vector.shape_cast %31 : vector<1x1x4x128xbf16> to vector<4x128xbf16>
    %33 = arith.maximumf %30, %32 : vector<4x128xbf16>
    %c0_45 = arith.constant 0 : index
    %c2_46 = arith.constant 2 : index
    %c1_47 = arith.constant 1 : index
    %c0_48 = arith.constant 0 : index
    %34 = vector.load %arg1[%c0_45, %c2_46, %c1_47, %c0_48] : memref<1x10x5x128xbf16, #tpu.memory_space<vmem>>, vector<1x1x4x128xbf16>
    %35 = vector.shape_cast %34 : vector<1x1x4x128xbf16> to vector<4x128xbf16>
    %36 = arith.maximumf %33, %35 : vector<4x128xbf16>
    %c0_49 = arith.constant 0 : index
    %c3 = arith.constant 3 : index
    %c0_50 = arith.constant 0 : index
    %c0_51 = arith.constant 0 : index
    %37 = vector.load %arg1[%c0_49, %c3, %c0_50, %c0_51] : memref<1x10x5x128xbf16, #tpu.memory_space<vmem>>, vector<1x1x4x128xbf16>
    %38 = vector.shape_cast %37 : vector<1x1x4x128xbf16> to vector<4x128xbf16>
    %39 = arith.maximumf %36, %38 : vector<4x128xbf16>
    %c0_52 = arith.constant 0 : index
    %c3_53 = arith.constant 3 : index
    %c0_54 = arith.constant 0 : index
    %c0_55 = arith.constant 0 : index
    %40 = vector.load %arg2[%c0_52, %c3_53, %c0_54, %c0_55] : memref<1x10x5x128xbf16, #tpu.memory_space<vmem>>, vector<1x1x4x128xbf16>
    %41 = vector.shape_cast %40 : vector<1x1x4x128xbf16> to vector<4x128xbf16>
    %42 = arith.maximumf %39, %41 : vector<4x128xbf16>
    %c0_56 = arith.constant 0 : index
    %c3_57 = arith.constant 3 : index
    %c1_58 = arith.constant 1 : index
    %c0_59 = arith.constant 0 : index
    %43 = vector.load %arg1[%c0_56, %c3_57, %c1_58, %c0_59] : memref<1x10x5x128xbf16, #tpu.memory_space<vmem>>, vector<1x1x4x128xbf16>
    %44 = vector.shape_cast %43 : vector<1x1x4x128xbf16> to vector<4x128xbf16>
    %45 = arith.maximumf %42, %44 : vector<4x128xbf16>
    %c0_60 = arith.constant 0 : index
    %c4 = arith.constant 4 : index
    %c0_61 = arith.constant 0 : index
    %c0_62 = arith.constant 0 : index
    %46 = vector.load %arg1[%c0_60, %c4, %c0_61, %c0_62] : memref<1x10x5x128xbf16, #tpu.memory_space<vmem>>, vector<1x1x4x128xbf16>
    %47 = vector.shape_cast %46 : vector<1x1x4x128xbf16> to vector<4x128xbf16>
    %48 = arith.maximumf %45, %47 : vector<4x128xbf16>
    %c0_63 = arith.constant 0 : index
    %c4_64 = arith.constant 4 : index
    %c0_65 = arith.constant 0 : index
    %c0_66 = arith.constant 0 : index
    %49 = vector.load %arg2[%c0_63, %c4_64, %c0_65, %c0_66] : memref<1x10x5x128xbf16, #tpu.memory_space<vmem>>, vector<1x1x4x128xbf16>
    %50 = vector.shape_cast %49 : vector<1x1x4x128xbf16> to vector<4x128xbf16>
    %51 = arith.maximumf %48, %50 : vector<4x128xbf16>
    %c0_67 = arith.constant 0 : index
    %c4_68 = arith.constant 4 : index
    %c1_69 = arith.constant 1 : index
    %c0_70 = arith.constant 0 : index
    %52 = vector.load %arg1[%c0_67, %c4_68, %c1_69, %c0_70] : memref<1x10x5x128xbf16, #tpu.memory_space<vmem>>, vector<1x1x4x128xbf16>
    %53 = vector.shape_cast %52 : vector<1x1x4x128xbf16> to vector<4x128xbf16>
    %54 = arith.maximumf %51, %53 : vector<4x128xbf16>
    %c0_71 = arith.constant 0 : index
    %c1_72 = arith.constant 1 : index
    %c0_73 = arith.constant 0 : index
    %c0_74 = arith.constant 0 : index
    %55 = vector.load %arg3[%c0_71, %c1_72, %c0_73, %c0_74] : memref<1x4x4x128xbf16, #tpu.memory_space<vmem>>, vector<1x1x4x128xbf16>
    %56 = vector.shape_cast %55 : vector<1x1x4x128xbf16> to vector<4x128xbf16>
    %57 = vector.shape_cast %54 : vector<4x128xbf16> to vector<1x1x4x128xbf16>
    tpu.vector_store %arg3[%c0_71, %c1_72, %c0_73, %c0_74], %57 {strides = array<i32>} : memref<1x4x4x128xbf16, #tpu.memory_space<vmem>>, vector<1x1x4x128xbf16>,
    %c0_75 = arith.constant 0 : index
    %c4_76 = arith.constant 4 : index
    %c0_77 = arith.constant 0 : index
    %c0_78 = arith.constant 0 : index
    %58 = vector.load %arg1[%c0_75, %c4_76, %c0_77, %c0_78] : memref<1x10x5x128xbf16, #tpu.memory_space<vmem>>, vector<1x1x4x128xbf16>
    %59 = vector.shape_cast %58 : vector<1x1x4x128xbf16> to vector<4x128xbf16>
    %c0_79 = arith.constant 0 : index
    %c4_80 = arith.constant 4 : index
    %c0_81 = arith.constant 0 : index
    %c0_82 = arith.constant 0 : index
    %60 = vector.load %arg2[%c0_79, %c4_80, %c0_81, %c0_82] : memref<1x10x5x128xbf16, #tpu.memory_space<vmem>>, vector<1x1x4x128xbf16>
    %61 = vector.shape_cast %60 : vector<1x1x4x128xbf16> to vector<4x128xbf16>
    %62 = arith.maximumf %59, %61 : vector<4x128xbf16>
    %c0_83 = arith.constant 0 : index
    %c4_84 = arith.constant 4 : index
    %c1_85 = arith.constant 1 : index
    %c0_86 = arith.constant 0 : index
    %63 = vector.load %arg1[%c0_83, %c4_84, %c1_85, %c0_86] : memref<1x10x5x128xbf16, #tpu.memory_space<vmem>>, vector<1x1x4x128xbf16>
    %64 = vector.shape_cast %63 : vector<1x1x4x128xbf16> to vector<4x128xbf16>
    %65 = arith.maximumf %62, %64 : vector<4x128xbf16>
    %c0_87 = arith.constant 0 : index
    %c5 = arith.constant 5 : index
    %c0_88 = arith.constant 0 : index
    %c0_89 = arith.constant 0 : index
    %66 = vector.load %arg1[%c0_87, %c5, %c0_88, %c0_89] : memref<1x10x5x128xbf16, #tpu.memory_space<vmem>>, vector<1x1x4x128xbf16>
    %67 = vector.shape_cast %66 : vector<1x1x4x128xbf16> to vector<4x128xbf16>
    %68 = arith.maximumf %65, %67 : vector<4x128xbf16>
    %c0_90 = arith.constant 0 : index
    %c5_91 = arith.constant 5 : index
    %c0_92 = arith.constant 0 : index
    %c0_93 = arith.constant 0 : index
    %69 = vector.load %arg2[%c0_90, %c5_91, %c0_92, %c0_93] : memref<1x10x5x128xbf16, #tpu.memory_space<vmem>>, vector<1x1x4x128xbf16>
    %70 = vector.shape_cast %69 : vector<1x1x4x128xbf16> to vector<4x128xbf16>
    %71 = arith.maximumf %68, %70 : vector<4x128xbf16>
    %c0_94 = arith.constant 0 : index
    %c5_95 = arith.constant 5 : index
    %c1_96 = arith.constant 1 : index
    %c0_97 = arith.constant 0 : index
    %72 = vector.load %arg1[%c0_94, %c5_95, %c1_96, %c0_97] : memref<1x10x5x128xbf16, #tpu.memory_space<vmem>>, vector<1x1x4x128xbf16>
    %73 = vector.shape_cast %72 : vector<1x1x4x128xbf16> to vector<4x128xbf16>
    %74 = arith.maximumf %71, %73 : vector<4x128xbf16>
    %c0_98 = arith.constant 0 : index
    %c6 = arith.constant 6 : index
    %c0_99 = arith.constant 0 : index
    %c0_100 = arith.constant 0 : index
    %75 = vector.load %arg1[%c0_98, %c6, %c0_99, %c0_100] : memref<1x10x5x128xbf16, #tpu.memory_space<vmem>>, vector<1x1x4x128xbf16>
    %76 = vector.shape_cast %75 : vector<1x1x4x128xbf16> to vector<4x128xbf16>
    %77 = arith.maximumf %74, %76 : vector<4x128xbf16>
    %c0_101 = arith.constant 0 : index
    %c6_102 = arith.constant 6 : index
    %c0_103 = arith.constant 0 : index
    %c0_104 = arith.constant 0 : index
    %78 = vector.load %arg2[%c0_101, %c6_102, %c0_103, %c0_104] : memref<1x10x5x128xbf16, #tpu.memory_space<vmem>>, vector<1x1x4x128xbf16>
    %79 = vector.shape_cast %78 : vector<1x1x4x128xbf16> to vector<4x128xbf16>
    %80 = arith.maximumf %77, %79 : vector<4x128xbf16>
    %c0_105 = arith.constant 0 : index
    %c6_106 = arith.constant 6 : index
    %c1_107 = arith.constant 1 : index
    %c0_108 = arith.constant 0 : index
    %81 = vector.load %arg1[%c0_105, %c6_106, %c1_107, %c0_108] : memref<1x10x5x128xbf16, #tpu.memory_space<vmem>>, vector<1x1x4x128xbf16>
    %82 = vector.shape_cast %81 : vector<1x1x4x128xbf16> to vector<4x128xbf16>
    %83 = arith.maximumf %80, %82 : vector<4x128xbf16>
    %c0_109 = arith.constant 0 : index
    %c2_110 = arith.constant 2 : index
    %c0_111 = arith.constant 0 : index
    %c0_112 = arith.constant 0 : index
    %84 = vector.load %arg3[%c0_109, %c2_110, %c0_111, %c0_112] : memref<1x4x4x128xbf16, #tpu.memory_space<vmem>>, vector<1x1x4x128xbf16>
    %85 = vector.shape_cast %84 : vector<1x1x4x128xbf16> to vector<4x128xbf16>
    %86 = vector.shape_cast %83 : vector<4x128xbf16> to vector<1x1x4x128xbf16>
    tpu.vector_store %arg3[%c0_109, %c2_110, %c0_111, %c0_112], %86 {strides = array<i32>} : memref<1x4x4x128xbf16, #tpu.memory_space<vmem>>, vector<1x1x4x128xbf16>,
    %c0_113 = arith.constant 0 : index
    %c6_114 = arith.constant 6 : index
    %c0_115 = arith.constant 0 : index
    %c0_116 = arith.constant 0 : index
    %87 = vector.load %arg1[%c0_113, %c6_114, %c0_115, %c0_116] : memref<1x10x5x128xbf16, #tpu.memory_space<vmem>>, vector<1x1x4x128xbf16>
    %88 = vector.shape_cast %87 : vector<1x1x4x128xbf16> to vector<4x128xbf16>
    %c0_117 = arith.constant 0 : index
    %c6_118 = arith.constant 6 : index
    %c0_119 = arith.constant 0 : index
    %c0_120 = arith.constant 0 : index
    %89 = vector.load %arg2[%c0_117, %c6_118, %c0_119, %c0_120] : memref<1x10x5x128xbf16, #tpu.memory_space<vmem>>, vector<1x1x4x128xbf16>
    %90 = vector.shape_cast %89 : vector<1x1x4x128xbf16> to vector<4x128xbf16>
    %91 = arith.maximumf %88, %90 : vector<4x128xbf16>
    %c0_121 = arith.constant 0 : index
    %c6_122 = arith.constant 6 : index
    %c1_123 = arith.constant 1 : index
    %c0_124 = arith.constant 0 : index
    %92 = vector.load %arg1[%c0_121, %c6_122, %c1_123, %c0_124] : memref<1x10x5x128xbf16, #tpu.memory_space<vmem>>, vector<1x1x4x128xbf16>
    %93 = vector.shape_cast %92 : vector<1x1x4x128xbf16> to vector<4x128xbf16>
    %94 = arith.maximumf %91, %93 : vector<4x128xbf16>
    %c0_125 = arith.constant 0 : index
    %c7 = arith.constant 7 : index
    %c0_126 = arith.constant 0 : index
    %c0_127 = arith.constant 0 : index
    %95 = vector.load %arg1[%c0_125, %c7, %c0_126, %c0_127] : memref<1x10x5x128xbf16, #tpu.memory_space<vmem>>, vector<1x1x4x128xbf16>
    %96 = vector.shape_cast %95 : vector<1x1x4x128xbf16> to vector<4x128xbf16>
    %97 = arith.maximumf %94, %96 : vector<4x128xbf16>
    %c0_128 = arith.constant 0 : index
    %c7_129 = arith.constant 7 : index
    %c0_130 = arith.constant 0 : index
    %c0_131 = arith.constant 0 : index
    %98 = vector.load %arg2[%c0_128, %c7_129, %c0_130, %c0_131] : memref<1x10x5x128xbf16, #tpu.memory_space<vmem>>, vector<1x1x4x128xbf16>
    %99 = vector.shape_cast %98 : vector<1x1x4x128xbf16> to vector<4x128xbf16>
    %100 = arith.maximumf %97, %99 : vector<4x128xbf16>
    %c0_132 = arith.constant 0 : index
    %c7_133 = arith.constant 7 : index
    %c1_134 = arith.constant 1 : index
    %c0_135 = arith.constant 0 : index
    %101 = vector.load %arg1[%c0_132, %c7_133, %c1_134, %c0_135] : memref<1x10x5x128xbf16, #tpu.memory_space<vmem>>, vector<1x1x4x128xbf16>
    %102 = vector.shape_cast %101 : vector<1x1x4x128xbf16> to vector<4x128xbf16>
    %103 = arith.maximumf %100, %102 : vector<4x128xbf16>
    %c0_136 = arith.constant 0 : index
    %c8 = arith.constant 8 : index
    %c0_137 = arith.constant 0 : index
    %c0_138 = arith.constant 0 : index
    %104 = vector.load %arg1[%c0_136, %c8, %c0_137, %c0_138] : memref<1x10x5x128xbf16, #tpu.memory_space<vmem>>, vector<1x1x4x128xbf16>
    %105 = vector.shape_cast %104 : vector<1x1x4x128xbf16> to vector<4x128xbf16>
    %106 = arith.maximumf %103, %105 : vector<4x128xbf16>
    %c0_139 = arith.constant 0 : index
    %c8_140 = arith.constant 8 : index
    %c0_141 = arith.constant 0 : index
    %c0_142 = arith.constant 0 : index
    %107 = vector.load %arg2[%c0_139, %c8_140, %c0_141, %c0_142] : memref<1x10x5x128xbf16, #tpu.memory_space<vmem>>, vector<1x1x4x128xbf16>
    %108 = vector.shape_cast %107 : vector<1x1x4x128xbf16> to vector<4x128xbf16>
    %109 = arith.maximumf %106, %108 : vector<4x128xbf16>
    %c0_143 = arith.constant 0 : index
    %c8_144 = arith.constant 8 : index
    %c1_145 = arith.constant 1 : index
    %c0_146 = arith.constant 0 : index
    %110 = vector.load %arg1[%c0_143, %c8_144, %c1_145, %c0_146] : memref<1x10x5x128xbf16, #tpu.memory_space<vmem>>, vector<1x1x4x128xbf16>
    %111 = vector.shape_cast %110 : vector<1x1x4x128xbf16> to vector<4x128xbf16>
    %112 = arith.maximumf %109, %111 : vector<4x128xbf16>
    %c0_147 = arith.constant 0 : index
    %c3_148 = arith.constant 3 : index
    %c0_149 = arith.constant 0 : index
    %c0_150 = arith.constant 0 : index
    %113 = vector.load %arg3[%c0_147, %c3_148, %c0_149, %c0_150] : memref<1x4x4x128xbf16, #tpu.memory_space<vmem>>, vector<1x1x4x128xbf16>
    %114 = vector.shape_cast %113 : vector<1x1x4x128xbf16> to vector<4x128xbf16>
    %115 = vector.shape_cast %112 : vector<4x128xbf16> to vector<1x1x4x128xbf16>
    tpu.vector_store %arg3[%c0_147, %c3_148, %c0_149, %c0_150], %115 {strides = array<i32>} : memref<1x4x4x128xbf16, #tpu.memory_space<vmem>>, vector<1x1x4x128xbf16>,
    return
  }
  func.func @transform_0(%arg0: i32) -> (i32, i32, i32, i32) {
    %c0_i32 = arith.constant 0 : i32
    %c0_i32_0 = arith.constant 0 : i32
    %c0_i32_1 = arith.constant 0 : i32
    %c0_i32_2 = arith.constant 0 : i32
    return %arg0, %c0_i32, %c0_i32_0, %c0_i32_1 : i32, i32, i32, i32
  }
  func.func @transform_1(%arg0: i32) -> (i32, i32, i32, i32) {
    %c0_i32 = arith.constant 0 : i32
    %c0_i32_0 = arith.constant 0 : i32
    %c0_i32_1 = arith.constant 0 : i32
    %c0_i32_2 = arith.constant 0 : i32
    return %arg0, %c0_i32, %c0_i32_0, %c0_i32_1 : i32, i32, i32, i32
  }
  func.func @transform_2(%arg0: i32) -> (i32, i32, i32, i32) {
    %c0_i32 = arith.constant 0 : i32
    %c0_i32_0 = arith.constant 0 : i32
    %c0_i32_1 = arith.constant 0 : i32
    %c0_i32_2 = arith.constant 0 : i32
    return %arg0, %c0_i32, %c0_i32_0, %c0_i32_1 : i32, i32, i32, i32
  }
}

module attributes {stable_mosaic.version = 11 : i64} {
  func.func @_gemm_bn_kernel(%arg0: i32, %arg1: i32, %arg2: memref<16x128xbf16, #tpu.memory_space<vmem>>, %arg3: memref<128x128xbf16, #tpu.memory_space<vmem>>, %arg4: memref<1x128xf32, #tpu.memory_space<vmem>>, %arg5: memref<1x128xf32, #tpu.memory_space<vmem>>, %arg6: memref<16x128xbf16, #tpu.memory_space<vmem>>) attributes {dimension_semantics = [#tpu.dimension_semantics<parallel>, #tpu.dimension_semantics<parallel>], iteration_bounds = array<i64: 1, 2>, scalar_prefetch = 0 : i64, scratch_operands = 0 : i64, tpu.core_type = #tpu.core_type<tc>, window_params = [{transform_indices = @transform_0, window_bounds = array<i64: 16, 128>}, {transform_indices = @transform_1, window_bounds = array<i64: 128, 128>}, {transform_indices = @transform_2, window_bounds = array<i64: 1, 128>}, {transform_indices = @transform_3, window_bounds = array<i64: 1, 128>}, {transform_indices = @transform_4, window_bounds = array<i64: 16, 128>}]} {
    %c0 = arith.constant 0 : index
    %c0_0 = arith.constant 0 : index
    %0 = vector.load %arg2[%c0, %c0_0] : memref<16x128xbf16, #tpu.memory_space<vmem>>, vector<16x128xbf16>
    %c0_1 = arith.constant 0 : index
    %c0_2 = arith.constant 0 : index
    %1 = vector.load %arg3[%c0_1, %c0_2] : memref<128x128xbf16, #tpu.memory_space<vmem>>, vector<128x128xbf16>
    %cst = arith.constant dense<0.000000e+00> : vector<16x128xf32>
    %2 = tpu.matmul %0, %1, %cst {dimension_numbers = #tpu.dot_dimension_numbers<[1], [0], [0], [1], [0, 0, 1, 1], [], []>} : vector<16x128xbf16>, vector<128x128xbf16>, vector<16x128xf32> -> vector<16x128xf32>
    %c0_3 = arith.constant 0 : index
    %c0_4 = arith.constant 0 : index
    %3 = vector.load %arg4[%c0_3, %c0_4] : memref<1x128xf32, #tpu.memory_space<vmem>>, vector<1x128xf32>
    %4 = vector.broadcast %3 : vector<1x128xf32> to vector<16x128xf32>
    %5 = arith.mulf %2, %4 : vector<16x128xf32>
    %c0_5 = arith.constant 0 : index
    %c0_6 = arith.constant 0 : index
    %6 = vector.load %arg5[%c0_5, %c0_6] : memref<1x128xf32, #tpu.memory_space<vmem>>, vector<1x128xf32>
    %7 = vector.broadcast %6 : vector<1x128xf32> to vector<16x128xf32>
    %8 = arith.addf %5, %7 : vector<16x128xf32>
    %cst_7 = arith.constant 0.000000e+00 : f32
    %9 = vector.broadcast %cst_7 : f32 to vector<16x128xf32>
    %10 = arith.maximumf %8, %9 : vector<16x128xf32>
    %11 = arith.truncf %10 : vector<16x128xf32> to vector<16x128xbf16>
    %c0_8 = arith.constant 0 : index
    %c0_9 = arith.constant 0 : index
    %12 = vector.load %arg6[%c0_8, %c0_9] : memref<16x128xbf16, #tpu.memory_space<vmem>>, vector<16x128xbf16>
    tpu.vector_store %arg6[%c0_8, %c0_9], %11 {strides = array<i32>} : memref<16x128xbf16, #tpu.memory_space<vmem>>, vector<16x128xbf16>,
    return
  }
  func.func @transform_0(%arg0: i32, %arg1: i32) -> (i32, i32) {
    %c0_i32 = arith.constant 0 : i32
    %c0_i32_0 = arith.constant 0 : i32
    return %arg1, %c0_i32 : i32, i32
  }
  func.func @transform_1(%arg0: i32, %arg1: i32) -> (i32, i32) {
    %c0_i32 = arith.constant 0 : i32
    %c0_i32_0 = arith.constant 0 : i32
    return %c0_i32, %arg0 : i32, i32
  }
  func.func @transform_2(%arg0: i32, %arg1: i32) -> (i32, i32) {
    %c0_i32 = arith.constant 0 : i32
    %c0_i32_0 = arith.constant 0 : i32
    return %c0_i32, %arg0 : i32, i32
  }
  func.func @transform_3(%arg0: i32, %arg1: i32) -> (i32, i32) {
    %c0_i32 = arith.constant 0 : i32
    %c0_i32_0 = arith.constant 0 : i32
    return %c0_i32, %arg0 : i32, i32
  }
  func.func @transform_4(%arg0: i32, %arg1: i32) -> (i32, i32) {
    %c0_i32 = arith.constant 0 : i32
    return %arg1, %arg0 : i32, i32
  }
}

module attributes {stable_mosaic.version = 11 : i64} {
  func.func @_direct_conv_kernel(%arg0: i32, %arg1: i32, %arg2: memref<1x6x6x128xbf16, #tpu.memory_space<vmem>>, %arg3: memref<9x128x128xbf16, #tpu.memory_space<vmem>>, %arg4: memref<1x128xf32, #tpu.memory_space<vmem>>, %arg5: memref<1x128xf32, #tpu.memory_space<vmem>>, %arg6: memref<1x4x4x128xbf16, #tpu.memory_space<vmem>>) attributes {dimension_semantics = [#tpu.dimension_semantics<parallel>, #tpu.dimension_semantics<parallel>], iteration_bounds = array<i64: 2, 1>, scalar_prefetch = 0 : i64, scratch_operands = 0 : i64, tpu.core_type = #tpu.core_type<tc>, window_params = [{transform_indices = @transform_0, window_bounds = array<i64: 1, 6, 6, 128>}, {transform_indices = @transform_1, window_bounds = array<i64: 9, 128, 128>}, {transform_indices = @transform_2, window_bounds = array<i64: 1, 128>}, {transform_indices = @transform_3, window_bounds = array<i64: 1, 128>}, {transform_indices = @transform_4, window_bounds = array<i64: 1, 4, 4, 128>}]} {
    %c0 = arith.constant 0 : index
    %c0_0 = arith.constant 0 : index
    %0 = vector.load %arg4[%c0, %c0_0] : memref<1x128xf32, #tpu.memory_space<vmem>>, vector<1x128xf32>
    %c0_1 = arith.constant 0 : index
    %c0_2 = arith.constant 0 : index
    %1 = vector.load %arg5[%c0_1, %c0_2] : memref<1x128xf32, #tpu.memory_space<vmem>>, vector<1x128xf32>
    %cst = arith.constant 0.000000e+00 : f32
    %2 = vector.broadcast %cst : f32 to vector<4x128xf32>
    %c0_3 = arith.constant 0 : index
    %c0_4 = arith.constant 0 : index
    %c0_5 = arith.constant 0 : index
    %c0_6 = arith.constant 0 : index
    %3 = vector.load %arg2[%c0_3, %c0_4, %c0_5, %c0_6] : memref<1x6x6x128xbf16, #tpu.memory_space<vmem>>, vector<1x1x4x128xbf16>
    %4 = vector.shape_cast %3 : vector<1x1x4x128xbf16> to vector<4x128xbf16>
    %c0_7 = arith.constant 0 : index
    %c0_8 = arith.constant 0 : index
    %c0_9 = arith.constant 0 : index
    %5 = vector.load %arg3[%c0_7, %c0_8, %c0_9] : memref<9x128x128xbf16, #tpu.memory_space<vmem>>, vector<1x128x128xbf16>
    %6 = vector.shape_cast %5 : vector<1x128x128xbf16> to vector<128x128xbf16>
    %cst_10 = arith.constant dense<0.000000e+00> : vector<4x128xf32>
    %7 = tpu.matmul %4, %6, %cst_10 {dimension_numbers = #tpu.dot_dimension_numbers<[1], [0], [0], [1], [0, 0, 1, 1], [], []>} : vector<4x128xbf16>, vector<128x128xbf16>, vector<4x128xf32> -> vector<4x128xf32>
    %8 = arith.addf %2, %7 : vector<4x128xf32>
    %c0_11 = arith.constant 0 : index
    %c0_12 = arith.constant 0 : index
    %c1 = arith.constant 1 : index
    %c0_13 = arith.constant 0 : index
    %9 = vector.load %arg2[%c0_11, %c0_12, %c1, %c0_13] : memref<1x6x6x128xbf16, #tpu.memory_space<vmem>>, vector<1x1x4x128xbf16>
    %10 = vector.shape_cast %9 : vector<1x1x4x128xbf16> to vector<4x128xbf16>
    %c1_14 = arith.constant 1 : index
    %c0_15 = arith.constant 0 : index
    %c0_16 = arith.constant 0 : index
    %11 = vector.load %arg3[%c1_14, %c0_15, %c0_16] : memref<9x128x128xbf16, #tpu.memory_space<vmem>>, vector<1x128x128xbf16>
    %12 = vector.shape_cast %11 : vector<1x128x128xbf16> to vector<128x128xbf16>
    %cst_17 = arith.constant dense<0.000000e+00> : vector<4x128xf32>
    %13 = tpu.matmul %10, %12, %cst_17 {dimension_numbers = #tpu.dot_dimension_numbers<[1], [0], [0], [1], [0, 0, 1, 1], [], []>} : vector<4x128xbf16>, vector<128x128xbf16>, vector<4x128xf32> -> vector<4x128xf32>
    %14 = arith.addf %8, %13 : vector<4x128xf32>
    %c0_18 = arith.constant 0 : index
    %c0_19 = arith.constant 0 : index
    %c2 = arith.constant 2 : index
    %c0_20 = arith.constant 0 : index
    %15 = vector.load %arg2[%c0_18, %c0_19, %c2, %c0_20] : memref<1x6x6x128xbf16, #tpu.memory_space<vmem>>, vector<1x1x4x128xbf16>
    %16 = vector.shape_cast %15 : vector<1x1x4x128xbf16> to vector<4x128xbf16>
    %c2_21 = arith.constant 2 : index
    %c0_22 = arith.constant 0 : index
    %c0_23 = arith.constant 0 : index
    %17 = vector.load %arg3[%c2_21, %c0_22, %c0_23] : memref<9x128x128xbf16, #tpu.memory_space<vmem>>, vector<1x128x128xbf16>
    %18 = vector.shape_cast %17 : vector<1x128x128xbf16> to vector<128x128xbf16>
    %cst_24 = arith.constant dense<0.000000e+00> : vector<4x128xf32>
    %19 = tpu.matmul %16, %18, %cst_24 {dimension_numbers = #tpu.dot_dimension_numbers<[1], [0], [0], [1], [0, 0, 1, 1], [], []>} : vector<4x128xbf16>, vector<128x128xbf16>, vector<4x128xf32> -> vector<4x128xf32>
    %20 = arith.addf %14, %19 : vector<4x128xf32>
    %c0_25 = arith.constant 0 : index
    %c1_26 = arith.constant 1 : index
    %c0_27 = arith.constant 0 : index
    %c0_28 = arith.constant 0 : index
    %21 = vector.load %arg2[%c0_25, %c1_26, %c0_27, %c0_28] : memref<1x6x6x128xbf16, #tpu.memory_space<vmem>>, vector<1x1x4x128xbf16>
    %22 = vector.shape_cast %21 : vector<1x1x4x128xbf16> to vector<4x128xbf16>
    %c3 = arith.constant 3 : index
    %c0_29 = arith.constant 0 : index
    %c0_30 = arith.constant 0 : index
    %23 = vector.load %arg3[%c3, %c0_29, %c0_30] : memref<9x128x128xbf16, #tpu.memory_space<vmem>>, vector<1x128x128xbf16>
    %24 = vector.shape_cast %23 : vector<1x128x128xbf16> to vector<128x128xbf16>
    %cst_31 = arith.constant dense<0.000000e+00> : vector<4x128xf32>
    %25 = tpu.matmul %22, %24, %cst_31 {dimension_numbers = #tpu.dot_dimension_numbers<[1], [0], [0], [1], [0, 0, 1, 1], [], []>} : vector<4x128xbf16>, vector<128x128xbf16>, vector<4x128xf32> -> vector<4x128xf32>
    %26 = arith.addf %20, %25 : vector<4x128xf32>
    %c0_32 = arith.constant 0 : index
    %c1_33 = arith.constant 1 : index
    %c1_34 = arith.constant 1 : index
    %c0_35 = arith.constant 0 : index
    %27 = vector.load %arg2[%c0_32, %c1_33, %c1_34, %c0_35] : memref<1x6x6x128xbf16, #tpu.memory_space<vmem>>, vector<1x1x4x128xbf16>
    %28 = vector.shape_cast %27 : vector<1x1x4x128xbf16> to vector<4x128xbf16>
    %c4 = arith.constant 4 : index
    %c0_36 = arith.constant 0 : index
    %c0_37 = arith.constant 0 : index
    %29 = vector.load %arg3[%c4, %c0_36, %c0_37] : memref<9x128x128xbf16, #tpu.memory_space<vmem>>, vector<1x128x128xbf16>
    %30 = vector.shape_cast %29 : vector<1x128x128xbf16> to vector<128x128xbf16>
    %cst_38 = arith.constant dense<0.000000e+00> : vector<4x128xf32>
    %31 = tpu.matmul %28, %30, %cst_38 {dimension_numbers = #tpu.dot_dimension_numbers<[1], [0], [0], [1], [0, 0, 1, 1], [], []>} : vector<4x128xbf16>, vector<128x128xbf16>, vector<4x128xf32> -> vector<4x128xf32>
    %32 = arith.addf %26, %31 : vector<4x128xf32>
    %c0_39 = arith.constant 0 : index
    %c1_40 = arith.constant 1 : index
    %c2_41 = arith.constant 2 : index
    %c0_42 = arith.constant 0 : index
    %33 = vector.load %arg2[%c0_39, %c1_40, %c2_41, %c0_42] : memref<1x6x6x128xbf16, #tpu.memory_space<vmem>>, vector<1x1x4x128xbf16>
    %34 = vector.shape_cast %33 : vector<1x1x4x128xbf16> to vector<4x128xbf16>
    %c5 = arith.constant 5 : index
    %c0_43 = arith.constant 0 : index
    %c0_44 = arith.constant 0 : index
    %35 = vector.load %arg3[%c5, %c0_43, %c0_44] : memref<9x128x128xbf16, #tpu.memory_space<vmem>>, vector<1x128x128xbf16>
    %36 = vector.shape_cast %35 : vector<1x128x128xbf16> to vector<128x128xbf16>
    %cst_45 = arith.constant dense<0.000000e+00> : vector<4x128xf32>
    %37 = tpu.matmul %34, %36, %cst_45 {dimension_numbers = #tpu.dot_dimension_numbers<[1], [0], [0], [1], [0, 0, 1, 1], [], []>} : vector<4x128xbf16>, vector<128x128xbf16>, vector<4x128xf32> -> vector<4x128xf32>
    %38 = arith.addf %32, %37 : vector<4x128xf32>
    %c0_46 = arith.constant 0 : index
    %c2_47 = arith.constant 2 : index
    %c0_48 = arith.constant 0 : index
    %c0_49 = arith.constant 0 : index
    %39 = vector.load %arg2[%c0_46, %c2_47, %c0_48, %c0_49] : memref<1x6x6x128xbf16, #tpu.memory_space<vmem>>, vector<1x1x4x128xbf16>
    %40 = vector.shape_cast %39 : vector<1x1x4x128xbf16> to vector<4x128xbf16>
    %c6 = arith.constant 6 : index
    %c0_50 = arith.constant 0 : index
    %c0_51 = arith.constant 0 : index
    %41 = vector.load %arg3[%c6, %c0_50, %c0_51] : memref<9x128x128xbf16, #tpu.memory_space<vmem>>, vector<1x128x128xbf16>
    %42 = vector.shape_cast %41 : vector<1x128x128xbf16> to vector<128x128xbf16>
    %cst_52 = arith.constant dense<0.000000e+00> : vector<4x128xf32>
    %43 = tpu.matmul %40, %42, %cst_52 {dimension_numbers = #tpu.dot_dimension_numbers<[1], [0], [0], [1], [0, 0, 1, 1], [], []>} : vector<4x128xbf16>, vector<128x128xbf16>, vector<4x128xf32> -> vector<4x128xf32>
    %44 = arith.addf %38, %43 : vector<4x128xf32>
    %c0_53 = arith.constant 0 : index
    %c2_54 = arith.constant 2 : index
    %c1_55 = arith.constant 1 : index
    %c0_56 = arith.constant 0 : index
    %45 = vector.load %arg2[%c0_53, %c2_54, %c1_55, %c0_56] : memref<1x6x6x128xbf16, #tpu.memory_space<vmem>>, vector<1x1x4x128xbf16>
    %46 = vector.shape_cast %45 : vector<1x1x4x128xbf16> to vector<4x128xbf16>
    %c7 = arith.constant 7 : index
    %c0_57 = arith.constant 0 : index
    %c0_58 = arith.constant 0 : index
    %47 = vector.load %arg3[%c7, %c0_57, %c0_58] : memref<9x128x128xbf16, #tpu.memory_space<vmem>>, vector<1x128x128xbf16>
    %48 = vector.shape_cast %47 : vector<1x128x128xbf16> to vector<128x128xbf16>
    %cst_59 = arith.constant dense<0.000000e+00> : vector<4x128xf32>
    %49 = tpu.matmul %46, %48, %cst_59 {dimension_numbers = #tpu.dot_dimension_numbers<[1], [0], [0], [1], [0, 0, 1, 1], [], []>} : vector<4x128xbf16>, vector<128x128xbf16>, vector<4x128xf32> -> vector<4x128xf32>
    %50 = arith.addf %44, %49 : vector<4x128xf32>
    %c0_60 = arith.constant 0 : index
    %c2_61 = arith.constant 2 : index
    %c2_62 = arith.constant 2 : index
    %c0_63 = arith.constant 0 : index
    %51 = vector.load %arg2[%c0_60, %c2_61, %c2_62, %c0_63] : memref<1x6x6x128xbf16, #tpu.memory_space<vmem>>, vector<1x1x4x128xbf16>
    %52 = vector.shape_cast %51 : vector<1x1x4x128xbf16> to vector<4x128xbf16>
    %c8 = arith.constant 8 : index
    %c0_64 = arith.constant 0 : index
    %c0_65 = arith.constant 0 : index
    %53 = vector.load %arg3[%c8, %c0_64, %c0_65] : memref<9x128x128xbf16, #tpu.memory_space<vmem>>, vector<1x128x128xbf16>
    %54 = vector.shape_cast %53 : vector<1x128x128xbf16> to vector<128x128xbf16>
    %cst_66 = arith.constant dense<0.000000e+00> : vector<4x128xf32>
    %55 = tpu.matmul %52, %54, %cst_66 {dimension_numbers = #tpu.dot_dimension_numbers<[1], [0], [0], [1], [0, 0, 1, 1], [], []>} : vector<4x128xbf16>, vector<128x128xbf16>, vector<4x128xf32> -> vector<4x128xf32>
    %56 = arith.addf %50, %55 : vector<4x128xf32>
    %57 = vector.broadcast %0 : vector<1x128xf32> to vector<4x128xf32>
    %58 = arith.mulf %56, %57 : vector<4x128xf32>
    %59 = vector.broadcast %1 : vector<1x128xf32> to vector<4x128xf32>
    %60 = arith.addf %58, %59 : vector<4x128xf32>
    %cst_67 = arith.constant 0.000000e+00 : f32
    %61 = vector.broadcast %cst_67 : f32 to vector<4x128xf32>
    %62 = arith.maximumf %60, %61 : vector<4x128xf32>
    %63 = arith.truncf %62 : vector<4x128xf32> to vector<4x128xbf16>
    %c0_68 = arith.constant 0 : index
    %c0_69 = arith.constant 0 : index
    %c0_70 = arith.constant 0 : index
    %c0_71 = arith.constant 0 : index
    %64 = vector.load %arg6[%c0_68, %c0_69, %c0_70, %c0_71] : memref<1x4x4x128xbf16, #tpu.memory_space<vmem>>, vector<1x1x4x128xbf16>
    %65 = vector.shape_cast %64 : vector<1x1x4x128xbf16> to vector<4x128xbf16>
    %66 = vector.shape_cast %63 : vector<4x128xbf16> to vector<1x1x4x128xbf16>
    tpu.vector_store %arg6[%c0_68, %c0_69, %c0_70, %c0_71], %66 {strides = array<i32>} : memref<1x4x4x128xbf16, #tpu.memory_space<vmem>>, vector<1x1x4x128xbf16>,
    %cst_72 = arith.constant 0.000000e+00 : f32
    %67 = vector.broadcast %cst_72 : f32 to vector<4x128xf32>
    %c0_73 = arith.constant 0 : index
    %c1_74 = arith.constant 1 : index
    %c0_75 = arith.constant 0 : index
    %c0_76 = arith.constant 0 : index
    %68 = vector.load %arg2[%c0_73, %c1_74, %c0_75, %c0_76] : memref<1x6x6x128xbf16, #tpu.memory_space<vmem>>, vector<1x1x4x128xbf16>
    %69 = vector.shape_cast %68 : vector<1x1x4x128xbf16> to vector<4x128xbf16>
    %c0_77 = arith.constant 0 : index
    %c0_78 = arith.constant 0 : index
    %c0_79 = arith.constant 0 : index
    %70 = vector.load %arg3[%c0_77, %c0_78, %c0_79] : memref<9x128x128xbf16, #tpu.memory_space<vmem>>, vector<1x128x128xbf16>
    %71 = vector.shape_cast %70 : vector<1x128x128xbf16> to vector<128x128xbf16>
    %cst_80 = arith.constant dense<0.000000e+00> : vector<4x128xf32>
    %72 = tpu.matmul %69, %71, %cst_80 {dimension_numbers = #tpu.dot_dimension_numbers<[1], [0], [0], [1], [0, 0, 1, 1], [], []>} : vector<4x128xbf16>, vector<128x128xbf16>, vector<4x128xf32> -> vector<4x128xf32>
    %73 = arith.addf %67, %72 : vector<4x128xf32>
    %c0_81 = arith.constant 0 : index
    %c1_82 = arith.constant 1 : index
    %c1_83 = arith.constant 1 : index
    %c0_84 = arith.constant 0 : index
    %74 = vector.load %arg2[%c0_81, %c1_82, %c1_83, %c0_84] : memref<1x6x6x128xbf16, #tpu.memory_space<vmem>>, vector<1x1x4x128xbf16>
    %75 = vector.shape_cast %74 : vector<1x1x4x128xbf16> to vector<4x128xbf16>
    %c1_85 = arith.constant 1 : index
    %c0_86 = arith.constant 0 : index
    %c0_87 = arith.constant 0 : index
    %76 = vector.load %arg3[%c1_85, %c0_86, %c0_87] : memref<9x128x128xbf16, #tpu.memory_space<vmem>>, vector<1x128x128xbf16>
    %77 = vector.shape_cast %76 : vector<1x128x128xbf16> to vector<128x128xbf16>
    %cst_88 = arith.constant dense<0.000000e+00> : vector<4x128xf32>
    %78 = tpu.matmul %75, %77, %cst_88 {dimension_numbers = #tpu.dot_dimension_numbers<[1], [0], [0], [1], [0, 0, 1, 1], [], []>} : vector<4x128xbf16>, vector<128x128xbf16>, vector<4x128xf32> -> vector<4x128xf32>
    %79 = arith.addf %73, %78 : vector<4x128xf32>
    %c0_89 = arith.constant 0 : index
    %c1_90 = arith.constant 1 : index
    %c2_91 = arith.constant 2 : index
    %c0_92 = arith.constant 0 : index
    %80 = vector.load %arg2[%c0_89, %c1_90, %c2_91, %c0_92] : memref<1x6x6x128xbf16, #tpu.memory_space<vmem>>, vector<1x1x4x128xbf16>
    %81 = vector.shape_cast %80 : vector<1x1x4x128xbf16> to vector<4x128xbf16>
    %c2_93 = arith.constant 2 : index
    %c0_94 = arith.constant 0 : index
    %c0_95 = arith.constant 0 : index
    %82 = vector.load %arg3[%c2_93, %c0_94, %c0_95] : memref<9x128x128xbf16, #tpu.memory_space<vmem>>, vector<1x128x128xbf16>
    %83 = vector.shape_cast %82 : vector<1x128x128xbf16> to vector<128x128xbf16>
    %cst_96 = arith.constant dense<0.000000e+00> : vector<4x128xf32>
    %84 = tpu.matmul %81, %83, %cst_96 {dimension_numbers = #tpu.dot_dimension_numbers<[1], [0], [0], [1], [0, 0, 1, 1], [], []>} : vector<4x128xbf16>, vector<128x128xbf16>, vector<4x128xf32> -> vector<4x128xf32>
    %85 = arith.addf %79, %84 : vector<4x128xf32>
    %c0_97 = arith.constant 0 : index
    %c2_98 = arith.constant 2 : index
    %c0_99 = arith.constant 0 : index
    %c0_100 = arith.constant 0 : index
    %86 = vector.load %arg2[%c0_97, %c2_98, %c0_99, %c0_100] : memref<1x6x6x128xbf16, #tpu.memory_space<vmem>>, vector<1x1x4x128xbf16>
    %87 = vector.shape_cast %86 : vector<1x1x4x128xbf16> to vector<4x128xbf16>
    %c3_101 = arith.constant 3 : index
    %c0_102 = arith.constant 0 : index
    %c0_103 = arith.constant 0 : index
    %88 = vector.load %arg3[%c3_101, %c0_102, %c0_103] : memref<9x128x128xbf16, #tpu.memory_space<vmem>>, vector<1x128x128xbf16>
    %89 = vector.shape_cast %88 : vector<1x128x128xbf16> to vector<128x128xbf16>
    %cst_104 = arith.constant dense<0.000000e+00> : vector<4x128xf32>
    %90 = tpu.matmul %87, %89, %cst_104 {dimension_numbers = #tpu.dot_dimension_numbers<[1], [0], [0], [1], [0, 0, 1, 1], [], []>} : vector<4x128xbf16>, vector<128x128xbf16>, vector<4x128xf32> -> vector<4x128xf32>
    %91 = arith.addf %85, %90 : vector<4x128xf32>
    %c0_105 = arith.constant 0 : index
    %c2_106 = arith.constant 2 : index
    %c1_107 = arith.constant 1 : index
    %c0_108 = arith.constant 0 : index
    %92 = vector.load %arg2[%c0_105, %c2_106, %c1_107, %c0_108] : memref<1x6x6x128xbf16, #tpu.memory_space<vmem>>, vector<1x1x4x128xbf16>
    %93 = vector.shape_cast %92 : vector<1x1x4x128xbf16> to vector<4x128xbf16>
    %c4_109 = arith.constant 4 : index
    %c0_110 = arith.constant 0 : index
    %c0_111 = arith.constant 0 : index
    %94 = vector.load %arg3[%c4_109, %c0_110, %c0_111] : memref<9x128x128xbf16, #tpu.memory_space<vmem>>, vector<1x128x128xbf16>
    %95 = vector.shape_cast %94 : vector<1x128x128xbf16> to vector<128x128xbf16>
    %cst_112 = arith.constant dense<0.000000e+00> : vector<4x128xf32>
    %96 = tpu.matmul %93, %95, %cst_112 {dimension_numbers = #tpu.dot_dimension_numbers<[1], [0], [0], [1], [0, 0, 1, 1], [], []>} : vector<4x128xbf16>, vector<128x128xbf16>, vector<4x128xf32> -> vector<4x128xf32>
    %97 = arith.addf %91, %96 : vector<4x128xf32>
    %c0_113 = arith.constant 0 : index
    %c2_114 = arith.constant 2 : index
    %c2_115 = arith.constant 2 : index
    %c0_116 = arith.constant 0 : index
    %98 = vector.load %arg2[%c0_113, %c2_114, %c2_115, %c0_116] : memref<1x6x6x128xbf16, #tpu.memory_space<vmem>>, vector<1x1x4x128xbf16>
    %99 = vector.shape_cast %98 : vector<1x1x4x128xbf16> to vector<4x128xbf16>
    %c5_117 = arith.constant 5 : index
    %c0_118 = arith.constant 0 : index
    %c0_119 = arith.constant 0 : index
    %100 = vector.load %arg3[%c5_117, %c0_118, %c0_119] : memref<9x128x128xbf16, #tpu.memory_space<vmem>>, vector<1x128x128xbf16>
    %101 = vector.shape_cast %100 : vector<1x128x128xbf16> to vector<128x128xbf16>
    %cst_120 = arith.constant dense<0.000000e+00> : vector<4x128xf32>
    %102 = tpu.matmul %99, %101, %cst_120 {dimension_numbers = #tpu.dot_dimension_numbers<[1], [0], [0], [1], [0, 0, 1, 1], [], []>} : vector<4x128xbf16>, vector<128x128xbf16>, vector<4x128xf32> -> vector<4x128xf32>
    %103 = arith.addf %97, %102 : vector<4x128xf32>
    %c0_121 = arith.constant 0 : index
    %c3_122 = arith.constant 3 : index
    %c0_123 = arith.constant 0 : index
    %c0_124 = arith.constant 0 : index
    %104 = vector.load %arg2[%c0_121, %c3_122, %c0_123, %c0_124] : memref<1x6x6x128xbf16, #tpu.memory_space<vmem>>, vector<1x1x4x128xbf16>
    %105 = vector.shape_cast %104 : vector<1x1x4x128xbf16> to vector<4x128xbf16>
    %c6_125 = arith.constant 6 : index
    %c0_126 = arith.constant 0 : index
    %c0_127 = arith.constant 0 : index
    %106 = vector.load %arg3[%c6_125, %c0_126, %c0_127] : memref<9x128x128xbf16, #tpu.memory_space<vmem>>, vector<1x128x128xbf16>
    %107 = vector.shape_cast %106 : vector<1x128x128xbf16> to vector<128x128xbf16>
    %cst_128 = arith.constant dense<0.000000e+00> : vector<4x128xf32>
    %108 = tpu.matmul %105, %107, %cst_128 {dimension_numbers = #tpu.dot_dimension_numbers<[1], [0], [0], [1], [0, 0, 1, 1], [], []>} : vector<4x128xbf16>, vector<128x128xbf16>, vector<4x128xf32> -> vector<4x128xf32>
    %109 = arith.addf %103, %108 : vector<4x128xf32>
    %c0_129 = arith.constant 0 : index
    %c3_130 = arith.constant 3 : index
    %c1_131 = arith.constant 1 : index
    %c0_132 = arith.constant 0 : index
    %110 = vector.load %arg2[%c0_129, %c3_130, %c1_131, %c0_132] : memref<1x6x6x128xbf16, #tpu.memory_space<vmem>>, vector<1x1x4x128xbf16>
    %111 = vector.shape_cast %110 : vector<1x1x4x128xbf16> to vector<4x128xbf16>
    %c7_133 = arith.constant 7 : index
    %c0_134 = arith.constant 0 : index
    %c0_135 = arith.constant 0 : index
    %112 = vector.load %arg3[%c7_133, %c0_134, %c0_135] : memref<9x128x128xbf16, #tpu.memory_space<vmem>>, vector<1x128x128xbf16>
    %113 = vector.shape_cast %112 : vector<1x128x128xbf16> to vector<128x128xbf16>
    %cst_136 = arith.constant dense<0.000000e+00> : vector<4x128xf32>
    %114 = tpu.matmul %111, %113, %cst_136 {dimension_numbers = #tpu.dot_dimension_numbers<[1], [0], [0], [1], [0, 0, 1, 1], [], []>} : vector<4x128xbf16>, vector<128x128xbf16>, vector<4x128xf32> -> vector<4x128xf32>
    %115 = arith.addf %109, %114 : vector<4x128xf32>
    %c0_137 = arith.constant 0 : index
    %c3_138 = arith.constant 3 : index
    %c2_139 = arith.constant 2 : index
    %c0_140 = arith.constant 0 : index
    %116 = vector.load %arg2[%c0_137, %c3_138, %c2_139, %c0_140] : memref<1x6x6x128xbf16, #tpu.memory_space<vmem>>, vector<1x1x4x128xbf16>
    %117 = vector.shape_cast %116 : vector<1x1x4x128xbf16> to vector<4x128xbf16>
    %c8_141 = arith.constant 8 : index
    %c0_142 = arith.constant 0 : index
    %c0_143 = arith.constant 0 : index
    %118 = vector.load %arg3[%c8_141, %c0_142, %c0_143] : memref<9x128x128xbf16, #tpu.memory_space<vmem>>, vector<1x128x128xbf16>
    %119 = vector.shape_cast %118 : vector<1x128x128xbf16> to vector<128x128xbf16>
    %cst_144 = arith.constant dense<0.000000e+00> : vector<4x128xf32>
    %120 = tpu.matmul %117, %119, %cst_144 {dimension_numbers = #tpu.dot_dimension_numbers<[1], [0], [0], [1], [0, 0, 1, 1], [], []>} : vector<4x128xbf16>, vector<128x128xbf16>, vector<4x128xf32> -> vector<4x128xf32>
    %121 = arith.addf %115, %120 : vector<4x128xf32>
    %122 = vector.broadcast %0 : vector<1x128xf32> to vector<4x128xf32>
    %123 = arith.mulf %121, %122 : vector<4x128xf32>
    %124 = vector.broadcast %1 : vector<1x128xf32> to vector<4x128xf32>
    %125 = arith.addf %123, %124 : vector<4x128xf32>
    %cst_145 = arith.constant 0.000000e+00 : f32
    %126 = vector.broadcast %cst_145 : f32 to vector<4x128xf32>
    %127 = arith.maximumf %125, %126 : vector<4x128xf32>
    %128 = arith.truncf %127 : vector<4x128xf32> to vector<4x128xbf16>
    %c0_146 = arith.constant 0 : index
    %c1_147 = arith.constant 1 : index
    %c0_148 = arith.constant 0 : index
    %c0_149 = arith.constant 0 : index
    %129 = vector.load %arg6[%c0_146, %c1_147, %c0_148, %c0_149] : memref<1x4x4x128xbf16, #tpu.memory_space<vmem>>, vector<1x1x4x128xbf16>
    %130 = vector.shape_cast %129 : vector<1x1x4x128xbf16> to vector<4x128xbf16>
    %131 = vector.shape_cast %128 : vector<4x128xbf16> to vector<1x1x4x128xbf16>
    tpu.vector_store %arg6[%c0_146, %c1_147, %c0_148, %c0_149], %131 {strides = array<i32>} : memref<1x4x4x128xbf16, #tpu.memory_space<vmem>>, vector<1x1x4x128xbf16>,
    %cst_150 = arith.constant 0.000000e+00 : f32
    %132 = vector.broadcast %cst_150 : f32 to vector<4x128xf32>
    %c0_151 = arith.constant 0 : index
    %c2_152 = arith.constant 2 : index
    %c0_153 = arith.constant 0 : index
    %c0_154 = arith.constant 0 : index
    %133 = vector.load %arg2[%c0_151, %c2_152, %c0_153, %c0_154] : memref<1x6x6x128xbf16, #tpu.memory_space<vmem>>, vector<1x1x4x128xbf16>
    %134 = vector.shape_cast %133 : vector<1x1x4x128xbf16> to vector<4x128xbf16>
    %c0_155 = arith.constant 0 : index
    %c0_156 = arith.constant 0 : index
    %c0_157 = arith.constant 0 : index
    %135 = vector.load %arg3[%c0_155, %c0_156, %c0_157] : memref<9x128x128xbf16, #tpu.memory_space<vmem>>, vector<1x128x128xbf16>
    %136 = vector.shape_cast %135 : vector<1x128x128xbf16> to vector<128x128xbf16>
    %cst_158 = arith.constant dense<0.000000e+00> : vector<4x128xf32>
    %137 = tpu.matmul %134, %136, %cst_158 {dimension_numbers = #tpu.dot_dimension_numbers<[1], [0], [0], [1], [0, 0, 1, 1], [], []>} : vector<4x128xbf16>, vector<128x128xbf16>, vector<4x128xf32> -> vector<4x128xf32>
    %138 = arith.addf %132, %137 : vector<4x128xf32>
    %c0_159 = arith.constant 0 : index
    %c2_160 = arith.constant 2 : index
    %c1_161 = arith.constant 1 : index
    %c0_162 = arith.constant 0 : index
    %139 = vector.load %arg2[%c0_159, %c2_160, %c1_161, %c0_162] : memref<1x6x6x128xbf16, #tpu.memory_space<vmem>>, vector<1x1x4x128xbf16>
    %140 = vector.shape_cast %139 : vector<1x1x4x128xbf16> to vector<4x128xbf16>
    %c1_163 = arith.constant 1 : index
    %c0_164 = arith.constant 0 : index
    %c0_165 = arith.constant 0 : index
    %141 = vector.load %arg3[%c1_163, %c0_164, %c0_165] : memref<9x128x128xbf16, #tpu.memory_space<vmem>>, vector<1x128x128xbf16>
    %142 = vector.shape_cast %141 : vector<1x128x128xbf16> to vector<128x128xbf16>
    %cst_166 = arith.constant dense<0.000000e+00> : vector<4x128xf32>
    %143 = tpu.matmul %140, %142, %cst_166 {dimension_numbers = #tpu.dot_dimension_numbers<[1], [0], [0], [1], [0, 0, 1, 1], [], []>} : vector<4x128xbf16>, vector<128x128xbf16>, vector<4x128xf32> -> vector<4x128xf32>
    %144 = arith.addf %138, %143 : vector<4x128xf32>
    %c0_167 = arith.constant 0 : index
    %c2_168 = arith.constant 2 : index
    %c2_169 = arith.constant 2 : index
    %c0_170 = arith.constant 0 : index
    %145 = vector.load %arg2[%c0_167, %c2_168, %c2_169, %c0_170] : memref<1x6x6x128xbf16, #tpu.memory_space<vmem>>, vector<1x1x4x128xbf16>
    %146 = vector.shape_cast %145 : vector<1x1x4x128xbf16> to vector<4x128xbf16>
    %c2_171 = arith.constant 2 : index
    %c0_172 = arith.constant 0 : index
    %c0_173 = arith.constant 0 : index
    %147 = vector.load %arg3[%c2_171, %c0_172, %c0_173] : memref<9x128x128xbf16, #tpu.memory_space<vmem>>, vector<1x128x128xbf16>
    %148 = vector.shape_cast %147 : vector<1x128x128xbf16> to vector<128x128xbf16>
    %cst_174 = arith.constant dense<0.000000e+00> : vector<4x128xf32>
    %149 = tpu.matmul %146, %148, %cst_174 {dimension_numbers = #tpu.dot_dimension_numbers<[1], [0], [0], [1], [0, 0, 1, 1], [], []>} : vector<4x128xbf16>, vector<128x128xbf16>, vector<4x128xf32> -> vector<4x128xf32>
    %150 = arith.addf %144, %149 : vector<4x128xf32>
    %c0_175 = arith.constant 0 : index
    %c3_176 = arith.constant 3 : index
    %c0_177 = arith.constant 0 : index
    %c0_178 = arith.constant 0 : index
    %151 = vector.load %arg2[%c0_175, %c3_176, %c0_177, %c0_178] : memref<1x6x6x128xbf16, #tpu.memory_space<vmem>>, vector<1x1x4x128xbf16>
    %152 = vector.shape_cast %151 : vector<1x1x4x128xbf16> to vector<4x128xbf16>
    %c3_179 = arith.constant 3 : index
    %c0_180 = arith.constant 0 : index
    %c0_181 = arith.constant 0 : index
    %153 = vector.load %arg3[%c3_179, %c0_180, %c0_181] : memref<9x128x128xbf16, #tpu.memory_space<vmem>>, vector<1x128x128xbf16>
    %154 = vector.shape_cast %153 : vector<1x128x128xbf16> to vector<128x128xbf16>
    %cst_182 = arith.constant dense<0.000000e+00> : vector<4x128xf32>
    %155 = tpu.matmul %152, %154, %cst_182 {dimension_numbers = #tpu.dot_dimension_numbers<[1], [0], [0], [1], [0, 0, 1, 1], [], []>} : vector<4x128xbf16>, vector<128x128xbf16>, vector<4x128xf32> -> vector<4x128xf32>
    %156 = arith.addf %150, %155 : vector<4x128xf32>
    %c0_183 = arith.constant 0 : index
    %c3_184 = arith.constant 3 : index
    %c1_185 = arith.constant 1 : index
    %c0_186 = arith.constant 0 : index
    %157 = vector.load %arg2[%c0_183, %c3_184, %c1_185, %c0_186] : memref<1x6x6x128xbf16, #tpu.memory_space<vmem>>, vector<1x1x4x128xbf16>
    %158 = vector.shape_cast %157 : vector<1x1x4x128xbf16> to vector<4x128xbf16>
    %c4_187 = arith.constant 4 : index
    %c0_188 = arith.constant 0 : index
    %c0_189 = arith.constant 0 : index
    %159 = vector.load %arg3[%c4_187, %c0_188, %c0_189] : memref<9x128x128xbf16, #tpu.memory_space<vmem>>, vector<1x128x128xbf16>
    %160 = vector.shape_cast %159 : vector<1x128x128xbf16> to vector<128x128xbf16>
    %cst_190 = arith.constant dense<0.000000e+00> : vector<4x128xf32>
    %161 = tpu.matmul %158, %160, %cst_190 {dimension_numbers = #tpu.dot_dimension_numbers<[1], [0], [0], [1], [0, 0, 1, 1], [], []>} : vector<4x128xbf16>, vector<128x128xbf16>, vector<4x128xf32> -> vector<4x128xf32>
    %162 = arith.addf %156, %161 : vector<4x128xf32>
    %c0_191 = arith.constant 0 : index
    %c3_192 = arith.constant 3 : index
    %c2_193 = arith.constant 2 : index
    %c0_194 = arith.constant 0 : index
    %163 = vector.load %arg2[%c0_191, %c3_192, %c2_193, %c0_194] : memref<1x6x6x128xbf16, #tpu.memory_space<vmem>>, vector<1x1x4x128xbf16>
    %164 = vector.shape_cast %163 : vector<1x1x4x128xbf16> to vector<4x128xbf16>
    %c5_195 = arith.constant 5 : index
    %c0_196 = arith.constant 0 : index
    %c0_197 = arith.constant 0 : index
    %165 = vector.load %arg3[%c5_195, %c0_196, %c0_197] : memref<9x128x128xbf16, #tpu.memory_space<vmem>>, vector<1x128x128xbf16>
    %166 = vector.shape_cast %165 : vector<1x128x128xbf16> to vector<128x128xbf16>
    %cst_198 = arith.constant dense<0.000000e+00> : vector<4x128xf32>
    %167 = tpu.matmul %164, %166, %cst_198 {dimension_numbers = #tpu.dot_dimension_numbers<[1], [0], [0], [1], [0, 0, 1, 1], [], []>} : vector<4x128xbf16>, vector<128x128xbf16>, vector<4x128xf32> -> vector<4x128xf32>
    %168 = arith.addf %162, %167 : vector<4x128xf32>
    %c0_199 = arith.constant 0 : index
    %c4_200 = arith.constant 4 : index
    %c0_201 = arith.constant 0 : index
    %c0_202 = arith.constant 0 : index
    %169 = vector.load %arg2[%c0_199, %c4_200, %c0_201, %c0_202] : memref<1x6x6x128xbf16, #tpu.memory_space<vmem>>, vector<1x1x4x128xbf16>
    %170 = vector.shape_cast %169 : vector<1x1x4x128xbf16> to vector<4x128xbf16>
    %c6_203 = arith.constant 6 : index
    %c0_204 = arith.constant 0 : index
    %c0_205 = arith.constant 0 : index
    %171 = vector.load %arg3[%c6_203, %c0_204, %c0_205] : memref<9x128x128xbf16, #tpu.memory_space<vmem>>, vector<1x128x128xbf16>
    %172 = vector.shape_cast %171 : vector<1x128x128xbf16> to vector<128x128xbf16>
    %cst_206 = arith.constant dense<0.000000e+00> : vector<4x128xf32>
    %173 = tpu.matmul %170, %172, %cst_206 {dimension_numbers = #tpu.dot_dimension_numbers<[1], [0], [0], [1], [0, 0, 1, 1], [], []>} : vector<4x128xbf16>, vector<128x128xbf16>, vector<4x128xf32> -> vector<4x128xf32>
    %174 = arith.addf %168, %173 : vector<4x128xf32>
    %c0_207 = arith.constant 0 : index
    %c4_208 = arith.constant 4 : index
    %c1_209 = arith.constant 1 : index
    %c0_210 = arith.constant 0 : index
    %175 = vector.load %arg2[%c0_207, %c4_208, %c1_209, %c0_210] : memref<1x6x6x128xbf16, #tpu.memory_space<vmem>>, vector<1x1x4x128xbf16>
    %176 = vector.shape_cast %175 : vector<1x1x4x128xbf16> to vector<4x128xbf16>
    %c7_211 = arith.constant 7 : index
    %c0_212 = arith.constant 0 : index
    %c0_213 = arith.constant 0 : index
    %177 = vector.load %arg3[%c7_211, %c0_212, %c0_213] : memref<9x128x128xbf16, #tpu.memory_space<vmem>>, vector<1x128x128xbf16>
    %178 = vector.shape_cast %177 : vector<1x128x128xbf16> to vector<128x128xbf16>
    %cst_214 = arith.constant dense<0.000000e+00> : vector<4x128xf32>
    %179 = tpu.matmul %176, %178, %cst_214 {dimension_numbers = #tpu.dot_dimension_numbers<[1], [0], [0], [1], [0, 0, 1, 1], [], []>} : vector<4x128xbf16>, vector<128x128xbf16>, vector<4x128xf32> -> vector<4x128xf32>
    %180 = arith.addf %174, %179 : vector<4x128xf32>
    %c0_215 = arith.constant 0 : index
    %c4_216 = arith.constant 4 : index
    %c2_217 = arith.constant 2 : index
    %c0_218 = arith.constant 0 : index
    %181 = vector.load %arg2[%c0_215, %c4_216, %c2_217, %c0_218] : memref<1x6x6x128xbf16, #tpu.memory_space<vmem>>, vector<1x1x4x128xbf16>
    %182 = vector.shape_cast %181 : vector<1x1x4x128xbf16> to vector<4x128xbf16>
    %c8_219 = arith.constant 8 : index
    %c0_220 = arith.constant 0 : index
    %c0_221 = arith.constant 0 : index
    %183 = vector.load %arg3[%c8_219, %c0_220, %c0_221] : memref<9x128x128xbf16, #tpu.memory_space<vmem>>, vector<1x128x128xbf16>
    %184 = vector.shape_cast %183 : vector<1x128x128xbf16> to vector<128x128xbf16>
    %cst_222 = arith.constant dense<0.000000e+00> : vector<4x128xf32>
    %185 = tpu.matmul %182, %184, %cst_222 {dimension_numbers = #tpu.dot_dimension_numbers<[1], [0], [0], [1], [0, 0, 1, 1], [], []>} : vector<4x128xbf16>, vector<128x128xbf16>, vector<4x128xf32> -> vector<4x128xf32>
    %186 = arith.addf %180, %185 : vector<4x128xf32>
    %187 = vector.broadcast %0 : vector<1x128xf32> to vector<4x128xf32>
    %188 = arith.mulf %186, %187 : vector<4x128xf32>
    %189 = vector.broadcast %1 : vector<1x128xf32> to vector<4x128xf32>
    %190 = arith.addf %188, %189 : vector<4x128xf32>
    %cst_223 = arith.constant 0.000000e+00 : f32
    %191 = vector.broadcast %cst_223 : f32 to vector<4x128xf32>
    %192 = arith.maximumf %190, %191 : vector<4x128xf32>
    %193 = arith.truncf %192 : vector<4x128xf32> to vector<4x128xbf16>
    %c0_224 = arith.constant 0 : index
    %c2_225 = arith.constant 2 : index
    %c0_226 = arith.constant 0 : index
    %c0_227 = arith.constant 0 : index
    %194 = vector.load %arg6[%c0_224, %c2_225, %c0_226, %c0_227] : memref<1x4x4x128xbf16, #tpu.memory_space<vmem>>, vector<1x1x4x128xbf16>
    %195 = vector.shape_cast %194 : vector<1x1x4x128xbf16> to vector<4x128xbf16>
    %196 = vector.shape_cast %193 : vector<4x128xbf16> to vector<1x1x4x128xbf16>
    tpu.vector_store %arg6[%c0_224, %c2_225, %c0_226, %c0_227], %196 {strides = array<i32>} : memref<1x4x4x128xbf16, #tpu.memory_space<vmem>>, vector<1x1x4x128xbf16>,
    %cst_228 = arith.constant 0.000000e+00 : f32
    %197 = vector.broadcast %cst_228 : f32 to vector<4x128xf32>
    %c0_229 = arith.constant 0 : index
    %c3_230 = arith.constant 3 : index
    %c0_231 = arith.constant 0 : index
    %c0_232 = arith.constant 0 : index
    %198 = vector.load %arg2[%c0_229, %c3_230, %c0_231, %c0_232] : memref<1x6x6x128xbf16, #tpu.memory_space<vmem>>, vector<1x1x4x128xbf16>
    %199 = vector.shape_cast %198 : vector<1x1x4x128xbf16> to vector<4x128xbf16>
    %c0_233 = arith.constant 0 : index
    %c0_234 = arith.constant 0 : index
    %c0_235 = arith.constant 0 : index
    %200 = vector.load %arg3[%c0_233, %c0_234, %c0_235] : memref<9x128x128xbf16, #tpu.memory_space<vmem>>, vector<1x128x128xbf16>
    %201 = vector.shape_cast %200 : vector<1x128x128xbf16> to vector<128x128xbf16>
    %cst_236 = arith.constant dense<0.000000e+00> : vector<4x128xf32>
    %202 = tpu.matmul %199, %201, %cst_236 {dimension_numbers = #tpu.dot_dimension_numbers<[1], [0], [0], [1], [0, 0, 1, 1], [], []>} : vector<4x128xbf16>, vector<128x128xbf16>, vector<4x128xf32> -> vector<4x128xf32>
    %203 = arith.addf %197, %202 : vector<4x128xf32>
    %c0_237 = arith.constant 0 : index
    %c3_238 = arith.constant 3 : index
    %c1_239 = arith.constant 1 : index
    %c0_240 = arith.constant 0 : index
    %204 = vector.load %arg2[%c0_237, %c3_238, %c1_239, %c0_240] : memref<1x6x6x128xbf16, #tpu.memory_space<vmem>>, vector<1x1x4x128xbf16>
    %205 = vector.shape_cast %204 : vector<1x1x4x128xbf16> to vector<4x128xbf16>
    %c1_241 = arith.constant 1 : index
    %c0_242 = arith.constant 0 : index
    %c0_243 = arith.constant 0 : index
    %206 = vector.load %arg3[%c1_241, %c0_242, %c0_243] : memref<9x128x128xbf16, #tpu.memory_space<vmem>>, vector<1x128x128xbf16>
    %207 = vector.shape_cast %206 : vector<1x128x128xbf16> to vector<128x128xbf16>
    %cst_244 = arith.constant dense<0.000000e+00> : vector<4x128xf32>
    %208 = tpu.matmul %205, %207, %cst_244 {dimension_numbers = #tpu.dot_dimension_numbers<[1], [0], [0], [1], [0, 0, 1, 1], [], []>} : vector<4x128xbf16>, vector<128x128xbf16>, vector<4x128xf32> -> vector<4x128xf32>
    %209 = arith.addf %203, %208 : vector<4x128xf32>
    %c0_245 = arith.constant 0 : index
    %c3_246 = arith.constant 3 : index
    %c2_247 = arith.constant 2 : index
    %c0_248 = arith.constant 0 : index
    %210 = vector.load %arg2[%c0_245, %c3_246, %c2_247, %c0_248] : memref<1x6x6x128xbf16, #tpu.memory_space<vmem>>, vector<1x1x4x128xbf16>
    %211 = vector.shape_cast %210 : vector<1x1x4x128xbf16> to vector<4x128xbf16>
    %c2_249 = arith.constant 2 : index
    %c0_250 = arith.constant 0 : index
    %c0_251 = arith.constant 0 : index
    %212 = vector.load %arg3[%c2_249, %c0_250, %c0_251] : memref<9x128x128xbf16, #tpu.memory_space<vmem>>, vector<1x128x128xbf16>
    %213 = vector.shape_cast %212 : vector<1x128x128xbf16> to vector<128x128xbf16>
    %cst_252 = arith.constant dense<0.000000e+00> : vector<4x128xf32>
    %214 = tpu.matmul %211, %213, %cst_252 {dimension_numbers = #tpu.dot_dimension_numbers<[1], [0], [0], [1], [0, 0, 1, 1], [], []>} : vector<4x128xbf16>, vector<128x128xbf16>, vector<4x128xf32> -> vector<4x128xf32>
    %215 = arith.addf %209, %214 : vector<4x128xf32>
    %c0_253 = arith.constant 0 : index
    %c4_254 = arith.constant 4 : index
    %c0_255 = arith.constant 0 : index
    %c0_256 = arith.constant 0 : index
    %216 = vector.load %arg2[%c0_253, %c4_254, %c0_255, %c0_256] : memref<1x6x6x128xbf16, #tpu.memory_space<vmem>>, vector<1x1x4x128xbf16>
    %217 = vector.shape_cast %216 : vector<1x1x4x128xbf16> to vector<4x128xbf16>
    %c3_257 = arith.constant 3 : index
    %c0_258 = arith.constant 0 : index
    %c0_259 = arith.constant 0 : index
    %218 = vector.load %arg3[%c3_257, %c0_258, %c0_259] : memref<9x128x128xbf16, #tpu.memory_space<vmem>>, vector<1x128x128xbf16>
    %219 = vector.shape_cast %218 : vector<1x128x128xbf16> to vector<128x128xbf16>
    %cst_260 = arith.constant dense<0.000000e+00> : vector<4x128xf32>
    %220 = tpu.matmul %217, %219, %cst_260 {dimension_numbers = #tpu.dot_dimension_numbers<[1], [0], [0], [1], [0, 0, 1, 1], [], []>} : vector<4x128xbf16>, vector<128x128xbf16>, vector<4x128xf32> -> vector<4x128xf32>
    %221 = arith.addf %215, %220 : vector<4x128xf32>
    %c0_261 = arith.constant 0 : index
    %c4_262 = arith.constant 4 : index
    %c1_263 = arith.constant 1 : index
    %c0_264 = arith.constant 0 : index
    %222 = vector.load %arg2[%c0_261, %c4_262, %c1_263, %c0_264] : memref<1x6x6x128xbf16, #tpu.memory_space<vmem>>, vector<1x1x4x128xbf16>
    %223 = vector.shape_cast %222 : vector<1x1x4x128xbf16> to vector<4x128xbf16>
    %c4_265 = arith.constant 4 : index
    %c0_266 = arith.constant 0 : index
    %c0_267 = arith.constant 0 : index
    %224 = vector.load %arg3[%c4_265, %c0_266, %c0_267] : memref<9x128x128xbf16, #tpu.memory_space<vmem>>, vector<1x128x128xbf16>
    %225 = vector.shape_cast %224 : vector<1x128x128xbf16> to vector<128x128xbf16>
    %cst_268 = arith.constant dense<0.000000e+00> : vector<4x128xf32>
    %226 = tpu.matmul %223, %225, %cst_268 {dimension_numbers = #tpu.dot_dimension_numbers<[1], [0], [0], [1], [0, 0, 1, 1], [], []>} : vector<4x128xbf16>, vector<128x128xbf16>, vector<4x128xf32> -> vector<4x128xf32>
    %227 = arith.addf %221, %226 : vector<4x128xf32>
    %c0_269 = arith.constant 0 : index
    %c4_270 = arith.constant 4 : index
    %c2_271 = arith.constant 2 : index
    %c0_272 = arith.constant 0 : index
    %228 = vector.load %arg2[%c0_269, %c4_270, %c2_271, %c0_272] : memref<1x6x6x128xbf16, #tpu.memory_space<vmem>>, vector<1x1x4x128xbf16>
    %229 = vector.shape_cast %228 : vector<1x1x4x128xbf16> to vector<4x128xbf16>
    %c5_273 = arith.constant 5 : index
    %c0_274 = arith.constant 0 : index
    %c0_275 = arith.constant 0 : index
    %230 = vector.load %arg3[%c5_273, %c0_274, %c0_275] : memref<9x128x128xbf16, #tpu.memory_space<vmem>>, vector<1x128x128xbf16>
    %231 = vector.shape_cast %230 : vector<1x128x128xbf16> to vector<128x128xbf16>
    %cst_276 = arith.constant dense<0.000000e+00> : vector<4x128xf32>
    %232 = tpu.matmul %229, %231, %cst_276 {dimension_numbers = #tpu.dot_dimension_numbers<[1], [0], [0], [1], [0, 0, 1, 1], [], []>} : vector<4x128xbf16>, vector<128x128xbf16>, vector<4x128xf32> -> vector<4x128xf32>
    %233 = arith.addf %227, %232 : vector<4x128xf32>
    %c0_277 = arith.constant 0 : index
    %c5_278 = arith.constant 5 : index
    %c0_279 = arith.constant 0 : index
    %c0_280 = arith.constant 0 : index
    %234 = vector.load %arg2[%c0_277, %c5_278, %c0_279, %c0_280] : memref<1x6x6x128xbf16, #tpu.memory_space<vmem>>, vector<1x1x4x128xbf16>
    %235 = vector.shape_cast %234 : vector<1x1x4x128xbf16> to vector<4x128xbf16>
    %c6_281 = arith.constant 6 : index
    %c0_282 = arith.constant 0 : index
    %c0_283 = arith.constant 0 : index
    %236 = vector.load %arg3[%c6_281, %c0_282, %c0_283] : memref<9x128x128xbf16, #tpu.memory_space<vmem>>, vector<1x128x128xbf16>
    %237 = vector.shape_cast %236 : vector<1x128x128xbf16> to vector<128x128xbf16>
    %cst_284 = arith.constant dense<0.000000e+00> : vector<4x128xf32>
    %238 = tpu.matmul %235, %237, %cst_284 {dimension_numbers = #tpu.dot_dimension_numbers<[1], [0], [0], [1], [0, 0, 1, 1], [], []>} : vector<4x128xbf16>, vector<128x128xbf16>, vector<4x128xf32> -> vector<4x128xf32>
    %239 = arith.addf %233, %238 : vector<4x128xf32>
    %c0_285 = arith.constant 0 : index
    %c5_286 = arith.constant 5 : index
    %c1_287 = arith.constant 1 : index
    %c0_288 = arith.constant 0 : index
    %240 = vector.load %arg2[%c0_285, %c5_286, %c1_287, %c0_288] : memref<1x6x6x128xbf16, #tpu.memory_space<vmem>>, vector<1x1x4x128xbf16>
    %241 = vector.shape_cast %240 : vector<1x1x4x128xbf16> to vector<4x128xbf16>
    %c7_289 = arith.constant 7 : index
    %c0_290 = arith.constant 0 : index
    %c0_291 = arith.constant 0 : index
    %242 = vector.load %arg3[%c7_289, %c0_290, %c0_291] : memref<9x128x128xbf16, #tpu.memory_space<vmem>>, vector<1x128x128xbf16>
    %243 = vector.shape_cast %242 : vector<1x128x128xbf16> to vector<128x128xbf16>
    %cst_292 = arith.constant dense<0.000000e+00> : vector<4x128xf32>
    %244 = tpu.matmul %241, %243, %cst_292 {dimension_numbers = #tpu.dot_dimension_numbers<[1], [0], [0], [1], [0, 0, 1, 1], [], []>} : vector<4x128xbf16>, vector<128x128xbf16>, vector<4x128xf32> -> vector<4x128xf32>
    %245 = arith.addf %239, %244 : vector<4x128xf32>
    %c0_293 = arith.constant 0 : index
    %c5_294 = arith.constant 5 : index
    %c2_295 = arith.constant 2 : index
    %c0_296 = arith.constant 0 : index
    %246 = vector.load %arg2[%c0_293, %c5_294, %c2_295, %c0_296] : memref<1x6x6x128xbf16, #tpu.memory_space<vmem>>, vector<1x1x4x128xbf16>
    %247 = vector.shape_cast %246 : vector<1x1x4x128xbf16> to vector<4x128xbf16>
    %c8_297 = arith.constant 8 : index
    %c0_298 = arith.constant 0 : index
    %c0_299 = arith.constant 0 : index
    %248 = vector.load %arg3[%c8_297, %c0_298, %c0_299] : memref<9x128x128xbf16, #tpu.memory_space<vmem>>, vector<1x128x128xbf16>
    %249 = vector.shape_cast %248 : vector<1x128x128xbf16> to vector<128x128xbf16>
    %cst_300 = arith.constant dense<0.000000e+00> : vector<4x128xf32>
    %250 = tpu.matmul %247, %249, %cst_300 {dimension_numbers = #tpu.dot_dimension_numbers<[1], [0], [0], [1], [0, 0, 1, 1], [], []>} : vector<4x128xbf16>, vector<128x128xbf16>, vector<4x128xf32> -> vector<4x128xf32>
    %251 = arith.addf %245, %250 : vector<4x128xf32>
    %252 = vector.broadcast %0 : vector<1x128xf32> to vector<4x128xf32>
    %253 = arith.mulf %251, %252 : vector<4x128xf32>
    %254 = vector.broadcast %1 : vector<1x128xf32> to vector<4x128xf32>
    %255 = arith.addf %253, %254 : vector<4x128xf32>
    %cst_301 = arith.constant 0.000000e+00 : f32
    %256 = vector.broadcast %cst_301 : f32 to vector<4x128xf32>
    %257 = arith.maximumf %255, %256 : vector<4x128xf32>
    %258 = arith.truncf %257 : vector<4x128xf32> to vector<4x128xbf16>
    %c0_302 = arith.constant 0 : index
    %c3_303 = arith.constant 3 : index
    %c0_304 = arith.constant 0 : index
    %c0_305 = arith.constant 0 : index
    %259 = vector.load %arg6[%c0_302, %c3_303, %c0_304, %c0_305] : memref<1x4x4x128xbf16, #tpu.memory_space<vmem>>, vector<1x1x4x128xbf16>
    %260 = vector.shape_cast %259 : vector<1x1x4x128xbf16> to vector<4x128xbf16>
    %261 = vector.shape_cast %258 : vector<4x128xbf16> to vector<1x1x4x128xbf16>
    tpu.vector_store %arg6[%c0_302, %c3_303, %c0_304, %c0_305], %261 {strides = array<i32>} : memref<1x4x4x128xbf16, #tpu.memory_space<vmem>>, vector<1x1x4x128xbf16>,
    return
  }
  func.func @transform_0(%arg0: i32, %arg1: i32) -> (i32, i32, i32, i32) {
    %c0_i32 = arith.constant 0 : i32
    %c0_i32_0 = arith.constant 0 : i32
    %c0_i32_1 = arith.constant 0 : i32
    %c0_i32_2 = arith.constant 0 : i32
    return %arg0, %c0_i32, %c0_i32_0, %c0_i32_1 : i32, i32, i32, i32
  }
  func.func @transform_1(%arg0: i32, %arg1: i32) -> (i32, i32, i32) {
    %c0_i32 = arith.constant 0 : i32
    %c0_i32_0 = arith.constant 0 : i32
    %c0_i32_1 = arith.constant 0 : i32
    return %c0_i32, %c0_i32_0, %arg1 : i32, i32, i32
  }
  func.func @transform_2(%arg0: i32, %arg1: i32) -> (i32, i32) {
    %c0_i32 = arith.constant 0 : i32
    %c0_i32_0 = arith.constant 0 : i32
    return %c0_i32, %arg1 : i32, i32
  }
  func.func @transform_3(%arg0: i32, %arg1: i32) -> (i32, i32) {
    %c0_i32 = arith.constant 0 : i32
    %c0_i32_0 = arith.constant 0 : i32
    return %c0_i32, %arg1 : i32, i32
  }
  func.func @transform_4(%arg0: i32, %arg1: i32) -> (i32, i32, i32, i32) {
    %c0_i32 = arith.constant 0 : i32
    %c0_i32_0 = arith.constant 0 : i32
    %c0_i32_1 = arith.constant 0 : i32
    return %arg0, %c0_i32, %c0_i32_0, %arg1 : i32, i32, i32, i32
  }
}

module attributes {stable_mosaic.version = 11 : i64} {
  func.func @_gemm_bn_kernel(%arg0: i32, %arg1: i32, %arg2: memref<16x128xbf16, #tpu.memory_space<vmem>>, %arg3: memref<128x128xbf16, #tpu.memory_space<vmem>>, %arg4: memref<1x128xf32, #tpu.memory_space<vmem>>, %arg5: memref<1x128xf32, #tpu.memory_space<vmem>>, %arg6: memref<16x128xbf16, #tpu.memory_space<vmem>>) attributes {dimension_semantics = [#tpu.dimension_semantics<parallel>, #tpu.dimension_semantics<parallel>], iteration_bounds = array<i64: 1, 2>, scalar_prefetch = 0 : i64, scratch_operands = 0 : i64, tpu.core_type = #tpu.core_type<tc>, window_params = [{transform_indices = @transform_0, window_bounds = array<i64: 16, 128>}, {transform_indices = @transform_1, window_bounds = array<i64: 128, 128>}, {transform_indices = @transform_2, window_bounds = array<i64: 1, 128>}, {transform_indices = @transform_3, window_bounds = array<i64: 1, 128>}, {transform_indices = @transform_4, window_bounds = array<i64: 16, 128>}]} {
    %c0 = arith.constant 0 : index
    %c0_0 = arith.constant 0 : index
    %0 = vector.load %arg2[%c0, %c0_0] : memref<16x128xbf16, #tpu.memory_space<vmem>>, vector<16x128xbf16>
    %c0_1 = arith.constant 0 : index
    %c0_2 = arith.constant 0 : index
    %1 = vector.load %arg3[%c0_1, %c0_2] : memref<128x128xbf16, #tpu.memory_space<vmem>>, vector<128x128xbf16>
    %cst = arith.constant dense<0.000000e+00> : vector<16x128xf32>
    %2 = tpu.matmul %0, %1, %cst {dimension_numbers = #tpu.dot_dimension_numbers<[1], [0], [0], [1], [0, 0, 1, 1], [], []>} : vector<16x128xbf16>, vector<128x128xbf16>, vector<16x128xf32> -> vector<16x128xf32>
    %c0_3 = arith.constant 0 : index
    %c0_4 = arith.constant 0 : index
    %3 = vector.load %arg4[%c0_3, %c0_4] : memref<1x128xf32, #tpu.memory_space<vmem>>, vector<1x128xf32>
    %4 = vector.broadcast %3 : vector<1x128xf32> to vector<16x128xf32>
    %5 = arith.mulf %2, %4 : vector<16x128xf32>
    %c0_5 = arith.constant 0 : index
    %c0_6 = arith.constant 0 : index
    %6 = vector.load %arg5[%c0_5, %c0_6] : memref<1x128xf32, #tpu.memory_space<vmem>>, vector<1x128xf32>
    %7 = vector.broadcast %6 : vector<1x128xf32> to vector<16x128xf32>
    %8 = arith.addf %5, %7 : vector<16x128xf32>
    %9 = arith.truncf %8 : vector<16x128xf32> to vector<16x128xbf16>
    %c0_7 = arith.constant 0 : index
    %c0_8 = arith.constant 0 : index
    %10 = vector.load %arg6[%c0_7, %c0_8] : memref<16x128xbf16, #tpu.memory_space<vmem>>, vector<16x128xbf16>
    tpu.vector_store %arg6[%c0_7, %c0_8], %9 {strides = array<i32>} : memref<16x128xbf16, #tpu.memory_space<vmem>>, vector<16x128xbf16>,
    return
  }
  func.func @transform_0(%arg0: i32, %arg1: i32) -> (i32, i32) {
    %c0_i32 = arith.constant 0 : i32
    %c0_i32_0 = arith.constant 0 : i32
    return %arg1, %c0_i32 : i32, i32
  }
  func.func @transform_1(%arg0: i32, %arg1: i32) -> (i32, i32) {
    %c0_i32 = arith.constant 0 : i32
    %c0_i32_0 = arith.constant 0 : i32
    return %c0_i32, %arg0 : i32, i32
  }
  func.func @transform_2(%arg0: i32, %arg1: i32) -> (i32, i32) {
    %c0_i32 = arith.constant 0 : i32
    %c0_i32_0 = arith.constant 0 : i32
    return %c0_i32, %arg0 : i32, i32
  }
  func.func @transform_3(%arg0: i32, %arg1: i32) -> (i32, i32) {
    %c0_i32 = arith.constant 0 : i32
    %c0_i32_0 = arith.constant 0 : i32
    return %c0_i32, %arg0 : i32, i32
  }
  func.func @transform_4(%arg0: i32, %arg1: i32) -> (i32, i32) {
    %c0_i32 = arith.constant 0 : i32
    return %arg1, %arg0 : i32, i32
  }
}

module attributes {stable_mosaic.version = 11 : i64} {
  func.func @_gemm_bn_res_kernel(%arg0: i32, %arg1: i32, %arg2: memref<16x128xbf16, #tpu.memory_space<vmem>>, %arg3: memref<128x128xbf16, #tpu.memory_space<vmem>>, %arg4: memref<1x128xf32, #tpu.memory_space<vmem>>, %arg5: memref<1x128xf32, #tpu.memory_space<vmem>>, %arg6: memref<16x128xbf16, #tpu.memory_space<vmem>>, %arg7: memref<16x128xbf16, #tpu.memory_space<vmem>>) attributes {dimension_semantics = [#tpu.dimension_semantics<parallel>, #tpu.dimension_semantics<parallel>], iteration_bounds = array<i64: 1, 2>, scalar_prefetch = 0 : i64, scratch_operands = 0 : i64, tpu.core_type = #tpu.core_type<tc>, window_params = [{transform_indices = @transform_0, window_bounds = array<i64: 16, 128>}, {transform_indices = @transform_1, window_bounds = array<i64: 128, 128>}, {transform_indices = @transform_2, window_bounds = array<i64: 1, 128>}, {transform_indices = @transform_3, window_bounds = array<i64: 1, 128>}, {transform_indices = @transform_4, window_bounds = array<i64: 16, 128>}, {transform_indices = @transform_5, window_bounds = array<i64: 16, 128>}]} {
    %c0 = arith.constant 0 : index
    %c0_0 = arith.constant 0 : index
    %0 = vector.load %arg2[%c0, %c0_0] : memref<16x128xbf16, #tpu.memory_space<vmem>>, vector<16x128xbf16>
    %c0_1 = arith.constant 0 : index
    %c0_2 = arith.constant 0 : index
    %1 = vector.load %arg3[%c0_1, %c0_2] : memref<128x128xbf16, #tpu.memory_space<vmem>>, vector<128x128xbf16>
    %cst = arith.constant dense<0.000000e+00> : vector<16x128xf32>
    %2 = tpu.matmul %0, %1, %cst {dimension_numbers = #tpu.dot_dimension_numbers<[1], [0], [0], [1], [0, 0, 1, 1], [], []>} : vector<16x128xbf16>, vector<128x128xbf16>, vector<16x128xf32> -> vector<16x128xf32>
    %c0_3 = arith.constant 0 : index
    %c0_4 = arith.constant 0 : index
    %3 = vector.load %arg4[%c0_3, %c0_4] : memref<1x128xf32, #tpu.memory_space<vmem>>, vector<1x128xf32>
    %4 = vector.broadcast %3 : vector<1x128xf32> to vector<16x128xf32>
    %5 = arith.mulf %2, %4 : vector<16x128xf32>
    %c0_5 = arith.constant 0 : index
    %c0_6 = arith.constant 0 : index
    %6 = vector.load %arg5[%c0_5, %c0_6] : memref<1x128xf32, #tpu.memory_space<vmem>>, vector<1x128xf32>
    %7 = vector.broadcast %6 : vector<1x128xf32> to vector<16x128xf32>
    %8 = arith.addf %5, %7 : vector<16x128xf32>
    %c0_7 = arith.constant 0 : index
    %c0_8 = arith.constant 0 : index
    %9 = vector.load %arg6[%c0_7, %c0_8] : memref<16x128xbf16, #tpu.memory_space<vmem>>, vector<16x128xbf16>
    %10 = arith.extf %9 : vector<16x128xbf16> to vector<16x128xf32>
    %11 = arith.addf %8, %10 : vector<16x128xf32>
    %cst_9 = arith.constant 0.000000e+00 : f32
    %12 = vector.broadcast %cst_9 : f32 to vector<16x128xf32>
    %13 = arith.maximumf %11, %12 : vector<16x128xf32>
    %14 = arith.truncf %13 : vector<16x128xf32> to vector<16x128xbf16>
    %c0_10 = arith.constant 0 : index
    %c0_11 = arith.constant 0 : index
    %15 = vector.load %arg7[%c0_10, %c0_11] : memref<16x128xbf16, #tpu.memory_space<vmem>>, vector<16x128xbf16>
    tpu.vector_store %arg7[%c0_10, %c0_11], %14 {strides = array<i32>} : memref<16x128xbf16, #tpu.memory_space<vmem>>, vector<16x128xbf16>,
    return
  }
  func.func @transform_0(%arg0: i32, %arg1: i32) -> (i32, i32) {
    %c0_i32 = arith.constant 0 : i32
    %c0_i32_0 = arith.constant 0 : i32
    return %arg1, %c0_i32 : i32, i32
  }
  func.func @transform_1(%arg0: i32, %arg1: i32) -> (i32, i32) {
    %c0_i32 = arith.constant 0 : i32
    %c0_i32_0 = arith.constant 0 : i32
    return %c0_i32, %arg0 : i32, i32
  }
  func.func @transform_2(%arg0: i32, %arg1: i32) -> (i32, i32) {
    %c0_i32 = arith.constant 0 : i32
    %c0_i32_0 = arith.constant 0 : i32
    return %c0_i32, %arg0 : i32, i32
  }
  func.func @transform_3(%arg0: i32, %arg1: i32) -> (i32, i32) {
    %c0_i32 = arith.constant 0 : i32
    %c0_i32_0 = arith.constant 0 : i32
    return %c0_i32, %arg0 : i32, i32
  }
  func.func @transform_4(%arg0: i32, %arg1: i32) -> (i32, i32) {
    %c0_i32 = arith.constant 0 : i32
    return %arg1, %arg0 : i32, i32
  }
  func.func @transform_5(%arg0: i32, %arg1: i32) -> (i32, i32) {
    %c0_i32 = arith.constant 0 : i32
    return %arg1, %arg0 : i32, i32
  }
}

module attributes {stable_mosaic.version = 11 : i64} {
  func.func @_direct_conv_kernel(%arg0: i32, %arg1: i32, %arg2: memref<1x6x3x128xbf16, #tpu.memory_space<vmem>>, %arg3: memref<1x6x3x128xbf16, #tpu.memory_space<vmem>>, %arg4: memref<9x128x128xbf16, #tpu.memory_space<vmem>>, %arg5: memref<1x128xf32, #tpu.memory_space<vmem>>, %arg6: memref<1x128xf32, #tpu.memory_space<vmem>>, %arg7: memref<1x2x2x128xbf16, #tpu.memory_space<vmem>>) attributes {dimension_semantics = [#tpu.dimension_semantics<parallel>, #tpu.dimension_semantics<parallel>], iteration_bounds = array<i64: 2, 1>, scalar_prefetch = 0 : i64, scratch_operands = 0 : i64, tpu.core_type = #tpu.core_type<tc>, window_params = [{transform_indices = @transform_0, window_bounds = array<i64: 1, 6, 3, 128>}, {transform_indices = @transform_1, window_bounds = array<i64: 1, 6, 3, 128>}, {transform_indices = @transform_2, window_bounds = array<i64: 9, 128, 128>}, {transform_indices = @transform_3, window_bounds = array<i64: 1, 128>}, {transform_indices = @transform_4, window_bounds = array<i64: 1, 128>}, {transform_indices = @transform_5, window_bounds = array<i64: 1, 2, 2, 128>}]} {
    %c0 = arith.constant 0 : index
    %c0_0 = arith.constant 0 : index
    %0 = vector.load %arg5[%c0, %c0_0] : memref<1x128xf32, #tpu.memory_space<vmem>>, vector<1x128xf32>
    %c0_1 = arith.constant 0 : index
    %c0_2 = arith.constant 0 : index
    %1 = vector.load %arg6[%c0_1, %c0_2] : memref<1x128xf32, #tpu.memory_space<vmem>>, vector<1x128xf32>
    %cst = arith.constant 0.000000e+00 : f32
    %2 = vector.broadcast %cst : f32 to vector<2x128xf32>
    %c0_3 = arith.constant 0 : index
    %c0_4 = arith.constant 0 : index
    %c0_5 = arith.constant 0 : index
    %c0_6 = arith.constant 0 : index
    %3 = vector.load %arg2[%c0_3, %c0_4, %c0_5, %c0_6] : memref<1x6x3x128xbf16, #tpu.memory_space<vmem>>, vector<1x1x2x128xbf16>
    %4 = vector.shape_cast %3 : vector<1x1x2x128xbf16> to vector<2x128xbf16>
    %c0_7 = arith.constant 0 : index
    %c0_8 = arith.constant 0 : index
    %c0_9 = arith.constant 0 : index
    %5 = vector.load %arg4[%c0_7, %c0_8, %c0_9] : memref<9x128x128xbf16, #tpu.memory_space<vmem>>, vector<1x128x128xbf16>
    %6 = vector.shape_cast %5 : vector<1x128x128xbf16> to vector<128x128xbf16>
    %cst_10 = arith.constant dense<0.000000e+00> : vector<2x128xf32>
    %7 = tpu.matmul %4, %6, %cst_10 {dimension_numbers = #tpu.dot_dimension_numbers<[1], [0], [0], [1], [0, 0, 1, 1], [], []>} : vector<2x128xbf16>, vector<128x128xbf16>, vector<2x128xf32> -> vector<2x128xf32>
    %8 = arith.addf %2, %7 : vector<2x128xf32>
    %c0_11 = arith.constant 0 : index
    %c0_12 = arith.constant 0 : index
    %c0_13 = arith.constant 0 : index
    %c0_14 = arith.constant 0 : index
    %9 = vector.load %arg3[%c0_11, %c0_12, %c0_13, %c0_14] : memref<1x6x3x128xbf16, #tpu.memory_space<vmem>>, vector<1x1x2x128xbf16>
    %10 = vector.shape_cast %9 : vector<1x1x2x128xbf16> to vector<2x128xbf16>
    %c1 = arith.constant 1 : index
    %c0_15 = arith.constant 0 : index
    %c0_16 = arith.constant 0 : index
    %11 = vector.load %arg4[%c1, %c0_15, %c0_16] : memref<9x128x128xbf16, #tpu.memory_space<vmem>>, vector<1x128x128xbf16>
    %12 = vector.shape_cast %11 : vector<1x128x128xbf16> to vector<128x128xbf16>
    %cst_17 = arith.constant dense<0.000000e+00> : vector<2x128xf32>
    %13 = tpu.matmul %10, %12, %cst_17 {dimension_numbers = #tpu.dot_dimension_numbers<[1], [0], [0], [1], [0, 0, 1, 1], [], []>} : vector<2x128xbf16>, vector<128x128xbf16>, vector<2x128xf32> -> vector<2x128xf32>
    %14 = arith.addf %8, %13 : vector<2x128xf32>
    %c0_18 = arith.constant 0 : index
    %c0_19 = arith.constant 0 : index
    %c1_20 = arith.constant 1 : index
    %c0_21 = arith.constant 0 : index
    %15 = vector.load %arg2[%c0_18, %c0_19, %c1_20, %c0_21] : memref<1x6x3x128xbf16, #tpu.memory_space<vmem>>, vector<1x1x2x128xbf16>
    %16 = vector.shape_cast %15 : vector<1x1x2x128xbf16> to vector<2x128xbf16>
    %c2 = arith.constant 2 : index
    %c0_22 = arith.constant 0 : index
    %c0_23 = arith.constant 0 : index
    %17 = vector.load %arg4[%c2, %c0_22, %c0_23] : memref<9x128x128xbf16, #tpu.memory_space<vmem>>, vector<1x128x128xbf16>
    %18 = vector.shape_cast %17 : vector<1x128x128xbf16> to vector<128x128xbf16>
    %cst_24 = arith.constant dense<0.000000e+00> : vector<2x128xf32>
    %19 = tpu.matmul %16, %18, %cst_24 {dimension_numbers = #tpu.dot_dimension_numbers<[1], [0], [0], [1], [0, 0, 1, 1], [], []>} : vector<2x128xbf16>, vector<128x128xbf16>, vector<2x128xf32> -> vector<2x128xf32>
    %20 = arith.addf %14, %19 : vector<2x128xf32>
    %c0_25 = arith.constant 0 : index
    %c1_26 = arith.constant 1 : index
    %c0_27 = arith.constant 0 : index
    %c0_28 = arith.constant 0 : index
    %21 = vector.load %arg2[%c0_25, %c1_26, %c0_27, %c0_28] : memref<1x6x3x128xbf16, #tpu.memory_space<vmem>>, vector<1x1x2x128xbf16>
    %22 = vector.shape_cast %21 : vector<1x1x2x128xbf16> to vector<2x128xbf16>
    %c3 = arith.constant 3 : index
    %c0_29 = arith.constant 0 : index
    %c0_30 = arith.constant 0 : index
    %23 = vector.load %arg4[%c3, %c0_29, %c0_30] : memref<9x128x128xbf16, #tpu.memory_space<vmem>>, vector<1x128x128xbf16>
    %24 = vector.shape_cast %23 : vector<1x128x128xbf16> to vector<128x128xbf16>
    %cst_31 = arith.constant dense<0.000000e+00> : vector<2x128xf32>
    %25 = tpu.matmul %22, %24, %cst_31 {dimension_numbers = #tpu.dot_dimension_numbers<[1], [0], [0], [1], [0, 0, 1, 1], [], []>} : vector<2x128xbf16>, vector<128x128xbf16>, vector<2x128xf32> -> vector<2x128xf32>
    %26 = arith.addf %20, %25 : vector<2x128xf32>
    %c0_32 = arith.constant 0 : index
    %c1_33 = arith.constant 1 : index
    %c0_34 = arith.constant 0 : index
    %c0_35 = arith.constant 0 : index
    %27 = vector.load %arg3[%c0_32, %c1_33, %c0_34, %c0_35] : memref<1x6x3x128xbf16, #tpu.memory_space<vmem>>, vector<1x1x2x128xbf16>
    %28 = vector.shape_cast %27 : vector<1x1x2x128xbf16> to vector<2x128xbf16>
    %c4 = arith.constant 4 : index
    %c0_36 = arith.constant 0 : index
    %c0_37 = arith.constant 0 : index
    %29 = vector.load %arg4[%c4, %c0_36, %c0_37] : memref<9x128x128xbf16, #tpu.memory_space<vmem>>, vector<1x128x128xbf16>
    %30 = vector.shape_cast %29 : vector<1x128x128xbf16> to vector<128x128xbf16>
    %cst_38 = arith.constant dense<0.000000e+00> : vector<2x128xf32>
    %31 = tpu.matmul %28, %30, %cst_38 {dimension_numbers = #tpu.dot_dimension_numbers<[1], [0], [0], [1], [0, 0, 1, 1], [], []>} : vector<2x128xbf16>, vector<128x128xbf16>, vector<2x128xf32> -> vector<2x128xf32>
    %32 = arith.addf %26, %31 : vector<2x128xf32>
    %c0_39 = arith.constant 0 : index
    %c1_40 = arith.constant 1 : index
    %c1_41 = arith.constant 1 : index
    %c0_42 = arith.constant 0 : index
    %33 = vector.load %arg2[%c0_39, %c1_40, %c1_41, %c0_42] : memref<1x6x3x128xbf16, #tpu.memory_space<vmem>>, vector<1x1x2x128xbf16>
    %34 = vector.shape_cast %33 : vector<1x1x2x128xbf16> to vector<2x128xbf16>
    %c5 = arith.constant 5 : index
    %c0_43 = arith.constant 0 : index
    %c0_44 = arith.constant 0 : index
    %35 = vector.load %arg4[%c5, %c0_43, %c0_44] : memref<9x128x128xbf16, #tpu.memory_space<vmem>>, vector<1x128x128xbf16>
    %36 = vector.shape_cast %35 : vector<1x128x128xbf16> to vector<128x128xbf16>
    %cst_45 = arith.constant dense<0.000000e+00> : vector<2x128xf32>
    %37 = tpu.matmul %34, %36, %cst_45 {dimension_numbers = #tpu.dot_dimension_numbers<[1], [0], [0], [1], [0, 0, 1, 1], [], []>} : vector<2x128xbf16>, vector<128x128xbf16>, vector<2x128xf32> -> vector<2x128xf32>
    %38 = arith.addf %32, %37 : vector<2x128xf32>
    %c0_46 = arith.constant 0 : index
    %c2_47 = arith.constant 2 : index
    %c0_48 = arith.constant 0 : index
    %c0_49 = arith.constant 0 : index
    %39 = vector.load %arg2[%c0_46, %c2_47, %c0_48, %c0_49] : memref<1x6x3x128xbf16, #tpu.memory_space<vmem>>, vector<1x1x2x128xbf16>
    %40 = vector.shape_cast %39 : vector<1x1x2x128xbf16> to vector<2x128xbf16>
    %c6 = arith.constant 6 : index
    %c0_50 = arith.constant 0 : index
    %c0_51 = arith.constant 0 : index
    %41 = vector.load %arg4[%c6, %c0_50, %c0_51] : memref<9x128x128xbf16, #tpu.memory_space<vmem>>, vector<1x128x128xbf16>
    %42 = vector.shape_cast %41 : vector<1x128x128xbf16> to vector<128x128xbf16>
    %cst_52 = arith.constant dense<0.000000e+00> : vector<2x128xf32>
    %43 = tpu.matmul %40, %42, %cst_52 {dimension_numbers = #tpu.dot_dimension_numbers<[1], [0], [0], [1], [0, 0, 1, 1], [], []>} : vector<2x128xbf16>, vector<128x128xbf16>, vector<2x128xf32> -> vector<2x128xf32>
    %44 = arith.addf %38, %43 : vector<2x128xf32>
    %c0_53 = arith.constant 0 : index
    %c2_54 = arith.constant 2 : index
    %c0_55 = arith.constant 0 : index
    %c0_56 = arith.constant 0 : index
    %45 = vector.load %arg3[%c0_53, %c2_54, %c0_55, %c0_56] : memref<1x6x3x128xbf16, #tpu.memory_space<vmem>>, vector<1x1x2x128xbf16>
    %46 = vector.shape_cast %45 : vector<1x1x2x128xbf16> to vector<2x128xbf16>
    %c7 = arith.constant 7 : index
    %c0_57 = arith.constant 0 : index
    %c0_58 = arith.constant 0 : index
    %47 = vector.load %arg4[%c7, %c0_57, %c0_58] : memref<9x128x128xbf16, #tpu.memory_space<vmem>>, vector<1x128x128xbf16>
    %48 = vector.shape_cast %47 : vector<1x128x128xbf16> to vector<128x128xbf16>
    %cst_59 = arith.constant dense<0.000000e+00> : vector<2x128xf32>
    %49 = tpu.matmul %46, %48, %cst_59 {dimension_numbers = #tpu.dot_dimension_numbers<[1], [0], [0], [1], [0, 0, 1, 1], [], []>} : vector<2x128xbf16>, vector<128x128xbf16>, vector<2x128xf32> -> vector<2x128xf32>
    %50 = arith.addf %44, %49 : vector<2x128xf32>
    %c0_60 = arith.constant 0 : index
    %c2_61 = arith.constant 2 : index
    %c1_62 = arith.constant 1 : index
    %c0_63 = arith.constant 0 : index
    %51 = vector.load %arg2[%c0_60, %c2_61, %c1_62, %c0_63] : memref<1x6x3x128xbf16, #tpu.memory_space<vmem>>, vector<1x1x2x128xbf16>
    %52 = vector.shape_cast %51 : vector<1x1x2x128xbf16> to vector<2x128xbf16>
    %c8 = arith.constant 8 : index
    %c0_64 = arith.constant 0 : index
    %c0_65 = arith.constant 0 : index
    %53 = vector.load %arg4[%c8, %c0_64, %c0_65] : memref<9x128x128xbf16, #tpu.memory_space<vmem>>, vector<1x128x128xbf16>
    %54 = vector.shape_cast %53 : vector<1x128x128xbf16> to vector<128x128xbf16>
    %cst_66 = arith.constant dense<0.000000e+00> : vector<2x128xf32>
    %55 = tpu.matmul %52, %54, %cst_66 {dimension_numbers = #tpu.dot_dimension_numbers<[1], [0], [0], [1], [0, 0, 1, 1], [], []>} : vector<2x128xbf16>, vector<128x128xbf16>, vector<2x128xf32> -> vector<2x128xf32>
    %56 = arith.addf %50, %55 : vector<2x128xf32>
    %57 = vector.broadcast %0 : vector<1x128xf32> to vector<2x128xf32>
    %58 = arith.mulf %56, %57 : vector<2x128xf32>
    %59 = vector.broadcast %1 : vector<1x128xf32> to vector<2x128xf32>
    %60 = arith.addf %58, %59 : vector<2x128xf32>
    %cst_67 = arith.constant 0.000000e+00 : f32
    %61 = vector.broadcast %cst_67 : f32 to vector<2x128xf32>
    %62 = arith.maximumf %60, %61 : vector<2x128xf32>
    %63 = arith.truncf %62 : vector<2x128xf32> to vector<2x128xbf16>
    %c0_68 = arith.constant 0 : index
    %c0_69 = arith.constant 0 : index
    %c0_70 = arith.constant 0 : index
    %c0_71 = arith.constant 0 : index
    %64 = vector.load %arg7[%c0_68, %c0_69, %c0_70, %c0_71] : memref<1x2x2x128xbf16, #tpu.memory_space<vmem>>, vector<1x1x2x128xbf16>
    %65 = vector.shape_cast %64 : vector<1x1x2x128xbf16> to vector<2x128xbf16>
    %66 = vector.shape_cast %63 : vector<2x128xbf16> to vector<1x1x2x128xbf16>
    tpu.vector_store %arg7[%c0_68, %c0_69, %c0_70, %c0_71], %66 {strides = array<i32>} : memref<1x2x2x128xbf16, #tpu.memory_space<vmem>>, vector<1x1x2x128xbf16>,
    %cst_72 = arith.constant 0.000000e+00 : f32
    %67 = vector.broadcast %cst_72 : f32 to vector<2x128xf32>
    %c0_73 = arith.constant 0 : index
    %c2_74 = arith.constant 2 : index
    %c0_75 = arith.constant 0 : index
    %c0_76 = arith.constant 0 : index
    %68 = vector.load %arg2[%c0_73, %c2_74, %c0_75, %c0_76] : memref<1x6x3x128xbf16, #tpu.memory_space<vmem>>, vector<1x1x2x128xbf16>
    %69 = vector.shape_cast %68 : vector<1x1x2x128xbf16> to vector<2x128xbf16>
    %c0_77 = arith.constant 0 : index
    %c0_78 = arith.constant 0 : index
    %c0_79 = arith.constant 0 : index
    %70 = vector.load %arg4[%c0_77, %c0_78, %c0_79] : memref<9x128x128xbf16, #tpu.memory_space<vmem>>, vector<1x128x128xbf16>
    %71 = vector.shape_cast %70 : vector<1x128x128xbf16> to vector<128x128xbf16>
    %cst_80 = arith.constant dense<0.000000e+00> : vector<2x128xf32>
    %72 = tpu.matmul %69, %71, %cst_80 {dimension_numbers = #tpu.dot_dimension_numbers<[1], [0], [0], [1], [0, 0, 1, 1], [], []>} : vector<2x128xbf16>, vector<128x128xbf16>, vector<2x128xf32> -> vector<2x128xf32>
    %73 = arith.addf %67, %72 : vector<2x128xf32>
    %c0_81 = arith.constant 0 : index
    %c2_82 = arith.constant 2 : index
    %c0_83 = arith.constant 0 : index
    %c0_84 = arith.constant 0 : index
    %74 = vector.load %arg3[%c0_81, %c2_82, %c0_83, %c0_84] : memref<1x6x3x128xbf16, #tpu.memory_space<vmem>>, vector<1x1x2x128xbf16>
    %75 = vector.shape_cast %74 : vector<1x1x2x128xbf16> to vector<2x128xbf16>
    %c1_85 = arith.constant 1 : index
    %c0_86 = arith.constant 0 : index
    %c0_87 = arith.constant 0 : index
    %76 = vector.load %arg4[%c1_85, %c0_86, %c0_87] : memref<9x128x128xbf16, #tpu.memory_space<vmem>>, vector<1x128x128xbf16>
    %77 = vector.shape_cast %76 : vector<1x128x128xbf16> to vector<128x128xbf16>
    %cst_88 = arith.constant dense<0.000000e+00> : vector<2x128xf32>
    %78 = tpu.matmul %75, %77, %cst_88 {dimension_numbers = #tpu.dot_dimension_numbers<[1], [0], [0], [1], [0, 0, 1, 1], [], []>} : vector<2x128xbf16>, vector<128x128xbf16>, vector<2x128xf32> -> vector<2x128xf32>
    %79 = arith.addf %73, %78 : vector<2x128xf32>
    %c0_89 = arith.constant 0 : index
    %c2_90 = arith.constant 2 : index
    %c1_91 = arith.constant 1 : index
    %c0_92 = arith.constant 0 : index
    %80 = vector.load %arg2[%c0_89, %c2_90, %c1_91, %c0_92] : memref<1x6x3x128xbf16, #tpu.memory_space<vmem>>, vector<1x1x2x128xbf16>
    %81 = vector.shape_cast %80 : vector<1x1x2x128xbf16> to vector<2x128xbf16>
    %c2_93 = arith.constant 2 : index
    %c0_94 = arith.constant 0 : index
    %c0_95 = arith.constant 0 : index
    %82 = vector.load %arg4[%c2_93, %c0_94, %c0_95] : memref<9x128x128xbf16, #tpu.memory_space<vmem>>, vector<1x128x128xbf16>
    %83 = vector.shape_cast %82 : vector<1x128x128xbf16> to vector<128x128xbf16>
    %cst_96 = arith.constant dense<0.000000e+00> : vector<2x128xf32>
    %84 = tpu.matmul %81, %83, %cst_96 {dimension_numbers = #tpu.dot_dimension_numbers<[1], [0], [0], [1], [0, 0, 1, 1], [], []>} : vector<2x128xbf16>, vector<128x128xbf16>, vector<2x128xf32> -> vector<2x128xf32>
    %85 = arith.addf %79, %84 : vector<2x128xf32>
    %c0_97 = arith.constant 0 : index
    %c3_98 = arith.constant 3 : index
    %c0_99 = arith.constant 0 : index
    %c0_100 = arith.constant 0 : index
    %86 = vector.load %arg2[%c0_97, %c3_98, %c0_99, %c0_100] : memref<1x6x3x128xbf16, #tpu.memory_space<vmem>>, vector<1x1x2x128xbf16>
    %87 = vector.shape_cast %86 : vector<1x1x2x128xbf16> to vector<2x128xbf16>
    %c3_101 = arith.constant 3 : index
    %c0_102 = arith.constant 0 : index
    %c0_103 = arith.constant 0 : index
    %88 = vector.load %arg4[%c3_101, %c0_102, %c0_103] : memref<9x128x128xbf16, #tpu.memory_space<vmem>>, vector<1x128x128xbf16>
    %89 = vector.shape_cast %88 : vector<1x128x128xbf16> to vector<128x128xbf16>
    %cst_104 = arith.constant dense<0.000000e+00> : vector<2x128xf32>
    %90 = tpu.matmul %87, %89, %cst_104 {dimension_numbers = #tpu.dot_dimension_numbers<[1], [0], [0], [1], [0, 0, 1, 1], [], []>} : vector<2x128xbf16>, vector<128x128xbf16>, vector<2x128xf32> -> vector<2x128xf32>
    %91 = arith.addf %85, %90 : vector<2x128xf32>
    %c0_105 = arith.constant 0 : index
    %c3_106 = arith.constant 3 : index
    %c0_107 = arith.constant 0 : index
    %c0_108 = arith.constant 0 : index
    %92 = vector.load %arg3[%c0_105, %c3_106, %c0_107, %c0_108] : memref<1x6x3x128xbf16, #tpu.memory_space<vmem>>, vector<1x1x2x128xbf16>
    %93 = vector.shape_cast %92 : vector<1x1x2x128xbf16> to vector<2x128xbf16>
    %c4_109 = arith.constant 4 : index
    %c0_110 = arith.constant 0 : index
    %c0_111 = arith.constant 0 : index
    %94 = vector.load %arg4[%c4_109, %c0_110, %c0_111] : memref<9x128x128xbf16, #tpu.memory_space<vmem>>, vector<1x128x128xbf16>
    %95 = vector.shape_cast %94 : vector<1x128x128xbf16> to vector<128x128xbf16>
    %cst_112 = arith.constant dense<0.000000e+00> : vector<2x128xf32>
    %96 = tpu.matmul %93, %95, %cst_112 {dimension_numbers = #tpu.dot_dimension_numbers<[1], [0], [0], [1], [0, 0, 1, 1], [], []>} : vector<2x128xbf16>, vector<128x128xbf16>, vector<2x128xf32> -> vector<2x128xf32>
    %97 = arith.addf %91, %96 : vector<2x128xf32>
    %c0_113 = arith.constant 0 : index
    %c3_114 = arith.constant 3 : index
    %c1_115 = arith.constant 1 : index
    %c0_116 = arith.constant 0 : index
    %98 = vector.load %arg2[%c0_113, %c3_114, %c1_115, %c0_116] : memref<1x6x3x128xbf16, #tpu.memory_space<vmem>>, vector<1x1x2x128xbf16>
    %99 = vector.shape_cast %98 : vector<1x1x2x128xbf16> to vector<2x128xbf16>
    %c5_117 = arith.constant 5 : index
    %c0_118 = arith.constant 0 : index
    %c0_119 = arith.constant 0 : index
    %100 = vector.load %arg4[%c5_117, %c0_118, %c0_119] : memref<9x128x128xbf16, #tpu.memory_space<vmem>>, vector<1x128x128xbf16>
    %101 = vector.shape_cast %100 : vector<1x128x128xbf16> to vector<128x128xbf16>
    %cst_120 = arith.constant dense<0.000000e+00> : vector<2x128xf32>
    %102 = tpu.matmul %99, %101, %cst_120 {dimension_numbers = #tpu.dot_dimension_numbers<[1], [0], [0], [1], [0, 0, 1, 1], [], []>} : vector<2x128xbf16>, vector<128x128xbf16>, vector<2x128xf32> -> vector<2x128xf32>
    %103 = arith.addf %97, %102 : vector<2x128xf32>
    %c0_121 = arith.constant 0 : index
    %c4_122 = arith.constant 4 : index
    %c0_123 = arith.constant 0 : index
    %c0_124 = arith.constant 0 : index
    %104 = vector.load %arg2[%c0_121, %c4_122, %c0_123, %c0_124] : memref<1x6x3x128xbf16, #tpu.memory_space<vmem>>, vector<1x1x2x128xbf16>
    %105 = vector.shape_cast %104 : vector<1x1x2x128xbf16> to vector<2x128xbf16>
    %c6_125 = arith.constant 6 : index
    %c0_126 = arith.constant 0 : index
    %c0_127 = arith.constant 0 : index
    %106 = vector.load %arg4[%c6_125, %c0_126, %c0_127] : memref<9x128x128xbf16, #tpu.memory_space<vmem>>, vector<1x128x128xbf16>
    %107 = vector.shape_cast %106 : vector<1x128x128xbf16> to vector<128x128xbf16>
    %cst_128 = arith.constant dense<0.000000e+00> : vector<2x128xf32>
    %108 = tpu.matmul %105, %107, %cst_128 {dimension_numbers = #tpu.dot_dimension_numbers<[1], [0], [0], [1], [0, 0, 1, 1], [], []>} : vector<2x128xbf16>, vector<128x128xbf16>, vector<2x128xf32> -> vector<2x128xf32>
    %109 = arith.addf %103, %108 : vector<2x128xf32>
    %c0_129 = arith.constant 0 : index
    %c4_130 = arith.constant 4 : index
    %c0_131 = arith.constant 0 : index
    %c0_132 = arith.constant 0 : index
    %110 = vector.load %arg3[%c0_129, %c4_130, %c0_131, %c0_132] : memref<1x6x3x128xbf16, #tpu.memory_space<vmem>>, vector<1x1x2x128xbf16>
    %111 = vector.shape_cast %110 : vector<1x1x2x128xbf16> to vector<2x128xbf16>
    %c7_133 = arith.constant 7 : index
    %c0_134 = arith.constant 0 : index
    %c0_135 = arith.constant 0 : index
    %112 = vector.load %arg4[%c7_133, %c0_134, %c0_135] : memref<9x128x128xbf16, #tpu.memory_space<vmem>>, vector<1x128x128xbf16>
    %113 = vector.shape_cast %112 : vector<1x128x128xbf16> to vector<128x128xbf16>
    %cst_136 = arith.constant dense<0.000000e+00> : vector<2x128xf32>
    %114 = tpu.matmul %111, %113, %cst_136 {dimension_numbers = #tpu.dot_dimension_numbers<[1], [0], [0], [1], [0, 0, 1, 1], [], []>} : vector<2x128xbf16>, vector<128x128xbf16>, vector<2x128xf32> -> vector<2x128xf32>
    %115 = arith.addf %109, %114 : vector<2x128xf32>
    %c0_137 = arith.constant 0 : index
    %c4_138 = arith.constant 4 : index
    %c1_139 = arith.constant 1 : index
    %c0_140 = arith.constant 0 : index
    %116 = vector.load %arg2[%c0_137, %c4_138, %c1_139, %c0_140] : memref<1x6x3x128xbf16, #tpu.memory_space<vmem>>, vector<1x1x2x128xbf16>
    %117 = vector.shape_cast %116 : vector<1x1x2x128xbf16> to vector<2x128xbf16>
    %c8_141 = arith.constant 8 : index
    %c0_142 = arith.constant 0 : index
    %c0_143 = arith.constant 0 : index
    %118 = vector.load %arg4[%c8_141, %c0_142, %c0_143] : memref<9x128x128xbf16, #tpu.memory_space<vmem>>, vector<1x128x128xbf16>
    %119 = vector.shape_cast %118 : vector<1x128x128xbf16> to vector<128x128xbf16>
    %cst_144 = arith.constant dense<0.000000e+00> : vector<2x128xf32>
    %120 = tpu.matmul %117, %119, %cst_144 {dimension_numbers = #tpu.dot_dimension_numbers<[1], [0], [0], [1], [0, 0, 1, 1], [], []>} : vector<2x128xbf16>, vector<128x128xbf16>, vector<2x128xf32> -> vector<2x128xf32>
    %121 = arith.addf %115, %120 : vector<2x128xf32>
    %122 = vector.broadcast %0 : vector<1x128xf32> to vector<2x128xf32>
    %123 = arith.mulf %121, %122 : vector<2x128xf32>
    %124 = vector.broadcast %1 : vector<1x128xf32> to vector<2x128xf32>
    %125 = arith.addf %123, %124 : vector<2x128xf32>
    %cst_145 = arith.constant 0.000000e+00 : f32
    %126 = vector.broadcast %cst_145 : f32 to vector<2x128xf32>
    %127 = arith.maximumf %125, %126 : vector<2x128xf32>
    %128 = arith.truncf %127 : vector<2x128xf32> to vector<2x128xbf16>
    %c0_146 = arith.constant 0 : index
    %c1_147 = arith.constant 1 : index
    %c0_148 = arith.constant 0 : index
    %c0_149 = arith.constant 0 : index
    %129 = vector.load %arg7[%c0_146, %c1_147, %c0_148, %c0_149] : memref<1x2x2x128xbf16, #tpu.memory_space<vmem>>, vector<1x1x2x128xbf16>
    %130 = vector.shape_cast %129 : vector<1x1x2x128xbf16> to vector<2x128xbf16>
    %131 = vector.shape_cast %128 : vector<2x128xbf16> to vector<1x1x2x128xbf16>
    tpu.vector_store %arg7[%c0_146, %c1_147, %c0_148, %c0_149], %131 {strides = array<i32>} : memref<1x2x2x128xbf16, #tpu.memory_space<vmem>>, vector<1x1x2x128xbf16>,
    return
  }
  func.func @transform_0(%arg0: i32, %arg1: i32) -> (i32, i32, i32, i32) {
    %c0_i32 = arith.constant 0 : i32
    %c0_i32_0 = arith.constant 0 : i32
    %c0_i32_1 = arith.constant 0 : i32
    %c0_i32_2 = arith.constant 0 : i32
    return %arg0, %c0_i32, %c0_i32_0, %c0_i32_1 : i32, i32, i32, i32
  }
  func.func @transform_1(%arg0: i32, %arg1: i32) -> (i32, i32, i32, i32) {
    %c0_i32 = arith.constant 0 : i32
    %c0_i32_0 = arith.constant 0 : i32
    %c0_i32_1 = arith.constant 0 : i32
    %c0_i32_2 = arith.constant 0 : i32
    return %arg0, %c0_i32, %c0_i32_0, %c0_i32_1 : i32, i32, i32, i32
  }
  func.func @transform_2(%arg0: i32, %arg1: i32) -> (i32, i32, i32) {
    %c0_i32 = arith.constant 0 : i32
    %c0_i32_0 = arith.constant 0 : i32
    %c0_i32_1 = arith.constant 0 : i32
    return %c0_i32, %c0_i32_0, %arg1 : i32, i32, i32
  }
  func.func @transform_3(%arg0: i32, %arg1: i32) -> (i32, i32) {
    %c0_i32 = arith.constant 0 : i32
    %c0_i32_0 = arith.constant 0 : i32
    return %c0_i32, %arg1 : i32, i32
  }
  func.func @transform_4(%arg0: i32, %arg1: i32) -> (i32, i32) {
    %c0_i32 = arith.constant 0 : i32
    %c0_i32_0 = arith.constant 0 : i32
    return %c0_i32, %arg1 : i32, i32
  }
  func.func @transform_5(%arg0: i32, %arg1: i32) -> (i32, i32, i32, i32) {
    %c0_i32 = arith.constant 0 : i32
    %c0_i32_0 = arith.constant 0 : i32
    %c0_i32_1 = arith.constant 0 : i32
    return %arg0, %c0_i32, %c0_i32_0, %arg1 : i32, i32, i32, i32
  }
}

module attributes {stable_mosaic.version = 11 : i64} {
  func.func @_gemm_bn_kernel(%arg0: i32, %arg1: i32, %arg2: memref<16x128xbf16, #tpu.memory_space<vmem>>, %arg3: memref<128x128xbf16, #tpu.memory_space<vmem>>, %arg4: memref<1x128xf32, #tpu.memory_space<vmem>>, %arg5: memref<1x128xf32, #tpu.memory_space<vmem>>, %arg6: memref<16x128xbf16, #tpu.memory_space<vmem>>) attributes {dimension_semantics = [#tpu.dimension_semantics<parallel>, #tpu.dimension_semantics<parallel>], iteration_bounds = array<i64: 1, 1>, scalar_prefetch = 0 : i64, scratch_operands = 0 : i64, tpu.core_type = #tpu.core_type<tc>, window_params = [{transform_indices = @transform_0, window_bounds = array<i64: 16, 128>}, {transform_indices = @transform_1, window_bounds = array<i64: 128, 128>}, {transform_indices = @transform_2, window_bounds = array<i64: 1, 128>}, {transform_indices = @transform_3, window_bounds = array<i64: 1, 128>}, {transform_indices = @transform_4, window_bounds = array<i64: 16, 128>}]} {
    %c0 = arith.constant 0 : index
    %c0_0 = arith.constant 0 : index
    %0 = vector.load %arg2[%c0, %c0_0] : memref<16x128xbf16, #tpu.memory_space<vmem>>, vector<16x128xbf16>
    %c0_1 = arith.constant 0 : index
    %c0_2 = arith.constant 0 : index
    %1 = vector.load %arg3[%c0_1, %c0_2] : memref<128x128xbf16, #tpu.memory_space<vmem>>, vector<128x128xbf16>
    %cst = arith.constant dense<0.000000e+00> : vector<16x128xf32>
    %2 = tpu.matmul %0, %1, %cst {dimension_numbers = #tpu.dot_dimension_numbers<[1], [0], [0], [1], [0, 0, 1, 1], [], []>} : vector<16x128xbf16>, vector<128x128xbf16>, vector<16x128xf32> -> vector<16x128xf32>
    %c0_3 = arith.constant 0 : index
    %c0_4 = arith.constant 0 : index
    %3 = vector.load %arg4[%c0_3, %c0_4] : memref<1x128xf32, #tpu.memory_space<vmem>>, vector<1x128xf32>
    %4 = vector.broadcast %3 : vector<1x128xf32> to vector<16x128xf32>
    %5 = arith.mulf %2, %4 : vector<16x128xf32>
    %c0_5 = arith.constant 0 : index
    %c0_6 = arith.constant 0 : index
    %6 = vector.load %arg5[%c0_5, %c0_6] : memref<1x128xf32, #tpu.memory_space<vmem>>, vector<1x128xf32>
    %7 = vector.broadcast %6 : vector<1x128xf32> to vector<16x128xf32>
    %8 = arith.addf %5, %7 : vector<16x128xf32>
    %9 = arith.truncf %8 : vector<16x128xf32> to vector<16x128xbf16>
    %c0_7 = arith.constant 0 : index
    %c0_8 = arith.constant 0 : index
    %10 = vector.load %arg6[%c0_7, %c0_8] : memref<16x128xbf16, #tpu.memory_space<vmem>>, vector<16x128xbf16>
    tpu.vector_store %arg6[%c0_7, %c0_8], %9 {strides = array<i32>} : memref<16x128xbf16, #tpu.memory_space<vmem>>, vector<16x128xbf16>,
    return
  }
  func.func @transform_0(%arg0: i32, %arg1: i32) -> (i32, i32) {
    %c0_i32 = arith.constant 0 : i32
    %c0_i32_0 = arith.constant 0 : i32
    return %arg1, %c0_i32 : i32, i32
  }
  func.func @transform_1(%arg0: i32, %arg1: i32) -> (i32, i32) {
    %c0_i32 = arith.constant 0 : i32
    %c0_i32_0 = arith.constant 0 : i32
    return %c0_i32, %arg0 : i32, i32
  }
  func.func @transform_2(%arg0: i32, %arg1: i32) -> (i32, i32) {
    %c0_i32 = arith.constant 0 : i32
    %c0_i32_0 = arith.constant 0 : i32
    return %c0_i32, %arg0 : i32, i32
  }
  func.func @transform_3(%arg0: i32, %arg1: i32) -> (i32, i32) {
    %c0_i32 = arith.constant 0 : i32
    %c0_i32_0 = arith.constant 0 : i32
    return %c0_i32, %arg0 : i32, i32
  }
  func.func @transform_4(%arg0: i32, %arg1: i32) -> (i32, i32) {
    %c0_i32 = arith.constant 0 : i32
    return %arg1, %arg0 : i32, i32
  }
}

module attributes {stable_mosaic.version = 11 : i64} {
  func.func @_gemm_bn_res_kernel(%arg0: i32, %arg1: i32, %arg2: memref<16x128xbf16, #tpu.memory_space<vmem>>, %arg3: memref<128x128xbf16, #tpu.memory_space<vmem>>, %arg4: memref<1x128xf32, #tpu.memory_space<vmem>>, %arg5: memref<1x128xf32, #tpu.memory_space<vmem>>, %arg6: memref<16x128xbf16, #tpu.memory_space<vmem>>, %arg7: memref<16x128xbf16, #tpu.memory_space<vmem>>) attributes {dimension_semantics = [#tpu.dimension_semantics<parallel>, #tpu.dimension_semantics<parallel>], iteration_bounds = array<i64: 1, 1>, scalar_prefetch = 0 : i64, scratch_operands = 0 : i64, tpu.core_type = #tpu.core_type<tc>, window_params = [{transform_indices = @transform_0, window_bounds = array<i64: 16, 128>}, {transform_indices = @transform_1, window_bounds = array<i64: 128, 128>}, {transform_indices = @transform_2, window_bounds = array<i64: 1, 128>}, {transform_indices = @transform_3, window_bounds = array<i64: 1, 128>}, {transform_indices = @transform_4, window_bounds = array<i64: 16, 128>}, {transform_indices = @transform_5, window_bounds = array<i64: 16, 128>}]} {
    %c0 = arith.constant 0 : index
    %c0_0 = arith.constant 0 : index
    %0 = vector.load %arg2[%c0, %c0_0] : memref<16x128xbf16, #tpu.memory_space<vmem>>, vector<16x128xbf16>
    %c0_1 = arith.constant 0 : index
    %c0_2 = arith.constant 0 : index
    %1 = vector.load %arg3[%c0_1, %c0_2] : memref<128x128xbf16, #tpu.memory_space<vmem>>, vector<128x128xbf16>
    %cst = arith.constant dense<0.000000e+00> : vector<16x128xf32>
    %2 = tpu.matmul %0, %1, %cst {dimension_numbers = #tpu.dot_dimension_numbers<[1], [0], [0], [1], [0, 0, 1, 1], [], []>} : vector<16x128xbf16>, vector<128x128xbf16>, vector<16x128xf32> -> vector<16x128xf32>
    %c0_3 = arith.constant 0 : index
    %c0_4 = arith.constant 0 : index
    %3 = vector.load %arg4[%c0_3, %c0_4] : memref<1x128xf32, #tpu.memory_space<vmem>>, vector<1x128xf32>
    %4 = vector.broadcast %3 : vector<1x128xf32> to vector<16x128xf32>
    %5 = arith.mulf %2, %4 : vector<16x128xf32>
    %c0_5 = arith.constant 0 : index
    %c0_6 = arith.constant 0 : index
    %6 = vector.load %arg5[%c0_5, %c0_6] : memref<1x128xf32, #tpu.memory_space<vmem>>, vector<1x128xf32>
    %7 = vector.broadcast %6 : vector<1x128xf32> to vector<16x128xf32>
    %8 = arith.addf %5, %7 : vector<16x128xf32>
    %c0_7 = arith.constant 0 : index
    %c0_8 = arith.constant 0 : index
    %9 = vector.load %arg6[%c0_7, %c0_8] : memref<16x128xbf16, #tpu.memory_space<vmem>>, vector<16x128xbf16>
    %10 = arith.extf %9 : vector<16x128xbf16> to vector<16x128xf32>
    %11 = arith.addf %8, %10 : vector<16x128xf32>
    %cst_9 = arith.constant 0.000000e+00 : f32
    %12 = vector.broadcast %cst_9 : f32 to vector<16x128xf32>
    %13 = arith.maximumf %11, %12 : vector<16x128xf32>
    %14 = arith.truncf %13 : vector<16x128xf32> to vector<16x128xbf16>
    %c0_10 = arith.constant 0 : index
    %c0_11 = arith.constant 0 : index
    %15 = vector.load %arg7[%c0_10, %c0_11] : memref<16x128xbf16, #tpu.memory_space<vmem>>, vector<16x128xbf16>
    tpu.vector_store %arg7[%c0_10, %c0_11], %14 {strides = array<i32>} : memref<16x128xbf16, #tpu.memory_space<vmem>>, vector<16x128xbf16>,
    return
  }
  func.func @transform_0(%arg0: i32, %arg1: i32) -> (i32, i32) {
    %c0_i32 = arith.constant 0 : i32
    %c0_i32_0 = arith.constant 0 : i32
    return %arg1, %c0_i32 : i32, i32
  }
  func.func @transform_1(%arg0: i32, %arg1: i32) -> (i32, i32) {
    %c0_i32 = arith.constant 0 : i32
    %c0_i32_0 = arith.constant 0 : i32
    return %c0_i32, %arg0 : i32, i32
  }
  func.func @transform_2(%arg0: i32, %arg1: i32) -> (i32, i32) {
    %c0_i32 = arith.constant 0 : i32
    %c0_i32_0 = arith.constant 0 : i32
    return %c0_i32, %arg0 : i32, i32
  }
  func.func @transform_3(%arg0: i32, %arg1: i32) -> (i32, i32) {
    %c0_i32 = arith.constant 0 : i32
    %c0_i32_0 = arith.constant 0 : i32
    return %c0_i32, %arg0 : i32, i32
  }
  func.func @transform_4(%arg0: i32, %arg1: i32) -> (i32, i32) {
    %c0_i32 = arith.constant 0 : i32
    return %arg1, %arg0 : i32, i32
  }
  func.func @transform_5(%arg0: i32, %arg1: i32) -> (i32, i32) {
    %c0_i32 = arith.constant 0 : i32
    return %arg1, %arg0 : i32, i32
  }
}

module attributes {stable_mosaic.version = 11 : i64} {
  func.func @_gemm_bn_kernel(%arg0: i32, %arg1: i32, %arg2: memref<16x128xbf16, #tpu.memory_space<vmem>>, %arg3: memref<128x128xbf16, #tpu.memory_space<vmem>>, %arg4: memref<1x128xf32, #tpu.memory_space<vmem>>, %arg5: memref<1x128xf32, #tpu.memory_space<vmem>>, %arg6: memref<16x128xbf16, #tpu.memory_space<vmem>>) attributes {dimension_semantics = [#tpu.dimension_semantics<parallel>, #tpu.dimension_semantics<parallel>], iteration_bounds = array<i64: 1, 1>, scalar_prefetch = 0 : i64, scratch_operands = 0 : i64, tpu.core_type = #tpu.core_type<tc>, window_params = [{transform_indices = @transform_0, window_bounds = array<i64: 16, 128>}, {transform_indices = @transform_1, window_bounds = array<i64: 128, 128>}, {transform_indices = @transform_2, window_bounds = array<i64: 1, 128>}, {transform_indices = @transform_3, window_bounds = array<i64: 1, 128>}, {transform_indices = @transform_4, window_bounds = array<i64: 16, 128>}]} {
    %c0 = arith.constant 0 : index
    %c0_0 = arith.constant 0 : index
    %0 = vector.load %arg2[%c0, %c0_0] : memref<16x128xbf16, #tpu.memory_space<vmem>>, vector<16x128xbf16>
    %c0_1 = arith.constant 0 : index
    %c0_2 = arith.constant 0 : index
    %1 = vector.load %arg3[%c0_1, %c0_2] : memref<128x128xbf16, #tpu.memory_space<vmem>>, vector<128x128xbf16>
    %cst = arith.constant dense<0.000000e+00> : vector<16x128xf32>
    %2 = tpu.matmul %0, %1, %cst {dimension_numbers = #tpu.dot_dimension_numbers<[1], [0], [0], [1], [0, 0, 1, 1], [], []>} : vector<16x128xbf16>, vector<128x128xbf16>, vector<16x128xf32> -> vector<16x128xf32>
    %c0_3 = arith.constant 0 : index
    %c0_4 = arith.constant 0 : index
    %3 = vector.load %arg4[%c0_3, %c0_4] : memref<1x128xf32, #tpu.memory_space<vmem>>, vector<1x128xf32>
    %4 = vector.broadcast %3 : vector<1x128xf32> to vector<16x128xf32>
    %5 = arith.mulf %2, %4 : vector<16x128xf32>
    %c0_5 = arith.constant 0 : index
    %c0_6 = arith.constant 0 : index
    %6 = vector.load %arg5[%c0_5, %c0_6] : memref<1x128xf32, #tpu.memory_space<vmem>>, vector<1x128xf32>
    %7 = vector.broadcast %6 : vector<1x128xf32> to vector<16x128xf32>
    %8 = arith.addf %5, %7 : vector<16x128xf32>
    %cst_7 = arith.constant 0.000000e+00 : f32
    %9 = vector.broadcast %cst_7 : f32 to vector<16x128xf32>
    %10 = arith.maximumf %8, %9 : vector<16x128xf32>
    %11 = arith.truncf %10 : vector<16x128xf32> to vector<16x128xbf16>
    %c0_8 = arith.constant 0 : index
    %c0_9 = arith.constant 0 : index
    %12 = vector.load %arg6[%c0_8, %c0_9] : memref<16x128xbf16, #tpu.memory_space<vmem>>, vector<16x128xbf16>
    tpu.vector_store %arg6[%c0_8, %c0_9], %11 {strides = array<i32>} : memref<16x128xbf16, #tpu.memory_space<vmem>>, vector<16x128xbf16>,
    return
  }
  func.func @transform_0(%arg0: i32, %arg1: i32) -> (i32, i32) {
    %c0_i32 = arith.constant 0 : i32
    %c0_i32_0 = arith.constant 0 : i32
    return %arg1, %c0_i32 : i32, i32
  }
  func.func @transform_1(%arg0: i32, %arg1: i32) -> (i32, i32) {
    %c0_i32 = arith.constant 0 : i32
    %c0_i32_0 = arith.constant 0 : i32
    return %c0_i32, %arg0 : i32, i32
  }
  func.func @transform_2(%arg0: i32, %arg1: i32) -> (i32, i32) {
    %c0_i32 = arith.constant 0 : i32
    %c0_i32_0 = arith.constant 0 : i32
    return %c0_i32, %arg0 : i32, i32
  }
  func.func @transform_3(%arg0: i32, %arg1: i32) -> (i32, i32) {
    %c0_i32 = arith.constant 0 : i32
    %c0_i32_0 = arith.constant 0 : i32
    return %c0_i32, %arg0 : i32, i32
  }
  func.func @transform_4(%arg0: i32, %arg1: i32) -> (i32, i32) {
    %c0_i32 = arith.constant 0 : i32
    return %arg1, %arg0 : i32, i32
  }
}

module attributes {stable_mosaic.version = 11 : i64} {
  func.func @_direct_conv_kernel(%arg0: i32, %arg1: i32, %arg2: memref<1x4x2x128xbf16, #tpu.memory_space<vmem>>, %arg3: memref<1x4x2x128xbf16, #tpu.memory_space<vmem>>, %arg4: memref<9x128x128xbf16, #tpu.memory_space<vmem>>, %arg5: memref<1x128xf32, #tpu.memory_space<vmem>>, %arg6: memref<1x128xf32, #tpu.memory_space<vmem>>, %arg7: memref<1x1x1x128xbf16, #tpu.memory_space<vmem>>) attributes {dimension_semantics = [#tpu.dimension_semantics<parallel>, #tpu.dimension_semantics<parallel>], iteration_bounds = array<i64: 2, 1>, scalar_prefetch = 0 : i64, scratch_operands = 0 : i64, tpu.core_type = #tpu.core_type<tc>, window_params = [{transform_indices = @transform_0, window_bounds = array<i64: 1, 4, 2, 128>}, {transform_indices = @transform_1, window_bounds = array<i64: 1, 4, 2, 128>}, {transform_indices = @transform_2, window_bounds = array<i64: 9, 128, 128>}, {transform_indices = @transform_3, window_bounds = array<i64: 1, 128>}, {transform_indices = @transform_4, window_bounds = array<i64: 1, 128>}, {transform_indices = @transform_5, window_bounds = array<i64: 1, 1, 1, 128>}]} {
    %c0 = arith.constant 0 : index
    %c0_0 = arith.constant 0 : index
    %0 = vector.load %arg5[%c0, %c0_0] : memref<1x128xf32, #tpu.memory_space<vmem>>, vector<1x128xf32>
    %c0_1 = arith.constant 0 : index
    %c0_2 = arith.constant 0 : index
    %1 = vector.load %arg6[%c0_1, %c0_2] : memref<1x128xf32, #tpu.memory_space<vmem>>, vector<1x128xf32>
    %cst = arith.constant 0.000000e+00 : f32
    %2 = vector.broadcast %cst : f32 to vector<1x128xf32>
    %c0_3 = arith.constant 0 : index
    %c0_4 = arith.constant 0 : index
    %c0_5 = arith.constant 0 : index
    %c0_6 = arith.constant 0 : index
    %3 = vector.load %arg2[%c0_3, %c0_4, %c0_5, %c0_6] : memref<1x4x2x128xbf16, #tpu.memory_space<vmem>>, vector<1x1x1x128xbf16>
    %4 = vector.shape_cast %3 : vector<1x1x1x128xbf16> to vector<1x128xbf16>
    %c0_7 = arith.constant 0 : index
    %c0_8 = arith.constant 0 : index
    %c0_9 = arith.constant 0 : index
    %5 = vector.load %arg4[%c0_7, %c0_8, %c0_9] : memref<9x128x128xbf16, #tpu.memory_space<vmem>>, vector<1x128x128xbf16>
    %6 = vector.shape_cast %5 : vector<1x128x128xbf16> to vector<128x128xbf16>
    %cst_10 = arith.constant dense<0.000000e+00> : vector<1x128xf32>
    %7 = tpu.matmul %4, %6, %cst_10 {dimension_numbers = #tpu.dot_dimension_numbers<[1], [0], [0], [1], [0, 0, 1, 1], [], []>} : vector<1x128xbf16>, vector<128x128xbf16>, vector<1x128xf32> -> vector<1x128xf32>
    %8 = arith.addf %2, %7 : vector<1x128xf32>
    %c0_11 = arith.constant 0 : index
    %c0_12 = arith.constant 0 : index
    %c0_13 = arith.constant 0 : index
    %c0_14 = arith.constant 0 : index
    %9 = vector.load %arg3[%c0_11, %c0_12, %c0_13, %c0_14] : memref<1x4x2x128xbf16, #tpu.memory_space<vmem>>, vector<1x1x1x128xbf16>
    %10 = vector.shape_cast %9 : vector<1x1x1x128xbf16> to vector<1x128xbf16>
    %c1 = arith.constant 1 : index
    %c0_15 = arith.constant 0 : index
    %c0_16 = arith.constant 0 : index
    %11 = vector.load %arg4[%c1, %c0_15, %c0_16] : memref<9x128x128xbf16, #tpu.memory_space<vmem>>, vector<1x128x128xbf16>
    %12 = vector.shape_cast %11 : vector<1x128x128xbf16> to vector<128x128xbf16>
    %cst_17 = arith.constant dense<0.000000e+00> : vector<1x128xf32>
    %13 = tpu.matmul %10, %12, %cst_17 {dimension_numbers = #tpu.dot_dimension_numbers<[1], [0], [0], [1], [0, 0, 1, 1], [], []>} : vector<1x128xbf16>, vector<128x128xbf16>, vector<1x128xf32> -> vector<1x128xf32>
    %14 = arith.addf %8, %13 : vector<1x128xf32>
    %c0_18 = arith.constant 0 : index
    %c0_19 = arith.constant 0 : index
    %c1_20 = arith.constant 1 : index
    %c0_21 = arith.constant 0 : index
    %15 = vector.load %arg2[%c0_18, %c0_19, %c1_20, %c0_21] : memref<1x4x2x128xbf16, #tpu.memory_space<vmem>>, vector<1x1x1x128xbf16>
    %16 = vector.shape_cast %15 : vector<1x1x1x128xbf16> to vector<1x128xbf16>
    %c2 = arith.constant 2 : index
    %c0_22 = arith.constant 0 : index
    %c0_23 = arith.constant 0 : index
    %17 = vector.load %arg4[%c2, %c0_22, %c0_23] : memref<9x128x128xbf16, #tpu.memory_space<vmem>>, vector<1x128x128xbf16>
    %18 = vector.shape_cast %17 : vector<1x128x128xbf16> to vector<128x128xbf16>
    %cst_24 = arith.constant dense<0.000000e+00> : vector<1x128xf32>
    %19 = tpu.matmul %16, %18, %cst_24 {dimension_numbers = #tpu.dot_dimension_numbers<[1], [0], [0], [1], [0, 0, 1, 1], [], []>} : vector<1x128xbf16>, vector<128x128xbf16>, vector<1x128xf32> -> vector<1x128xf32>
    %20 = arith.addf %14, %19 : vector<1x128xf32>
    %c0_25 = arith.constant 0 : index
    %c1_26 = arith.constant 1 : index
    %c0_27 = arith.constant 0 : index
    %c0_28 = arith.constant 0 : index
    %21 = vector.load %arg2[%c0_25, %c1_26, %c0_27, %c0_28] : memref<1x4x2x128xbf16, #tpu.memory_space<vmem>>, vector<1x1x1x128xbf16>
    %22 = vector.shape_cast %21 : vector<1x1x1x128xbf16> to vector<1x128xbf16>
    %c3 = arith.constant 3 : index
    %c0_29 = arith.constant 0 : index
    %c0_30 = arith.constant 0 : index
    %23 = vector.load %arg4[%c3, %c0_29, %c0_30] : memref<9x128x128xbf16, #tpu.memory_space<vmem>>, vector<1x128x128xbf16>
    %24 = vector.shape_cast %23 : vector<1x128x128xbf16> to vector<128x128xbf16>
    %cst_31 = arith.constant dense<0.000000e+00> : vector<1x128xf32>
    %25 = tpu.matmul %22, %24, %cst_31 {dimension_numbers = #tpu.dot_dimension_numbers<[1], [0], [0], [1], [0, 0, 1, 1], [], []>} : vector<1x128xbf16>, vector<128x128xbf16>, vector<1x128xf32> -> vector<1x128xf32>
    %26 = arith.addf %20, %25 : vector<1x128xf32>
    %c0_32 = arith.constant 0 : index
    %c1_33 = arith.constant 1 : index
    %c0_34 = arith.constant 0 : index
    %c0_35 = arith.constant 0 : index
    %27 = vector.load %arg3[%c0_32, %c1_33, %c0_34, %c0_35] : memref<1x4x2x128xbf16, #tpu.memory_space<vmem>>, vector<1x1x1x128xbf16>
    %28 = vector.shape_cast %27 : vector<1x1x1x128xbf16> to vector<1x128xbf16>
    %c4 = arith.constant 4 : index
    %c0_36 = arith.constant 0 : index
    %c0_37 = arith.constant 0 : index
    %29 = vector.load %arg4[%c4, %c0_36, %c0_37] : memref<9x128x128xbf16, #tpu.memory_space<vmem>>, vector<1x128x128xbf16>
    %30 = vector.shape_cast %29 : vector<1x128x128xbf16> to vector<128x128xbf16>
    %cst_38 = arith.constant dense<0.000000e+00> : vector<1x128xf32>
    %31 = tpu.matmul %28, %30, %cst_38 {dimension_numbers = #tpu.dot_dimension_numbers<[1], [0], [0], [1], [0, 0, 1, 1], [], []>} : vector<1x128xbf16>, vector<128x128xbf16>, vector<1x128xf32> -> vector<1x128xf32>
    %32 = arith.addf %26, %31 : vector<1x128xf32>
    %c0_39 = arith.constant 0 : index
    %c1_40 = arith.constant 1 : index
    %c1_41 = arith.constant 1 : index
    %c0_42 = arith.constant 0 : index
    %33 = vector.load %arg2[%c0_39, %c1_40, %c1_41, %c0_42] : memref<1x4x2x128xbf16, #tpu.memory_space<vmem>>, vector<1x1x1x128xbf16>
    %34 = vector.shape_cast %33 : vector<1x1x1x128xbf16> to vector<1x128xbf16>
    %c5 = arith.constant 5 : index
    %c0_43 = arith.constant 0 : index
    %c0_44 = arith.constant 0 : index
    %35 = vector.load %arg4[%c5, %c0_43, %c0_44] : memref<9x128x128xbf16, #tpu.memory_space<vmem>>, vector<1x128x128xbf16>
    %36 = vector.shape_cast %35 : vector<1x128x128xbf16> to vector<128x128xbf16>
    %cst_45 = arith.constant dense<0.000000e+00> : vector<1x128xf32>
    %37 = tpu.matmul %34, %36, %cst_45 {dimension_numbers = #tpu.dot_dimension_numbers<[1], [0], [0], [1], [0, 0, 1, 1], [], []>} : vector<1x128xbf16>, vector<128x128xbf16>, vector<1x128xf32> -> vector<1x128xf32>
    %38 = arith.addf %32, %37 : vector<1x128xf32>
    %c0_46 = arith.constant 0 : index
    %c2_47 = arith.constant 2 : index
    %c0_48 = arith.constant 0 : index
    %c0_49 = arith.constant 0 : index
    %39 = vector.load %arg2[%c0_46, %c2_47, %c0_48, %c0_49] : memref<1x4x2x128xbf16, #tpu.memory_space<vmem>>, vector<1x1x1x128xbf16>
    %40 = vector.shape_cast %39 : vector<1x1x1x128xbf16> to vector<1x128xbf16>
    %c6 = arith.constant 6 : index
    %c0_50 = arith.constant 0 : index
    %c0_51 = arith.constant 0 : index
    %41 = vector.load %arg4[%c6, %c0_50, %c0_51] : memref<9x128x128xbf16, #tpu.memory_space<vmem>>, vector<1x128x128xbf16>
    %42 = vector.shape_cast %41 : vector<1x128x128xbf16> to vector<128x128xbf16>
    %cst_52 = arith.constant dense<0.000000e+00> : vector<1x128xf32>
    %43 = tpu.matmul %40, %42, %cst_52 {dimension_numbers = #tpu.dot_dimension_numbers<[1], [0], [0], [1], [0, 0, 1, 1], [], []>} : vector<1x128xbf16>, vector<128x128xbf16>, vector<1x128xf32> -> vector<1x128xf32>
    %44 = arith.addf %38, %43 : vector<1x128xf32>
    %c0_53 = arith.constant 0 : index
    %c2_54 = arith.constant 2 : index
    %c0_55 = arith.constant 0 : index
    %c0_56 = arith.constant 0 : index
    %45 = vector.load %arg3[%c0_53, %c2_54, %c0_55, %c0_56] : memref<1x4x2x128xbf16, #tpu.memory_space<vmem>>, vector<1x1x1x128xbf16>
    %46 = vector.shape_cast %45 : vector<1x1x1x128xbf16> to vector<1x128xbf16>
    %c7 = arith.constant 7 : index
    %c0_57 = arith.constant 0 : index
    %c0_58 = arith.constant 0 : index
    %47 = vector.load %arg4[%c7, %c0_57, %c0_58] : memref<9x128x128xbf16, #tpu.memory_space<vmem>>, vector<1x128x128xbf16>
    %48 = vector.shape_cast %47 : vector<1x128x128xbf16> to vector<128x128xbf16>
    %cst_59 = arith.constant dense<0.000000e+00> : vector<1x128xf32>
    %49 = tpu.matmul %46, %48, %cst_59 {dimension_numbers = #tpu.dot_dimension_numbers<[1], [0], [0], [1], [0, 0, 1, 1], [], []>} : vector<1x128xbf16>, vector<128x128xbf16>, vector<1x128xf32> -> vector<1x128xf32>
    %50 = arith.addf %44, %49 : vector<1x128xf32>
    %c0_60 = arith.constant 0 : index
    %c2_61 = arith.constant 2 : index
    %c1_62 = arith.constant 1 : index
    %c0_63 = arith.constant 0 : index
    %51 = vector.load %arg2[%c0_60, %c2_61, %c1_62, %c0_63] : memref<1x4x2x128xbf16, #tpu.memory_space<vmem>>, vector<1x1x1x128xbf16>
    %52 = vector.shape_cast %51 : vector<1x1x1x128xbf16> to vector<1x128xbf16>
    %c8 = arith.constant 8 : index
    %c0_64 = arith.constant 0 : index
    %c0_65 = arith.constant 0 : index
    %53 = vector.load %arg4[%c8, %c0_64, %c0_65] : memref<9x128x128xbf16, #tpu.memory_space<vmem>>, vector<1x128x128xbf16>
    %54 = vector.shape_cast %53 : vector<1x128x128xbf16> to vector<128x128xbf16>
    %cst_66 = arith.constant dense<0.000000e+00> : vector<1x128xf32>
    %55 = tpu.matmul %52, %54, %cst_66 {dimension_numbers = #tpu.dot_dimension_numbers<[1], [0], [0], [1], [0, 0, 1, 1], [], []>} : vector<1x128xbf16>, vector<128x128xbf16>, vector<1x128xf32> -> vector<1x128xf32>
    %56 = arith.addf %50, %55 : vector<1x128xf32>
    %57 = arith.mulf %56, %0 : vector<1x128xf32>
    %58 = arith.addf %57, %1 : vector<1x128xf32>
    %cst_67 = arith.constant 0.000000e+00 : f32
    %59 = vector.broadcast %cst_67 : f32 to vector<1x128xf32>
    %60 = arith.maximumf %58, %59 : vector<1x128xf32>
    %61 = arith.truncf %60 : vector<1x128xf32> to vector<1x128xbf16>
    %c0_68 = arith.constant 0 : index
    %c0_69 = arith.constant 0 : index
    %c0_70 = arith.constant 0 : index
    %c0_71 = arith.constant 0 : index
    %62 = vector.load %arg7[%c0_68, %c0_69, %c0_70, %c0_71] : memref<1x1x1x128xbf16, #tpu.memory_space<vmem>>, vector<1x1x1x128xbf16>
    %63 = vector.shape_cast %62 : vector<1x1x1x128xbf16> to vector<1x128xbf16>
    %64 = vector.shape_cast %61 : vector<1x128xbf16> to vector<1x1x1x128xbf16>
    tpu.vector_store %arg7[%c0_68, %c0_69, %c0_70, %c0_71], %64 {strides = array<i32>} : memref<1x1x1x128xbf16, #tpu.memory_space<vmem>>, vector<1x1x1x128xbf16>,
    return
  }
  func.func @transform_0(%arg0: i32, %arg1: i32) -> (i32, i32, i32, i32) {
    %c0_i32 = arith.constant 0 : i32
    %c0_i32_0 = arith.constant 0 : i32
    %c0_i32_1 = arith.constant 0 : i32
    %c0_i32_2 = arith.constant 0 : i32
    return %arg0, %c0_i32, %c0_i32_0, %c0_i32_1 : i32, i32, i32, i32
  }
  func.func @transform_1(%arg0: i32, %arg1: i32) -> (i32, i32, i32, i32) {
    %c0_i32 = arith.constant 0 : i32
    %c0_i32_0 = arith.constant 0 : i32
    %c0_i32_1 = arith.constant 0 : i32
    %c0_i32_2 = arith.constant 0 : i32
    return %arg0, %c0_i32, %c0_i32_0, %c0_i32_1 : i32, i32, i32, i32
  }
  func.func @transform_2(%arg0: i32, %arg1: i32) -> (i32, i32, i32) {
    %c0_i32 = arith.constant 0 : i32
    %c0_i32_0 = arith.constant 0 : i32
    %c0_i32_1 = arith.constant 0 : i32
    return %c0_i32, %c0_i32_0, %arg1 : i32, i32, i32
  }
  func.func @transform_3(%arg0: i32, %arg1: i32) -> (i32, i32) {
    %c0_i32 = arith.constant 0 : i32
    %c0_i32_0 = arith.constant 0 : i32
    return %c0_i32, %arg1 : i32, i32
  }
  func.func @transform_4(%arg0: i32, %arg1: i32) -> (i32, i32) {
    %c0_i32 = arith.constant 0 : i32
    %c0_i32_0 = arith.constant 0 : i32
    return %c0_i32, %arg1 : i32, i32
  }
  func.func @transform_5(%arg0: i32, %arg1: i32) -> (i32, i32, i32, i32) {
    %c0_i32 = arith.constant 0 : i32
    %c0_i32_0 = arith.constant 0 : i32
    %c0_i32_1 = arith.constant 0 : i32
    return %arg0, %c0_i32, %c0_i32_0, %arg1 : i32, i32, i32, i32
  }
}

module attributes {stable_mosaic.version = 11 : i64} {
  func.func @_gemm_bn_kernel(%arg0: i32, %arg1: i32, %arg2: memref<16x128xbf16, #tpu.memory_space<vmem>>, %arg3: memref<128x256xbf16, #tpu.memory_space<vmem>>, %arg4: memref<1x256xf32, #tpu.memory_space<vmem>>, %arg5: memref<1x256xf32, #tpu.memory_space<vmem>>, %arg6: memref<16x256xbf16, #tpu.memory_space<vmem>>) attributes {dimension_semantics = [#tpu.dimension_semantics<parallel>, #tpu.dimension_semantics<parallel>], iteration_bounds = array<i64: 1, 1>, scalar_prefetch = 0 : i64, scratch_operands = 0 : i64, tpu.core_type = #tpu.core_type<tc>, window_params = [{transform_indices = @transform_0, window_bounds = array<i64: 16, 128>}, {transform_indices = @transform_1, window_bounds = array<i64: 128, 256>}, {transform_indices = @transform_2, window_bounds = array<i64: 1, 256>}, {transform_indices = @transform_3, window_bounds = array<i64: 1, 256>}, {transform_indices = @transform_4, window_bounds = array<i64: 16, 256>}]} {
    %c0 = arith.constant 0 : index
    %c0_0 = arith.constant 0 : index
    %0 = vector.load %arg2[%c0, %c0_0] : memref<16x128xbf16, #tpu.memory_space<vmem>>, vector<16x128xbf16>
    %c0_1 = arith.constant 0 : index
    %c0_2 = arith.constant 0 : index
    %1 = vector.load %arg3[%c0_1, %c0_2] : memref<128x256xbf16, #tpu.memory_space<vmem>>, vector<128x256xbf16>
    %cst = arith.constant dense<0.000000e+00> : vector<16x256xf32>
    %2 = tpu.matmul %0, %1, %cst {dimension_numbers = #tpu.dot_dimension_numbers<[1], [0], [0], [1], [0, 0, 1, 1], [], []>} : vector<16x128xbf16>, vector<128x256xbf16>, vector<16x256xf32> -> vector<16x256xf32>
    %c0_3 = arith.constant 0 : index
    %c0_4 = arith.constant 0 : index
    %3 = vector.load %arg4[%c0_3, %c0_4] : memref<1x256xf32, #tpu.memory_space<vmem>>, vector<1x256xf32>
    %4 = vector.broadcast %3 : vector<1x256xf32> to vector<16x256xf32>
    %5 = arith.mulf %2, %4 : vector<16x256xf32>
    %c0_5 = arith.constant 0 : index
    %c0_6 = arith.constant 0 : index
    %6 = vector.load %arg5[%c0_5, %c0_6] : memref<1x256xf32, #tpu.memory_space<vmem>>, vector<1x256xf32>
    %7 = vector.broadcast %6 : vector<1x256xf32> to vector<16x256xf32>
    %8 = arith.addf %5, %7 : vector<16x256xf32>
    %9 = arith.truncf %8 : vector<16x256xf32> to vector<16x256xbf16>
    %c0_7 = arith.constant 0 : index
    %c0_8 = arith.constant 0 : index
    %10 = vector.load %arg6[%c0_7, %c0_8] : memref<16x256xbf16, #tpu.memory_space<vmem>>, vector<16x256xbf16>
    tpu.vector_store %arg6[%c0_7, %c0_8], %9 {strides = array<i32>} : memref<16x256xbf16, #tpu.memory_space<vmem>>, vector<16x256xbf16>,
    return
  }
  func.func @transform_0(%arg0: i32, %arg1: i32) -> (i32, i32) {
    %c0_i32 = arith.constant 0 : i32
    %c0_i32_0 = arith.constant 0 : i32
    return %arg1, %c0_i32 : i32, i32
  }
  func.func @transform_1(%arg0: i32, %arg1: i32) -> (i32, i32) {
    %c0_i32 = arith.constant 0 : i32
    %c0_i32_0 = arith.constant 0 : i32
    return %c0_i32, %arg0 : i32, i32
  }
  func.func @transform_2(%arg0: i32, %arg1: i32) -> (i32, i32) {
    %c0_i32 = arith.constant 0 : i32
    %c0_i32_0 = arith.constant 0 : i32
    return %c0_i32, %arg0 : i32, i32
  }
  func.func @transform_3(%arg0: i32, %arg1: i32) -> (i32, i32) {
    %c0_i32 = arith.constant 0 : i32
    %c0_i32_0 = arith.constant 0 : i32
    return %c0_i32, %arg0 : i32, i32
  }
  func.func @transform_4(%arg0: i32, %arg1: i32) -> (i32, i32) {
    %c0_i32 = arith.constant 0 : i32
    return %arg1, %arg0 : i32, i32
  }
}

module attributes {stable_mosaic.version = 11 : i64} {
  func.func @_direct_conv_kernel(%arg0: i32, %arg1: i32, %arg2: memref<1x5x5x128xbf16, #tpu.memory_space<vmem>>, %arg3: memref<9x128x128xbf16, #tpu.memory_space<vmem>>, %arg4: memref<1x128xf32, #tpu.memory_space<vmem>>, %arg5: memref<1x128xf32, #tpu.memory_space<vmem>>, %arg6: memref<1x1x1x128xbf16, #tpu.memory_space<vmem>>) attributes {dimension_semantics = [#tpu.dimension_semantics<parallel>, #tpu.dimension_semantics<parallel>], iteration_bounds = array<i64: 2, 1>, scalar_prefetch = 0 : i64, scratch_operands = 0 : i64, tpu.core_type = #tpu.core_type<tc>, window_params = [{transform_indices = @transform_0, window_bounds = array<i64: 1, 5, 5, 128>}, {transform_indices = @transform_1, window_bounds = array<i64: 9, 128, 128>}, {transform_indices = @transform_2, window_bounds = array<i64: 1, 128>}, {transform_indices = @transform_3, window_bounds = array<i64: 1, 128>}, {transform_indices = @transform_4, window_bounds = array<i64: 1, 1, 1, 128>}]} {
    %c0 = arith.constant 0 : index
    %c0_0 = arith.constant 0 : index
    %0 = vector.load %arg4[%c0, %c0_0] : memref<1x128xf32, #tpu.memory_space<vmem>>, vector<1x128xf32>
    %c0_1 = arith.constant 0 : index
    %c0_2 = arith.constant 0 : index
    %1 = vector.load %arg5[%c0_1, %c0_2] : memref<1x128xf32, #tpu.memory_space<vmem>>, vector<1x128xf32>
    %cst = arith.constant 0.000000e+00 : f32
    %2 = vector.broadcast %cst : f32 to vector<1x128xf32>
    %c0_3 = arith.constant 0 : index
    %c0_4 = arith.constant 0 : index
    %c0_5 = arith.constant 0 : index
    %c0_6 = arith.constant 0 : index
    %3 = vector.load %arg2[%c0_3, %c0_4, %c0_5, %c0_6] : memref<1x5x5x128xbf16, #tpu.memory_space<vmem>>, vector<1x1x1x128xbf16>
    %4 = vector.shape_cast %3 : vector<1x1x1x128xbf16> to vector<1x128xbf16>
    %c0_7 = arith.constant 0 : index
    %c0_8 = arith.constant 0 : index
    %c0_9 = arith.constant 0 : index
    %5 = vector.load %arg3[%c0_7, %c0_8, %c0_9] : memref<9x128x128xbf16, #tpu.memory_space<vmem>>, vector<1x128x128xbf16>
    %6 = vector.shape_cast %5 : vector<1x128x128xbf16> to vector<128x128xbf16>
    %cst_10 = arith.constant dense<0.000000e+00> : vector<1x128xf32>
    %7 = tpu.matmul %4, %6, %cst_10 {dimension_numbers = #tpu.dot_dimension_numbers<[1], [0], [0], [1], [0, 0, 1, 1], [], []>} : vector<1x128xbf16>, vector<128x128xbf16>, vector<1x128xf32> -> vector<1x128xf32>
    %8 = arith.addf %2, %7 : vector<1x128xf32>
    %c0_11 = arith.constant 0 : index
    %c0_12 = arith.constant 0 : index
    %c2 = arith.constant 2 : index
    %c0_13 = arith.constant 0 : index
    %9 = vector.load %arg2[%c0_11, %c0_12, %c2, %c0_13] : memref<1x5x5x128xbf16, #tpu.memory_space<vmem>>, vector<1x1x1x128xbf16>
    %10 = vector.shape_cast %9 : vector<1x1x1x128xbf16> to vector<1x128xbf16>
    %c1 = arith.constant 1 : index
    %c0_14 = arith.constant 0 : index
    %c0_15 = arith.constant 0 : index
    %11 = vector.load %arg3[%c1, %c0_14, %c0_15] : memref<9x128x128xbf16, #tpu.memory_space<vmem>>, vector<1x128x128xbf16>
    %12 = vector.shape_cast %11 : vector<1x128x128xbf16> to vector<128x128xbf16>
    %cst_16 = arith.constant dense<0.000000e+00> : vector<1x128xf32>
    %13 = tpu.matmul %10, %12, %cst_16 {dimension_numbers = #tpu.dot_dimension_numbers<[1], [0], [0], [1], [0, 0, 1, 1], [], []>} : vector<1x128xbf16>, vector<128x128xbf16>, vector<1x128xf32> -> vector<1x128xf32>
    %14 = arith.addf %8, %13 : vector<1x128xf32>
    %c0_17 = arith.constant 0 : index
    %c0_18 = arith.constant 0 : index
    %c4 = arith.constant 4 : index
    %c0_19 = arith.constant 0 : index
    %15 = vector.load %arg2[%c0_17, %c0_18, %c4, %c0_19] : memref<1x5x5x128xbf16, #tpu.memory_space<vmem>>, vector<1x1x1x128xbf16>
    %16 = vector.shape_cast %15 : vector<1x1x1x128xbf16> to vector<1x128xbf16>
    %c2_20 = arith.constant 2 : index
    %c0_21 = arith.constant 0 : index
    %c0_22 = arith.constant 0 : index
    %17 = vector.load %arg3[%c2_20, %c0_21, %c0_22] : memref<9x128x128xbf16, #tpu.memory_space<vmem>>, vector<1x128x128xbf16>
    %18 = vector.shape_cast %17 : vector<1x128x128xbf16> to vector<128x128xbf16>
    %cst_23 = arith.constant dense<0.000000e+00> : vector<1x128xf32>
    %19 = tpu.matmul %16, %18, %cst_23 {dimension_numbers = #tpu.dot_dimension_numbers<[1], [0], [0], [1], [0, 0, 1, 1], [], []>} : vector<1x128xbf16>, vector<128x128xbf16>, vector<1x128xf32> -> vector<1x128xf32>
    %20 = arith.addf %14, %19 : vector<1x128xf32>
    %c0_24 = arith.constant 0 : index
    %c2_25 = arith.constant 2 : index
    %c0_26 = arith.constant 0 : index
    %c0_27 = arith.constant 0 : index
    %21 = vector.load %arg2[%c0_24, %c2_25, %c0_26, %c0_27] : memref<1x5x5x128xbf16, #tpu.memory_space<vmem>>, vector<1x1x1x128xbf16>
    %22 = vector.shape_cast %21 : vector<1x1x1x128xbf16> to vector<1x128xbf16>
    %c3 = arith.constant 3 : index
    %c0_28 = arith.constant 0 : index
    %c0_29 = arith.constant 0 : index
    %23 = vector.load %arg3[%c3, %c0_28, %c0_29] : memref<9x128x128xbf16, #tpu.memory_space<vmem>>, vector<1x128x128xbf16>
    %24 = vector.shape_cast %23 : vector<1x128x128xbf16> to vector<128x128xbf16>
    %cst_30 = arith.constant dense<0.000000e+00> : vector<1x128xf32>
    %25 = tpu.matmul %22, %24, %cst_30 {dimension_numbers = #tpu.dot_dimension_numbers<[1], [0], [0], [1], [0, 0, 1, 1], [], []>} : vector<1x128xbf16>, vector<128x128xbf16>, vector<1x128xf32> -> vector<1x128xf32>
    %26 = arith.addf %20, %25 : vector<1x128xf32>
    %c0_31 = arith.constant 0 : index
    %c2_32 = arith.constant 2 : index
    %c2_33 = arith.constant 2 : index
    %c0_34 = arith.constant 0 : index
    %27 = vector.load %arg2[%c0_31, %c2_32, %c2_33, %c0_34] : memref<1x5x5x128xbf16, #tpu.memory_space<vmem>>, vector<1x1x1x128xbf16>
    %28 = vector.shape_cast %27 : vector<1x1x1x128xbf16> to vector<1x128xbf16>
    %c4_35 = arith.constant 4 : index
    %c0_36 = arith.constant 0 : index
    %c0_37 = arith.constant 0 : index
    %29 = vector.load %arg3[%c4_35, %c0_36, %c0_37] : memref<9x128x128xbf16, #tpu.memory_space<vmem>>, vector<1x128x128xbf16>
    %30 = vector.shape_cast %29 : vector<1x128x128xbf16> to vector<128x128xbf16>
    %cst_38 = arith.constant dense<0.000000e+00> : vector<1x128xf32>
    %31 = tpu.matmul %28, %30, %cst_38 {dimension_numbers = #tpu.dot_dimension_numbers<[1], [0], [0], [1], [0, 0, 1, 1], [], []>} : vector<1x128xbf16>, vector<128x128xbf16>, vector<1x128xf32> -> vector<1x128xf32>
    %32 = arith.addf %26, %31 : vector<1x128xf32>
    %c0_39 = arith.constant 0 : index
    %c2_40 = arith.constant 2 : index
    %c4_41 = arith.constant 4 : index
    %c0_42 = arith.constant 0 : index
    %33 = vector.load %arg2[%c0_39, %c2_40, %c4_41, %c0_42] : memref<1x5x5x128xbf16, #tpu.memory_space<vmem>>, vector<1x1x1x128xbf16>
    %34 = vector.shape_cast %33 : vector<1x1x1x128xbf16> to vector<1x128xbf16>
    %c5 = arith.constant 5 : index
    %c0_43 = arith.constant 0 : index
    %c0_44 = arith.constant 0 : index
    %35 = vector.load %arg3[%c5, %c0_43, %c0_44] : memref<9x128x128xbf16, #tpu.memory_space<vmem>>, vector<1x128x128xbf16>
    %36 = vector.shape_cast %35 : vector<1x128x128xbf16> to vector<128x128xbf16>
    %cst_45 = arith.constant dense<0.000000e+00> : vector<1x128xf32>
    %37 = tpu.matmul %34, %36, %cst_45 {dimension_numbers = #tpu.dot_dimension_numbers<[1], [0], [0], [1], [0, 0, 1, 1], [], []>} : vector<1x128xbf16>, vector<128x128xbf16>, vector<1x128xf32> -> vector<1x128xf32>
    %38 = arith.addf %32, %37 : vector<1x128xf32>
    %c0_46 = arith.constant 0 : index
    %c4_47 = arith.constant 4 : index
    %c0_48 = arith.constant 0 : index
    %c0_49 = arith.constant 0 : index
    %39 = vector.load %arg2[%c0_46, %c4_47, %c0_48, %c0_49] : memref<1x5x5x128xbf16, #tpu.memory_space<vmem>>, vector<1x1x1x128xbf16>
    %40 = vector.shape_cast %39 : vector<1x1x1x128xbf16> to vector<1x128xbf16>
    %c6 = arith.constant 6 : index
    %c0_50 = arith.constant 0 : index
    %c0_51 = arith.constant 0 : index
    %41 = vector.load %arg3[%c6, %c0_50, %c0_51] : memref<9x128x128xbf16, #tpu.memory_space<vmem>>, vector<1x128x128xbf16>
    %42 = vector.shape_cast %41 : vector<1x128x128xbf16> to vector<128x128xbf16>
    %cst_52 = arith.constant dense<0.000000e+00> : vector<1x128xf32>
    %43 = tpu.matmul %40, %42, %cst_52 {dimension_numbers = #tpu.dot_dimension_numbers<[1], [0], [0], [1], [0, 0, 1, 1], [], []>} : vector<1x128xbf16>, vector<128x128xbf16>, vector<1x128xf32> -> vector<1x128xf32>
    %44 = arith.addf %38, %43 : vector<1x128xf32>
    %c0_53 = arith.constant 0 : index
    %c4_54 = arith.constant 4 : index
    %c2_55 = arith.constant 2 : index
    %c0_56 = arith.constant 0 : index
    %45 = vector.load %arg2[%c0_53, %c4_54, %c2_55, %c0_56] : memref<1x5x5x128xbf16, #tpu.memory_space<vmem>>, vector<1x1x1x128xbf16>
    %46 = vector.shape_cast %45 : vector<1x1x1x128xbf16> to vector<1x128xbf16>
    %c7 = arith.constant 7 : index
    %c0_57 = arith.constant 0 : index
    %c0_58 = arith.constant 0 : index
    %47 = vector.load %arg3[%c7, %c0_57, %c0_58] : memref<9x128x128xbf16, #tpu.memory_space<vmem>>, vector<1x128x128xbf16>
    %48 = vector.shape_cast %47 : vector<1x128x128xbf16> to vector<128x128xbf16>
    %cst_59 = arith.constant dense<0.000000e+00> : vector<1x128xf32>
    %49 = tpu.matmul %46, %48, %cst_59 {dimension_numbers = #tpu.dot_dimension_numbers<[1], [0], [0], [1], [0, 0, 1, 1], [], []>} : vector<1x128xbf16>, vector<128x128xbf16>, vector<1x128xf32> -> vector<1x128xf32>
    %50 = arith.addf %44, %49 : vector<1x128xf32>
    %c0_60 = arith.constant 0 : index
    %c4_61 = arith.constant 4 : index
    %c4_62 = arith.constant 4 : index
    %c0_63 = arith.constant 0 : index
    %51 = vector.load %arg2[%c0_60, %c4_61, %c4_62, %c0_63] : memref<1x5x5x128xbf16, #tpu.memory_space<vmem>>, vector<1x1x1x128xbf16>
    %52 = vector.shape_cast %51 : vector<1x1x1x128xbf16> to vector<1x128xbf16>
    %c8 = arith.constant 8 : index
    %c0_64 = arith.constant 0 : index
    %c0_65 = arith.constant 0 : index
    %53 = vector.load %arg3[%c8, %c0_64, %c0_65] : memref<9x128x128xbf16, #tpu.memory_space<vmem>>, vector<1x128x128xbf16>
    %54 = vector.shape_cast %53 : vector<1x128x128xbf16> to vector<128x128xbf16>
    %cst_66 = arith.constant dense<0.000000e+00> : vector<1x128xf32>
    %55 = tpu.matmul %52, %54, %cst_66 {dimension_numbers = #tpu.dot_dimension_numbers<[1], [0], [0], [1], [0, 0, 1, 1], [], []>} : vector<1x128xbf16>, vector<128x128xbf16>, vector<1x128xf32> -> vector<1x128xf32>
    %56 = arith.addf %50, %55 : vector<1x128xf32>
    %57 = arith.mulf %56, %0 : vector<1x128xf32>
    %58 = arith.addf %57, %1 : vector<1x128xf32>
    %cst_67 = arith.constant 0.000000e+00 : f32
    %59 = vector.broadcast %cst_67 : f32 to vector<1x128xf32>
    %60 = arith.maximumf %58, %59 : vector<1x128xf32>
    %61 = arith.truncf %60 : vector<1x128xf32> to vector<1x128xbf16>
    %c0_68 = arith.constant 0 : index
    %c0_69 = arith.constant 0 : index
    %c0_70 = arith.constant 0 : index
    %c0_71 = arith.constant 0 : index
    %62 = vector.load %arg6[%c0_68, %c0_69, %c0_70, %c0_71] : memref<1x1x1x128xbf16, #tpu.memory_space<vmem>>, vector<1x1x1x128xbf16>
    %63 = vector.shape_cast %62 : vector<1x1x1x128xbf16> to vector<1x128xbf16>
    %64 = vector.shape_cast %61 : vector<1x128xbf16> to vector<1x1x1x128xbf16>
    tpu.vector_store %arg6[%c0_68, %c0_69, %c0_70, %c0_71], %64 {strides = array<i32>} : memref<1x1x1x128xbf16, #tpu.memory_space<vmem>>, vector<1x1x1x128xbf16>,
    return
  }
  func.func @transform_0(%arg0: i32, %arg1: i32) -> (i32, i32, i32, i32) {
    %c0_i32 = arith.constant 0 : i32
    %c0_i32_0 = arith.constant 0 : i32
    %c0_i32_1 = arith.constant 0 : i32
    %c0_i32_2 = arith.constant 0 : i32
    return %arg0, %c0_i32, %c0_i32_0, %c0_i32_1 : i32, i32, i32, i32
  }
  func.func @transform_1(%arg0: i32, %arg1: i32) -> (i32, i32, i32) {
    %c0_i32 = arith.constant 0 : i32
    %c0_i32_0 = arith.constant 0 : i32
    %c0_i32_1 = arith.constant 0 : i32
    return %c0_i32, %c0_i32_0, %arg1 : i32, i32, i32
  }
  func.func @transform_2(%arg0: i32, %arg1: i32) -> (i32, i32) {
    %c0_i32 = arith.constant 0 : i32
    %c0_i32_0 = arith.constant 0 : i32
    return %c0_i32, %arg1 : i32, i32
  }
  func.func @transform_3(%arg0: i32, %arg1: i32) -> (i32, i32) {
    %c0_i32 = arith.constant 0 : i32
    %c0_i32_0 = arith.constant 0 : i32
    return %c0_i32, %arg1 : i32, i32
  }
  func.func @transform_4(%arg0: i32, %arg1: i32) -> (i32, i32, i32, i32) {
    %c0_i32 = arith.constant 0 : i32
    %c0_i32_0 = arith.constant 0 : i32
    %c0_i32_1 = arith.constant 0 : i32
    return %arg0, %c0_i32, %c0_i32_0, %arg1 : i32, i32, i32, i32
  }
}

module attributes {stable_mosaic.version = 11 : i64} {
  func.func @_gemm_bn_res_kernel(%arg0: i32, %arg1: i32, %arg2: memref<16x128xbf16, #tpu.memory_space<vmem>>, %arg3: memref<128x256xbf16, #tpu.memory_space<vmem>>, %arg4: memref<1x256xf32, #tpu.memory_space<vmem>>, %arg5: memref<1x256xf32, #tpu.memory_space<vmem>>, %arg6: memref<16x256xbf16, #tpu.memory_space<vmem>>, %arg7: memref<16x256xbf16, #tpu.memory_space<vmem>>) attributes {dimension_semantics = [#tpu.dimension_semantics<parallel>, #tpu.dimension_semantics<parallel>], iteration_bounds = array<i64: 1, 1>, scalar_prefetch = 0 : i64, scratch_operands = 0 : i64, tpu.core_type = #tpu.core_type<tc>, window_params = [{transform_indices = @transform_0, window_bounds = array<i64: 16, 128>}, {transform_indices = @transform_1, window_bounds = array<i64: 128, 256>}, {transform_indices = @transform_2, window_bounds = array<i64: 1, 256>}, {transform_indices = @transform_3, window_bounds = array<i64: 1, 256>}, {transform_indices = @transform_4, window_bounds = array<i64: 16, 256>}, {transform_indices = @transform_5, window_bounds = array<i64: 16, 256>}]} {
    %c0 = arith.constant 0 : index
    %c0_0 = arith.constant 0 : index
    %0 = vector.load %arg2[%c0, %c0_0] : memref<16x128xbf16, #tpu.memory_space<vmem>>, vector<16x128xbf16>
    %c0_1 = arith.constant 0 : index
    %c0_2 = arith.constant 0 : index
    %1 = vector.load %arg3[%c0_1, %c0_2] : memref<128x256xbf16, #tpu.memory_space<vmem>>, vector<128x256xbf16>
    %cst = arith.constant dense<0.000000e+00> : vector<16x256xf32>
    %2 = tpu.matmul %0, %1, %cst {dimension_numbers = #tpu.dot_dimension_numbers<[1], [0], [0], [1], [0, 0, 1, 1], [], []>} : vector<16x128xbf16>, vector<128x256xbf16>, vector<16x256xf32> -> vector<16x256xf32>
    %c0_3 = arith.constant 0 : index
    %c0_4 = arith.constant 0 : index
    %3 = vector.load %arg4[%c0_3, %c0_4] : memref<1x256xf32, #tpu.memory_space<vmem>>, vector<1x256xf32>
    %4 = vector.broadcast %3 : vector<1x256xf32> to vector<16x256xf32>
    %5 = arith.mulf %2, %4 : vector<16x256xf32>
    %c0_5 = arith.constant 0 : index
    %c0_6 = arith.constant 0 : index
    %6 = vector.load %arg5[%c0_5, %c0_6] : memref<1x256xf32, #tpu.memory_space<vmem>>, vector<1x256xf32>
    %7 = vector.broadcast %6 : vector<1x256xf32> to vector<16x256xf32>
    %8 = arith.addf %5, %7 : vector<16x256xf32>
    %c0_7 = arith.constant 0 : index
    %c0_8 = arith.constant 0 : index
    %9 = vector.load %arg6[%c0_7, %c0_8] : memref<16x256xbf16, #tpu.memory_space<vmem>>, vector<16x256xbf16>
    %10 = arith.extf %9 : vector<16x256xbf16> to vector<16x256xf32>
    %11 = arith.addf %8, %10 : vector<16x256xf32>
    %cst_9 = arith.constant 0.000000e+00 : f32
    %12 = vector.broadcast %cst_9 : f32 to vector<16x256xf32>
    %13 = arith.maximumf %11, %12 : vector<16x256xf32>
    %14 = arith.truncf %13 : vector<16x256xf32> to vector<16x256xbf16>
    %c0_10 = arith.constant 0 : index
    %c0_11 = arith.constant 0 : index
    %15 = vector.load %arg7[%c0_10, %c0_11] : memref<16x256xbf16, #tpu.memory_space<vmem>>, vector<16x256xbf16>
    tpu.vector_store %arg7[%c0_10, %c0_11], %14 {strides = array<i32>} : memref<16x256xbf16, #tpu.memory_space<vmem>>, vector<16x256xbf16>,
    return
  }
  func.func @transform_0(%arg0: i32, %arg1: i32) -> (i32, i32) {
    %c0_i32 = arith.constant 0 : i32
    %c0_i32_0 = arith.constant 0 : i32
    return %arg1, %c0_i32 : i32, i32
  }
  func.func @transform_1(%arg0: i32, %arg1: i32) -> (i32, i32) {
    %c0_i32 = arith.constant 0 : i32
    %c0_i32_0 = arith.constant 0 : i32
    return %c0_i32, %arg0 : i32, i32
  }
  func.func @transform_2(%arg0: i32, %arg1: i32) -> (i32, i32) {
    %c0_i32 = arith.constant 0 : i32
    %c0_i32_0 = arith.constant 0 : i32
    return %c0_i32, %arg0 : i32, i32
  }
  func.func @transform_3(%arg0: i32, %arg1: i32) -> (i32, i32) {
    %c0_i32 = arith.constant 0 : i32
    %c0_i32_0 = arith.constant 0 : i32
    return %c0_i32, %arg0 : i32, i32
  }
  func.func @transform_4(%arg0: i32, %arg1: i32) -> (i32, i32) {
    %c0_i32 = arith.constant 0 : i32
    return %arg1, %arg0 : i32, i32
  }
  func.func @transform_5(%arg0: i32, %arg1: i32) -> (i32, i32) {
    %c0_i32 = arith.constant 0 : i32
    return %arg1, %arg0 : i32, i32
  }
}

</mosaic_0001>

<bundles_post_ra>
// kernel: discriminator_forward.20
= control target key start
LH: loop header
LB: loop body
LE: loop exit
PB: predicated region body
PF: predicated region fallthrough
CT: control target
= control target key end

     0   :  { %s673_s15 = smov 0   ;;  %s675_s16 = smov 0   ;;  %s743_s0 = inlined_call_operand.vmem [shape: bf16[32,128], index: 0, kind: input, shape index: {}]   ;;  %s744_s1 = inlined_call_operand.vmem [shape: bf16[128,128], index: 1, kind: input, shape index: {}]   ;;  %s745_s2 = inlined_call_operand.vmem [shape: f32[1,128], index: 2, kind: input, shape index: {}]   ;;  %s746_s3 = inlined_call_operand.vmem [shape: f32[1,128], index: 3, kind: input, shape index: {}]   ;;  %s747_s4 = inlined_call_operand.vmem [shape: bf16[32,128], index: 4, kind: output, shape index: {}]  }
   0x1   :  { %s677_s17 = smov 0  }
   0x2 LB: > { %s23_s18 = sadd.s32 1, %s640_s16  ;;  %p531_p0 = scmp.ge.s32.totalorder %s644_s17, 1  ;;  %s644_s17 = sphi %s677_s17, %s14_s17   ;;  %s640_s16 = sphi %s675_s16, %s749_s16   ;;  %s636_s15 = sphi %s673_s15, %s748_s15  }
   0x3   : > { %p24_p1 = scmp.ge.s32.totalorder %s23_s18, 2  ;;  %p202_p2 = scmp.lt.s32.totalorder %s644_s17, 3 }
   0x5   : > { %s751_s18 = smov (%p24_p1, %s23_s18), 0  ;;  %p203_p3 = pnand %p531_p0, %p202_p2 }
   0x6   : > { %v613_v0 = vld [vmem:[%s744_s1] sm:$0xff] (!%p203_p3)   ;;  %v646_v1 = vmov (!%p203_p3), 0.0   ;;  %v614_v2 = vld [vmem:[%s744_s1 + $0x8] sm:$0xff] (!%p203_p3)   ;;  %vm647_vm0 = vmmov (!%p203_p3), 0   ;;  %s532_s23 = sshll.u32 (!%p203_p3), %s636_s15, 1  ;;  %v615_v3 = vld [vmem:[%s744_s1 + $0x10] sm:$0xff] (!%p203_p3)  }
   0x7   : > { %206 = sbr.rel (%p203_p3) target bundleno = 262 (0x106), region = 36  ;;  %567 = vmatprep.subr.bf16.mxu0 (!%p203_p3), %v646_v1  ;;  %583 = vmatprep.mubr.msk.bf16.mxu0 (!%p203_p3), %vm647_vm0, %v646_v1  ;;  %p242_p4 = scmp.lt.s32.totalorder (!%p203_p3), %s532_s23, 3  ;;  %v616_v4 = vld [vmem:[%s744_s1 + $0x18] sm:$0xff] (!%p203_p3)   ;;  %v617_v5 = vld [vmem:[%s744_s1 + $0x20] sm:$0xff] (!%p203_p3)   ;;  %v618_v6 = vld [vmem:[%s744_s1 + $0x28] sm:$0xff] (!%p203_p3)  }
   0x8   : > { %568 = vmatpush3.bf16.msra.mxu0 (!%p203_p3), %v613_v0  ;;  %v619_v7 = vld [vmem:[%s744_s1 + $0x30] sm:$0xff] (!%p203_p3)   ;;  %v620_v8 = vld [vmem:[%s744_s1 + $0x38] sm:$0xff] (!%p203_p3)   ;;  %v545_v10 = vld [vmem:[%s745_s2] ss:$0 sm:$0xff] (!%p203_p3) }
   0x9   : > { %569 = vmatprep.subr.bf16.mxu0 (!%p203_p3), %v646_v1  ;;  %v546_v12 = vld [vmem:[%s746_s3] ss:$0 sm:$0xff] (!%p203_p3) }
   0xc   : > { %570 = vmatpush3.bf16.msra.mxu0 (!%p203_p3), %v614_v2 }
   0xd   : > { %571 = vmatprep.subr.bf16.mxu0 (!%p203_p3), %v646_v1 }
   0xe   : > { %s753_s23 = smov (!%p242_p4, %s532_s23), 3 }
   0xf   : > { %s533_s26 = sshll.u32 %s753_s23, 2 }
  0x10   : > { %s245_s29 = scalar_lea.vmem %s743_s0, %s533_s26  ;;  %572 = vmatpush3.bf16.msra.mxu0 %v615_v3  ;;  %s264_s24 = scalar_lea.vmem %s747_s4, %s533_s26 }
  0x11   : > { %573 = vmatprep.subr.bf16.mxu0 %v646_v1  ;;  %v621_v9 = vld [vmem:[%s245_s29] sm:$0xff]  }
  0x14   : > { %574 = vmatpush3.bf16.msra.mxu0 %v616_v4 }
  0x15   : > { %575 = vmatprep.subr.bf16.mxu0 %v646_v1 }
  0x18   : > { %576 = vmatpush3.bf16.msra.mxu0 %v617_v5 }
  0x19   : > { %577 = vmatprep.subr.bf16.mxu0 %v646_v1 }
  0x1c   : > { %578 = vmatpush3.bf16.msra.mxu0 %v618_v6 }
  0x1d   : > { %579 = vmatprep.subr.bf16.mxu0 %v646_v1 }
  0x20   : > { %580 = vmatpush3.bf16.msra.mxu0 %v619_v7 }
  0x21   : > { %581 = vmatprep.subr.bf16.mxu0 %v646_v1 }
  0x24   : > { %582 = vmatpush3.bf16.msra.mxu0 %v620_v8 }
  0x27   : > { %584 = vmatmul.mubr.bf16.vlgmr.msra.gmra.mrb[0].mxu0 %v621_v9 }
  0xfa   : > { %v373_v11 = vpop.f32.mrb[0].mxu0 }
  0xfb   : > { %v387_v13 = vmul.f32 %v545_v10, %v373_v11  ;;  %v585_v14 = vpop.f32.mrb[1].mxu0 }
  0xfc   : > { %v376_v15 = vpop.f32.mrb[2].mxu0 }
  0xfd   : > { %v396_v16 = vadd.f32 %v546_v12, %v387_v13  ;;  %v388_v17 = vmul.f32 %v545_v10, %v376_v15  ;;  %v586_v18 = vpop.f32.mrb[3].mxu0 }
  0xff   : > { %v397_v19 = vadd.f32 %v546_v12, %v388_v17  ;;  %v398_v20 = vmax.f32 %v396_v16, 0.0 }
 0x101   : > { %v399_v21 = vmax.f32 %v397_v19, 0.0 }
 0x103   : > { %v556_v22 = vpack.c.bf16 %v399_v21, %v398_v20 }
 0x105   : > { %557 = vst [vmem:[%s264_s24] sm:$0xff] %v556_v22  }
 0x106 PF: > { %s14_s17 = sadd.s32 1, %s644_s17   ;;  %s748_s15 = smov %s640_s16 }
 0x107   : > { %p11_p5 = scmp.ge.s32.totalorder %s14_s17, 4   ;;  %s749_s16 = smov %s751_s18 }
 0x109   :  { %13 = sbr.rel (!%p11_p5) target bundleno = 2 (0x2), region = 75 }

// kernel: discriminator_forward.18
= control target key start
LH: loop header
LB: loop body
LE: loop exit
PB: predicated region body
PF: predicated region fallthrough
CT: control target
= control target key end

     0   :  { %s941_s15 = smov 0   ;;  %s943_s16 = smov 0   ;;  %s1042_s0 = inlined_call_operand.vmem [shape: bf16[128,256], index: 0, kind: input, shape index: {}]   ;;  %s1043_s1 = inlined_call_operand.vmem [shape: bf16[256,128], index: 1, kind: input, shape index: {}]   ;;  %s1044_s2 = inlined_call_operand.vmem [shape: f32[1,128], index: 2, kind: input, shape index: {}]   ;;  %s1045_s3 = inlined_call_operand.vmem [shape: f32[1,128], index: 3, kind: input, shape index: {}]   ;;  %s1046_s4 = inlined_call_operand.vmem [shape: bf16[128,128], index: 4, kind: output, shape index: {}]  }
   0x1   :  { %s945_s17 = smov 0  }
   0x2 LB: > { %s23_s18 = sadd.s32 1, %s910_s16  ;;  %p710_p0 = scmp.ge.s32.totalorder %s914_s17, 1  ;;  %s914_s17 = sphi %s945_s17, %s14_s17   ;;  %s910_s16 = sphi %s943_s16, %s1048_s16   ;;  %s906_s15 = sphi %s941_s15, %s1047_s15  }
   0x3   : > { %p24_p1 = scmp.ge.s32.totalorder %s23_s18, 2  ;;  %p203_p2 = scmp.lt.s32.totalorder %s914_s17, 3 }
   0x5   : > { %s1050_s18 = smov (%p24_p1, %s23_s18), 0  ;;  %p204_p3 = pnand %p710_p0, %p203_p2 }
   0x6   : > { %v864_v0 = vld [vmem:[%s1043_s1 + $0x40] sm:$0xff] (!%p204_p3)   ;;  %s711_s21 = sshll.u32 (!%p204_p3), %s906_s15, 3  ;;  %v866_v2 = vld [vmem:[%s1043_s1 + $0x48] sm:$0xff] (!%p204_p3)   ;;  %v868_v4 = vld [vmem:[%s1043_s1 + $0x50] sm:$0xff] (!%p204_p3)  }
   0x7   : > { %207 = sbr.rel (%p204_p3) target bundleno = 274 (0x112), region = 36  ;;  %v865_v1 = vld [vmem:[%s1043_s1] sm:$0xff] (!%p204_p3)   ;;  %784 = vmatprep.subr.bf16.mxu0 (!%p204_p3), %v864_v0  ;;  %824 = vmatprep.subr.bf16.mxu1 (!%p204_p3), %v864_v0  ;;  %v867_v3 = vld [vmem:[%s1043_s1 + $0x8] sm:$0xff] (!%p204_p3)   ;;  %p244_p4 = scmp.lt.s32.totalorder (!%p204_p3), %s711_s21, 15  ;;  %v869_v5 = vld [vmem:[%s1043_s1 + $0x10] sm:$0xff] (!%p204_p3)  }
   0x8   : > { %785 = vmatpush3.bf16.msra.mxu0 (!%p204_p3), %v865_v1  ;;  %832 = vmatpush3.bf16.msra.mxu1 (!%p204_p3), %v865_v1  ;;  %v870_v6 = vld [vmem:[%s1043_s1 + $0x58] sm:$0xff] (!%p204_p3)   ;;  %v872_v8 = vld [vmem:[%s1043_s1 + $0x60] sm:$0xff] (!%p204_p3)   ;;  %v874_v10 = vld [vmem:[%s1043_s1 + $0x68] sm:$0xff] (!%p204_p3)  }
   0x9   : > { %786 = vmatprep.subr.bf16.mxu0 (!%p204_p3), %v866_v2  ;;  %825 = vmatprep.subr.bf16.mxu1 (!%p204_p3), %v866_v2  ;;  %v871_v7 = vld [vmem:[%s1043_s1 + $0x18] sm:$0xff] (!%p204_p3)   ;;  %v873_v9 = vld [vmem:[%s1043_s1 + $0x20] sm:$0xff] (!%p204_p3)   ;;  %v875_v13 = vld [vmem:[%s1043_s1 + $0x28] sm:$0xff] (!%p204_p3)  }
   0xa   : > { %v876_v14 = vld [vmem:[%s1043_s1 + $0x70] sm:$0xff] (!%p204_p3)   ;;  %v878_v16 = vld [vmem:[%s1043_s1 + $0x78] sm:$0xff] (!%p204_p3)   ;;  %v740_v27 = vld [vmem:[%s1044_s2] ss:$0 sm:$0xff] (!%p204_p3) }
   0xb   : > { %v877_v15 = vld [vmem:[%s1043_s1 + $0x30] sm:$0xff] (!%p204_p3)   ;;  %v879_v17 = vld [vmem:[%s1043_s1 + $0x38] sm:$0xff] (!%p204_p3)   ;;  %v741_v33 = vld [vmem:[%s1045_s3] ss:$0 sm:$0xff] (!%p204_p3) }
   0xc   : > { %787 = vmatpush3.bf16.msra.mxu0 (!%p204_p3), %v867_v3  ;;  %833 = vmatpush3.bf16.msra.mxu1 (!%p204_p3), %v867_v3 }
   0xd   : > { %788 = vmatprep.subr.bf16.mxu0 (!%p204_p3), %v868_v4  ;;  %826 = vmatprep.subr.bf16.mxu1 (!%p204_p3), %v868_v4 }
   0xe   : > { %s1052_s21 = smov (!%p244_p4, %s711_s21), 15 }
   0xf   : > { %s752_s10 = sshll.u32 %s1052_s21, 3  ;;  %s715_s12 = sshll.u32 %s1052_s21, 2 }
  0x10   : > { %789 = vmatpush3.bf16.msra.mxu0 %v869_v5  ;;  %834 = vmatpush3.bf16.msra.mxu1 %v869_v5  ;;  %s992_s15 = scalar_lea.vmem %s1042_s0, %s752_s10 }
  0x11   : > { %790 = vmatprep.subr.bf16.mxu0 %v870_v6  ;;  %827 = vmatprep.subr.bf16.mxu1 %v870_v6  ;;  %v882_v11 = vld [vmem:[%s992_s15 + $0x4] ss:$8 sps:$4 sm:$0xff]   ;;  %v880_v18 = vld [vmem:[%s992_s15] ss:$8 sps:$4 sm:$0xff]   ;;  %v886_v20 = vld [vmem:[%s992_s15 + $0x14] ss:$8 sps:$4 sm:$0xff]  }
  0x12   : > { %v885_v12 = vld [vmem:[%s992_s15 + $0x24] ss:$8 sps:$4 sm:$0xff]   ;;  %478 = vmatprep.mubr.bf16.mxu0 %v882_v11  ;;  %v883_v19 = vld [vmem:[%s992_s15 + $0x20] ss:$8 sps:$4 sm:$0xff]   ;;  %v888_v21 = vld [vmem:[%s992_s15 + $0x34] ss:$8 sps:$4 sm:$0xff]  }
  0x13   : > { %494 = vmatprep.mubr.bf16.mxu1 %v885_v12  ;;  %v890_v22 = vld [vmem:[%s992_s15 + $0x10] ss:$8 sps:$4 sm:$0xff]  }
  0x14   : > { %791 = vmatpush3.bf16.msra.mxu0 %v871_v7  ;;  %835 = vmatpush3.bf16.msra.mxu1 %v871_v7  ;;  %v891_v23 = vld [vmem:[%s992_s15 + $0x30] ss:$8 sps:$4 sm:$0xff]   ;;  %s267_s15 = scalar_lea.vmem %s1046_s4, %s715_s12 }
  0x15   : > { %792 = vmatprep.subr.bf16.mxu0 %v872_v8  ;;  %828 = vmatprep.subr.bf16.mxu1 %v872_v8 }
  0x18   : > { %793 = vmatpush3.bf16.msra.mxu0 %v873_v9  ;;  %836 = vmatpush3.bf16.msra.mxu1 %v873_v9 }
  0x19   : > { %794 = vmatprep.subr.bf16.mxu0 %v874_v10  ;;  %829 = vmatprep.subr.bf16.mxu1 %v874_v10 }
  0x1c   : > { %795 = vmatpush3.bf16.msra.mxu0 %v875_v13  ;;  %837 = vmatpush3.bf16.msra.mxu1 %v875_v13 }
  0x1d   : > { %796 = vmatprep.subr.bf16.mxu0 %v876_v14  ;;  %830 = vmatprep.subr.bf16.mxu1 %v876_v14 }
  0x20   : > { %797 = vmatpush3.bf16.msra.mxu0 %v877_v15  ;;  %838 = vmatpush3.bf16.msra.mxu1 %v877_v15 }
  0x21   : > { %798 = vmatprep.subr.bf16.mxu0 %v878_v16  ;;  %831 = vmatprep.subr.bf16.mxu1 %v878_v16 }
  0x24   : > { %799 = vmatpush3.bf16.msra.mxu0 %v879_v17  ;;  %839 = vmatpush3.bf16.msra.mxu1 %v879_v17 }
  0x27   : > { %479 = vmatmul.mubr.bf16.vlgmr.msra.gmra.mrb[0].mxu0 %v880_v18  ;;  %495 = vmatmul.mubr.bf16.vlgmr.msra.gmra.mrb[0].mxu1 %v883_v19 }
  0x28   : > { %486 = vmatprep.mubr.bf16.mxu0 %v886_v20  ;;  %502 = vmatprep.mubr.bf16.mxu1 %v888_v21 }
  0x2f   : > { %487 = vmatmul.mubr.bf16.gmra.mrb[4].mxu0 %v890_v22  ;;  %503 = vmatmul.mubr.bf16.gmra.mrb[4].mxu1 %v891_v23 }
  0xfa   : > { %v800_v24 = vpop.f32.mrb[0].mxu0  ;;  %v812_v25 = vpop.f32.mrb[0].mxu1 }
  0xfb   : > { %v801_v26 = vpop.f32.mrb[1].mxu0  ;;  %v813_v28 = vpop.f32.mrb[1].mxu1 }
  0xfc   : > { %v802_v29 = vadd.f32 %v801_v26, %v800_v24  ;;  %v814_v30 = vadd.f32 %v813_v28, %v812_v25  ;;  %v803_v31 = vpop.f32.mrb[2].mxu0  ;;  %v815_v32 = vpop.f32.mrb[2].mxu1 }
  0xfd   : > { %v804_v34 = vpop.f32.mrb[3].mxu0  ;;  %v816_v35 = vpop.f32.mrb[3].mxu1 }
  0xfe   : > { %v518_v36 = vmul.f32 %v802_v29, %v740_v27  ;;  %v522_v37 = vmul.f32 %v814_v30, %v740_v27  ;;  %v805_v38 = vadd.f32 %v804_v34, %v803_v31  ;;  %v817_v39 = vadd.f32 %v816_v35, %v815_v32 }
 0x100   : > { %v533_v40 = vadd.f32 %v741_v33, %v518_v36  ;;  %v537_v41 = vadd.f32 %v741_v33, %v522_v37  ;;  %v519_v42 = vmul.f32 %v805_v38, %v740_v27  ;;  %v523_v43 = vmul.f32 %v817_v39, %v740_v27 }
 0x102   : > { %v534_v44 = vadd.f32 %v741_v33, %v519_v42  ;;  %v538_v45 = vadd.f32 %v741_v33, %v523_v43  ;;  %v806_v46 = vpop.f32.mrb[4].mxu0  ;;  %v818_v47 = vpop.f32.mrb[4].mxu1  ;;  %v541_v48 = vmax.f32 %v533_v40, 0.0  ;;  %v545_v49 = vmax.f32 %v537_v41, 0.0 }
 0x103   : > { %v807_v50 = vpop.f32.mrb[5].mxu0  ;;  %v819_v51 = vpop.f32.mrb[5].mxu1 }
 0x104   : > { %v542_v52 = vmax.f32 %v534_v44, 0.0  ;;  %v546_v53 = vmax.f32 %v538_v45, 0.0  ;;  %v808_v54 = vadd.f32 %v807_v50, %v806_v46  ;;  %v820_v55 = vadd.f32 %v819_v51, %v818_v47  ;;  %v809_v56 = vpop.f32.mrb[6].mxu0  ;;  %v821_v57 = vpop.f32.mrb[6].mxu1 }
 0x105   : > { %v810_v58 = vpop.f32.mrb[7].mxu0  ;;  %v822_v59 = vpop.f32.mrb[7].mxu1 }
 0x106   : > { %v764_v60 = vpack.c.bf16 %v542_v52, %v541_v48  ;;  %v774_v61 = vpack.c.bf16 %v546_v53, %v545_v49  ;;  %v520_v62 = vmul.f32 %v808_v54, %v740_v27  ;;  %v524_v63 = vmul.f32 %v820_v55, %v740_v27 }
 0x107   : > { %v811_v0 = vadd.f32 %v810_v58, %v809_v56  ;;  %v823_v1 = vadd.f32 %v822_v59, %v821_v57 }
 0x108   : > { %765 = vst [vmem:[%s267_s15] sm:$0xff] %v764_v60   ;;  %782 = vst [vmem:[%s267_s15 + $0x10] sm:$0xff] %v774_v61   ;;  %v535_v2 = vadd.f32 %v741_v33, %v520_v62  ;;  %v539_v3 = vadd.f32 %v741_v33, %v524_v63 }
 0x109   : > { %v521_v4 = vmul.f32 %v811_v0, %v740_v27  ;;  %v525_v5 = vmul.f32 %v823_v1, %v740_v27 }
 0x10a   : > { %v543_v8 = vmax.f32 %v535_v2, 0.0  ;;  %v547_v9 = vmax.f32 %v539_v3, 0.0 }
 0x10b   : > { %v536_v6 = vadd.f32 %v741_v33, %v521_v4  ;;  %v540_v7 = vadd.f32 %v741_v33, %v525_v5 }
 0x10d   : > { %v544_v10 = vmax.f32 %v536_v6, 0.0  ;;  %v548_v11 = vmax.f32 %v540_v7, 0.0 }
 0x10f   : > { %v769_v12 = vpack.c.bf16 %v544_v10, %v543_v8  ;;  %v779_v13 = vpack.c.bf16 %v548_v11, %v547_v9 }
 0x111   : > { %781 = vst [vmem:[%s267_s15 + $0x8] sm:$0xff] %v769_v12   ;;  %783 = vst [vmem:[%s267_s15 + $0x18] sm:$0xff] %v779_v13  }
 0x112 PF: > { %s14_s17 = sadd.s32 1, %s914_s17   ;;  %s1047_s15 = smov %s910_s16 }
 0x113   : > { %p11_p5 = scmp.ge.s32.totalorder %s14_s17, 4   ;;  %s1048_s16 = smov %s1050_s18 }
 0x115   :  { %13 = sbr.rel (!%p11_p5) target bundleno = 2 (0x2), region = 75 }

// kernel: discriminator_forward.19
= control target key start
LH: loop header
LB: loop body
LE: loop exit
PB: predicated region body
PF: predicated region fallthrough
CT: control target
= control target key end

     0   :  { %s522_s9 = smov 0   ;;  %s592_s0 = inlined_call_operand.vmem [shape: bf16[2,10,5,128], index: 0, kind: input, shape index: {}]   ;;  %s593_s1 = inlined_call_operand.vmem [shape: bf16[2,10,5,128], index: 1, kind: input, shape index: {}]   ;;  %s594_s2 = inlined_call_operand.vmem [shape: bf16[2,4,4,128], index: 2, kind: output, shape index: {}]  }
   0x1 LB: > { %s442_s10 = sadd.s32 4294967295, %s505_s9   ;;  %p446_p0 = scmp.ge.s32.totalorder %s505_s9, 1  ;;  %s505_s9 = sphi %s522_s9, %s12_s9  }
   0x2   : > { %p122_p1 = scmp.lt.s32.totalorder %s505_s9, 3 }
   0x4   : > { %p123_p2 = pnand %p446_p0, %p122_p1 }
   0x5   : > { %p149_p3 = scmp.lt.s32.totalorder (!%p123_p2), %s442_s10, 1 }
   0x6   : > { %126 = sbr.rel (%p123_p2) target bundleno = 57 (0x39), region = 28 }
   0xd   : > { %s596_s10 = smov (!%p149_p3, %s442_s10), 1 }
   0xe   : > { %s490_s11 = smul.u32 40, %s596_s10  ;;  %s489_s18 = sshll.u32 %s596_s10, 3 }
   0xf   : > { %s574_s21 = scalar_lea.vmem %s594_s2, %s489_s18 }
  0x10   : > { %s536_s14 = scalar_lea.vmem %s592_s0, %s490_s11  ;;  %s541_s17 = scalar_lea.vmem %s593_s1, %s490_s11 }
  0x11   : > { %v167_v0 = vld [vmem:[%s536_s14] sm:$0x7]  ;;  %v453_v5 = vld [vmem:[%s536_s14 + $0x4] sm:$0x7]  ;;  %v456_v10 = vld [vmem:[%s536_s14 + $0x8] sm:$0x7] }
  0x12   : > { %v169_v1 = vshrl.u32 %v167_v0, 16  ;;  %v172_v2 = vshll.u32 %v167_v0, 16  ;;  %v164_v3 = vld [vmem:[%s536_s14] sm:$0x3]  ;;  %v187_v8 = vshrl.u32 %v453_v5, 16  ;;  %v190_v9 = vshll.u32 %v453_v5, 16 }
  0x13   : > { %v165_v4 = vld [vmem:[%s541_s17] sm:$0x3]  ;;  %v205_v11 = vshrl.u32 %v456_v10, 16  ;;  %v208_v12 = vshll.u32 %v456_v10, 16  ;;  %v457_v17 = vld [vmem:[%s536_s14 + $0x8] sm:$0x3] }
  0x14   : > { %v171_v6 = vrot.slane %v169_v1, 4  ;;  %v174_v7 = vrot.slane %v172_v2, 5  ;;  %v166_v13 = vmax.bf16 %v165_v4, %v164_v3  ;;  %v189_v15 = vrot.slane %v187_v8, 4  ;;  %v459_v18 = vld [vmem:[%s536_s14 + $0x8] sm:$0x7] }
  0x15   : > { %v192_v16 = vrot.slane %v190_v9, 5  ;;  %v207_v19 = vrot.slane %v205_v11, 4  ;;  %v210_v20 = vrot.slane %v208_v12, 5  ;;  %v458_v21 = vld [vmem:[%s541_s17 + $0x8] sm:$0x3]  ;;  %v221_v22 = vshrl.u32 %v459_v18, 16 }
  0x16   : > { %v175_v14 = vor.u32 %v174_v7, %v171_v6  ;;  %v224_v23 = vshll.u32 %v459_v18, 16  ;;  %v462_v26 = vld [vmem:[%s536_s14 + $0xc] sm:$0x7]  ;;  %v451_v27 = vld [vmem:[%s536_s14 + $0x4] sm:$0x3]  ;;  %v218_v33 = vmax.bf16 %v458_v21, %v457_v17 }
  0x17   : > { %v193_v25 = vor.u32 %v192_v16, %v189_v15  ;;  %v211_v28 = vor.u32 %v210_v20, %v207_v19  ;;  %v223_v29 = vrot.slane %v221_v22, 4  ;;  %v239_v31 = vshrl.u32 %v462_v26, 16  ;;  %v465_v35 = vld [vmem:[%s536_s14 + $0x10] sm:$0x7]  ;;  %v452_v36 = vld [vmem:[%s541_s17 + $0x4] sm:$0x3] }
  0x18   : > { %v176_v24 = vrot.slane %v175_v14, 4  ;;  %v226_v30 = vrot.slane %v224_v23, 5  ;;  %v242_v34 = vshll.u32 %v462_v26, 16  ;;  %v257_v40 = vshrl.u32 %v465_v35, 16  ;;  %v467_v44 = vld [vmem:[%s536_s14 + $0x10] sm:$0x3] }
  0x19   : > { %v194_v37 = vrot.slane %v193_v25, 4  ;;  %v241_v39 = vrot.slane %v239_v31, 4  ;;  %v260_v43 = vshll.u32 %v465_v35, 16  ;;  %v469_v45 = vld [vmem:[%s536_s14 + $0x10] sm:$0x7]  ;;  %v212_v46 = vrot.slane %v211_v28, 4 }
  0x1a   : > { %v178_v32 = vmax.bf16 %v176_v24, %v166_v13  ;;  %v227_v38 = vor.u32 %v226_v30, %v223_v29  ;;  %v244_v42 = vrot.slane %v242_v34, 5  ;;  %v468_v48 = vld [vmem:[%s541_s17 + $0x10] sm:$0x3]  ;;  %v274_v49 = vshrl.u32 %v469_v45, 16  ;;  %v460_v52 = vld [vmem:[%s536_s14 + $0xc] sm:$0x3] }
  0x1b   : > { %v277_v50 = vshll.u32 %v469_v45, 16  ;;  %v259_v54 = vrot.slane %v257_v40, 4  ;;  %v262_v55 = vrot.slane %v260_v43, 5  ;;  %v472_v56 = vld [vmem:[%s536_s14 + $0x14] sm:$0x7]  ;;  %v271_v1 = vmax.bf16 %v468_v48, %v467_v44 }
  0x1c   : > { %v181_v41 = vmax.bf16 %v451_v27, %v178_v32  ;;  %v228_v47 = vrot.slane %v227_v38, 4  ;;  %v245_v53 = vor.u32 %v244_v42, %v241_v39  ;;  %v454_v57 = vld [vmem:[%s536_s14 + $0x8] sm:$0x3]  ;;  %v276_v59 = vrot.slane %v274_v49, 4  ;;  %v461_v63 = vld [vmem:[%s541_s17 + $0xc] sm:$0x3] }
  0x1d   : > { %v279_v60 = vrot.slane %v277_v50, 5  ;;  %v292_v61 = vshrl.u32 %v472_v56, 16  ;;  %v295_v2 = vshll.u32 %v472_v56, 16  ;;  %v475_v3 = vld [vmem:[%s536_s14 + $0x18] sm:$0x7]  ;;  %v263_v11 = vor.u32 %v262_v55, %v259_v54 }
  0x1e   : > { %v184_v51 = vmax.bf16 %v452_v36, %v181_v41  ;;  %v230_v58 = vmax.bf16 %v228_v47, %v218_v33  ;;  %v246_v0 = vrot.slane %v245_v53, 4  ;;  %v455_v4 = vld [vmem:[%s541_s17 + $0x8] sm:$0x3]  ;;  %v310_v8 = vshrl.u32 %v475_v3, 16  ;;  %v479_v9 = vld [vmem:[%s536_s14 + $0x18] sm:$0x7] }
  0x1f   : > { %v280_v6 = vor.u32 %v279_v60, %v276_v59  ;;  %v294_v7 = vrot.slane %v292_v61, 4  ;;  %v297_v12 = vrot.slane %v295_v2, 5  ;;  %v313_v13 = vshll.u32 %v475_v3, 16  ;;  %v477_v14 = vld [vmem:[%s536_s14 + $0x18] sm:$0x3] }
  0x20   : > { %v196_v62 = vmax.bf16 %v194_v37, %v184_v51  ;;  %v233_v5 = vmax.bf16 %v460_v52, %v230_v58  ;;  %v312_v17 = vrot.slane %v310_v8, 4  ;;  %v478_v18 = vld [vmem:[%s541_s17 + $0x18] sm:$0x3]  ;;  %v482_v19 = vld [vmem:[%s536_s14 + $0x1c] sm:$0x7]  ;;  %v327_v25 = vshrl.u32 %v479_v9, 16 }
  0x21   : > { %v281_v16 = vrot.slane %v280_v6, 4  ;;  %v463_v21 = vld [vmem:[%s536_s14 + $0x10] sm:$0x3]  ;;  %v470_v22 = vld [vmem:[%s536_s14 + $0x14] sm:$0x3]  ;;  %v298_v23 = vor.u32 %v297_v12, %v294_v7  ;;  %v315_v24 = vrot.slane %v313_v13, 5  ;;  %v324_v35 = vmax.bf16 %v478_v18, %v477_v14 }
  0x22   : > { %v199_v10 = vmax.bf16 %v454_v57, %v196_v62  ;;  %v236_v15 = vmax.bf16 %v461_v63, %v233_v5  ;;  %v330_v28 = vshll.u32 %v479_v9, 16  ;;  %v345_v29 = vshrl.u32 %v482_v19, 16  ;;  %v485_v30 = vld [vmem:[%s536_s14 + $0x20] sm:$0x7]  ;;  %v464_v32 = vld [vmem:[%s541_s17 + $0x10] sm:$0x3] }
  0x23   : > { %v283_v27 = vmax.bf16 %v281_v16, %v271_v1  ;;  %v264_v33 = vrot.slane %v263_v11, 4  ;;  %v471_v34 = vld [vmem:[%s541_s17 + $0x14] sm:$0x3]  ;;  %v329_v36 = vrot.slane %v327_v25, 4  ;;  %v299_v39 = vrot.slane %v298_v23, 4 }
  0x24   : > { %v202_v20 = vmax.bf16 %v455_v4, %v199_v10  ;;  %v248_v26 = vmax.bf16 %v246_v0, %v236_v15  ;;  %v332_v40 = vrot.slane %v330_v28, 5  ;;  %v316_v41 = vor.u32 %v315_v24, %v312_v17  ;;  %v473_v49 = vld [vmem:[%s536_s14 + $0x18] sm:$0x3]  ;;  %v480_v56 = vld [vmem:[%s536_s14 + $0x1c] sm:$0x3] }
  0x25   : > { %v286_v38 = vmax.bf16 %v470_v22, %v283_v27  ;;  %v347_v42 = vrot.slane %v345_v29, 4  ;;  %v348_v43 = vshll.u32 %v482_v19, 16  ;;  %v363_v44 = vshrl.u32 %v485_v30, 16  ;;  %v474_v54 = vld [vmem:[%s541_s17 + $0x18] sm:$0x3] }
  0x26   : > { %v214_v31 = vmax.bf16 %v212_v46, %v202_v20  ;;  %v251_v37 = vmax.bf16 %v463_v21, %v248_v26  ;;  %v333_v47 = vor.u32 %v332_v40, %v329_v36  ;;  %v366_v48 = vshll.u32 %v485_v30, 16  ;;  %v481_v62 = vld [vmem:[%s541_s17 + $0x1c] sm:$0x3]  ;;  %v483_v5 = vld [vmem:[%s536_s14 + $0x20] sm:$0x3] }
  0x27   : > { %v289_v46 = vmax.bf16 %v471_v34, %v286_v38  ;;  %v350_v50 = vrot.slane %v348_v43, 5  ;;  %v317_v55 = vrot.slane %v316_v41, 4  ;;  %v365_v60 = vrot.slane %v363_v44, 4  ;;  %v484_v7 = vld [vmem:[%s541_s17 + $0x20] sm:$0x3] }
  0x28   : > { %215 = vst [vmem:[%s574_s21] sm:$0x3] %v214_v31  ;;  %v254_v45 = vmax.bf16 %v464_v32, %v251_v37  ;;  %v334_v53 = vrot.slane %v333_v47, 4  ;;  %v368_v61 = vrot.slane %v366_v48, 5 }
  0x29   : > { %v301_v52 = vmax.bf16 %v299_v39, %v289_v46  ;;  %v351_v57 = vor.u32 %v350_v50, %v347_v42 }
  0x2a   : > { %v266_v51 = vmax.bf16 %v264_v33, %v254_v45  ;;  %v336_v59 = vmax.bf16 %v334_v53, %v324_v35  ;;  %v369_v4 = vor.u32 %v368_v61, %v365_v60 }
  0x2b   : > { %v304_v58 = vmax.bf16 %v473_v49, %v301_v52  ;;  %v352_v1 = vrot.slane %v351_v57, 4 }
  0x2c   : > { %466 = vst [vmem:[%s574_s21 + $0x2] sm:$0x3] %v266_v51  ;;  %v339_v0 = vmax.bf16 %v480_v56, %v336_v59  ;;  %v370_v9 = vrot.slane %v369_v4, 4 }
  0x2d   : > { %v307_v63 = vmax.bf16 %v474_v54, %v304_v58 }
  0x2e   : > { %v342_v3 = vmax.bf16 %v481_v62, %v339_v0 }
  0x2f   : > { %v319_v2 = vmax.bf16 %v317_v55, %v307_v63 }
  0x30   : > { %v354_v6 = vmax.bf16 %v352_v1, %v342_v3 }
  0x31   : > { %476 = vst [vmem:[%s574_s21 + $0x4] sm:$0x3] %v319_v2 }
  0x32   : > { %v357_v8 = vmax.bf16 %v483_v5, %v354_v6 }
  0x34   : > { %v360_v10 = vmax.bf16 %v484_v7, %v357_v8 }
  0x36   : > { %v372_v11 = vmax.bf16 %v370_v9, %v360_v10 }
  0x38   : > { %486 = vst [vmem:[%s574_s21 + $0x6] sm:$0x3] %v372_v11 }
  0x39 PF: > { %s12_s9 = sadd.s32 1, %s505_s9  }
  0x3a   : > { %p9_p4 = scmp.ge.s32.totalorder %s12_s9, 4  }
  0x3c   :  { %11 = sbr.rel (!%p9_p4) target bundleno = 1 (0x1), region = 80 }

// kernel: discriminator_forward.22
= control target key start
LH: loop header
LB: loop body
LE: loop exit
PB: predicated region body
PF: predicated region fallthrough
CT: control target
= control target key end

     0   :  { %s671_s15 = smov 0   ;;  %s673_s16 = smov 0   ;;  %s741_s0 = inlined_call_operand.vmem [shape: bf16[32,128], index: 0, kind: input, shape index: {}]   ;;  %s742_s1 = inlined_call_operand.vmem [shape: bf16[128,128], index: 1, kind: input, shape index: {}]   ;;  %s743_s2 = inlined_call_operand.vmem [shape: f32[1,128], index: 2, kind: input, shape index: {}]   ;;  %s744_s3 = inlined_call_operand.vmem [shape: f32[1,128], index: 3, kind: input, shape index: {}]   ;;  %s745_s4 = inlined_call_operand.vmem [shape: bf16[32,128], index: 4, kind: output, shape index: {}]  }
   0x1   :  { %s675_s17 = smov 0  }
   0x2 LB: > { %s23_s18 = sadd.s32 1, %s638_s16  ;;  %p529_p0 = scmp.ge.s32.totalorder %s642_s17, 1  ;;  %s642_s17 = sphi %s675_s17, %s14_s17   ;;  %s638_s16 = sphi %s673_s16, %s747_s16   ;;  %s634_s15 = sphi %s671_s15, %s746_s15  }
   0x3   : > { %p24_p1 = scmp.ge.s32.totalorder %s23_s18, 2  ;;  %p202_p2 = scmp.lt.s32.totalorder %s642_s17, 3 }
   0x5   : > { %s749_s18 = smov (%p24_p1, %s23_s18), 0  ;;  %p203_p3 = pnand %p529_p0, %p202_p2 }
   0x6   : > { %v611_v0 = vld [vmem:[%s742_s1] sm:$0xff] (!%p203_p3)   ;;  %v644_v1 = vmov (!%p203_p3), 0.0   ;;  %v612_v2 = vld [vmem:[%s742_s1 + $0x8] sm:$0xff] (!%p203_p3)   ;;  %vm645_vm0 = vmmov (!%p203_p3), 0   ;;  %s530_s23 = sshll.u32 (!%p203_p3), %s634_s15, 1  ;;  %v613_v3 = vld [vmem:[%s742_s1 + $0x10] sm:$0xff] (!%p203_p3)  }
   0x7   : > { %206 = sbr.rel (%p203_p3) target bundleno = 260 (0x104), region = 36  ;;  %565 = vmatprep.subr.bf16.mxu0 (!%p203_p3), %v644_v1  ;;  %581 = vmatprep.mubr.msk.bf16.mxu0 (!%p203_p3), %vm645_vm0, %v644_v1  ;;  %p242_p4 = scmp.lt.s32.totalorder (!%p203_p3), %s530_s23, 3  ;;  %v614_v4 = vld [vmem:[%s742_s1 + $0x18] sm:$0xff] (!%p203_p3)   ;;  %v615_v5 = vld [vmem:[%s742_s1 + $0x20] sm:$0xff] (!%p203_p3)   ;;  %v616_v6 = vld [vmem:[%s742_s1 + $0x28] sm:$0xff] (!%p203_p3)  }
   0x8   : > { %566 = vmatpush3.bf16.msra.mxu0 (!%p203_p3), %v611_v0  ;;  %v617_v7 = vld [vmem:[%s742_s1 + $0x30] sm:$0xff] (!%p203_p3)   ;;  %v618_v8 = vld [vmem:[%s742_s1 + $0x38] sm:$0xff] (!%p203_p3)   ;;  %v543_v10 = vld [vmem:[%s743_s2] ss:$0 sm:$0xff] (!%p203_p3) }
   0x9   : > { %567 = vmatprep.subr.bf16.mxu0 (!%p203_p3), %v644_v1  ;;  %v544_v14 = vld [vmem:[%s744_s3] ss:$0 sm:$0xff] (!%p203_p3) }
   0xc   : > { %568 = vmatpush3.bf16.msra.mxu0 (!%p203_p3), %v612_v2 }
   0xd   : > { %569 = vmatprep.subr.bf16.mxu0 (!%p203_p3), %v644_v1 }
   0xe   : > { %s751_s23 = smov (!%p242_p4, %s530_s23), 3 }
   0xf   : > { %s531_s26 = sshll.u32 %s751_s23, 2 }
  0x10   : > { %s245_s29 = scalar_lea.vmem %s741_s0, %s531_s26  ;;  %570 = vmatpush3.bf16.msra.mxu0 %v613_v3  ;;  %s264_s24 = scalar_lea.vmem %s745_s4, %s531_s26 }
  0x11   : > { %571 = vmatprep.subr.bf16.mxu0 %v644_v1  ;;  %v619_v9 = vld [vmem:[%s245_s29] sm:$0xff]  }
  0x14   : > { %572 = vmatpush3.bf16.msra.mxu0 %v614_v4 }
  0x15   : > { %573 = vmatprep.subr.bf16.mxu0 %v644_v1 }
  0x18   : > { %574 = vmatpush3.bf16.msra.mxu0 %v615_v5 }
  0x19   : > { %575 = vmatprep.subr.bf16.mxu0 %v644_v1 }
  0x1c   : > { %576 = vmatpush3.bf16.msra.mxu0 %v616_v6 }
  0x1d   : > { %577 = vmatprep.subr.bf16.mxu0 %v644_v1 }
  0x20   : > { %578 = vmatpush3.bf16.msra.mxu0 %v617_v7 }
  0x21   : > { %579 = vmatprep.subr.bf16.mxu0 %v644_v1 }
  0x24   : > { %580 = vmatpush3.bf16.msra.mxu0 %v618_v8 }
  0x27   : > { %582 = vmatmul.mubr.bf16.vlgmr.msra.gmra.mrb[0].mxu0 %v619_v9 }
  0xfa   : > { %v373_v11 = vpop.f32.mrb[0].mxu0 }
  0xfb   : > { %v387_v12 = vmul.f32 %v543_v10, %v373_v11  ;;  %v583_v13 = vpop.f32.mrb[1].mxu0 }
  0xfc   : > { %v376_v15 = vpop.f32.mrb[2].mxu0 }
  0xfd   : > { %v388_v16 = vmul.f32 %v543_v10, %v376_v15  ;;  %v584_v17 = vpop.f32.mrb[3].mxu0  ;;  %v396_v18 = vadd.f32 %v544_v14, %v387_v12 }
  0xff   : > { %v397_v19 = vadd.f32 %v544_v14, %v388_v16 }
 0x101   : > { %v554_v20 = vpack.c.bf16 %v397_v19, %v396_v18 }
 0x103   : > { %555 = vst [vmem:[%s264_s24] sm:$0xff] %v554_v20  }
 0x104 PF: > { %s14_s17 = sadd.s32 1, %s642_s17   ;;  %s746_s15 = smov %s638_s16 }
 0x105   : > { %p11_p5 = scmp.ge.s32.totalorder %s14_s17, 4   ;;  %s747_s16 = smov %s749_s18 }
 0x107   :  { %13 = sbr.rel (!%p11_p5) target bundleno = 2 (0x2), region = 75 }

// kernel: discriminator_forward.23
= control target key start
LH: loop header
LB: loop body
LE: loop exit
PB: predicated region body
PF: predicated region fallthrough
CT: control target
= control target key end

     0   :  { %s765_s18 = smov 0   ;;  %s767_s19 = smov 0   ;;  %s836_s0 = inlined_call_operand.vmem [shape: bf16[32,128], index: 0, kind: input, shape index: {}]   ;;  %s837_s1 = inlined_call_operand.vmem [shape: bf16[128,128], index: 1, kind: input, shape index: {}]   ;;  %s838_s2 = inlined_call_operand.vmem [shape: f32[1,128], index: 2, kind: input, shape index: {}]   ;;  %s839_s3 = inlined_call_operand.vmem [shape: f32[1,128], index: 3, kind: input, shape index: {}]   ;;  %s840_s4 = inlined_call_operand.vmem [shape: bf16[32,128], index: 4, kind: input, shape index: {}]   ;;  %s841_s5 = inlined_call_operand.vmem [shape: bf16[32,128], index: 5, kind: output, shape index: {}]  }
   0x1   :  { %s769_s20 = smov 0  }
   0x2 LB: > { %s24_s21 = sadd.s32 1, %s727_s19  ;;  %p612_p0 = scmp.ge.s32.totalorder %s731_s20, 1  ;;  %s731_s20 = sphi %s769_s20, %s15_s20   ;;  %s727_s19 = sphi %s767_s19, %s843_s19   ;;  %s723_s18 = sphi %s765_s18, %s842_s18  }
   0x3   : > { %p25_p1 = scmp.ge.s32.totalorder %s24_s21, 2  ;;  %p243_p2 = scmp.lt.s32.totalorder %s731_s20, 3 }
   0x5   : > { %s845_s21 = smov (%p25_p1, %s24_s21), 0  ;;  %p244_p3 = pnand %p612_p0, %p243_p2 }
   0x6   : > { %v700_v0 = vld [vmem:[%s837_s1] sm:$0xff] (!%p244_p3)   ;;  %v733_v1 = vmov (!%p244_p3), 0.0   ;;  %v701_v2 = vld [vmem:[%s837_s1 + $0x8] sm:$0xff] (!%p244_p3)   ;;  %vm734_vm0 = vmmov (!%p244_p3), 0   ;;  %s613_s26 = sshll.u32 (!%p244_p3), %s723_s18, 1  ;;  %v702_v3 = vld [vmem:[%s837_s1 + $0x10] sm:$0xff] (!%p244_p3)  }
   0x7   : > { %247 = sbr.rel (%p244_p3) target bundleno = 264 (0x108), region = 40  ;;  %654 = vmatprep.subr.bf16.mxu0 (!%p244_p3), %v733_v1  ;;  %670 = vmatprep.mubr.msk.bf16.mxu0 (!%p244_p3), %vm734_vm0, %v733_v1  ;;  %p293_p4 = scmp.lt.s32.totalorder (!%p244_p3), %s613_s26, 3  ;;  %v703_v4 = vld [vmem:[%s837_s1 + $0x18] sm:$0xff] (!%p244_p3)   ;;  %v704_v5 = vld [vmem:[%s837_s1 + $0x20] sm:$0xff] (!%p244_p3)   ;;  %v705_v6 = vld [vmem:[%s837_s1 + $0x28] sm:$0xff] (!%p244_p3)  }
   0x8   : > { %655 = vmatpush3.bf16.msra.mxu0 (!%p244_p3), %v700_v0  ;;  %v706_v7 = vld [vmem:[%s837_s1 + $0x30] sm:$0xff] (!%p244_p3)   ;;  %v707_v8 = vld [vmem:[%s837_s1 + $0x38] sm:$0xff] (!%p244_p3)   ;;  %v628_v10 = vld [vmem:[%s838_s2] ss:$0 sm:$0xff] (!%p244_p3) }
   0x9   : > { %656 = vmatprep.subr.bf16.mxu0 (!%p244_p3), %v733_v1  ;;  %v629_v13 = vld [vmem:[%s839_s3] ss:$0 sm:$0xff] (!%p244_p3) }
   0xc   : > { %657 = vmatpush3.bf16.msra.mxu0 (!%p244_p3), %v701_v2 }
   0xd   : > { %658 = vmatprep.subr.bf16.mxu0 (!%p244_p3), %v733_v1 }
   0xe   : > { %s847_s26 = smov (!%p293_p4, %s613_s26), 3 }
   0xf   : > { %s792_s29 = sshll.u32 %s847_s26, 2 }
  0x10   : > { %s296_s7 = scalar_lea.vmem %s836_s0, %s792_s29  ;;  %659 = vmatpush3.bf16.msra.mxu0 %v702_v3  ;;  %s315_s23 = scalar_lea.vmem %s840_s4, %s792_s29 }
  0x11   : > { %660 = vmatprep.subr.bf16.mxu0 %v733_v1  ;;  %v708_v9 = vld [vmem:[%s296_s7] sm:$0xff]   ;;  %s324_s6 = scalar_lea.vmem %s841_s5, %s792_s29 }
  0x12   : > { %v637_v11 = vld [vmem:[%s315_s23] sm:$0xff]  }
  0x13   : > { %v638_v15 = vunpack.c.l.bf16 %v637_v11  ;;  %v639_v20 = vunpack.c.h.bf16 %v637_v11 }
  0x14   : > { %661 = vmatpush3.bf16.msra.mxu0 %v703_v4 }
  0x15   : > { %662 = vmatprep.subr.bf16.mxu0 %v733_v1 }
  0x18   : > { %663 = vmatpush3.bf16.msra.mxu0 %v704_v5 }
  0x19   : > { %664 = vmatprep.subr.bf16.mxu0 %v733_v1 }
  0x1c   : > { %665 = vmatpush3.bf16.msra.mxu0 %v705_v6 }
  0x1d   : > { %666 = vmatprep.subr.bf16.mxu0 %v733_v1 }
  0x20   : > { %667 = vmatpush3.bf16.msra.mxu0 %v706_v7 }
  0x21   : > { %668 = vmatprep.subr.bf16.mxu0 %v733_v1 }
  0x24   : > { %669 = vmatpush3.bf16.msra.mxu0 %v707_v8 }
  0x27   : > { %671 = vmatmul.mubr.bf16.vlgmr.msra.gmra.mrb[0].mxu0 %v708_v9 }
  0xfa   : > { %v433_v12 = vpop.f32.mrb[0].mxu0 }
  0xfb   : > { %v447_v14 = vmul.f32 %v628_v10, %v433_v12  ;;  %v672_v16 = vpop.f32.mrb[1].mxu0 }
  0xfc   : > { %v436_v17 = vpop.f32.mrb[2].mxu0 }
  0xfd   : > { %v456_v18 = vadd.f32 %v629_v13, %v447_v14  ;;  %v448_v19 = vmul.f32 %v628_v10, %v436_v17  ;;  %v673_v21 = vpop.f32.mrb[3].mxu0 }
  0xff   : > { %v462_v22 = vadd.f32 %v638_v15, %v456_v18  ;;  %v457_v23 = vadd.f32 %v629_v13, %v448_v19 }
 0x101   : > { %v463_v24 = vadd.f32 %v639_v20, %v457_v23  ;;  %v464_v25 = vmax.f32 %v462_v22, 0.0 }
 0x103   : > { %v465_v26 = vmax.f32 %v463_v24, 0.0 }
 0x105   : > { %v643_v27 = vpack.c.bf16 %v465_v26, %v464_v25 }
 0x107   : > { %644 = vst [vmem:[%s324_s6] sm:$0xff] %v643_v27  }
 0x108 PF: > { %s15_s20 = sadd.s32 1, %s731_s20   ;;  %s842_s18 = smov %s727_s19 }
 0x109   : > { %p12_p5 = scmp.ge.s32.totalorder %s15_s20, 4   ;;  %s843_s19 = smov %s845_s21 }
 0x10b   :  { %14 = sbr.rel (!%p12_p5) target bundleno = 2 (0x2), region = 82 }

// kernel: discriminator_forward.26
= control target key start
LH: loop header
LB: loop body
LE: loop exit
PB: predicated region body
PF: predicated region fallthrough
CT: control target
= control target key end

     0   :  { %v223_v0 = vmov 0.0   ;;  %vm224_vm0 = vmmov 0   ;;  %s286_s1 = inlined_call_operand.vmem [shape: bf16[128,128], index: 1, kind: input, shape index: {}]   ;;  %s287_s0 = inlined_call_operand.vmem [shape: bf16[16,128], index: 0, kind: input, shape index: {}]   ;;  %s288_s2 = inlined_call_operand.vmem [shape: f32[1,128], index: 2, kind: input, shape index: {}]   ;;  %s289_s3 = inlined_call_operand.vmem [shape: f32[1,128], index: 3, kind: input, shape index: {}]   ;;  %s290_s4 = inlined_call_operand.vmem [shape: bf16[16,128], index: 4, kind: output, shape index: {}]  }
   0x1   :  { %192 = vmatprep.subr.bf16.mxu0 %v223_v0  ;;  %v214_v1 = vld [vmem:[%s286_s1] sm:$0xff]   ;;  %208 = vmatprep.mubr.msk.bf16.mxu0 %vm224_vm0, %v223_v0  ;;  %v215_v2 = vld [vmem:[%s286_s1 + $0x8] sm:$0xff]   ;;  %v216_v3 = vld [vmem:[%s286_s1 + $0x10] sm:$0xff]  }
   0x2   :  { %193 = vmatpush3.bf16.msra.mxu0 %v214_v1  ;;  %v217_v4 = vld [vmem:[%s286_s1 + $0x18] sm:$0xff]   ;;  %v218_v5 = vld [vmem:[%s286_s1 + $0x20] sm:$0xff]   ;;  %v219_v6 = vld [vmem:[%s286_s1 + $0x28] sm:$0xff]  }
   0x3   :  { %194 = vmatprep.subr.bf16.mxu0 %v223_v0  ;;  %v220_v7 = vld [vmem:[%s286_s1 + $0x30] sm:$0xff]   ;;  %v221_v8 = vld [vmem:[%s286_s1 + $0x38] sm:$0xff]   ;;  %v222_v9 = vld [vmem:[%s287_s0] sm:$0xff]  }
   0x4   :  { %v172_v10 = vld [vmem:[%s288_s2] ss:$0 sm:$0xff] }
   0x5   :  { %v173_v14 = vld [vmem:[%s289_s3] ss:$0 sm:$0xff] }
   0x6   :  { %195 = vmatpush3.bf16.msra.mxu0 %v215_v2 }
   0x7   :  { %196 = vmatprep.subr.bf16.mxu0 %v223_v0 }
   0xa   :  { %197 = vmatpush3.bf16.msra.mxu0 %v216_v3 }
   0xb   :  { %198 = vmatprep.subr.bf16.mxu0 %v223_v0 }
   0xe   :  { %199 = vmatpush3.bf16.msra.mxu0 %v217_v4 }
   0xf   :  { %200 = vmatprep.subr.bf16.mxu0 %v223_v0 }
  0x12   :  { %201 = vmatpush3.bf16.msra.mxu0 %v218_v5 }
  0x13   :  { %202 = vmatprep.subr.bf16.mxu0 %v223_v0 }
  0x16   :  { %203 = vmatpush3.bf16.msra.mxu0 %v219_v6 }
  0x17   :  { %204 = vmatprep.subr.bf16.mxu0 %v223_v0 }
  0x1a   :  { %205 = vmatpush3.bf16.msra.mxu0 %v220_v7 }
  0x1b   :  { %206 = vmatprep.subr.bf16.mxu0 %v223_v0 }
  0x1e   :  { %207 = vmatpush3.bf16.msra.mxu0 %v221_v8 }
  0x21   :  { %209 = vmatmul.mubr.bf16.vlgmr.msra.gmra.mrb[0].mxu0 %v222_v9 }
  0xf4   :  { %v124_v11 = vpop.f32.mrb[0].mxu0 }
  0xf5   :  { %v138_v12 = vmul.f32 %v172_v10, %v124_v11  ;;  %v210_v13 = vpop.f32.mrb[1].mxu0 }
  0xf6   :  { %v127_v15 = vpop.f32.mrb[2].mxu0 }
  0xf7   :  { %v139_v16 = vmul.f32 %v172_v10, %v127_v15  ;;  %v211_v17 = vpop.f32.mrb[3].mxu0  ;;  %v147_v18 = vadd.f32 %v173_v14, %v138_v12 }
  0xf9   :  { %v148_v19 = vadd.f32 %v173_v14, %v139_v16 }
  0xfb   :  { %v181_v20 = vpack.c.bf16 %v148_v19, %v147_v18 }
  0xfd   :  { %182 = vst [vmem:[%s290_s4] sm:$0xff] %v181_v20  }

// kernel: discriminator_forward.27
= control target key start
LH: loop header
LB: loop body
LE: loop exit
PB: predicated region body
PF: predicated region fallthrough
CT: control target
= control target key end

     0   :  { %v238_v0 = vmov 0.0   ;;  %vm239_vm0 = vmmov 0   ;;  %s309_s1 = inlined_call_operand.vmem [shape: bf16[128,128], index: 1, kind: input, shape index: {}]   ;;  %s310_s0 = inlined_call_operand.vmem [shape: bf16[16,128], index: 0, kind: input, shape index: {}]   ;;  %s311_s2 = inlined_call_operand.vmem [shape: f32[1,128], index: 2, kind: input, shape index: {}]   ;;  %s312_s4 = inlined_call_operand.vmem [shape: bf16[16,128], index: 4, kind: input, shape index: {}]   ;;  %s313_s3 = inlined_call_operand.vmem [shape: f32[1,128], index: 3, kind: input, shape index: {}]   ;;  %s314_s5 = inlined_call_operand.vmem [shape: bf16[16,128], index: 5, kind: output, shape index: {}]  }
   0x1   :  { %207 = vmatprep.subr.bf16.mxu0 %v238_v0  ;;  %v229_v1 = vld [vmem:[%s309_s1] sm:$0xff]   ;;  %223 = vmatprep.mubr.msk.bf16.mxu0 %vm239_vm0, %v238_v0  ;;  %v230_v2 = vld [vmem:[%s309_s1 + $0x8] sm:$0xff]   ;;  %v231_v3 = vld [vmem:[%s309_s1 + $0x10] sm:$0xff]  }
   0x2   :  { %208 = vmatpush3.bf16.msra.mxu0 %v229_v1  ;;  %v232_v4 = vld [vmem:[%s309_s1 + $0x18] sm:$0xff]   ;;  %v233_v5 = vld [vmem:[%s309_s1 + $0x20] sm:$0xff]   ;;  %v234_v6 = vld [vmem:[%s309_s1 + $0x28] sm:$0xff]  }
   0x3   :  { %209 = vmatprep.subr.bf16.mxu0 %v238_v0  ;;  %v235_v7 = vld [vmem:[%s309_s1 + $0x30] sm:$0xff]   ;;  %v236_v8 = vld [vmem:[%s309_s1 + $0x38] sm:$0xff]   ;;  %v237_v9 = vld [vmem:[%s310_s0] sm:$0xff]  }
   0x4   :  { %v183_v10 = vld [vmem:[%s311_s2] ss:$0 sm:$0xff] }
   0x5   :  { %v190_v11 = vld [vmem:[%s312_s4] sm:$0xff]  }
   0x6   :  { %210 = vmatpush3.bf16.msra.mxu0 %v230_v2  ;;  %v184_v13 = vld [vmem:[%s313_s3] ss:$0 sm:$0xff]  ;;  %v191_v15 = vunpack.c.l.bf16 %v190_v11  ;;  %v192_v20 = vunpack.c.h.bf16 %v190_v11 }
   0x7   :  { %211 = vmatprep.subr.bf16.mxu0 %v238_v0 }
   0xa   :  { %212 = vmatpush3.bf16.msra.mxu0 %v231_v3 }
   0xb   :  { %213 = vmatprep.subr.bf16.mxu0 %v238_v0 }
   0xe   :  { %214 = vmatpush3.bf16.msra.mxu0 %v232_v4 }
   0xf   :  { %215 = vmatprep.subr.bf16.mxu0 %v238_v0 }
  0x12   :  { %216 = vmatpush3.bf16.msra.mxu0 %v233_v5 }
  0x13   :  { %217 = vmatprep.subr.bf16.mxu0 %v238_v0 }
  0x16   :  { %218 = vmatpush3.bf16.msra.mxu0 %v234_v6 }
  0x17   :  { %219 = vmatprep.subr.bf16.mxu0 %v238_v0 }
  0x1a   :  { %220 = vmatpush3.bf16.msra.mxu0 %v235_v7 }
  0x1b   :  { %221 = vmatprep.subr.bf16.mxu0 %v238_v0 }
  0x1e   :  { %222 = vmatpush3.bf16.msra.mxu0 %v236_v8 }
  0x21   :  { %224 = vmatmul.mubr.bf16.vlgmr.msra.gmra.mrb[0].mxu0 %v237_v9 }
  0xf4   :  { %v127_v12 = vpop.f32.mrb[0].mxu0 }
  0xf5   :  { %v141_v14 = vmul.f32 %v183_v10, %v127_v12  ;;  %v225_v16 = vpop.f32.mrb[1].mxu0 }
  0xf6   :  { %v130_v17 = vpop.f32.mrb[2].mxu0 }
  0xf7   :  { %v150_v18 = vadd.f32 %v184_v13, %v141_v14  ;;  %v142_v19 = vmul.f32 %v183_v10, %v130_v17  ;;  %v226_v21 = vpop.f32.mrb[3].mxu0 }
  0xf9   :  { %v156_v22 = vadd.f32 %v191_v15, %v150_v18  ;;  %v151_v23 = vadd.f32 %v184_v13, %v142_v19 }
  0xfb   :  { %v157_v24 = vadd.f32 %v192_v20, %v151_v23  ;;  %v158_v25 = vmax.f32 %v156_v22, 0.0 }
  0xfd   :  { %v159_v26 = vmax.f32 %v157_v24, 0.0 }
  0xff   :  { %v196_v27 = vpack.c.bf16 %v159_v26, %v158_v25 }
 0x101   :  { %197 = vst [vmem:[%s314_s5] sm:$0xff] %v196_v27  }

// kernel: discriminator_forward.28
= control target key start
LH: loop header
LB: loop body
LE: loop exit
PB: predicated region body
PF: predicated region fallthrough
CT: control target
= control target key end

     0   :  { %v225_v0 = vmov 0.0   ;;  %vm226_vm0 = vmmov 0   ;;  %s288_s1 = inlined_call_operand.vmem [shape: bf16[128,128], index: 1, kind: input, shape index: {}]   ;;  %s289_s0 = inlined_call_operand.vmem [shape: bf16[16,128], index: 0, kind: input, shape index: {}]   ;;  %s290_s2 = inlined_call_operand.vmem [shape: f32[1,128], index: 2, kind: input, shape index: {}]   ;;  %s291_s3 = inlined_call_operand.vmem [shape: f32[1,128], index: 3, kind: input, shape index: {}]   ;;  %s292_s4 = inlined_call_operand.vmem [shape: bf16[16,128], index: 4, kind: output, shape index: {}]  }
   0x1   :  { %194 = vmatprep.subr.bf16.mxu0 %v225_v0  ;;  %v216_v1 = vld [vmem:[%s288_s1] sm:$0xff]   ;;  %210 = vmatprep.mubr.msk.bf16.mxu0 %vm226_vm0, %v225_v0  ;;  %v217_v2 = vld [vmem:[%s288_s1 + $0x8] sm:$0xff]   ;;  %v218_v3 = vld [vmem:[%s288_s1 + $0x10] sm:$0xff]  }
   0x2   :  { %195 = vmatpush3.bf16.msra.mxu0 %v216_v1  ;;  %v219_v4 = vld [vmem:[%s288_s1 + $0x18] sm:$0xff]   ;;  %v220_v5 = vld [vmem:[%s288_s1 + $0x20] sm:$0xff]   ;;  %v221_v6 = vld [vmem:[%s288_s1 + $0x28] sm:$0xff]  }
   0x3   :  { %196 = vmatprep.subr.bf16.mxu0 %v225_v0  ;;  %v222_v7 = vld [vmem:[%s288_s1 + $0x30] sm:$0xff]   ;;  %v223_v8 = vld [vmem:[%s288_s1 + $0x38] sm:$0xff]   ;;  %v224_v9 = vld [vmem:[%s289_s0] sm:$0xff]  }
   0x4   :  { %v174_v10 = vld [vmem:[%s290_s2] ss:$0 sm:$0xff] }
   0x5   :  { %v175_v12 = vld [vmem:[%s291_s3] ss:$0 sm:$0xff] }
   0x6   :  { %197 = vmatpush3.bf16.msra.mxu0 %v217_v2 }
   0x7   :  { %198 = vmatprep.subr.bf16.mxu0 %v225_v0 }
   0xa   :  { %199 = vmatpush3.bf16.msra.mxu0 %v218_v3 }
   0xb   :  { %200 = vmatprep.subr.bf16.mxu0 %v225_v0 }
   0xe   :  { %201 = vmatpush3.bf16.msra.mxu0 %v219_v4 }
   0xf   :  { %202 = vmatprep.subr.bf16.mxu0 %v225_v0 }
  0x12   :  { %203 = vmatpush3.bf16.msra.mxu0 %v220_v5 }
  0x13   :  { %204 = vmatprep.subr.bf16.mxu0 %v225_v0 }
  0x16   :  { %205 = vmatpush3.bf16.msra.mxu0 %v221_v6 }
  0x17   :  { %206 = vmatprep.subr.bf16.mxu0 %v225_v0 }
  0x1a   :  { %207 = vmatpush3.bf16.msra.mxu0 %v222_v7 }
  0x1b   :  { %208 = vmatprep.subr.bf16.mxu0 %v225_v0 }
  0x1e   :  { %209 = vmatpush3.bf16.msra.mxu0 %v223_v8 }
  0x21   :  { %211 = vmatmul.mubr.bf16.vlgmr.msra.gmra.mrb[0].mxu0 %v224_v9 }
  0xf4   :  { %v124_v11 = vpop.f32.mrb[0].mxu0 }
  0xf5   :  { %v138_v13 = vmul.f32 %v174_v10, %v124_v11  ;;  %v212_v14 = vpop.f32.mrb[1].mxu0 }
  0xf6   :  { %v127_v15 = vpop.f32.mrb[2].mxu0 }
  0xf7   :  { %v147_v16 = vadd.f32 %v175_v12, %v138_v13  ;;  %v139_v17 = vmul.f32 %v174_v10, %v127_v15  ;;  %v213_v18 = vpop.f32.mrb[3].mxu0 }
  0xf9   :  { %v148_v19 = vadd.f32 %v175_v12, %v139_v17  ;;  %v149_v20 = vmax.f32 %v147_v16, 0.0 }
  0xfb   :  { %v150_v21 = vmax.f32 %v148_v19, 0.0 }
  0xfd   :  { %v183_v22 = vpack.c.bf16 %v150_v21, %v149_v20 }
  0xff   :  { %184 = vst [vmem:[%s292_s4] sm:$0xff] %v183_v22  }

// kernel: discriminator_forward.25
= control target key start
LH: loop header
LB: loop body
LE: loop exit
PB: predicated region body
PF: predicated region fallthrough
CT: control target
= control target key end

     0   :  { %s3723_s18 = smov 0   ;;  %s3725_s19 = smov 0   ;;  %s4411_s0 = inlined_call_operand.vmem [shape: bf16[2,6,3,128], index: 0, kind: input, shape index: {}]   ;;  %s4412_s1 = inlined_call_operand.vmem [shape: bf16[2,6,3,128], index: 1, kind: input, shape index: {}]   ;;  %s4413_s2 = inlined_call_operand.vmem [shape: bf16[9,128,128], index: 2, kind: input, shape index: {}]   ;;  %s4414_s3 = inlined_call_operand.vmem [shape: f32[1,128], index: 3, kind: input, shape index: {}]   ;;  %s4415_s4 = inlined_call_operand.vmem [shape: f32[1,128], index: 4, kind: input, shape index: {}]   ;;  %s4416_s5 = inlined_call_operand.vmem [shape: bf16[2,2,2,128], index: 5, kind: output, shape index: {}]  }
   0x1   :  { %s3727_s20 = smov 0  }
   0x2 LB: > { %s27_s21 = sadd.s32 1, %s3685_s19  ;;  %p2480_p0 = scmp.ge.s32.totalorder %s3689_s20, 1  ;;  %s3689_s20 = sphi %s3727_s20, %s15_s20   ;;  %s3685_s19 = sphi %s3725_s19, %s4418_s19   ;;  %s3681_s18 = sphi %s3723_s18, %s4417_s18  }
   0x3   : > { %p29_p1 = scmp.ge.s32.totalorder %s27_s21, 2  ;;  %p236_p2 = scmp.lt.s32.totalorder %s3689_s20, 3 }
   0x5   : > { %s4420_s21 = smov (%p29_p1, %s27_s21), 0  ;;  %p237_p3 = pnand %p2480_p0, %p236_p2 }
   0x6   : > { %v3523_v0 = vld [vmem:[%s4413_s2 + $0x40] sm:$0xff] (!%p237_p3)   ;;  %v3691_v1 = vmov (!%p237_p3), 0.0   ;;  %v3525_v3 = vld [vmem:[%s4413_s2 + $0x48] sm:$0xff] (!%p237_p3)   ;;  %vm3692_vm0 = vmmov (!%p237_p3), 0   ;;  %v3527_v5 = vld [vmem:[%s4413_s2 + $0x50] sm:$0xff] (!%p237_p3)   ;;  %p281_p4 = scmp.lt.s32.totalorder (!%p237_p3), %s3681_s18, 1 }
   0x7   : > { %240 = sbr.rel (%p237_p3) target bundleno = 517 (0x205), region = 40  ;;  %3072 = vmatprep.subr.bf16.mxu0 (!%p237_p3), %v3691_v1  ;;  %3252 = vmatprep.subr.bf16.mxu1 (!%p237_p3), %v3691_v1  ;;  %v3524_v2 = vld [vmem:[%s4413_s2 + $0x40] sm:$0xff] (!%p237_p3)   ;;  %v3526_v4 = vld [vmem:[%s4413_s2 + $0x48] sm:$0xff] (!%p237_p3)   ;;  %v3528_v6 = vld [vmem:[%s4413_s2 + $0x50] sm:$0xff] (!%p237_p3)  }
   0x8   : > { %3073 = vmatpush3.bf16.msra.mxu0 (!%p237_p3), %v3523_v0  ;;  %3088 = vmatprep.mubr.msk.bf16.mxu0 (!%p237_p3), %vm3692_vm0, %v3691_v1  ;;  %v3529_v7 = vld [vmem:[%s4413_s2 + $0x58] sm:$0xff] (!%p237_p3)   ;;  %v3531_v9 = vld [vmem:[%s4413_s2 + $0x60] sm:$0xff] (!%p237_p3)   ;;  %v3533_v11 = vld [vmem:[%s4413_s2 + $0x68] sm:$0xff] (!%p237_p3)  }
   0x9   : > { %3253 = vmatpush3.bf16.msra.mxu1 (!%p237_p3), %v3524_v2  ;;  %3074 = vmatprep.subr.bf16.mxu0 (!%p237_p3), %v3691_v1  ;;  %v3530_v8 = vld [vmem:[%s4413_s2 + $0x58] sm:$0xff] (!%p237_p3)   ;;  %v3532_v10 = vld [vmem:[%s4413_s2 + $0x60] sm:$0xff] (!%p237_p3)   ;;  %v3534_v12 = vld [vmem:[%s4413_s2 + $0x68] sm:$0xff] (!%p237_p3)  }
   0xa   : > { %3254 = vmatprep.subr.bf16.mxu1 (!%p237_p3), %v3691_v1  ;;  %3268 = vmatprep.mubr.msk.bf16.mxu1 (!%p237_p3), %vm3692_vm0, %v3691_v1  ;;  %v3535_v13 = vld [vmem:[%s4413_s2 + $0x70] sm:$0xff] (!%p237_p3)   ;;  %v3537_v15 = vld [vmem:[%s4413_s2 + $0x78] sm:$0xff] (!%p237_p3)   ;;  %v3539_v18 = vld [vmem:[%s4413_s2] sm:$0xff] (!%p237_p3)  }
   0xb   : > { %v3536_v14 = vld [vmem:[%s4413_s2 + $0x70] sm:$0xff] (!%p237_p3)   ;;  %v3538_v16 = vld [vmem:[%s4413_s2 + $0x78] sm:$0xff] (!%p237_p3)   ;;  %v3540_v20 = vld [vmem:[%s4413_s2] sm:$0xff] (!%p237_p3)  }
   0xc   : > { %3075 = vmatpush3.bf16.msra.mxu0 (!%p237_p3), %v3525_v3  ;;  %v3541_v21 = vld [vmem:[%s4413_s2 + $0x8] sm:$0xff] (!%p237_p3)   ;;  %v3543_v23 = vld [vmem:[%s4413_s2 + $0x10] sm:$0xff] (!%p237_p3)   ;;  %v3545_v25 = vld [vmem:[%s4413_s2 + $0x18] sm:$0xff] (!%p237_p3)  }
   0xd   : > { %3255 = vmatpush3.bf16.msra.mxu1 (!%p237_p3), %v3526_v4  ;;  %3076 = vmatprep.subr.bf16.mxu0 (!%p237_p3), %v3691_v1  ;;  %v3542_v22 = vld [vmem:[%s4413_s2 + $0x8] sm:$0xff] (!%p237_p3)   ;;  %v3544_v24 = vld [vmem:[%s4413_s2 + $0x10] sm:$0xff] (!%p237_p3)   ;;  %v3546_v26 = vld [vmem:[%s4413_s2 + $0x18] sm:$0xff] (!%p237_p3)  }
   0xe   : > { %3256 = vmatprep.subr.bf16.mxu1 %v3691_v1  ;;  %s4422_s18 = smov (!%p281_p4, %s3681_s18), 1  ;;  %v3547_v27 = vld [vmem:[%s4413_s2 + $0x20] sm:$0xff]   ;;  %v3549_v29 = vld [vmem:[%s4413_s2 + $0x28] sm:$0xff]   ;;  %v3551_v31 = vld [vmem:[%s4413_s2 + $0x30] sm:$0xff]  }
   0xf   : > { %s3496_s25 = smul.u32 12, %s4422_s18  ;;  %v3548_v28 = vld [vmem:[%s4413_s2 + $0x20] sm:$0xff]   ;;  %v3550_v30 = vld [vmem:[%s4413_s2 + $0x28] sm:$0xff]   ;;  %v3552_v32 = vld [vmem:[%s4413_s2 + $0x30] sm:$0xff]   ;;  %s2483_s30 = sshll.u32 %s4422_s18, 1 }
  0x10   : > { %3077 = vmatpush3.bf16.msra.mxu0 %v3527_v5  ;;  %v3553_v33 = vld [vmem:[%s4413_s2 + $0x38] sm:$0xff]   ;;  %v3555_v36 = vld [vmem:[%s4413_s2 + $0x80] sm:$0xff]   ;;  %v3557_v39 = vld [vmem:[%s4413_s2 + $0x88] sm:$0xff]   ;;  %s307_s9 = scalar_lea.vmem %s4416_s5, %s2483_s30 }
  0x11   : > { %3257 = vmatpush3.bf16.msra.mxu1 %v3528_v6  ;;  %3078 = vmatprep.subr.bf16.mxu0 %v3691_v1  ;;  %s3813_s7 = scalar_lea.vmem %s4412_s1, %s3496_s25  ;;  %s3890_s28 = scalar_lea.vmem %s4411_s0, %s3496_s25  ;;  %v3554_v34 = vld [vmem:[%s4413_s2 + $0x38] sm:$0xff]   ;;  %v3556_v38 = vld [vmem:[%s4413_s2 + $0x80] sm:$0xff]   ;;  %v3558_v40 = vld [vmem:[%s4413_s2 + $0x88] sm:$0xff]  }
  0x12   : > { %3258 = vmatprep.subr.bf16.mxu1 %v3691_v1  ;;  %v328_v17 = vld [vmem:[%s3813_s7] sm:$0x1]  ;;  %v2696_v19 = vld [vmem:[%s3813_s7 + $0x4] sm:$0x1]  ;;  %v3559_v41 = vld [vmem:[%s4413_s2 + $0x90] sm:$0xff]  }
  0x13   : > { %v311_v35 = vld [vmem:[%s3890_s28] sm:$0x1]  ;;  %v2695_v37 = vld [vmem:[%s3890_s28 + $0x4] sm:$0x1]  ;;  %v3560_v42 = vld [vmem:[%s4413_s2 + $0x90] sm:$0xff]  }
  0x14   : > { %3079 = vmatpush3.bf16.msra.mxu0 %v3529_v7  ;;  %v3561_v43 = vld [vmem:[%s4413_s2 + $0x98] sm:$0xff]   ;;  %v3563_v45 = vld [vmem:[%s4413_s2 + $0xa0] sm:$0xff]   ;;  %v3565_v48 = vld [vmem:[%s4413_s2 + $0xa8] sm:$0xff]  }
  0x15   : > { %3259 = vmatpush3.bf16.msra.mxu1 %v3530_v8  ;;  %3080 = vmatprep.subr.bf16.mxu0 %v3691_v1  ;;  %v3562_v44 = vld [vmem:[%s4413_s2 + $0x98] sm:$0xff]   ;;  %v3564_v46 = vld [vmem:[%s4413_s2 + $0xa0] sm:$0xff]   ;;  %v3566_v49 = vld [vmem:[%s4413_s2 + $0xa8] sm:$0xff]  }
  0x16   : > { %3260 = vmatprep.subr.bf16.mxu1 %v3691_v1  ;;  %v2532_v47 = vld.sshfl [vmem:[%s3890_s28] sm:$0x3 pattern:$0x76325410]  ;;  %v3567_v52 = vld [vmem:[%s4413_s2 + $0xb0] sm:$0xff]   ;;  %v3569_v55 = vld [vmem:[%s4413_s2 + $0xb8] sm:$0xff]  }
  0x17   : > { %v2746_v50 = vld.sshfl [vmem:[%s3890_s28 + $0x4] sm:$0x3 pattern:$0x76325410]  ;;  %v551_v51 = vshll.u32 %v2532_v47, 16  ;;  %v3568_v54 = vld [vmem:[%s4413_s2 + $0xb0] sm:$0xff]  }
  0x18   : > { %3081 = vmatpush3.bf16.msra.mxu0 %v3531_v9  ;;  %v1578_v53 = vshll.u32 %v2746_v50, 16  ;;  %v549_v56 = vshrl.u32 %v2532_v47, 16  ;;  %v1576_v58 = vshrl.u32 %v2746_v50, 16  ;;  %v3570_v60 = vld [vmem:[%s4413_s2 + $0xb8] sm:$0xff]   ;;  %v3571_v62 = vld [vmem:[%s4413_s2 + $0xc0] sm:$0xff]   ;;  %v3573_v2 = vld [vmem:[%s4413_s2 + $0xc8] sm:$0xff]  }
  0x19   : > { %3261 = vmatpush3.bf16.msra.mxu1 %v3532_v10  ;;  %3082 = vmatprep.subr.bf16.mxu0 %v3691_v1  ;;  %v553_v57 = vrot.slane %v551_v51, 1  ;;  %v3572_v0 = vld [vmem:[%s4413_s2 + $0xc0] sm:$0xff]   ;;  %v3574_v3 = vld [vmem:[%s4413_s2 + $0xc8] sm:$0xff]   ;;  %v3575_v4 = vld [vmem:[%s4413_s2 + $0xd0] sm:$0xff]  }
  0x1a   : > { %3262 = vmatprep.subr.bf16.mxu1 %v3691_v1  ;;  %v1580_v59 = vrot.slane %v1578_v53, 1  ;;  %v3576_v5 = vld [vmem:[%s4413_s2 + $0xd0] sm:$0xff]   ;;  %v3577_v6 = vld [vmem:[%s4413_s2 + $0xd8] sm:$0xff]   ;;  %v3579_v8 = vld [vmem:[%s4413_s2 + $0xe0] sm:$0xff]  }
  0x1b   : > { %v554_v61 = vor.u32 %v553_v57, %v549_v56  ;;  %v3578_v7 = vld [vmem:[%s4413_s2 + $0xd8] sm:$0xff]   ;;  %v3580_v9 = vld [vmem:[%s4413_s2 + $0xe0] sm:$0xff]   ;;  %v3581_v10 = vld [vmem:[%s4413_s2 + $0xe8] sm:$0xff]  }
  0x1c   : > { %3083 = vmatpush3.bf16.msra.mxu0 %v3533_v11  ;;  %v1581_v63 = vor.u32 %v1580_v59, %v1576_v58  ;;  %v3582_v11 = vld [vmem:[%s4413_s2 + $0xe8] sm:$0xff]   ;;  %v2608_v47 = vld.sshfl [vmem:[%s3890_s28 + $0x2] sm:$0x3 pattern:$0x76325410]  ;;  %v3615_v51 = vld [vmem:[%s4413_s2 + $0x170] sm:$0xff]  }
  0x1d   : > { %3263 = vmatpush3.bf16.msra.mxu1 %v3534_v12  ;;  %3084 = vmatprep.subr.bf16.mxu0 %v3691_v1  ;;  %v3583_v12 = vld [vmem:[%s4413_s2 + $0xf0] sm:$0xff]   ;;  %v890_v50 = vshll.u32 %v2608_v47, 16  ;;  %v3617_v56 = vld [vmem:[%s4413_s2 + $0x178] sm:$0xff]  }
  0x1e   : > { %3264 = vmatprep.subr.bf16.mxu1 %v3691_v1  ;;  %v3616_v53 = vld [vmem:[%s4413_s2 + $0x170] sm:$0xff]   ;;  %v3618_v59 = vld [vmem:[%s4413_s2 + $0x178] sm:$0xff]  }
  0x20   : > { %3085 = vmatpush3.bf16.msra.mxu0 %v3535_v13  ;;  %v3584_v13 = vld [vmem:[%s4413_s2 + $0xf0] sm:$0xff]  }
  0x21   : > { %3265 = vmatpush3.bf16.msra.mxu1 %v3536_v14  ;;  %3086 = vmatprep.subr.bf16.mxu0 %v3691_v1  ;;  %v3585_v14 = vld [vmem:[%s4413_s2 + $0xf8] sm:$0xff]  }
  0x22   : > { %3266 = vmatprep.subr.bf16.mxu1 %v3691_v1 }
  0x24   : > { %3087 = vmatpush3.bf16.msra.mxu0 %v3537_v15  ;;  %v3586_v15 = vld [vmem:[%s4413_s2 + $0xf8] sm:$0xff]  }
  0x25   : > { %3267 = vmatpush3.bf16.msra.mxu1 %v3538_v16  ;;  %3092 = vmatprep.subr.bf16.mxu0 %v3691_v1  ;;  %v2541_v16 = vld [vmem:[%s3890_s28 + $0x2] sm:$0x1] }
  0x26   : > { %3272 = vmatprep.subr.bf16.mxu1 %v3691_v1 }
  0x27   : > { %3089 = vmatmul.mubr.bf16.vlgmr.msra.gmra.mrb[0].mxu0 %v328_v17  ;;  %v3587_v17 = vld [vmem:[%s4413_s2 + $0x100] sm:$0xff]  }
  0x28   : > { %3093 = vmatpush3.bf16.msra.mxu0 %v3539_v18  ;;  %3269 = vmatmul.mubr.bf16.vlgmr.msra.gmra.mrb[0].mxu1 %v2696_v19  ;;  %v2755_v18 = vld [vmem:[%s3890_s28 + $0x6] sm:$0x1] }
  0x29   : > { %3273 = vmatpush3.bf16.msra.mxu1 %v3540_v20  ;;  %3094 = vmatprep.subr.bf16.mxu0 %v3691_v1  ;;  %v3588_v19 = vld [vmem:[%s4413_s2 + $0x100] sm:$0xff]   ;;  %v3589_v20 = vld [vmem:[%s4413_s2 + $0x108] sm:$0xff]  }
  0x2a   : > { %3274 = vmatprep.subr.bf16.mxu1 %v3691_v1  ;;  %3108 = vmatprep.mubr.msk.bf16.mxu0 %vm3692_vm0, %v3691_v1 }
  0x2b   : > { %3288 = vmatprep.mubr.msk.bf16.mxu1 %vm3692_vm0, %v3691_v1 }
  0x2c   : > { %3095 = vmatpush3.bf16.msra.mxu0 %v3541_v21  ;;  %v3590_v21 = vld [vmem:[%s4413_s2 + $0x108] sm:$0xff]  }
  0x2d   : > { %3275 = vmatpush3.bf16.msra.mxu1 %v3542_v22  ;;  %3096 = vmatprep.subr.bf16.mxu0 %v3691_v1  ;;  %v3591_v22 = vld [vmem:[%s4413_s2 + $0x110] sm:$0xff]  }
  0x2e   : > { %3276 = vmatprep.subr.bf16.mxu1 %v3691_v1 }
  0x30   : > { %3097 = vmatpush3.bf16.msra.mxu0 %v3543_v23  ;;  %v3592_v23 = vld [vmem:[%s4413_s2 + $0x110] sm:$0xff]  }
  0x31   : > { %3277 = vmatpush3.bf16.msra.mxu1 %v3544_v24  ;;  %3098 = vmatprep.subr.bf16.mxu0 %v3691_v1  ;;  %v3593_v24 = vld [vmem:[%s4413_s2 + $0x118] sm:$0xff]  }
  0x32   : > { %3278 = vmatprep.subr.bf16.mxu1 %v3691_v1 }
  0x34   : > { %3099 = vmatpush3.bf16.msra.mxu0 %v3545_v25  ;;  %v3594_v25 = vld [vmem:[%s4413_s2 + $0x118] sm:$0xff]  }
  0x35   : > { %3279 = vmatpush3.bf16.msra.mxu1 %v3546_v26  ;;  %3100 = vmatprep.subr.bf16.mxu0 %v3691_v1  ;;  %v3595_v26 = vld [vmem:[%s4413_s2 + $0x120] sm:$0xff]  }
  0x36   : > { %3280 = vmatprep.subr.bf16.mxu1 %v3691_v1 }
  0x38   : > { %3101 = vmatpush3.bf16.msra.mxu0 %v3547_v27  ;;  %v3596_v27 = vld [vmem:[%s4413_s2 + $0x120] sm:$0xff]  }
  0x39   : > { %3281 = vmatpush3.bf16.msra.mxu1 %v3548_v28  ;;  %3102 = vmatprep.subr.bf16.mxu0 %v3691_v1  ;;  %v3597_v28 = vld [vmem:[%s4413_s2 + $0x128] sm:$0xff]  }
  0x3a   : > { %3282 = vmatprep.subr.bf16.mxu1 %v3691_v1 }
  0x3c   : > { %3103 = vmatpush3.bf16.msra.mxu0 %v3549_v29  ;;  %v3598_v29 = vld [vmem:[%s4413_s2 + $0x128] sm:$0xff]  }
  0x3d   : > { %3283 = vmatpush3.bf16.msra.mxu1 %v3550_v30  ;;  %3104 = vmatprep.subr.bf16.mxu0 %v3691_v1  ;;  %v3599_v30 = vld [vmem:[%s4413_s2 + $0x130] sm:$0xff]  }
  0x3e   : > { %3284 = vmatprep.subr.bf16.mxu1 %v3691_v1 }
  0x40   : > { %3105 = vmatpush3.bf16.msra.mxu0 %v3551_v31  ;;  %v3600_v31 = vld [vmem:[%s4413_s2 + $0x130] sm:$0xff]  }
  0x41   : > { %3285 = vmatpush3.bf16.msra.mxu1 %v3552_v32  ;;  %3106 = vmatprep.subr.bf16.mxu0 %v3691_v1  ;;  %v3601_v32 = vld [vmem:[%s4413_s2 + $0x138] sm:$0xff]  }
  0x42   : > { %3286 = vmatprep.subr.bf16.mxu1 %v3691_v1 }
  0x44   : > { %3107 = vmatpush3.bf16.msra.mxu0 %v3553_v33  ;;  %v3602_v33 = vld [vmem:[%s4413_s2 + $0x138] sm:$0xff]  }
  0x45   : > { %3287 = vmatpush3.bf16.msra.mxu1 %v3554_v34  ;;  %3112 = vmatprep.subr.bf16.mxu0 %v3691_v1  ;;  %v2566_v34 = vld [vmem:[%s3813_s7 + $0x2] sm:$0x1] }
  0x46   : > { %3292 = vmatprep.subr.bf16.mxu1 %v3691_v1 }
  0x47   : > { %3109 = vmatmul.mubr.bf16.vlgmr.msra.gmra.mrb[0].mxu0 %v311_v35  ;;  %v3603_v35 = vld [vmem:[%s4413_s2 + $0x140] sm:$0xff]  }
  0x48   : > { %3113 = vmatpush3.bf16.msra.mxu0 %v3555_v36  ;;  %3289 = vmatmul.mubr.bf16.vlgmr.msra.gmra.mrb[0].mxu1 %v2695_v37  ;;  %v2780_v36 = vld [vmem:[%s3813_s7 + $0x6] sm:$0x1] }
  0x49   : > { %3293 = vmatpush3.bf16.msra.mxu1 %v3556_v38  ;;  %3114 = vmatprep.subr.bf16.mxu0 %v3691_v1  ;;  %v3604_v37 = vld [vmem:[%s4413_s2 + $0x140] sm:$0xff]   ;;  %v3605_v38 = vld [vmem:[%s4413_s2 + $0x148] sm:$0xff]  }
  0x4a   : > { %3294 = vmatprep.subr.bf16.mxu1 %v3691_v1  ;;  %3128 = vmatprep.mubr.msk.bf16.mxu0 %vm3692_vm0, %v3691_v1 }
  0x4b   : > { %3308 = vmatprep.mubr.msk.bf16.mxu1 %vm3692_vm0, %v3691_v1 }
  0x4c   : > { %3115 = vmatpush3.bf16.msra.mxu0 %v3557_v39  ;;  %v3606_v39 = vld [vmem:[%s4413_s2 + $0x148] sm:$0xff]  }
  0x4d   : > { %3295 = vmatpush3.bf16.msra.mxu1 %v3558_v40  ;;  %3116 = vmatprep.subr.bf16.mxu0 %v3691_v1  ;;  %v3607_v40 = vld [vmem:[%s4413_s2 + $0x150] sm:$0xff]  }
  0x4e   : > { %3296 = vmatprep.subr.bf16.mxu1 %v3691_v1 }
  0x50   : > { %3117 = vmatpush3.bf16.msra.mxu0 %v3559_v41  ;;  %v3608_v41 = vld [vmem:[%s4413_s2 + $0x150] sm:$0xff]  }
  0x51   : > { %3297 = vmatpush3.bf16.msra.mxu1 %v3560_v42  ;;  %3118 = vmatprep.subr.bf16.mxu0 %v3691_v1  ;;  %v3609_v42 = vld [vmem:[%s4413_s2 + $0x158] sm:$0xff]  }
  0x52   : > { %3298 = vmatprep.subr.bf16.mxu1 %v3691_v1 }
  0x54   : > { %3119 = vmatpush3.bf16.msra.mxu0 %v3561_v43  ;;  %v3610_v43 = vld [vmem:[%s4413_s2 + $0x158] sm:$0xff]  }
  0x55   : > { %3299 = vmatpush3.bf16.msra.mxu1 %v3562_v44  ;;  %3120 = vmatprep.subr.bf16.mxu0 %v3691_v1  ;;  %v3611_v44 = vld [vmem:[%s4413_s2 + $0x160] sm:$0xff]  }
  0x56   : > { %3300 = vmatprep.subr.bf16.mxu1 %v3691_v1 }
  0x58   : > { %3121 = vmatpush3.bf16.msra.mxu0 %v3563_v45  ;;  %v3612_v45 = vld [vmem:[%s4413_s2 + $0x160] sm:$0xff]  }
  0x59   : > { %3301 = vmatpush3.bf16.msra.mxu1 %v3564_v46  ;;  %3122 = vmatprep.subr.bf16.mxu0 %v3691_v1  ;;  %v3613_v46 = vld [vmem:[%s4413_s2 + $0x168] sm:$0xff]  }
  0x5a   : > { %3302 = vmatprep.subr.bf16.mxu1 %v3691_v1 }
  0x5c   : > { %3123 = vmatpush3.bf16.msra.mxu0 %v3565_v48  ;;  %v3614_v48 = vld [vmem:[%s4413_s2 + $0x168] sm:$0xff]  }
  0x5d   : > { %3303 = vmatpush3.bf16.msra.mxu1 %v3566_v49  ;;  %3124 = vmatprep.subr.bf16.mxu0 %v3691_v1  ;;  %v2822_v49 = vld.sshfl [vmem:[%s3890_s28 + $0x6] sm:$0x3 pattern:$0x76325410] }
  0x5e   : > { %3304 = vmatprep.subr.bf16.mxu1 %v3691_v1  ;;  %v1912_v57 = vshrl.u32 %v2822_v49, 16 }
  0x60   : > { %3125 = vmatpush3.bf16.msra.mxu0 %v3567_v52  ;;  %v1914_v52 = vshll.u32 %v2822_v49, 16 }
  0x61   : > { %3305 = vmatpush3.bf16.msra.mxu1 %v3568_v54  ;;  %3126 = vmatprep.subr.bf16.mxu0 %v3691_v1  ;;  %v888_v54 = vshrl.u32 %v2608_v47, 16  ;;  %v3662_v47 = vld [vmem:[%s4413_s2 + $0x228] sm:$0xff]  }
  0x62   : > { %3306 = vmatprep.subr.bf16.mxu1 %v3691_v1  ;;  %v1916_v58 = vrot.slane %v1914_v52, 1  ;;  %v3664_v52 = vld [vmem:[%s4413_s2 + $0x230] sm:$0xff]  }
  0x64   : > { %3127 = vmatpush3.bf16.msra.mxu0 %v3569_v55  ;;  %v892_v55 = vrot.slane %v890_v50, 1  ;;  %v3663_v50 = vld [vmem:[%s4413_s2 + $0x230] sm:$0xff]  }
  0x65   : > { %3307 = vmatpush3.bf16.msra.mxu1 %v3570_v60  ;;  %3132 = vmatprep.subr.bf16.mxu0 %v3691_v1 }
  0x66   : > { %3312 = vmatprep.subr.bf16.mxu1 %v3691_v1  ;;  %v893_v60 = vor.u32 %v892_v55, %v888_v54  ;;  %v3665_v55 = vld [vmem:[%s4413_s2 + $0x238] sm:$0xff]  }
  0x67   : > { %3129 = vmatmul.mubr.bf16.vlgmr.msra.gmra.mrb[0].mxu0 %v554_v61  ;;  %v3619_v61 = vld [vmem:[%s4413_s2 + $0x180] sm:$0xff]  }
  0x68   : > { %3133 = vmatpush3.bf16.msra.mxu0 %v3571_v62  ;;  %3309 = vmatmul.mubr.bf16.vlgmr.msra.gmra.mrb[0].mxu1 %v1581_v63  ;;  %v1917_v62 = vor.u32 %v1916_v58, %v1912_v57  ;;  %v3620_v63 = vld [vmem:[%s4413_s2 + $0x180] sm:$0xff]   ;;  %v3666_v58 = vld [vmem:[%s4413_s2 + $0x238] sm:$0xff]  }
  0x69   : > { %3313 = vmatpush3.bf16.msra.mxu1 %v3572_v0  ;;  %3134 = vmatprep.subr.bf16.mxu0 %v3691_v1  ;;  %v3621_v0 = vld [vmem:[%s4413_s2 + $0x188] sm:$0xff]  }
  0x6a   : > { %3314 = vmatprep.subr.bf16.mxu1 %v3691_v1  ;;  %3148 = vmatprep.mubr.msk.bf16.mxu0 %vm3692_vm0, %v3691_v1 }
  0x6b   : > { %3328 = vmatprep.mubr.msk.bf16.mxu1 %vm3692_vm0, %v3691_v1 }
  0x6c   : > { %3135 = vmatpush3.bf16.msra.mxu0 %v3573_v2  ;;  %v3622_v2 = vld [vmem:[%s4413_s2 + $0x188] sm:$0xff]  }
  0x6d   : > { %3315 = vmatpush3.bf16.msra.mxu1 %v3574_v3  ;;  %3136 = vmatprep.subr.bf16.mxu0 %v3691_v1  ;;  %v3623_v3 = vld [vmem:[%s4413_s2 + $0x190] sm:$0xff]  }
  0x6e   : > { %3316 = vmatprep.subr.bf16.mxu1 %v3691_v1 }
  0x70   : > { %3137 = vmatpush3.bf16.msra.mxu0 %v3575_v4  ;;  %v3624_v4 = vld [vmem:[%s4413_s2 + $0x190] sm:$0xff]  }
  0x71   : > { %3317 = vmatpush3.bf16.msra.mxu1 %v3576_v5  ;;  %3138 = vmatprep.subr.bf16.mxu0 %v3691_v1  ;;  %v3625_v5 = vld [vmem:[%s4413_s2 + $0x198] sm:$0xff]  }
  0x72   : > { %3318 = vmatprep.subr.bf16.mxu1 %v3691_v1 }
  0x74   : > { %3139 = vmatpush3.bf16.msra.mxu0 %v3577_v6  ;;  %v3626_v6 = vld [vmem:[%s4413_s2 + $0x198] sm:$0xff]  }
  0x75   : > { %3319 = vmatpush3.bf16.msra.mxu1 %v3578_v7  ;;  %3140 = vmatprep.subr.bf16.mxu0 %v3691_v1  ;;  %v3627_v7 = vld [vmem:[%s4413_s2 + $0x1a0] sm:$0xff]  }
  0x76   : > { %3320 = vmatprep.subr.bf16.mxu1 %v3691_v1 }
  0x78   : > { %3141 = vmatpush3.bf16.msra.mxu0 %v3579_v8  ;;  %v3628_v8 = vld [vmem:[%s4413_s2 + $0x1a0] sm:$0xff]  }
  0x79   : > { %3321 = vmatpush3.bf16.msra.mxu1 %v3580_v9  ;;  %3142 = vmatprep.subr.bf16.mxu0 %v3691_v1  ;;  %v3629_v9 = vld [vmem:[%s4413_s2 + $0x1a8] sm:$0xff]  }
  0x7a   : > { %3322 = vmatprep.subr.bf16.mxu1 %v3691_v1 }
  0x7c   : > { %3143 = vmatpush3.bf16.msra.mxu0 %v3581_v10  ;;  %v3630_v10 = vld [vmem:[%s4413_s2 + $0x1a8] sm:$0xff]  }
  0x7d   : > { %3323 = vmatpush3.bf16.msra.mxu1 %v3582_v11  ;;  %3144 = vmatprep.subr.bf16.mxu0 %v3691_v1  ;;  %v3631_v11 = vld [vmem:[%s4413_s2 + $0x1b0] sm:$0xff]  }
  0x7e   : > { %3324 = vmatprep.subr.bf16.mxu1 %v3691_v1 }
  0x80   : > { %3145 = vmatpush3.bf16.msra.mxu0 %v3583_v12  ;;  %v3632_v12 = vld [vmem:[%s4413_s2 + $0x1b0] sm:$0xff]  }
  0x81   : > { %3325 = vmatpush3.bf16.msra.mxu1 %v3584_v13  ;;  %3146 = vmatprep.subr.bf16.mxu0 %v3691_v1  ;;  %v3633_v13 = vld [vmem:[%s4413_s2 + $0x1b8] sm:$0xff]  }
  0x82   : > { %3326 = vmatprep.subr.bf16.mxu1 %v3691_v1 }
  0x84   : > { %3147 = vmatpush3.bf16.msra.mxu0 %v3585_v14  ;;  %v3634_v14 = vld [vmem:[%s4413_s2 + $0x1b8] sm:$0xff]  }
  0x85   : > { %3327 = vmatpush3.bf16.msra.mxu1 %v3586_v15  ;;  %3152 = vmatprep.subr.bf16.mxu0 %v3691_v1  ;;  %v2617_v15 = vld [vmem:[%s3890_s28 + $0x4] sm:$0x1] }
  0x86   : > { %3332 = vmatprep.subr.bf16.mxu1 %v3691_v1 }
  0x87   : > { %3149 = vmatmul.mubr.bf16.vlgmr.msra.gmra.mrb[0].mxu0 %v2541_v16  ;;  %v3635_v16 = vld [vmem:[%s4413_s2 + $0x1c0] sm:$0xff]  }
  0x88   : > { %3153 = vmatpush3.bf16.msra.mxu0 %v3587_v17  ;;  %3329 = vmatmul.mubr.bf16.vlgmr.msra.gmra.mrb[0].mxu1 %v2755_v18  ;;  %v2831_v17 = vld [vmem:[%s3890_s28 + $0x8] sm:$0x1]  ;;  %v3636_v18 = vld [vmem:[%s4413_s2 + $0x1c0] sm:$0xff]  }
  0x89   : > { %3333 = vmatpush3.bf16.msra.mxu1 %v3588_v19  ;;  %3154 = vmatprep.subr.bf16.mxu0 %v3691_v1  ;;  %v3637_v19 = vld [vmem:[%s4413_s2 + $0x1c8] sm:$0xff]  }
  0x8a   : > { %3334 = vmatprep.subr.bf16.mxu1 %v3691_v1  ;;  %3168 = vmatprep.mubr.msk.bf16.mxu0 %vm3692_vm0, %v3691_v1 }
  0x8b   : > { %3348 = vmatprep.mubr.msk.bf16.mxu1 %vm3692_vm0, %v3691_v1 }
  0x8c   : > { %3155 = vmatpush3.bf16.msra.mxu0 %v3589_v20  ;;  %v3638_v20 = vld [vmem:[%s4413_s2 + $0x1c8] sm:$0xff]  }
  0x8d   : > { %3335 = vmatpush3.bf16.msra.mxu1 %v3590_v21  ;;  %3156 = vmatprep.subr.bf16.mxu0 %v3691_v1  ;;  %v3639_v21 = vld [vmem:[%s4413_s2 + $0x1d0] sm:$0xff]  }
  0x8e   : > { %3336 = vmatprep.subr.bf16.mxu1 %v3691_v1 }
  0x90   : > { %3157 = vmatpush3.bf16.msra.mxu0 %v3591_v22  ;;  %v3640_v22 = vld [vmem:[%s4413_s2 + $0x1d0] sm:$0xff]  }
  0x91   : > { %3337 = vmatpush3.bf16.msra.mxu1 %v3592_v23  ;;  %3158 = vmatprep.subr.bf16.mxu0 %v3691_v1  ;;  %v3641_v23 = vld [vmem:[%s4413_s2 + $0x1d8] sm:$0xff]  }
  0x92   : > { %3338 = vmatprep.subr.bf16.mxu1 %v3691_v1 }
  0x94   : > { %3159 = vmatpush3.bf16.msra.mxu0 %v3593_v24  ;;  %v3642_v24 = vld [vmem:[%s4413_s2 + $0x1d8] sm:$0xff]  }
  0x95   : > { %3339 = vmatpush3.bf16.msra.mxu1 %v3594_v25  ;;  %3160 = vmatprep.subr.bf16.mxu0 %v3691_v1  ;;  %v3643_v25 = vld [vmem:[%s4413_s2 + $0x1e0] sm:$0xff]  }
  0x96   : > { %3340 = vmatprep.subr.bf16.mxu1 %v3691_v1 }
  0x98   : > { %3161 = vmatpush3.bf16.msra.mxu0 %v3595_v26  ;;  %v3644_v26 = vld [vmem:[%s4413_s2 + $0x1e0] sm:$0xff]  }
  0x99   : > { %3341 = vmatpush3.bf16.msra.mxu1 %v3596_v27  ;;  %3162 = vmatprep.subr.bf16.mxu0 %v3691_v1  ;;  %v3645_v27 = vld [vmem:[%s4413_s2 + $0x1e8] sm:$0xff]  }
  0x9a   : > { %3342 = vmatprep.subr.bf16.mxu1 %v3691_v1 }
  0x9c   : > { %3163 = vmatpush3.bf16.msra.mxu0 %v3597_v28  ;;  %v3646_v28 = vld [vmem:[%s4413_s2 + $0x1e8] sm:$0xff]  }
  0x9d   : > { %3343 = vmatpush3.bf16.msra.mxu1 %v3598_v29  ;;  %3164 = vmatprep.subr.bf16.mxu0 %v3691_v1  ;;  %v3647_v29 = vld [vmem:[%s4413_s2 + $0x1f0] sm:$0xff]  }
  0x9e   : > { %3344 = vmatprep.subr.bf16.mxu1 %v3691_v1 }
  0xa0   : > { %3165 = vmatpush3.bf16.msra.mxu0 %v3599_v30  ;;  %v3648_v30 = vld [vmem:[%s4413_s2 + $0x1f0] sm:$0xff]  }
  0xa1   : > { %3345 = vmatpush3.bf16.msra.mxu1 %v3600_v31  ;;  %3166 = vmatprep.subr.bf16.mxu0 %v3691_v1  ;;  %v3649_v31 = vld [vmem:[%s4413_s2 + $0x1f8] sm:$0xff]  }
  0xa2   : > { %3346 = vmatprep.subr.bf16.mxu1 %v3691_v1 }
  0xa4   : > { %3167 = vmatpush3.bf16.msra.mxu0 %v3601_v32  ;;  %v3650_v32 = vld [vmem:[%s4413_s2 + $0x1f8] sm:$0xff]  }
  0xa5   : > { %3347 = vmatpush3.bf16.msra.mxu1 %v3602_v33  ;;  %3172 = vmatprep.subr.bf16.mxu0 %v3691_v1  ;;  %v2642_v33 = vld [vmem:[%s3813_s7 + $0x4] sm:$0x1] }
  0xa6   : > { %3352 = vmatprep.subr.bf16.mxu1 %v3691_v1 }
  0xa7   : > { %3169 = vmatmul.mubr.bf16.vlgmr.msra.gmra.mrb[0].mxu0 %v2566_v34  ;;  %v3651_v34 = vld [vmem:[%s4413_s2 + $0x200] sm:$0xff]  }
  0xa8   : > { %3173 = vmatpush3.bf16.msra.mxu0 %v3603_v35  ;;  %3349 = vmatmul.mubr.bf16.vlgmr.msra.gmra.mrb[0].mxu1 %v2780_v36  ;;  %v2856_v35 = vld [vmem:[%s3813_s7 + $0x8] sm:$0x1]  ;;  %v3652_v36 = vld [vmem:[%s4413_s2 + $0x200] sm:$0xff]  }
  0xa9   : > { %3353 = vmatpush3.bf16.msra.mxu1 %v3604_v37  ;;  %3174 = vmatprep.subr.bf16.mxu0 %v3691_v1  ;;  %v3653_v37 = vld [vmem:[%s4413_s2 + $0x208] sm:$0xff]  }
  0xaa   : > { %3354 = vmatprep.subr.bf16.mxu1 %v3691_v1  ;;  %3188 = vmatprep.mubr.msk.bf16.mxu0 %vm3692_vm0, %v3691_v1 }
  0xab   : > { %3368 = vmatprep.mubr.msk.bf16.mxu1 %vm3692_vm0, %v3691_v1 }
  0xac   : > { %3175 = vmatpush3.bf16.msra.mxu0 %v3605_v38  ;;  %v3654_v38 = vld [vmem:[%s4413_s2 + $0x208] sm:$0xff]  }
  0xad   : > { %3355 = vmatpush3.bf16.msra.mxu1 %v3606_v39  ;;  %3176 = vmatprep.subr.bf16.mxu0 %v3691_v1  ;;  %v3655_v39 = vld [vmem:[%s4413_s2 + $0x210] sm:$0xff]  }
  0xae   : > { %3356 = vmatprep.subr.bf16.mxu1 %v3691_v1 }
  0xb0   : > { %3177 = vmatpush3.bf16.msra.mxu0 %v3607_v40  ;;  %v3656_v40 = vld [vmem:[%s4413_s2 + $0x210] sm:$0xff]  }
  0xb1   : > { %3357 = vmatpush3.bf16.msra.mxu1 %v3608_v41  ;;  %3178 = vmatprep.subr.bf16.mxu0 %v3691_v1  ;;  %v3657_v41 = vld [vmem:[%s4413_s2 + $0x218] sm:$0xff]  }
  0xb2   : > { %3358 = vmatprep.subr.bf16.mxu1 %v3691_v1 }
  0xb4   : > { %3179 = vmatpush3.bf16.msra.mxu0 %v3609_v42  ;;  %v3658_v42 = vld [vmem:[%s4413_s2 + $0x218] sm:$0xff]  }
  0xb5   : > { %3359 = vmatpush3.bf16.msra.mxu1 %v3610_v43  ;;  %3180 = vmatprep.subr.bf16.mxu0 %v3691_v1  ;;  %v3659_v43 = vld [vmem:[%s4413_s2 + $0x220] sm:$0xff]  }
  0xb6   : > { %3360 = vmatprep.subr.bf16.mxu1 %v3691_v1 }
  0xb8   : > { %3181 = vmatpush3.bf16.msra.mxu0 %v3611_v44  ;;  %v3660_v44 = vld [vmem:[%s4413_s2 + $0x220] sm:$0xff]  }
  0xb9   : > { %3361 = vmatpush3.bf16.msra.mxu1 %v3612_v45  ;;  %3182 = vmatprep.subr.bf16.mxu0 %v3691_v1  ;;  %v3661_v45 = vld [vmem:[%s4413_s2 + $0x228] sm:$0xff]  }
  0xba   : > { %3362 = vmatprep.subr.bf16.mxu1 %v3691_v1 }
  0xbc   : > { %3183 = vmatpush3.bf16.msra.mxu0 %v3613_v46  ;;  %v2684_v46 = vld.sshfl [vmem:[%s3890_s28 + $0x4] sm:$0x3 pattern:$0x76325410] }
  0xbd   : > { %3363 = vmatpush3.bf16.msra.mxu1 %v3614_v48  ;;  %3184 = vmatprep.subr.bf16.mxu0 %v3691_v1  ;;  %v2898_v48 = vld.sshfl [vmem:[%s3890_s28 + $0x8] sm:$0x3 pattern:$0x76325410]  ;;  %v1229_v49 = vshll.u32 %v2684_v46, 16 }
  0xbe   : > { %3364 = vmatprep.subr.bf16.mxu1 %v3691_v1 }
  0xbf   : > { %v1231_v54 = vrot.slane %v1229_v49, 1 }
  0xc0   : > { %3185 = vmatpush3.bf16.msra.mxu0 %v3615_v51  ;;  %v2250_v51 = vshll.u32 %v2898_v48, 16 }
  0xc1   : > { %3365 = vmatpush3.bf16.msra.mxu1 %v3616_v53  ;;  %3186 = vmatprep.subr.bf16.mxu0 %v3691_v1  ;;  %v1227_v53 = vshrl.u32 %v2684_v46, 16 }
  0xc2   : > { %3366 = vmatprep.subr.bf16.mxu1 %v3691_v1  ;;  %v2252_v57 = vrot.slane %v2250_v51, 1 }
  0xc4   : > { %3187 = vmatpush3.bf16.msra.mxu0 %v3617_v56  ;;  %v2248_v56 = vshrl.u32 %v2898_v48, 16 }
  0xc5   : > { %3367 = vmatpush3.bf16.msra.mxu1 %v3618_v59  ;;  %3192 = vmatprep.subr.bf16.mxu0 %v3691_v1  ;;  %v1232_v59 = vor.u32 %v1231_v54, %v1227_v53 }
  0xc6   : > { %3372 = vmatprep.subr.bf16.mxu1 %v3691_v1 }
  0xc7   : > { %3189 = vmatmul.mubr.bf16.vlgmr.msra.gmra.mrb[0].mxu0 %v893_v60  ;;  %v2253_v60 = vor.u32 %v2252_v57, %v2248_v56 }
  0xc8   : > { %3193 = vmatpush3.bf16.msra.mxu0 %v3619_v61  ;;  %3369 = vmatmul.mubr.bf16.vlgmr.msra.gmra.mrb[0].mxu1 %v1917_v62  ;;  %v2693_v61 = vld [vmem:[%s4414_s3] ss:$0 sm:$0xff] }
  0xc9   : > { %3373 = vmatpush3.bf16.msra.mxu1 %v3620_v63  ;;  %3194 = vmatprep.subr.bf16.mxu0 %v3691_v1  ;;  %v2694_v62 = vld [vmem:[%s4415_s4] ss:$0 sm:$0xff] }
  0xca   : > { %3374 = vmatprep.subr.bf16.mxu1 %v3691_v1  ;;  %3208 = vmatprep.mubr.msk.bf16.mxu0 %vm3692_vm0, %v3691_v1 }
  0xcb   : > { %3388 = vmatprep.mubr.msk.bf16.mxu1 %vm3692_vm0, %v3691_v1 }
  0xcc   : > { %3195 = vmatpush3.bf16.msra.mxu0 %v3621_v0 }
  0xcd   : > { %3375 = vmatpush3.bf16.msra.mxu1 %v3622_v2  ;;  %3196 = vmatprep.subr.bf16.mxu0 %v3691_v1 }
  0xce   : > { %3376 = vmatprep.subr.bf16.mxu1 %v3691_v1 }
  0xd0   : > { %3197 = vmatpush3.bf16.msra.mxu0 %v3623_v3 }
  0xd1   : > { %3377 = vmatpush3.bf16.msra.mxu1 %v3624_v4  ;;  %3198 = vmatprep.subr.bf16.mxu0 %v3691_v1 }
  0xd2   : > { %3378 = vmatprep.subr.bf16.mxu1 %v3691_v1 }
  0xd4   : > { %3199 = vmatpush3.bf16.msra.mxu0 %v3625_v5 }
  0xd5   : > { %3379 = vmatpush3.bf16.msra.mxu1 %v3626_v6  ;;  %3200 = vmatprep.subr.bf16.mxu0 %v3691_v1 }
  0xd6   : > { %3380 = vmatprep.subr.bf16.mxu1 %v3691_v1 }
  0xd8   : > { %3201 = vmatpush3.bf16.msra.mxu0 %v3627_v7 }
  0xd9   : > { %3381 = vmatpush3.bf16.msra.mxu1 %v3628_v8  ;;  %3202 = vmatprep.subr.bf16.mxu0 %v3691_v1 }
  0xda   : > { %3382 = vmatprep.subr.bf16.mxu1 %v3691_v1 }
  0xdc   : > { %3203 = vmatpush3.bf16.msra.mxu0 %v3629_v9 }
  0xdd   : > { %3383 = vmatpush3.bf16.msra.mxu1 %v3630_v10  ;;  %3204 = vmatprep.subr.bf16.mxu0 %v3691_v1 }
  0xde   : > { %3384 = vmatprep.subr.bf16.mxu1 %v3691_v1 }
  0xe0   : > { %3205 = vmatpush3.bf16.msra.mxu0 %v3631_v11 }
  0xe1   : > { %3385 = vmatpush3.bf16.msra.mxu1 %v3632_v12  ;;  %3206 = vmatprep.subr.bf16.mxu0 %v3691_v1 }
  0xe2   : > { %3386 = vmatprep.subr.bf16.mxu1 %v3691_v1 }
  0xe4   : > { %3207 = vmatpush3.bf16.msra.mxu0 %v3633_v13 }
  0xe5   : > { %3387 = vmatpush3.bf16.msra.mxu1 %v3634_v14  ;;  %3212 = vmatprep.subr.bf16.mxu0 %v3691_v1 }
  0xe6   : > { %3392 = vmatprep.subr.bf16.mxu1 %v3691_v1 }
  0xe7   : > { %3209 = vmatmul.mubr.bf16.vlgmr.msra.gmra.mrb[0].mxu0 %v2617_v15 }
  0xe8   : > { %3213 = vmatpush3.bf16.msra.mxu0 %v3635_v16  ;;  %3389 = vmatmul.mubr.bf16.vlgmr.msra.gmra.mrb[0].mxu1 %v2831_v17 }
  0xe9   : > { %3393 = vmatpush3.bf16.msra.mxu1 %v3636_v18  ;;  %3214 = vmatprep.subr.bf16.mxu0 %v3691_v1 }
  0xea   : > { %3394 = vmatprep.subr.bf16.mxu1 %v3691_v1  ;;  %3228 = vmatprep.mubr.msk.bf16.mxu0 %vm3692_vm0, %v3691_v1 }
  0xeb   : > { %3408 = vmatprep.mubr.msk.bf16.mxu1 %vm3692_vm0, %v3691_v1 }
  0xec   : > { %3215 = vmatpush3.bf16.msra.mxu0 %v3637_v19 }
  0xed   : > { %3395 = vmatpush3.bf16.msra.mxu1 %v3638_v20  ;;  %3216 = vmatprep.subr.bf16.mxu0 %v3691_v1 }
  0xee   : > { %3396 = vmatprep.subr.bf16.mxu1 %v3691_v1 }
  0xf0   : > { %3217 = vmatpush3.bf16.msra.mxu0 %v3639_v21 }
  0xf1   : > { %3397 = vmatpush3.bf16.msra.mxu1 %v3640_v22  ;;  %3218 = vmatprep.subr.bf16.mxu0 %v3691_v1 }
  0xf2   : > { %3398 = vmatprep.subr.bf16.mxu1 %v3691_v1 }
  0xf4   : > { %3219 = vmatpush3.bf16.msra.mxu0 %v3641_v23 }
  0xf5   : > { %3399 = vmatpush3.bf16.msra.mxu1 %v3642_v24  ;;  %3220 = vmatprep.subr.bf16.mxu0 %v3691_v1 }
  0xf6   : > { %3400 = vmatprep.subr.bf16.mxu1 %v3691_v1 }
  0xf8   : > { %3221 = vmatpush3.bf16.msra.mxu0 %v3643_v25 }
  0xf9   : > { %3401 = vmatpush3.bf16.msra.mxu1 %v3644_v26  ;;  %3222 = vmatprep.subr.bf16.mxu0 %v3691_v1 }
  0xfa   : > { %3402 = vmatprep.subr.bf16.mxu1 %v3691_v1 }
  0xfc   : > { %3223 = vmatpush3.bf16.msra.mxu0 %v3645_v27 }
  0xfd   : > { %3403 = vmatpush3.bf16.msra.mxu1 %v3646_v28  ;;  %3224 = vmatprep.subr.bf16.mxu0 %v3691_v1 }
  0xfe   : > { %3404 = vmatprep.subr.bf16.mxu1 %v3691_v1 }
 0x100   : > { %3225 = vmatpush3.bf16.msra.mxu0 %v3647_v29 }
 0x101   : > { %3405 = vmatpush3.bf16.msra.mxu1 %v3648_v30  ;;  %3226 = vmatprep.subr.bf16.mxu0 %v3691_v1 }
 0x102   : > { %3406 = vmatprep.subr.bf16.mxu1 %v3691_v1 }
 0x104   : > { %3227 = vmatpush3.bf16.msra.mxu0 %v3649_v31 }
 0x105   : > { %3407 = vmatpush3.bf16.msra.mxu1 %v3650_v32  ;;  %3232 = vmatprep.subr.bf16.mxu0 %v3691_v1 }
 0x106   : > { %3412 = vmatprep.subr.bf16.mxu1 %v3691_v1 }
 0x107   : > { %3229 = vmatmul.mubr.bf16.vlgmr.msra.gmra.mrb[0].mxu0 %v2642_v33 }
 0x108   : > { %3233 = vmatpush3.bf16.msra.mxu0 %v3651_v34  ;;  %3409 = vmatmul.mubr.bf16.vlgmr.msra.gmra.mrb[0].mxu1 %v2856_v35 }
 0x109   : > { %3413 = vmatpush3.bf16.msra.mxu1 %v3652_v36  ;;  %3234 = vmatprep.subr.bf16.mxu0 %v3691_v1 }
 0x10a   : > { %3414 = vmatprep.subr.bf16.mxu1 %v3691_v1  ;;  %3248 = vmatprep.mubr.msk.bf16.mxu0 %vm3692_vm0, %v3691_v1 }
 0x10b   : > { %3428 = vmatprep.mubr.msk.bf16.mxu1 %vm3692_vm0, %v3691_v1 }
 0x10c   : > { %3235 = vmatpush3.bf16.msra.mxu0 %v3653_v37 }
 0x10d   : > { %3415 = vmatpush3.bf16.msra.mxu1 %v3654_v38  ;;  %3236 = vmatprep.subr.bf16.mxu0 %v3691_v1 }
 0x10e   : > { %3416 = vmatprep.subr.bf16.mxu1 %v3691_v1 }
 0x110   : > { %3237 = vmatpush3.bf16.msra.mxu0 %v3655_v39 }
 0x111   : > { %3417 = vmatpush3.bf16.msra.mxu1 %v3656_v40  ;;  %3238 = vmatprep.subr.bf16.mxu0 %v3691_v1 }
 0x112   : > { %3418 = vmatprep.subr.bf16.mxu1 %v3691_v1 }
 0x114   : > { %3239 = vmatpush3.bf16.msra.mxu0 %v3657_v41 }
 0x115   : > { %3419 = vmatpush3.bf16.msra.mxu1 %v3658_v42  ;;  %3240 = vmatprep.subr.bf16.mxu0 %v3691_v1 }
 0x116   : > { %3420 = vmatprep.subr.bf16.mxu1 %v3691_v1 }
 0x118   : > { %3241 = vmatpush3.bf16.msra.mxu0 %v3659_v43 }
 0x119   : > { %3421 = vmatpush3.bf16.msra.mxu1 %v3660_v44  ;;  %3242 = vmatprep.subr.bf16.mxu0 %v3691_v1 }
 0x11a   : > { %3422 = vmatprep.subr.bf16.mxu1 %v3691_v1 }
 0x11c   : > { %3243 = vmatpush3.bf16.msra.mxu0 %v3661_v45 }
 0x11d   : > { %3423 = vmatpush3.bf16.msra.mxu1 %v3662_v47  ;;  %3244 = vmatprep.subr.bf16.mxu0 %v3691_v1 }
 0x11e   : > { %3424 = vmatprep.subr.bf16.mxu1 %v3691_v1 }
 0x120   : > { %3245 = vmatpush3.bf16.msra.mxu0 %v3663_v50 }
 0x121   : > { %3425 = vmatpush3.bf16.msra.mxu1 %v3664_v52  ;;  %3246 = vmatprep.subr.bf16.mxu0 %v3691_v1 }
 0x122   : > { %3426 = vmatprep.subr.bf16.mxu1 %v3691_v1 }
 0x124   : > { %3247 = vmatpush3.bf16.msra.mxu0 %v3665_v55 }
 0x125   : > { %3427 = vmatpush3.bf16.msra.mxu1 %v3666_v58 }
 0x127   : > { %3249 = vmatmul.mubr.bf16.vlgmr.msra.gmra.mrb[0].mxu0 %v1232_v59 }
 0x128   : > { %3429 = vmatmul.mubr.bf16.vlgmr.msra.gmra.mrb[0].mxu1 %v2253_v60 }
 0x1fa   : > { %v1316_v63 = vpop.f32.mrb[0].mxu0 }
 0x1fb   : > { %v1329_v0 = vmul.f32 %v2693_v61, %v1316_v63  ;;  %v2337_v2 = vpop.f32.mrb[0].mxu1  ;;  %v3250_v3 = vpop.f32.mrb[1].mxu0 }
 0x1fc   : > { %v2344_v1 = vmul.f32 %v2693_v61, %v2337_v2  ;;  %v3430_v4 = vpop.f32.mrb[1].mxu1  ;;  %v1319_v5 = vpop.f32.mrb[2].mxu0 }
 0x1fd   : > { %v1336_v6 = vadd.f32 %v2694_v62, %v1329_v0  ;;  %v2340_v7 = vpop.f32.mrb[2].mxu1  ;;  %v3251_v8 = vpop.f32.mrb[3].mxu0 }
 0x1fe   : > { %v2345_v9 = vadd.f32 %v2694_v62, %v2344_v1  ;;  %v3431_v10 = vpop.f32.mrb[3].mxu1 }
 0x1ff   : > { %v1337_v11 = vmax.f32 %v1336_v6, 0.0 }
 0x200   : > { %v2346_v12 = vmax.f32 %v2345_v9, 0.0 }
 0x201   : > { %v1338_v13 = vpack.c.bf16 %v1337_v11, %v1337_v11 }
 0x202   : > { %v2347_v14 = vpack.c.bf16 %v2346_v12, %v2346_v12 }
 0x203   : > { %1339 = vst [vmem:[%s307_s9] sm:$0x1] %v1338_v13 }
 0x204   : > { %2907 = vst [vmem:[%s307_s9 + $0x1] sm:$0x1] %v2347_v14 }
 0x205 PF: > { %s15_s20 = sadd.s32 1, %s3689_s20   ;;  %s4417_s18 = smov %s3685_s19 }
 0x206   : > { %p12_p5 = scmp.ge.s32.totalorder %s15_s20, 4   ;;  %s4418_s19 = smov %s4420_s21 }
 0x208   :  { %14 = sbr.rel (!%p12_p5) target bundleno = 2 (0x2), region = 99 }

// kernel: discriminator_forward.34
= control target key start
LH: loop header
LB: loop body
LE: loop exit
PB: predicated region body
PF: predicated region fallthrough
CT: control target
= control target key end

     0   :  { %v262_v1 = vmov 0   ;;  %v167_v18 = vlaneseq  ;;  %s351_s1 = inlined_call_operand.vmem [shape: bf16[128,256], index: 1, kind: input, shape index: {}]   ;;  %s352_s0 = inlined_call_operand.vmem [shape: bf16[16,128], index: 0, kind: input, shape index: {}]   ;;  %s353_s2 = inlined_call_operand.vmem [shape: f32[1,256], index: 2, kind: input, shape index: {}]   ;;  %s354_s3 = inlined_call_operand.vmem [shape: f32[1,256], index: 3, kind: input, shape index: {}]   ;;  %s355_s4 = inlined_call_operand.vmem [shape: bf16[16,256], index: 4, kind: output, shape index: {}]  }
   0x1   :  { %v237_v0 = vld [vmem:[%s351_s1 + $0x4] ss:$8 sps:$4 sm:$0xff]   ;;  %154 = vmatprep.mubr.bf16.mxu0 %v262_v1  ;;  %v239_v2 = vld [vmem:[%s351_s1] ss:$8 sps:$4 sm:$0xff]   ;;  %v240_v3 = vld [vmem:[%s351_s1 + $0x14] ss:$8 sps:$4 sm:$0xff]  }
   0x2   :  { %122 = vmatprep.subr.bf16.mxu0 %v237_v0  ;;  %v242_v4 = vld [vmem:[%s351_s1 + $0x10] ss:$8 sps:$4 sm:$0xff]   ;;  %v243_v5 = vld [vmem:[%s351_s1 + $0x24] ss:$8 sps:$4 sm:$0xff]   ;;  %v245_v6 = vld [vmem:[%s351_s1 + $0x20] ss:$8 sps:$4 sm:$0xff]  }
   0x3   :  { %123 = vmatpush1.bf16.msra.mxu0 %v239_v2  ;;  %v246_v7 = vld [vmem:[%s351_s1 + $0x34] ss:$8 sps:$4 sm:$0xff]   ;;  %v248_v8 = vld [vmem:[%s351_s1 + $0x30] ss:$8 sps:$4 sm:$0xff]   ;;  %v249_v9 = vld [vmem:[%s351_s1 + $0x44] ss:$8 sps:$4 sm:$0xff]  }
   0x4   :  { %124 = vmatprep.subr.bf16.mxu0 %v240_v3  ;;  %v251_v10 = vld [vmem:[%s351_s1 + $0x40] ss:$8 sps:$4 sm:$0xff]   ;;  %v252_v11 = vld [vmem:[%s351_s1 + $0x54] ss:$8 sps:$4 sm:$0xff]   ;;  %v254_v12 = vld [vmem:[%s351_s1 + $0x50] ss:$8 sps:$4 sm:$0xff]  }
   0x5   :  { %v255_v13 = vld [vmem:[%s351_s1 + $0x64] ss:$8 sps:$4 sm:$0xff]   ;;  %v257_v14 = vld [vmem:[%s351_s1 + $0x60] ss:$8 sps:$4 sm:$0xff]   ;;  %v258_v15 = vld [vmem:[%s351_s1 + $0x74] ss:$8 sps:$4 sm:$0xff]  }
   0x6   :  { %v260_v16 = vld [vmem:[%s351_s1 + $0x70] ss:$8 sps:$4 sm:$0xff]   ;;  %v261_v17 = vld [vmem:[%s352_s0] sm:$0xff]   ;;  %v168_v19 = vshrl.u32 %v167_v18, 7 }
   0x7   :  { %125 = vmatpush1.bf16.msra.mxu0 %v242_v4  ;;  %v165_v21 = vld [vmem:[%s353_s2] sm:$0x3] }
   0x8   :  { %126 = vmatprep.subr.bf16.mxu0 %v243_v5  ;;  %v169_v20 = vsub.s32 0, %v168_v19  ;;  %v173_v22 = vsub.s32 1, %v168_v19  ;;  %v181_v23 = vld [vmem:[%s354_s3] sm:$0x3] }
   0xa   :  { %v170_v24 = vrot.slane %v165_v21, %v169_v20  ;;  %v174_v25 = vrot.slane %v165_v21, %v173_v22  ;;  %v186_v26 = vrot.slane %v181_v23, %v169_v20  ;;  %v190_v28 = vrot.slane %v181_v23, %v173_v22 }
   0xb   :  { %127 = vmatpush1.bf16.msra.mxu0 %v245_v6 }
   0xc   :  { %128 = vmatprep.subr.bf16.mxu0 %v246_v7 }
   0xf   :  { %129 = vmatpush1.bf16.msra.mxu0 %v248_v8 }
  0x10   :  { %130 = vmatprep.subr.bf16.mxu0 %v249_v9 }
  0x13   :  { %131 = vmatpush1.bf16.msra.mxu0 %v251_v10 }
  0x14   :  { %132 = vmatprep.subr.bf16.mxu0 %v252_v11 }
  0x17   :  { %133 = vmatpush1.bf16.msra.mxu0 %v254_v12 }
  0x18   :  { %134 = vmatprep.subr.bf16.mxu0 %v255_v13 }
  0x1b   :  { %135 = vmatpush1.bf16.msra.mxu0 %v257_v14 }
  0x1c   :  { %136 = vmatprep.subr.bf16.mxu0 %v258_v15 }
  0x1f   :  { %137 = vmatpush1.bf16.msra.mxu0 %v260_v16 }
  0x22   :  { %155 = vmatmul.mubr.bf16.vlgmr.msra.gmra.mrb[0].mxu0 %v261_v17 }
  0xf5   :  { %v156_v27 = vpop.f32.mrb[0].mxu0 }
  0xf6   :  { %v177_v29 = vmul.f32 %v170_v24, %v156_v27  ;;  %v158_v30 = vpop.f32.mrb[1].mxu0 }
  0xf7   :  { %v178_v31 = vmul.f32 %v174_v25, %v158_v30  ;;  %v160_v32 = vpop.f32.mrb[2].mxu0 }
  0xf8   :  { %v193_v33 = vadd.f32 %v186_v26, %v177_v29  ;;  %v179_v34 = vmul.f32 %v170_v24, %v160_v32  ;;  %v162_v35 = vpop.f32.mrb[3].mxu0 }
  0xf9   :  { %v194_v36 = vadd.f32 %v190_v28, %v178_v31  ;;  %v180_v37 = vmul.f32 %v174_v25, %v162_v35 }
  0xfa   :  { %v195_v38 = vadd.f32 %v186_v26, %v179_v34 }
  0xfb   :  { %v234_v39 = vpack.c.bf16 %v194_v36, %v193_v33  ;;  %v196_v40 = vadd.f32 %v190_v28, %v180_v37 }
  0xfd   :  { %209 = vst [vmem:[%s355_s4] sm:$0xff] %v234_v39  ;;  %v235_v41 = vpack.c.bf16 %v196_v40, %v195_v38 }
  0xff   :  { %210 = vst [vmem:[%s355_s4 + $0x8] sm:$0xff] %v235_v41 }

// kernel: discriminator_forward.29
= control target key start
LH: loop header
LB: loop body
LE: loop exit
PB: predicated region body
PF: predicated region fallthrough
CT: control target
= control target key end

     0   :  { %s2110_s18 = smov 0   ;;  %s2112_s19 = smov 0   ;;  %s2496_s0 = inlined_call_operand.vmem [shape: bf16[2,4,2,128], index: 0, kind: input, shape index: {}]   ;;  %s2497_s1 = inlined_call_operand.vmem [shape: bf16[2,4,2,128], index: 1, kind: input, shape index: {}]   ;;  %s2498_s2 = inlined_call_operand.vmem [shape: bf16[9,128,128], index: 2, kind: input, shape index: {}]   ;;  %s2499_s3 = inlined_call_operand.vmem [shape: f32[1,128], index: 3, kind: input, shape index: {}]   ;;  %s2500_s4 = inlined_call_operand.vmem [shape: f32[1,128], index: 4, kind: input, shape index: {}]   ;;  %s2501_s5 = inlined_call_operand.vmem [shape: bf16[2,1,1,128], index: 5, kind: output, shape index: {}]  }
   0x1   :  { %s2114_s20 = smov 0  }
   0x2 LB: > { %s27_s21 = sadd.s32 1, %s2071_s19  ;;  %p1455_p0 = scmp.ge.s32.totalorder %s2075_s20, 1  ;;  %s2075_s20 = sphi %s2114_s20, %s15_s20   ;;  %s2071_s19 = sphi %s2112_s19, %s2503_s19   ;;  %s2067_s18 = sphi %s2110_s18, %s2502_s18  }
   0x3   : > { %p29_p1 = scmp.ge.s32.totalorder %s27_s21, 2  ;;  %p234_p2 = scmp.lt.s32.totalorder %s2075_s20, 3 }
   0x5   : > { %s2505_s21 = smov (%p29_p1, %s27_s21), 0  ;;  %p235_p3 = pnand %p1455_p0, %p234_p2 }
   0x6   : > { %v1981_v0 = vld [vmem:[%s2498_s2 + $0x40] sm:$0xff] (!%p235_p3)   ;;  %v2077_v1 = vmov (!%p235_p3), 0.0   ;;  %v1983_v3 = vld [vmem:[%s2498_s2 + $0x48] sm:$0xff] (!%p235_p3)   ;;  %vm2078_vm0 = vmmov (!%p235_p3), 0   ;;  %v1985_v5 = vld [vmem:[%s2498_s2 + $0x50] sm:$0xff] (!%p235_p3)   ;;  %p276_p4 = scmp.lt.s32.totalorder (!%p235_p3), %s2067_s18, 1  ;;  %v535_v28 = vlaneseq (!%p235_p3) }
   0x7   : > { %238 = sbr.rel (%p235_p3) target bundleno = 392 (0x188), region = 40  ;;  %1745 = vmatprep.subr.bf16.mxu1 (!%p235_p3), %v2077_v1  ;;  %1825 = vmatprep.subr.bf16.mxu0 (!%p235_p3), %v2077_v1  ;;  %v1982_v2 = vld [vmem:[%s2498_s2 + $0x100] sm:$0xff] (!%p235_p3)   ;;  %v1984_v4 = vld [vmem:[%s2498_s2 + $0x108] sm:$0xff] (!%p235_p3)   ;;  %v1986_v6 = vld [vmem:[%s2498_s2 + $0x110] sm:$0xff] (!%p235_p3)   ;;  %v2079_v26 = vmov (!%p235_p3), 1966171168  }
   0x8   : > { %1746 = vmatpush3.bf16.msra.mxu1 (!%p235_p3), %v1981_v0  ;;  %1761 = vmatprep.mubr.msk.bf16.mxu1 (!%p235_p3), %vm2078_vm0, %v2077_v1  ;;  %v1987_v7 = vld [vmem:[%s2498_s2 + $0x58] sm:$0xff] (!%p235_p3)   ;;  %v1989_v9 = vld [vmem:[%s2498_s2 + $0x60] sm:$0xff] (!%p235_p3)   ;;  %v1991_v11 = vld [vmem:[%s2498_s2 + $0x68] sm:$0xff] (!%p235_p3)   ;;  %v533_v27 = vunpack.c.l.s4 (!%p235_p3), %v2079_v26  ;;  %v536_v32 = vshrl.u32 (!%p235_p3), %v535_v28, 7  ;;  %vm1325_vm1 = vcmask (!%p235_p3), 1040384  }
   0x9   : > { %1826 = vmatpush3.bf16.msra.mxu0 (!%p235_p3), %v1982_v2  ;;  %1747 = vmatprep.subr.bf16.mxu1 (!%p235_p3), %v2077_v1  ;;  %v1988_v8 = vld [vmem:[%s2498_s2 + $0x118] sm:$0xff] (!%p235_p3)   ;;  %v1990_v10 = vld [vmem:[%s2498_s2 + $0x120] sm:$0xff] (!%p235_p3)   ;;  %v1992_v12 = vld [vmem:[%s2498_s2 + $0x128] sm:$0xff] (!%p235_p3)   ;;  %vm1326_vm2 = vsmask.f32 (!%p235_p3), 256 }
   0xa   : > { %1827 = vmatprep.subr.bf16.mxu0 (!%p235_p3), %v2077_v1  ;;  %1841 = vmatprep.mubr.msk.bf16.mxu0 (!%p235_p3), %vm2078_vm0, %v2077_v1  ;;  %v1993_v13 = vld [vmem:[%s2498_s2 + $0x70] sm:$0xff] (!%p235_p3)   ;;  %v1995_v15 = vld [vmem:[%s2498_s2 + $0x78] sm:$0xff] (!%p235_p3)   ;;  %v1997_v18 = vld [vmem:[%s2498_s2] sm:$0xff] (!%p235_p3)   ;;  %v534_v31 = vunpack.c.0.s8 (!%p235_p3), %v533_v27 }
   0xb   : > { %v1994_v14 = vld [vmem:[%s2498_s2 + $0x130] sm:$0xff] (!%p235_p3)   ;;  %v1996_v16 = vld [vmem:[%s2498_s2 + $0x138] sm:$0xff] (!%p235_p3)   ;;  %v1998_v20 = vld [vmem:[%s2498_s2 + $0x140] sm:$0xff] (!%p235_p3)  }
   0xc   : > { %1748 = vmatpush3.bf16.msra.mxu1 (!%p235_p3), %v1983_v3  ;;  %v1999_v21 = vld [vmem:[%s2498_s2 + $0x8] sm:$0xff] (!%p235_p3)   ;;  %v2001_v23 = vld [vmem:[%s2498_s2 + $0x10] sm:$0xff] (!%p235_p3)   ;;  %v2003_v25 = vld [vmem:[%s2498_s2 + $0x18] sm:$0xff] (!%p235_p3)   ;;  %v2266_v35 = vsub.s32 (!%p235_p3), %v534_v31, %v536_v32 }
   0xd   : > { %1828 = vmatpush3.bf16.msra.mxu0 (!%p235_p3), %v1984_v4  ;;  %1749 = vmatprep.subr.bf16.mxu1 (!%p235_p3), %v2077_v1  ;;  %v2000_v22 = vld [vmem:[%s2498_s2 + $0x148] sm:$0xff] (!%p235_p3)   ;;  %v2002_v24 = vld [vmem:[%s2498_s2 + $0x150] sm:$0xff] (!%p235_p3)   ;;  %v2004_v29 = vld [vmem:[%s2498_s2 + $0x158] sm:$0xff] (!%p235_p3)  }
   0xe   : > { %1829 = vmatprep.subr.bf16.mxu0 %v2077_v1  ;;  %s2507_s18 = smov (!%p276_p4, %s2067_s18), 1  ;;  %v2005_v30 = vld [vmem:[%s2498_s2 + $0x20] sm:$0xff]   ;;  %v2007_v34 = vld [vmem:[%s2498_s2 + $0x28] sm:$0xff]   ;;  %v2009_v38 = vld [vmem:[%s2498_s2 + $0x30] sm:$0xff]  }
   0xf   : > { %s1456_s27 = sshll.u32 %s2507_s18, 2  ;;  %v2006_v33 = vld [vmem:[%s2498_s2 + $0x160] sm:$0xff]   ;;  %v2008_v36 = vld [vmem:[%s2498_s2 + $0x168] sm:$0xff]   ;;  %v2010_v40 = vld [vmem:[%s2498_s2 + $0x170] sm:$0xff]   ;;  %s299_s14 = scalar_lea.vmem %s2501_s5, %s2507_s18 }
  0x10   : > { %1750 = vmatpush3.bf16.msra.mxu1 %v1985_v5  ;;  %s2200_s7 = scalar_lea.vmem %s2497_s1, %s1456_s27  ;;  %s2261_s15 = scalar_lea.vmem %s2496_s0, %s1456_s27  ;;  %v2011_v41 = vld [vmem:[%s2498_s2 + $0x38] sm:$0xff]   ;;  %v2013_v45 = vld [vmem:[%s2498_s2 + $0x80] sm:$0xff]   ;;  %v2015_v48 = vld [vmem:[%s2498_s2 + $0x88] sm:$0xff]  }
  0x11   : > { %1830 = vmatpush3.bf16.msra.mxu0 %v1986_v6  ;;  %1751 = vmatprep.subr.bf16.mxu1 %v2077_v1  ;;  %v320_v17 = vld [vmem:[%s2200_s7] sm:$0x1]  ;;  %v1539_v19 = vld [vmem:[%s2200_s7 + $0x1] sm:$0x1]  ;;  %v2012_v43 = vld [vmem:[%s2498_s2 + $0x178] sm:$0xff]  }
  0x12   : > { %1831 = vmatprep.subr.bf16.mxu0 %v2077_v1  ;;  %v2273_v37 = vld [vmem:[%s2261_s15 + $0x1] sm:$0x1]  ;;  %v303_v44 = vld [vmem:[%s2261_s15] sm:$0x1]  ;;  %v2016_v49 = vld [vmem:[%s2498_s2 + $0x188] sm:$0xff]  }
  0x13   : > { %v879_v39 = vrot.slane %v2273_v37, %v2266_v35  ;;  %v2014_v47 = vld [vmem:[%s2498_s2 + $0x180] sm:$0xff]   ;;  %v2017_v50 = vld [vmem:[%s2498_s2 + $0x90] sm:$0xff]   ;;  %v2019_v52 = vld [vmem:[%s2498_s2 + $0x98] sm:$0xff]   ;;  %v538_v58 = vrot.slane %v303_v44, %v2266_v35 }
  0x14   : > { %1752 = vmatpush3.bf16.msra.mxu1 %v1987_v7  ;;  %v2018_v51 = vld [vmem:[%s2498_s2 + $0x190] sm:$0xff]   ;;  %v2020_v53 = vld [vmem:[%s2498_s2 + $0x198] sm:$0xff]   ;;  %v2021_v54 = vld [vmem:[%s2498_s2 + $0xa0] sm:$0xff]  }
  0x15   : > { %1832 = vmatpush3.bf16.msra.mxu0 %v1988_v8  ;;  %1753 = vmatprep.subr.bf16.mxu1 %v2077_v1  ;;  %v886_v42 = vrot.slane %v879_v39, %v2266_v35  ;;  %v2022_v55 = vld [vmem:[%s2498_s2 + $0x1a0] sm:$0xff]   ;;  %v2023_v56 = vld [vmem:[%s2498_s2 + $0xa8] sm:$0xff]   ;;  %v2025_v59 = vld [vmem:[%s2498_s2 + $0xb0] sm:$0xff]   ;;  %v545_v61 = vrot.slane %v538_v58, %v2266_v35 }
  0x16   : > { %1833 = vmatprep.subr.bf16.mxu0 %v2077_v1  ;;  %v2024_v57 = vld [vmem:[%s2498_s2 + $0x1a8] sm:$0xff]   ;;  %v2026_v60 = vld [vmem:[%s2498_s2 + $0x1b0] sm:$0xff]   ;;  %v2027_v62 = vld [vmem:[%s2498_s2 + $0xb8] sm:$0xff]  }
  0x17   : > { %v888_v46 = vshrl.u32 %v886_v42, 16  ;;  %v2028_v63 = vld [vmem:[%s2498_s2 + $0x1b8] sm:$0xff]   ;;  %v547_v0 = vshrl.u32 %v545_v61, 16  ;;  %v2029_v2 = vld [vmem:[%s2498_s2 + $0xc0] sm:$0xff]   ;;  %v2031_v5 = vld [vmem:[%s2498_s2 + $0xc8] sm:$0xff]  }
  0x18   : > { %1754 = vmatpush3.bf16.msra.mxu1 %v1989_v9  ;;  %v2371_v3 = vld [vmem:[%s2261_s15 + $0x2] sm:$0x1]  ;;  %v2032_v6 = vld [vmem:[%s2498_s2 + $0x1c8] sm:$0xff]   ;;  %v2033_v7 = vld [vmem:[%s2498_s2 + $0xd0] sm:$0xff]  }
  0x19   : > { %1834 = vmatpush3.bf16.msra.mxu0 %v1990_v10  ;;  %1755 = vmatprep.subr.bf16.mxu1 %v2077_v1  ;;  %v2030_v4 = vld [vmem:[%s2498_s2 + $0x1c0] sm:$0xff]   ;;  %v2034_v8 = vld [vmem:[%s2498_s2 + $0x1d0] sm:$0xff]   ;;  %v2035_v9 = vld [vmem:[%s2498_s2 + $0xd8] sm:$0xff]   ;;  %v1220_v26 = vrot.slane %v2371_v3, %v2266_v35 }
  0x1a   : > { %1835 = vmatprep.subr.bf16.mxu0 %v2077_v1  ;;  %v2036_v10 = vld [vmem:[%s2498_s2 + $0x1d8] sm:$0xff]   ;;  %v2051_v27 = vld [vmem:[%s2498_s2 + $0x230] sm:$0xff]   ;;  %v302_v39 = vld [vmem:[%s2500_s4] sm:$0x1] }
  0x1b   : > { %v1227_v28 = vrot.slane %v1220_v26, %v2266_v35  ;;  %vm1327_vm3 = vmand %vm1325_vm1, %vm1326_vm2 }
  0x1c   : > { %1756 = vmatpush3.bf16.msra.mxu1 %v1991_v11  ;;  %v2037_v11 = vld [vmem:[%s2498_s2 + $0xe0] sm:$0xff]  }
  0x1d   : > { %1836 = vmatpush3.bf16.msra.mxu0 %v1992_v12  ;;  %1757 = vmatprep.subr.bf16.mxu1 %v2077_v1  ;;  %v2038_v12 = vld [vmem:[%s2498_s2 + $0x1e0] sm:$0xff]  }
  0x1e   : > { %1837 = vmatprep.subr.bf16.mxu0 %v2077_v1 }
  0x20   : > { %1758 = vmatpush3.bf16.msra.mxu1 %v1993_v13  ;;  %v2039_v13 = vld [vmem:[%s2498_s2 + $0xe8] sm:$0xff]  }
  0x21   : > { %1838 = vmatpush3.bf16.msra.mxu0 %v1994_v14  ;;  %1759 = vmatprep.subr.bf16.mxu1 %v2077_v1  ;;  %v2040_v14 = vld [vmem:[%s2498_s2 + $0x1e8] sm:$0xff]  }
  0x22   : > { %1839 = vmatprep.subr.bf16.mxu0 %v2077_v1 }
  0x24   : > { %1760 = vmatpush3.bf16.msra.mxu1 %v1995_v15  ;;  %v2041_v15 = vld [vmem:[%s2498_s2 + $0xf0] sm:$0xff]  }
  0x25   : > { %1840 = vmatpush3.bf16.msra.mxu0 %v1996_v16  ;;  %1765 = vmatprep.subr.bf16.mxu1 %v2077_v1  ;;  %v2042_v16 = vld [vmem:[%s2498_s2 + $0x1f0] sm:$0xff]  }
  0x26   : > { %1845 = vmatprep.subr.bf16.mxu0 %v2077_v1 }
  0x27   : > { %1762 = vmatmul.mubr.bf16.vlgmr.msra.gmra.mrb[0].mxu1 %v320_v17  ;;  %v2043_v17 = vld [vmem:[%s2498_s2 + $0xf8] sm:$0xff]  }
  0x28   : > { %1766 = vmatpush3.bf16.msra.mxu1 %v1997_v18  ;;  %1842 = vmatmul.mubr.bf16.vlgmr.msra.gmra.mrb[0].mxu0 %v1539_v19  ;;  %v2044_v18 = vld [vmem:[%s2498_s2 + $0x1f8] sm:$0xff]   ;;  %v1613_v19 = vld [vmem:[%s2200_s7 + $0x2] sm:$0x1] }
  0x29   : > { %1846 = vmatpush3.bf16.msra.mxu0 %v1998_v20  ;;  %1767 = vmatprep.subr.bf16.mxu1 %v2077_v1  ;;  %v2045_v20 = vld [vmem:[%s2498_s2 + $0x200] sm:$0xff]  }
  0x2a   : > { %1847 = vmatprep.subr.bf16.mxu0 %v2077_v1  ;;  %1781 = vmatprep.mubr.msk.bf16.mxu1 %vm2078_vm0, %v2077_v1 }
  0x2b   : > { %1861 = vmatprep.mubr.msk.bf16.mxu0 %vm2078_vm0, %v2077_v1 }
  0x2c   : > { %1768 = vmatpush3.bf16.msra.mxu1 %v1999_v21  ;;  %v2046_v21 = vld [vmem:[%s2498_s2 + $0x208] sm:$0xff]  }
  0x2d   : > { %1848 = vmatpush3.bf16.msra.mxu0 %v2000_v22  ;;  %1769 = vmatprep.subr.bf16.mxu1 %v2077_v1  ;;  %v2047_v22 = vld [vmem:[%s2498_s2 + $0x210] sm:$0xff]  }
  0x2e   : > { %1849 = vmatprep.subr.bf16.mxu0 %v2077_v1 }
  0x30   : > { %1770 = vmatpush3.bf16.msra.mxu1 %v2001_v23  ;;  %v2048_v23 = vld [vmem:[%s2498_s2 + $0x218] sm:$0xff]  }
  0x31   : > { %1850 = vmatpush3.bf16.msra.mxu0 %v2002_v24  ;;  %1771 = vmatprep.subr.bf16.mxu1 %v2077_v1  ;;  %v2049_v24 = vld [vmem:[%s2498_s2 + $0x220] sm:$0xff]  }
  0x32   : > { %1851 = vmatprep.subr.bf16.mxu0 %v2077_v1 }
  0x34   : > { %1772 = vmatpush3.bf16.msra.mxu1 %v2003_v25  ;;  %v2050_v25 = vld [vmem:[%s2498_s2 + $0x228] sm:$0xff]  }
  0x35   : > { %1852 = vmatpush3.bf16.msra.mxu0 %v2004_v29  ;;  %1773 = vmatprep.subr.bf16.mxu1 %v2077_v1  ;;  %v2052_v29 = vld [vmem:[%s2498_s2 + $0x238] sm:$0xff]  }
  0x36   : > { %1853 = vmatprep.subr.bf16.mxu0 %v2077_v1 }
  0x38   : > { %1774 = vmatpush3.bf16.msra.mxu1 %v2005_v30  ;;  %v1229_v30 = vshrl.u32 %v1227_v28, 16 }
  0x39   : > { %1854 = vmatpush3.bf16.msra.mxu0 %v2006_v33  ;;  %1775 = vmatprep.subr.bf16.mxu1 %v2077_v1 }
  0x3a   : > { %1855 = vmatprep.subr.bf16.mxu0 %v2077_v1 }
  0x3c   : > { %1776 = vmatpush3.bf16.msra.mxu1 %v2007_v34 }
  0x3d   : > { %1856 = vmatpush3.bf16.msra.mxu0 %v2008_v36  ;;  %1777 = vmatprep.subr.bf16.mxu1 %v2077_v1  ;;  %v301_v36 = vld [vmem:[%s2499_s3] sm:$0x1] }
  0x3e   : > { %1857 = vmatprep.subr.bf16.mxu0 %v2077_v1 }
  0x40   : > { %1778 = vmatpush3.bf16.msra.mxu1 %v2009_v38 }
  0x41   : > { %1858 = vmatpush3.bf16.msra.mxu0 %v2010_v40  ;;  %1779 = vmatprep.subr.bf16.mxu1 %v2077_v1 }
  0x42   : > { %1859 = vmatprep.subr.bf16.mxu0 %v2077_v1 }
  0x44   : > { %1780 = vmatpush3.bf16.msra.mxu1 %v2011_v41 }
  0x45   : > { %1860 = vmatpush3.bf16.msra.mxu0 %v2012_v43  ;;  %1785 = vmatprep.subr.bf16.mxu1 %v2077_v1 }
  0x46   : > { %1865 = vmatprep.subr.bf16.mxu0 %v2077_v1 }
  0x47   : > { %1782 = vmatmul.mubr.bf16.vlgmr.msra.gmra.mrb[0].mxu1 %v303_v44  ;;  %v1328_v44 = vld [vmem:[%s299_s14] sm:$0x1] }
  0x48   : > { %1786 = vmatpush3.bf16.msra.mxu1 %v2013_v45  ;;  %1862 = vmatmul.mubr.bf16.vlgmr.msra.gmra.mrb[0].mxu0 %v888_v46 }
  0x49   : > { %1866 = vmatpush3.bf16.msra.mxu0 %v2014_v47  ;;  %1787 = vmatprep.subr.bf16.mxu1 %v2077_v1 }
  0x4a   : > { %1867 = vmatprep.subr.bf16.mxu0 %v2077_v1  ;;  %1801 = vmatprep.mubr.msk.bf16.mxu1 %vm2078_vm0, %v2077_v1 }
  0x4b   : > { %1881 = vmatprep.mubr.msk.bf16.mxu0 %vm2078_vm0, %v2077_v1 }
  0x4c   : > { %1788 = vmatpush3.bf16.msra.mxu1 %v2015_v48 }
  0x4d   : > { %1868 = vmatpush3.bf16.msra.mxu0 %v2016_v49  ;;  %1789 = vmatprep.subr.bf16.mxu1 %v2077_v1 }
  0x4e   : > { %1869 = vmatprep.subr.bf16.mxu0 %v2077_v1 }
  0x50   : > { %1790 = vmatpush3.bf16.msra.mxu1 %v2017_v50 }
  0x51   : > { %1870 = vmatpush3.bf16.msra.mxu0 %v2018_v51  ;;  %1791 = vmatprep.subr.bf16.mxu1 %v2077_v1 }
  0x52   : > { %1871 = vmatprep.subr.bf16.mxu0 %v2077_v1 }
  0x54   : > { %1792 = vmatpush3.bf16.msra.mxu1 %v2019_v52 }
  0x55   : > { %1872 = vmatpush3.bf16.msra.mxu0 %v2020_v53  ;;  %1793 = vmatprep.subr.bf16.mxu1 %v2077_v1 }
  0x56   : > { %1873 = vmatprep.subr.bf16.mxu0 %v2077_v1 }
  0x58   : > { %1794 = vmatpush3.bf16.msra.mxu1 %v2021_v54 }
  0x59   : > { %1874 = vmatpush3.bf16.msra.mxu0 %v2022_v55  ;;  %1795 = vmatprep.subr.bf16.mxu1 %v2077_v1 }
  0x5a   : > { %1875 = vmatprep.subr.bf16.mxu0 %v2077_v1 }
  0x5c   : > { %1796 = vmatpush3.bf16.msra.mxu1 %v2023_v56 }
  0x5d   : > { %1876 = vmatpush3.bf16.msra.mxu0 %v2024_v57  ;;  %1797 = vmatprep.subr.bf16.mxu1 %v2077_v1 }
  0x5e   : > { %1877 = vmatprep.subr.bf16.mxu0 %v2077_v1 }
  0x60   : > { %1798 = vmatpush3.bf16.msra.mxu1 %v2025_v59 }
  0x61   : > { %1878 = vmatpush3.bf16.msra.mxu0 %v2026_v60  ;;  %1799 = vmatprep.subr.bf16.mxu1 %v2077_v1 }
  0x62   : > { %1879 = vmatprep.subr.bf16.mxu0 %v2077_v1 }
  0x64   : > { %1800 = vmatpush3.bf16.msra.mxu1 %v2027_v62 }
  0x65   : > { %1880 = vmatpush3.bf16.msra.mxu0 %v2028_v63  ;;  %1805 = vmatprep.subr.bf16.mxu1 %v2077_v1 }
  0x66   : > { %1885 = vmatprep.subr.bf16.mxu0 %v2077_v1 }
  0x67   : > { %1802 = vmatmul.mubr.bf16.vlgmr.msra.gmra.mrb[0].mxu1 %v547_v0 }
  0x68   : > { %1806 = vmatpush3.bf16.msra.mxu1 %v2029_v2  ;;  %1882 = vmatmul.mubr.bf16.vlgmr.msra.gmra.mrb[0].mxu0 %v2371_v3 }
  0x69   : > { %1886 = vmatpush3.bf16.msra.mxu0 %v2030_v4  ;;  %1807 = vmatprep.subr.bf16.mxu1 %v2077_v1 }
  0x6a   : > { %1887 = vmatprep.subr.bf16.mxu0 %v2077_v1  ;;  %1821 = vmatprep.mubr.msk.bf16.mxu1 %vm2078_vm0, %v2077_v1 }
  0x6b   : > { %1901 = vmatprep.mubr.msk.bf16.mxu0 %vm2078_vm0, %v2077_v1 }
  0x6c   : > { %1808 = vmatpush3.bf16.msra.mxu1 %v2031_v5 }
  0x6d   : > { %1888 = vmatpush3.bf16.msra.mxu0 %v2032_v6  ;;  %1809 = vmatprep.subr.bf16.mxu1 %v2077_v1 }
  0x6e   : > { %1889 = vmatprep.subr.bf16.mxu0 %v2077_v1 }
  0x70   : > { %1810 = vmatpush3.bf16.msra.mxu1 %v2033_v7 }
  0x71   : > { %1890 = vmatpush3.bf16.msra.mxu0 %v2034_v8  ;;  %1811 = vmatprep.subr.bf16.mxu1 %v2077_v1 }
  0x72   : > { %1891 = vmatprep.subr.bf16.mxu0 %v2077_v1 }
  0x74   : > { %1812 = vmatpush3.bf16.msra.mxu1 %v2035_v9 }
  0x75   : > { %1892 = vmatpush3.bf16.msra.mxu0 %v2036_v10  ;;  %1813 = vmatprep.subr.bf16.mxu1 %v2077_v1 }
  0x76   : > { %1893 = vmatprep.subr.bf16.mxu0 %v2077_v1 }
  0x78   : > { %1814 = vmatpush3.bf16.msra.mxu1 %v2037_v11 }
  0x79   : > { %1894 = vmatpush3.bf16.msra.mxu0 %v2038_v12  ;;  %1815 = vmatprep.subr.bf16.mxu1 %v2077_v1 }
  0x7a   : > { %1895 = vmatprep.subr.bf16.mxu0 %v2077_v1 }
  0x7c   : > { %1816 = vmatpush3.bf16.msra.mxu1 %v2039_v13 }
  0x7d   : > { %1896 = vmatpush3.bf16.msra.mxu0 %v2040_v14  ;;  %1817 = vmatprep.subr.bf16.mxu1 %v2077_v1 }
  0x7e   : > { %1897 = vmatprep.subr.bf16.mxu0 %v2077_v1 }
  0x80   : > { %1818 = vmatpush3.bf16.msra.mxu1 %v2041_v15 }
  0x81   : > { %1898 = vmatpush3.bf16.msra.mxu0 %v2042_v16  ;;  %1819 = vmatprep.subr.bf16.mxu1 %v2077_v1 }
  0x82   : > { %1899 = vmatprep.subr.bf16.mxu0 %v2077_v1 }
  0x84   : > { %1820 = vmatpush3.bf16.msra.mxu1 %v2043_v17 }
  0x85   : > { %1900 = vmatpush3.bf16.msra.mxu0 %v2044_v18 }
  0x86   : > { %1905 = vmatprep.subr.bf16.mxu0 %v2077_v1 }
  0x87   : > { %1822 = vmatmul.mubr.bf16.vlgmr.msra.gmra.mrb[0].mxu1 %v2273_v37 }
  0x88   : > { %1902 = vmatmul.mubr.bf16.vlgmr.msra.gmra.mrb[0].mxu0 %v1613_v19 }
  0x89   : > { %1906 = vmatpush3.bf16.msra.mxu0 %v2045_v20  ;;  %1921 = vmatprep.mubr.msk.bf16.mxu0 %vm2078_vm0, %v2077_v1 }
  0x8a   : > { %1907 = vmatprep.subr.bf16.mxu0 %v2077_v1 }
  0x8d   : > { %1908 = vmatpush3.bf16.msra.mxu0 %v2046_v21 }
  0x8e   : > { %1909 = vmatprep.subr.bf16.mxu0 %v2077_v1 }
  0x91   : > { %1910 = vmatpush3.bf16.msra.mxu0 %v2047_v22 }
  0x92   : > { %1911 = vmatprep.subr.bf16.mxu0 %v2077_v1 }
  0x95   : > { %1912 = vmatpush3.bf16.msra.mxu0 %v2048_v23 }
  0x96   : > { %1913 = vmatprep.subr.bf16.mxu0 %v2077_v1 }
  0x99   : > { %1914 = vmatpush3.bf16.msra.mxu0 %v2049_v24 }
  0x9a   : > { %1915 = vmatprep.subr.bf16.mxu0 %v2077_v1 }
  0x9d   : > { %1916 = vmatpush3.bf16.msra.mxu0 %v2050_v25 }
  0x9e   : > { %1917 = vmatprep.subr.bf16.mxu0 %v2077_v1 }
  0xa1   : > { %1918 = vmatpush3.bf16.msra.mxu0 %v2051_v27 }
  0xa2   : > { %1919 = vmatprep.subr.bf16.mxu0 %v2077_v1 }
  0xa5   : > { %1920 = vmatpush3.bf16.msra.mxu0 %v2052_v29 }
  0xa8   : > { %1922 = vmatmul.mubr.bf16.vlgmr.msra.gmra.mrb[0].mxu0 %v1229_v30 }
 0x15a   : > { %v740_v31 = vpop.f32.mrb[0].mxu1 }
 0x15b   : > { %v1823_v32 = vpop.f32.mrb[1].mxu1 }
 0x15c   : > { %v743_v33 = vpop.f32.mrb[2].mxu1 }
 0x15d   : > { %v1824_v34 = vpop.f32.mrb[3].mxu1 }
 0x17b   : > { %v1314_v35 = vpop.f32.mrb[0].mxu0 }
 0x17c   : > { %v1925_v37 = vadd.f32 %v1314_v35, %v740_v31  ;;  %v1923_v38 = vpop.f32.mrb[1].mxu0 }
 0x17d   : > { %v1317_v1 = vpop.f32.mrb[2].mxu0 }
 0x17e   : > { %v1321_v40 = vmul.f32 %v1925_v37, %v301_v36  ;;  %v1924_v41 = vpop.f32.mrb[3].mxu0 }
 0x180   : > { %v1322_v42 = vadd.f32 %v1321_v40, %v302_v39 }
 0x182   : > { %v1323_v43 = vmax.f32 %v1322_v42, 0.0 }
 0x184   : > { %v1324_v45 = vpack.c.bf16 %v1323_v43, %v1323_v43 }
 0x186   : > { %v1329_v46 = vsel %vm1327_vm3, %v1324_v45, %v1328_v44 }
 0x187   : > { %1330 = vst [vmem:[%s299_s14] sm:$0x1] %v1329_v46 }
 0x188 PF: > { %s15_s20 = sadd.s32 1, %s2075_s20   ;;  %s2502_s18 = smov %s2071_s19 }
 0x189   : > { %p12_p5 = scmp.ge.s32.totalorder %s15_s20, 4   ;;  %s2503_s19 = smov %s2505_s21 }
 0x18b   :  { %14 = sbr.rel (!%p12_p5) target bundleno = 2 (0x2), region = 94 }

// kernel: discriminator_forward.21
= control target key start
LH: loop header
LB: loop body
LE: loop exit
PB: predicated region body
PF: predicated region fallthrough
CT: control target
= control target key end

     0   :  { %s6869_s15 = smov 0   ;;  %s6871_s16 = smov 0   ;;  %s8192_s0 = inlined_call_operand.vmem [shape: bf16[2,6,6,128], index: 0, kind: input, shape index: {}]   ;;  %s8193_s1 = inlined_call_operand.vmem [shape: bf16[9,128,128], index: 1, kind: input, shape index: {}]   ;;  %s8194_s2 = inlined_call_operand.vmem [shape: f32[1,128], index: 2, kind: input, shape index: {}]   ;;  %s8195_s3 = inlined_call_operand.vmem [shape: f32[1,128], index: 3, kind: input, shape index: {}]   ;;  %s8196_s4 = inlined_call_operand.vmem [shape: bf16[2,4,4,128], index: 4, kind: output, shape index: {}]  }
   0x1   :  { %s6873_s17 = smov 0  }
   0x2 LB: > { %s26_s18 = sadd.s32 1, %s6836_s16  ;;  %p4438_p0 = scmp.ge.s32.totalorder %s6840_s17, 1  ;;  %s6840_s17 = sphi %s6873_s17, %s14_s17   ;;  %s6836_s16 = sphi %s6871_s16, %s8198_s16   ;;  %s6832_s15 = sphi %s6869_s15, %s8197_s15  }
   0x3   : > { %p28_p1 = scmp.ge.s32.totalorder %s26_s18, 2  ;;  %p201_p2 = scmp.lt.s32.totalorder %s6840_s17, 3 }
   0x5   : > { %s8200_s18 = smov (%p28_p1, %s26_s18), 0  ;;  %p202_p3 = pnand %p4438_p0, %p201_p2 }
   0x6   : > { %v6506_v0 = vld [vmem:[%s8193_s1 + $0x40] sm:$0xff] (!%p202_p3)   ;;  %v6842_v1 = vmov (!%p202_p3), 0.0   ;;  %v6508_v3 = vld [vmem:[%s8193_s1 + $0x48] sm:$0xff] (!%p202_p3)   ;;  %vm6843_vm0 = vmmov (!%p202_p3), 0   ;;  %p240_p4 = scmp.lt.s32.totalorder (!%p202_p3), %s6832_s15, 1  ;;  %v6510_v5 = vld [vmem:[%s8193_s1 + $0x50] sm:$0xff] (!%p202_p3)  }
   0x7   : > { %205 = sbr.rel (%p202_p3) target bundleno = 805 (0x325), region = 36  ;;  %5631 = vmatprep.subr.bf16.mxu0 (!%p202_p3), %v6842_v1  ;;  %5811 = vmatprep.subr.bf16.mxu1 (!%p202_p3), %v6842_v1  ;;  %v6507_v2 = vld [vmem:[%s8193_s1 + $0x40] sm:$0xff] (!%p202_p3)   ;;  %v6509_v4 = vld [vmem:[%s8193_s1 + $0x48] sm:$0xff] (!%p202_p3)   ;;  %v6511_v6 = vld [vmem:[%s8193_s1 + $0x50] sm:$0xff] (!%p202_p3)  }
   0x8   : > { %5632 = vmatpush3.bf16.msra.mxu0 (!%p202_p3), %v6506_v0  ;;  %5647 = vmatprep.mubr.msk.bf16.mxu0 (!%p202_p3), %vm6843_vm0, %v6842_v1  ;;  %v6512_v7 = vld [vmem:[%s8193_s1 + $0x58] sm:$0xff] (!%p202_p3)   ;;  %v6514_v9 = vld [vmem:[%s8193_s1 + $0x60] sm:$0xff] (!%p202_p3)   ;;  %v6516_v12 = vld [vmem:[%s8193_s1 + $0x68] sm:$0xff] (!%p202_p3)  }
   0x9   : > { %5812 = vmatpush3.bf16.msra.mxu1 (!%p202_p3), %v6507_v2  ;;  %5633 = vmatprep.subr.bf16.mxu0 (!%p202_p3), %v6842_v1  ;;  %v6513_v8 = vld [vmem:[%s8193_s1 + $0x58] sm:$0xff] (!%p202_p3)   ;;  %v6515_v10 = vld [vmem:[%s8193_s1 + $0x60] sm:$0xff] (!%p202_p3)   ;;  %v6517_v13 = vld [vmem:[%s8193_s1 + $0x68] sm:$0xff] (!%p202_p3)  }
   0xa   : > { %5813 = vmatprep.subr.bf16.mxu1 (!%p202_p3), %v6842_v1  ;;  %5827 = vmatprep.mubr.msk.bf16.mxu1 (!%p202_p3), %vm6843_vm0, %v6842_v1  ;;  %v6518_v16 = vld [vmem:[%s8193_s1 + $0x70] sm:$0xff] (!%p202_p3)   ;;  %v6520_v19 = vld [vmem:[%s8193_s1 + $0x78] sm:$0xff] (!%p202_p3)   ;;  %v6523_v26 = vld [vmem:[%s8193_s1] sm:$0xff] (!%p202_p3)  }
   0xb   : > { %v6519_v18 = vld [vmem:[%s8193_s1 + $0x70] sm:$0xff] (!%p202_p3)   ;;  %v6521_v24 = vld [vmem:[%s8193_s1 + $0x78] sm:$0xff] (!%p202_p3)   ;;  %v6525_v28 = vld [vmem:[%s8193_s1] sm:$0xff] (!%p202_p3)  }
   0xc   : > { %5634 = vmatpush3.bf16.msra.mxu0 (!%p202_p3), %v6508_v3  ;;  %v6526_v29 = vld [vmem:[%s8193_s1 + $0x8] sm:$0xff] (!%p202_p3)   ;;  %v6528_v31 = vld [vmem:[%s8193_s1 + $0x10] sm:$0xff] (!%p202_p3)   ;;  %v6530_v33 = vld [vmem:[%s8193_s1 + $0x18] sm:$0xff] (!%p202_p3)  }
   0xd   : > { %5814 = vmatpush3.bf16.msra.mxu1 (!%p202_p3), %v6509_v4  ;;  %5635 = vmatprep.subr.bf16.mxu0 (!%p202_p3), %v6842_v1  ;;  %v6527_v30 = vld [vmem:[%s8193_s1 + $0x8] sm:$0xff] (!%p202_p3)   ;;  %v6529_v32 = vld [vmem:[%s8193_s1 + $0x10] sm:$0xff] (!%p202_p3)   ;;  %v6531_v34 = vld [vmem:[%s8193_s1 + $0x18] sm:$0xff] (!%p202_p3)  }
   0xe   : > { %s8202_s15 = smov (!%p240_p4, %s6832_s15), 1  ;;  %5815 = vmatprep.subr.bf16.mxu1 %v6842_v1  ;;  %v6532_v35 = vld [vmem:[%s8193_s1 + $0x20] sm:$0xff]   ;;  %v6534_v37 = vld [vmem:[%s8193_s1 + $0x28] sm:$0xff]   ;;  %v6536_v39 = vld [vmem:[%s8193_s1 + $0x30] sm:$0xff]  }
   0xf   : > { %s6479_s5 = smul.u32 24, %s8202_s15  ;;  %v6533_v36 = vld [vmem:[%s8193_s1 + $0x20] sm:$0xff]   ;;  %v6535_v38 = vld [vmem:[%s8193_s1 + $0x28] sm:$0xff]   ;;  %v6537_v40 = vld [vmem:[%s8193_s1 + $0x30] sm:$0xff]   ;;  %s5306_s28 = sshll.u32 %s8202_s15, 3 }
  0x10   : > { %5636 = vmatpush3.bf16.msra.mxu0 %v6510_v5  ;;  %v6538_v41 = vld [vmem:[%s8193_s1 + $0x38] sm:$0xff]   ;;  %v6540_v44 = vld [vmem:[%s8193_s1 + $0x80] sm:$0xff]   ;;  %v6542_v47 = vld [vmem:[%s8193_s1 + $0x88] sm:$0xff]   ;;  %s8023_s6 = scalar_lea.vmem %s8196_s4, %s5306_s28 }
  0x11   : > { %5816 = vmatpush3.bf16.msra.mxu1 %v6511_v6  ;;  %5637 = vmatprep.subr.bf16.mxu0 %v6842_v1  ;;  %s6929_s12 = scalar_lea.vmem %s8192_s0, %s6479_s5  ;;  %v6539_v42 = vld [vmem:[%s8193_s1 + $0x38] sm:$0xff]   ;;  %v6541_v46 = vld [vmem:[%s8193_s1 + $0x80] sm:$0xff]   ;;  %v6543_v48 = vld [vmem:[%s8193_s1 + $0x88] sm:$0xff]  }
  0x12   : > { %5817 = vmatprep.subr.bf16.mxu1 %v6842_v1  ;;  %v6522_v11 = vld [vmem:[%s6929_s12] ss:$0 sps:$4 sm:$0x77]   ;;  %v6524_v14 = vld [vmem:[%s6929_s12 + $0x4] ss:$0 sps:$4 sm:$0x77]  }
  0x13   : > { %v307_v15 = vshll.u32 %v6522_v11, 16  ;;  %v1333_v17 = vshll.u32 %v6524_v14, 16  ;;  %v305_v20 = vshrl.u32 %v6522_v11, 16  ;;  %v1331_v22 = vshrl.u32 %v6524_v14, 16  ;;  %v266_v43 = vld [vmem:[%s6929_s12] sm:$0x3] }
  0x14   : > { %5638 = vmatpush3.bf16.msra.mxu0 %v6512_v7  ;;  %v4656_v45 = vld [vmem:[%s6929_s12 + $0x4] sm:$0x3]  ;;  %v6544_v49 = vld [vmem:[%s8193_s1 + $0x90] sm:$0xff]   ;;  %v6546_v51 = vld [vmem:[%s8193_s1 + $0x98] sm:$0xff]  }
  0x15   : > { %5818 = vmatpush3.bf16.msra.mxu1 %v6513_v8  ;;  %5639 = vmatprep.subr.bf16.mxu0 %v6842_v1  ;;  %v309_v21 = vrot.slane %v307_v15, 1  ;;  %v1335_v23 = vrot.slane %v1333_v17, 1  ;;  %v6545_v50 = vld [vmem:[%s8193_s1 + $0x90] sm:$0xff]   ;;  %v6547_v52 = vld [vmem:[%s8193_s1 + $0x98] sm:$0xff]   ;;  %v6548_v53 = vld [vmem:[%s8193_s1 + $0xa0] sm:$0xff]  }
  0x16   : > { %5819 = vmatprep.subr.bf16.mxu1 %v6842_v1  ;;  %v6549_v54 = vld [vmem:[%s8193_s1 + $0xa0] sm:$0xff]   ;;  %v6550_v55 = vld [vmem:[%s8193_s1 + $0xa8] sm:$0xff]   ;;  %v6552_v57 = vld [vmem:[%s8193_s1 + $0xb0] sm:$0xff]  }
  0x17   : > { %v310_v25 = vor.u32 %v309_v21, %v305_v20  ;;  %v1336_v27 = vor.u32 %v1335_v23, %v1331_v22  ;;  %v6551_v56 = vld [vmem:[%s8193_s1 + $0xa8] sm:$0xff]   ;;  %v6553_v58 = vld [vmem:[%s8193_s1 + $0xb0] sm:$0xff]   ;;  %v6556_v59 = vld [vmem:[%s6929_s12] ss:$0 sps:$4 sm:$0x66]  }
  0x18   : > { %5640 = vmatpush3.bf16.msra.mxu0 %v6514_v9  ;;  %v6558_v60 = vld [vmem:[%s6929_s12 + $0x4] ss:$0 sps:$4 sm:$0x66]   ;;  %v6554_v61 = vld [vmem:[%s8193_s1 + $0xb8] sm:$0xff]   ;;  %v509_v63 = vrot.slane %v6556_v59, 1  ;;  %v6560_v4 = vld [vmem:[%s8193_s1 + $0xc8] sm:$0xff]  }
  0x19   : > { %5820 = vmatpush3.bf16.msra.mxu1 %v6515_v10  ;;  %5641 = vmatprep.subr.bf16.mxu0 %v6842_v1  ;;  %v6555_v62 = vld [vmem:[%s8193_s1 + $0xb8] sm:$0xff]   ;;  %v6557_v0 = vld [vmem:[%s8193_s1 + $0xc0] sm:$0xff]   ;;  %v1534_v2 = vrot.slane %v6558_v60, 1  ;;  %v6561_v5 = vld [vmem:[%s8193_s1 + $0xc8] sm:$0xff]  }
  0x1a   : > { %5821 = vmatprep.subr.bf16.mxu1 %v6842_v1  ;;  %v6559_v3 = vld [vmem:[%s8193_s1 + $0xc0] sm:$0xff]   ;;  %v6562_v6 = vld [vmem:[%s8193_s1 + $0xd0] sm:$0xff]   ;;  %v6564_v8 = vld [vmem:[%s8193_s1 + $0xd8] sm:$0xff]  }
  0x1b   : > { %v6563_v7 = vld [vmem:[%s8193_s1 + $0xd0] sm:$0xff]   ;;  %v6565_v9 = vld [vmem:[%s8193_s1 + $0xd8] sm:$0xff]   ;;  %v6566_v10 = vld [vmem:[%s8193_s1 + $0xe0] sm:$0xff]  }
  0x1c   : > { %5642 = vmatpush3.bf16.msra.mxu0 %v6516_v12  ;;  %v6567_v11 = vld [vmem:[%s8193_s1 + $0xe0] sm:$0xff]   ;;  %v6568_v12 = vld [vmem:[%s8193_s1 + $0xe8] sm:$0xff]   ;;  %v6570_v14 = vld [vmem:[%s8193_s1 + $0xf0] sm:$0xff]  }
  0x1d   : > { %5822 = vmatpush3.bf16.msra.mxu1 %v6517_v13  ;;  %5643 = vmatprep.subr.bf16.mxu0 %v6842_v1  ;;  %v6569_v13 = vld [vmem:[%s8193_s1 + $0xe8] sm:$0xff]   ;;  %v6571_v15 = vld [vmem:[%s8193_s1 + $0xf0] sm:$0xff]   ;;  %v6573_v17 = vld [vmem:[%s8193_s1 + $0xf8] sm:$0xff]  }
  0x1e   : > { %5823 = vmatprep.subr.bf16.mxu1 %v6842_v1  ;;  %v4717_v20 = vld [vmem:[%s6929_s12 + $0x8] sm:$0x3]  ;;  %v6575_v21 = vld [vmem:[%s8193_s1 + $0x100] sm:$0xff]   ;;  %v6605_v59 = vld [vmem:[%s8193_s1 + $0x170] sm:$0xff]  }
  0x1f   : > { %v6576_v22 = vld [vmem:[%s8193_s1 + $0x108] sm:$0xff]   ;;  %v6608_v60 = vld [vmem:[%s6929_s12 + $0x4] ss:$0 sps:$4 sm:$0x66]  }
  0x20   : > { %5644 = vmatpush3.bf16.msra.mxu0 %v6518_v16  ;;  %v6572_v16 = vld [vmem:[%s8193_s1 + $0xf8] sm:$0xff]   ;;  %v6577_v23 = vld [vmem:[%s8193_s1 + $0x108] sm:$0xff]  }
  0x21   : > { %5824 = vmatpush3.bf16.msra.mxu1 %v6519_v18  ;;  %5645 = vmatprep.subr.bf16.mxu0 %v6842_v1  ;;  %v4500_v18 = vld [vmem:[%s6929_s12 + $0x4] sm:$0x3] }
  0x22   : > { %5825 = vmatprep.subr.bf16.mxu1 %v6842_v1 }
  0x24   : > { %5646 = vmatpush3.bf16.msra.mxu0 %v6520_v19  ;;  %v6574_v19 = vld [vmem:[%s8193_s1 + $0x100] sm:$0xff]  }
  0x25   : > { %5826 = vmatpush3.bf16.msra.mxu1 %v6521_v24  ;;  %5651 = vmatprep.subr.bf16.mxu0 %v6842_v1  ;;  %v6578_v24 = vld [vmem:[%s8193_s1 + $0x110] sm:$0xff]  }
  0x26   : > { %5831 = vmatprep.subr.bf16.mxu1 %v6842_v1 }
  0x27   : > { %5648 = vmatmul.mubr.bf16.vlgmr.msra.gmra.mrb[0].mxu0 %v310_v25  ;;  %v6579_v25 = vld [vmem:[%s8193_s1 + $0x110] sm:$0xff]  }
  0x28   : > { %5652 = vmatpush3.bf16.msra.mxu0 %v6523_v26  ;;  %5828 = vmatmul.mubr.bf16.vlgmr.msra.gmra.mrb[0].mxu1 %v1336_v27  ;;  %v6580_v26 = vld [vmem:[%s8193_s1 + $0x118] sm:$0xff]  }
  0x29   : > { %5832 = vmatpush3.bf16.msra.mxu1 %v6525_v28  ;;  %5653 = vmatprep.subr.bf16.mxu0 %v6842_v1  ;;  %v6581_v27 = vld [vmem:[%s8193_s1 + $0x118] sm:$0xff]   ;;  %v6582_v28 = vld [vmem:[%s8193_s1 + $0x120] sm:$0xff]  }
  0x2a   : > { %5833 = vmatprep.subr.bf16.mxu1 %v6842_v1  ;;  %5667 = vmatprep.mubr.msk.bf16.mxu0 %vm6843_vm0, %v6842_v1 }
  0x2b   : > { %5847 = vmatprep.mubr.msk.bf16.mxu1 %vm6843_vm0, %v6842_v1 }
  0x2c   : > { %5654 = vmatpush3.bf16.msra.mxu0 %v6526_v29  ;;  %v6590_v29 = vld [vmem:[%s6929_s12 + $0x4] ss:$0 sps:$4 sm:$0x77]  }
  0x2d   : > { %5834 = vmatpush3.bf16.msra.mxu1 %v6527_v30  ;;  %5655 = vmatprep.subr.bf16.mxu0 %v6842_v1  ;;  %v6583_v30 = vld [vmem:[%s8193_s1 + $0x120] sm:$0xff]  }
  0x2e   : > { %5835 = vmatprep.subr.bf16.mxu1 %v6842_v1 }
  0x30   : > { %5656 = vmatpush3.bf16.msra.mxu0 %v6528_v31  ;;  %v6592_v31 = vld [vmem:[%s6929_s12 + $0x8] ss:$0 sps:$4 sm:$0x77]  }
  0x31   : > { %5836 = vmatpush3.bf16.msra.mxu1 %v6529_v32  ;;  %5657 = vmatprep.subr.bf16.mxu0 %v6842_v1  ;;  %v6584_v32 = vld [vmem:[%s8193_s1 + $0x128] sm:$0xff]  }
  0x32   : > { %5837 = vmatprep.subr.bf16.mxu1 %v6842_v1 }
  0x34   : > { %5658 = vmatpush3.bf16.msra.mxu0 %v6530_v33  ;;  %v6585_v33 = vld [vmem:[%s8193_s1 + $0x128] sm:$0xff]  }
  0x35   : > { %5838 = vmatpush3.bf16.msra.mxu1 %v6531_v34  ;;  %5659 = vmatprep.subr.bf16.mxu0 %v6842_v1  ;;  %v732_v34 = vshll.u32 %v6590_v29, 16 }
  0x36   : > { %5839 = vmatprep.subr.bf16.mxu1 %v6842_v1 }
  0x38   : > { %5660 = vmatpush3.bf16.msra.mxu0 %v6532_v35  ;;  %v1754_v35 = vshll.u32 %v6592_v31, 16 }
  0x39   : > { %5840 = vmatpush3.bf16.msra.mxu1 %v6533_v36  ;;  %5661 = vmatprep.subr.bf16.mxu0 %v6842_v1  ;;  %v6586_v36 = vld [vmem:[%s8193_s1 + $0x130] sm:$0xff]  }
  0x3a   : > { %5841 = vmatprep.subr.bf16.mxu1 %v6842_v1 }
  0x3c   : > { %5662 = vmatpush3.bf16.msra.mxu0 %v6534_v37  ;;  %v6587_v37 = vld [vmem:[%s8193_s1 + $0x130] sm:$0xff]  }
  0x3d   : > { %5842 = vmatpush3.bf16.msra.mxu1 %v6535_v38  ;;  %5663 = vmatprep.subr.bf16.mxu0 %v6842_v1  ;;  %v6588_v38 = vld [vmem:[%s8193_s1 + $0x138] sm:$0xff]  }
  0x3e   : > { %5843 = vmatprep.subr.bf16.mxu1 %v6842_v1 }
  0x40   : > { %5664 = vmatpush3.bf16.msra.mxu0 %v6536_v39  ;;  %v730_v39 = vshrl.u32 %v6590_v29, 16  ;;  %v6634_v29 = vld [vmem:[%s8193_s1 + $0x1e0] sm:$0xff]  }
  0x41   : > { %5844 = vmatpush3.bf16.msra.mxu1 %v6537_v40  ;;  %5665 = vmatprep.subr.bf16.mxu0 %v6842_v1  ;;  %v734_v40 = vrot.slane %v732_v34, 1  ;;  %v6637_v34 = vld [vmem:[%s8193_s1 + $0x1e8] sm:$0xff]  }
  0x42   : > { %5845 = vmatprep.subr.bf16.mxu1 %v6842_v1 }
  0x44   : > { %5666 = vmatpush3.bf16.msra.mxu0 %v6538_v41  ;;  %v6589_v41 = vld [vmem:[%s8193_s1 + $0x138] sm:$0xff]  }
  0x45   : > { %5846 = vmatpush3.bf16.msra.mxu1 %v6539_v42  ;;  %5671 = vmatprep.subr.bf16.mxu0 %v6842_v1  ;;  %v1752_v42 = vshrl.u32 %v6592_v31, 16  ;;  %v6642_v31 = vld [vmem:[%s6929_s12 + $0x8] ss:$0 sps:$4 sm:$0x77]  }
  0x46   : > { %5851 = vmatprep.subr.bf16.mxu1 %v6842_v1 }
  0x47   : > { %5668 = vmatmul.mubr.bf16.vlgmr.msra.gmra.mrb[0].mxu0 %v266_v43  ;;  %v1756_v43 = vrot.slane %v1754_v35, 1  ;;  %v6638_v35 = vld [vmem:[%s8193_s1 + $0x1f0] sm:$0xff]  }
  0x48   : > { %5672 = vmatpush3.bf16.msra.mxu0 %v6540_v44  ;;  %5848 = vmatmul.mubr.bf16.vlgmr.msra.gmra.mrb[0].mxu1 %v4656_v45  ;;  %v735_v44 = vor.u32 %v734_v40, %v730_v39  ;;  %v6591_v45 = vld [vmem:[%s8193_s1 + $0x140] sm:$0xff]   ;;  %v6640_v39 = vld [vmem:[%s8193_s1 + $0x1f8] sm:$0xff]   ;;  %v1068_v40 = vshrl.u32 %v6642_v31, 16 }
  0x49   : > { %5852 = vmatpush3.bf16.msra.mxu1 %v6541_v46  ;;  %5673 = vmatprep.subr.bf16.mxu0 %v6842_v1  ;;  %v1757_v46 = vor.u32 %v1756_v43, %v1752_v42  ;;  %v6641_v42 = vld [vmem:[%s8193_s1 + $0x1f8] sm:$0xff]  }
  0x4a   : > { %5853 = vmatprep.subr.bf16.mxu1 %v6842_v1  ;;  %5687 = vmatprep.mubr.msk.bf16.mxu0 %vm6843_vm0, %v6842_v1 }
  0x4b   : > { %5867 = vmatprep.mubr.msk.bf16.mxu1 %vm6843_vm0, %v6842_v1 }
  0x4c   : > { %5674 = vmatpush3.bf16.msra.mxu0 %v6542_v47  ;;  %v6593_v47 = vld [vmem:[%s8193_s1 + $0x140] sm:$0xff]  }
  0x4d   : > { %5854 = vmatpush3.bf16.msra.mxu1 %v6543_v48  ;;  %5675 = vmatprep.subr.bf16.mxu0 %v6842_v1  ;;  %v6594_v48 = vld [vmem:[%s8193_s1 + $0x148] sm:$0xff]  }
  0x4e   : > { %5855 = vmatprep.subr.bf16.mxu1 %v6842_v1 }
  0x50   : > { %5676 = vmatpush3.bf16.msra.mxu0 %v6544_v49  ;;  %v6595_v49 = vld [vmem:[%s8193_s1 + $0x148] sm:$0xff]  }
  0x51   : > { %5856 = vmatpush3.bf16.msra.mxu1 %v6545_v50  ;;  %5677 = vmatprep.subr.bf16.mxu0 %v6842_v1  ;;  %v6596_v50 = vld [vmem:[%s8193_s1 + $0x150] sm:$0xff]  }
  0x52   : > { %5857 = vmatprep.subr.bf16.mxu1 %v6842_v1 }
  0x54   : > { %5678 = vmatpush3.bf16.msra.mxu0 %v6546_v51  ;;  %v6597_v51 = vld [vmem:[%s8193_s1 + $0x150] sm:$0xff]  }
  0x55   : > { %5858 = vmatpush3.bf16.msra.mxu1 %v6547_v52  ;;  %5679 = vmatprep.subr.bf16.mxu0 %v6842_v1  ;;  %v6598_v52 = vld [vmem:[%s8193_s1 + $0x158] sm:$0xff]  }
  0x56   : > { %5859 = vmatprep.subr.bf16.mxu1 %v6842_v1 }
  0x58   : > { %5680 = vmatpush3.bf16.msra.mxu0 %v6548_v53  ;;  %v6599_v53 = vld [vmem:[%s8193_s1 + $0x158] sm:$0xff]  }
  0x59   : > { %5860 = vmatpush3.bf16.msra.mxu1 %v6549_v54  ;;  %5681 = vmatprep.subr.bf16.mxu0 %v6842_v1  ;;  %v6600_v54 = vld [vmem:[%s8193_s1 + $0x160] sm:$0xff]  }
  0x5a   : > { %5861 = vmatprep.subr.bf16.mxu1 %v6842_v1 }
  0x5c   : > { %5682 = vmatpush3.bf16.msra.mxu0 %v6550_v55  ;;  %v6601_v55 = vld [vmem:[%s8193_s1 + $0x160] sm:$0xff]  }
  0x5d   : > { %5862 = vmatpush3.bf16.msra.mxu1 %v6551_v56  ;;  %5683 = vmatprep.subr.bf16.mxu0 %v6842_v1  ;;  %v6602_v56 = vld [vmem:[%s8193_s1 + $0x168] sm:$0xff]  }
  0x5e   : > { %5863 = vmatprep.subr.bf16.mxu1 %v6842_v1 }
  0x60   : > { %5684 = vmatpush3.bf16.msra.mxu0 %v6552_v57  ;;  %v6603_v57 = vld [vmem:[%s8193_s1 + $0x168] sm:$0xff]  }
  0x61   : > { %5864 = vmatpush3.bf16.msra.mxu1 %v6553_v58  ;;  %5685 = vmatprep.subr.bf16.mxu0 %v6842_v1  ;;  %v6604_v58 = vld [vmem:[%s8193_s1 + $0x170] sm:$0xff]  }
  0x62   : > { %5865 = vmatprep.subr.bf16.mxu1 %v6842_v1 }
  0x64   : > { %5686 = vmatpush3.bf16.msra.mxu0 %v6554_v61  ;;  %v6610_v61 = vld [vmem:[%s6929_s12 + $0x8] ss:$0 sps:$4 sm:$0x66]  }
  0x65   : > { %5866 = vmatpush3.bf16.msra.mxu1 %v6555_v62  ;;  %5691 = vmatprep.subr.bf16.mxu0 %v6842_v1  ;;  %v6606_v62 = vld [vmem:[%s8193_s1 + $0x178] sm:$0xff]  }
  0x66   : > { %5871 = vmatprep.subr.bf16.mxu1 %v6842_v1 }
  0x67   : > { %5688 = vmatmul.mubr.bf16.vlgmr.msra.gmra.mrb[0].mxu0 %v509_v63  ;;  %v6607_v63 = vld [vmem:[%s8193_s1 + $0x178] sm:$0xff]  }
  0x68   : > { %5692 = vmatpush3.bf16.msra.mxu0 %v6557_v0  ;;  %5868 = vmatmul.mubr.bf16.vlgmr.msra.gmra.mrb[0].mxu1 %v1534_v2  ;;  %v847_v0 = vrot.slane %v6608_v60, 1  ;;  %v6609_v2 = vld [vmem:[%s8193_s1 + $0x180] sm:$0xff]   ;;  %v6657_v60 = vld [vmem:[%s8193_s1 + $0x230] sm:$0xff]  }
  0x69   : > { %5872 = vmatpush3.bf16.msra.mxu1 %v6559_v3  ;;  %5693 = vmatprep.subr.bf16.mxu0 %v6842_v1  ;;  %v1868_v3 = vrot.slane %v6610_v61, 1  ;;  %v6660_v61 = vld [vmem:[%s6929_s12 + $0x8] ss:$0 sps:$4 sm:$0x66]  }
  0x6a   : > { %5873 = vmatprep.subr.bf16.mxu1 %v6842_v1  ;;  %5707 = vmatprep.mubr.msk.bf16.mxu0 %vm6843_vm0, %v6842_v1 }
  0x6b   : > { %5887 = vmatprep.mubr.msk.bf16.mxu1 %vm6843_vm0, %v6842_v1 }
  0x6c   : > { %5694 = vmatpush3.bf16.msra.mxu0 %v6560_v4  ;;  %v6611_v4 = vld [vmem:[%s8193_s1 + $0x180] sm:$0xff]  }
  0x6d   : > { %5874 = vmatpush3.bf16.msra.mxu1 %v6561_v5  ;;  %5695 = vmatprep.subr.bf16.mxu0 %v6842_v1  ;;  %v6612_v5 = vld [vmem:[%s8193_s1 + $0x188] sm:$0xff]  }
  0x6e   : > { %5875 = vmatprep.subr.bf16.mxu1 %v6842_v1 }
  0x70   : > { %5696 = vmatpush3.bf16.msra.mxu0 %v6562_v6  ;;  %v6613_v6 = vld [vmem:[%s8193_s1 + $0x188] sm:$0xff]  }
  0x71   : > { %5876 = vmatpush3.bf16.msra.mxu1 %v6563_v7  ;;  %5697 = vmatprep.subr.bf16.mxu0 %v6842_v1  ;;  %v6614_v7 = vld [vmem:[%s8193_s1 + $0x190] sm:$0xff]  }
  0x72   : > { %5877 = vmatprep.subr.bf16.mxu1 %v6842_v1 }
  0x74   : > { %5698 = vmatpush3.bf16.msra.mxu0 %v6564_v8  ;;  %v6615_v8 = vld [vmem:[%s8193_s1 + $0x190] sm:$0xff]  }
  0x75   : > { %5878 = vmatpush3.bf16.msra.mxu1 %v6565_v9  ;;  %5699 = vmatprep.subr.bf16.mxu0 %v6842_v1  ;;  %v6616_v9 = vld [vmem:[%s8193_s1 + $0x198] sm:$0xff]  }
  0x76   : > { %5879 = vmatprep.subr.bf16.mxu1 %v6842_v1 }
  0x78   : > { %5700 = vmatpush3.bf16.msra.mxu0 %v6566_v10  ;;  %v6617_v10 = vld [vmem:[%s8193_s1 + $0x198] sm:$0xff]  }
  0x79   : > { %5880 = vmatpush3.bf16.msra.mxu1 %v6567_v11  ;;  %5701 = vmatprep.subr.bf16.mxu0 %v6842_v1  ;;  %v6618_v11 = vld [vmem:[%s8193_s1 + $0x1a0] sm:$0xff]  }
  0x7a   : > { %5881 = vmatprep.subr.bf16.mxu1 %v6842_v1 }
  0x7c   : > { %5702 = vmatpush3.bf16.msra.mxu0 %v6568_v12  ;;  %v6619_v12 = vld [vmem:[%s8193_s1 + $0x1a0] sm:$0xff]  }
  0x7d   : > { %5882 = vmatpush3.bf16.msra.mxu1 %v6569_v13  ;;  %5703 = vmatprep.subr.bf16.mxu0 %v6842_v1  ;;  %v6620_v13 = vld [vmem:[%s8193_s1 + $0x1a8] sm:$0xff]  }
  0x7e   : > { %5883 = vmatprep.subr.bf16.mxu1 %v6842_v1 }
  0x80   : > { %5704 = vmatpush3.bf16.msra.mxu0 %v6570_v14  ;;  %v6621_v14 = vld [vmem:[%s8193_s1 + $0x1a8] sm:$0xff]  }
  0x81   : > { %5884 = vmatpush3.bf16.msra.mxu1 %v6571_v15  ;;  %5705 = vmatprep.subr.bf16.mxu0 %v6842_v1  ;;  %v6622_v15 = vld [vmem:[%s8193_s1 + $0x1b0] sm:$0xff]  }
  0x82   : > { %5885 = vmatprep.subr.bf16.mxu1 %v6842_v1 }
  0x84   : > { %5706 = vmatpush3.bf16.msra.mxu0 %v6572_v16  ;;  %v6623_v16 = vld [vmem:[%s8193_s1 + $0x1b0] sm:$0xff]  }
  0x85   : > { %5886 = vmatpush3.bf16.msra.mxu1 %v6573_v17  ;;  %5711 = vmatprep.subr.bf16.mxu0 %v6842_v1  ;;  %v6624_v17 = vld [vmem:[%s8193_s1 + $0x1b8] sm:$0xff]  }
  0x86   : > { %5891 = vmatprep.subr.bf16.mxu1 %v6842_v1 }
  0x87   : > { %5708 = vmatmul.mubr.bf16.vlgmr.msra.gmra.mrb[0].mxu0 %v4500_v18  ;;  %v6625_v18 = vld [vmem:[%s8193_s1 + $0x1b8] sm:$0xff]  }
  0x88   : > { %5712 = vmatpush3.bf16.msra.mxu0 %v6574_v19  ;;  %5888 = vmatmul.mubr.bf16.vlgmr.msra.gmra.mrb[0].mxu1 %v4717_v20  ;;  %v4577_v19 = vld [vmem:[%s6929_s12 + $0x8] sm:$0x3]  ;;  %v6626_v20 = vld [vmem:[%s8193_s1 + $0x1c0] sm:$0xff]  }
  0x89   : > { %5892 = vmatpush3.bf16.msra.mxu1 %v6575_v21  ;;  %5713 = vmatprep.subr.bf16.mxu0 %v6842_v1  ;;  %v4794_v21 = vld [vmem:[%s6929_s12 + $0xc] sm:$0x3] }
  0x8a   : > { %5893 = vmatprep.subr.bf16.mxu1 %v6842_v1  ;;  %5727 = vmatprep.mubr.msk.bf16.mxu0 %vm6843_vm0, %v6842_v1 }
  0x8b   : > { %5907 = vmatprep.mubr.msk.bf16.mxu1 %vm6843_vm0, %v6842_v1 }
  0x8c   : > { %5714 = vmatpush3.bf16.msra.mxu0 %v6576_v22  ;;  %v6627_v22 = vld [vmem:[%s8193_s1 + $0x1c0] sm:$0xff]  }
  0x8d   : > { %5894 = vmatpush3.bf16.msra.mxu1 %v6577_v23  ;;  %5715 = vmatprep.subr.bf16.mxu0 %v6842_v1  ;;  %v6628_v23 = vld [vmem:[%s8193_s1 + $0x1c8] sm:$0xff]  }
  0x8e   : > { %5895 = vmatprep.subr.bf16.mxu1 %v6842_v1 }
  0x90   : > { %5716 = vmatpush3.bf16.msra.mxu0 %v6578_v24  ;;  %v6629_v24 = vld [vmem:[%s8193_s1 + $0x1c8] sm:$0xff]  }
  0x91   : > { %5896 = vmatpush3.bf16.msra.mxu1 %v6579_v25  ;;  %5717 = vmatprep.subr.bf16.mxu0 %v6842_v1  ;;  %v6630_v25 = vld [vmem:[%s8193_s1 + $0x1d0] sm:$0xff]  }
  0x92   : > { %5897 = vmatprep.subr.bf16.mxu1 %v6842_v1 }
  0x94   : > { %5718 = vmatpush3.bf16.msra.mxu0 %v6580_v26  ;;  %v6631_v26 = vld [vmem:[%s8193_s1 + $0x1d0] sm:$0xff]  }
  0x95   : > { %5898 = vmatpush3.bf16.msra.mxu1 %v6581_v27  ;;  %5719 = vmatprep.subr.bf16.mxu0 %v6842_v1  ;;  %v6632_v27 = vld [vmem:[%s8193_s1 + $0x1d8] sm:$0xff]  }
  0x96   : > { %5899 = vmatprep.subr.bf16.mxu1 %v6842_v1 }
  0x98   : > { %5720 = vmatpush3.bf16.msra.mxu0 %v6582_v28  ;;  %v6633_v28 = vld [vmem:[%s8193_s1 + $0x1d8] sm:$0xff]  }
  0x99   : > { %5900 = vmatpush3.bf16.msra.mxu1 %v6583_v30  ;;  %5721 = vmatprep.subr.bf16.mxu0 %v6842_v1  ;;  %v6635_v30 = vld [vmem:[%s8193_s1 + $0x1e0] sm:$0xff]  }
  0x9a   : > { %5901 = vmatprep.subr.bf16.mxu1 %v6842_v1 }
  0x9c   : > { %5722 = vmatpush3.bf16.msra.mxu0 %v6584_v32  ;;  %v6644_v32 = vld [vmem:[%s6929_s12 + $0xc] ss:$0 sps:$4 sm:$0x77]  }
  0x9d   : > { %5902 = vmatpush3.bf16.msra.mxu1 %v6585_v33  ;;  %5723 = vmatprep.subr.bf16.mxu0 %v6842_v1  ;;  %v6636_v33 = vld [vmem:[%s8193_s1 + $0x1e8] sm:$0xff]   ;;  %v2087_v43 = vshrl.u32 %v6644_v32, 16 }
  0x9e   : > { %5903 = vmatprep.subr.bf16.mxu1 %v6842_v1 }
  0xa0   : > { %5724 = vmatpush3.bf16.msra.mxu0 %v6586_v36  ;;  %v1070_v36 = vshll.u32 %v6642_v31, 16  ;;  %v6681_v31 = vld [vmem:[%s8193_s1] sm:$0xff]  }
  0xa1   : > { %5904 = vmatpush3.bf16.msra.mxu1 %v6587_v37  ;;  %5725 = vmatprep.subr.bf16.mxu0 %v6842_v1  ;;  %v6639_v37 = vld [vmem:[%s8193_s1 + $0x1f0] sm:$0xff]  }
  0xa2   : > { %5905 = vmatprep.subr.bf16.mxu1 %v6842_v1 }
  0xa4   : > { %5726 = vmatpush3.bf16.msra.mxu0 %v6588_v38  ;;  %v2089_v38 = vshll.u32 %v6644_v32, 16  ;;  %v6682_v32 = vld [vmem:[%s8193_s1 + $0x8] sm:$0xff]  }
  0xa5   : > { %5906 = vmatpush3.bf16.msra.mxu1 %v6589_v41  ;;  %5731 = vmatprep.subr.bf16.mxu0 %v6842_v1  ;;  %v1072_v41 = vrot.slane %v1070_v36, 1  ;;  %v6686_v36 = vld [vmem:[%s8193_s1 + $0x18] sm:$0xff]  }
  0xa6   : > { %5911 = vmatprep.subr.bf16.mxu1 %v6842_v1 }
  0xa7   : > { %5728 = vmatmul.mubr.bf16.vlgmr.msra.gmra.mrb[0].mxu0 %v735_v44  ;;  %v2091_v44 = vrot.slane %v2089_v38, 1  ;;  %v6688_v38 = vld [vmem:[%s8193_s1 + $0x20] sm:$0xff]  }
  0xa8   : > { %5732 = vmatpush3.bf16.msra.mxu0 %v6591_v45  ;;  %5908 = vmatmul.mubr.bf16.vlgmr.msra.gmra.mrb[0].mxu1 %v1757_v46  ;;  %v1073_v45 = vor.u32 %v1072_v41, %v1068_v40  ;;  %v6643_v46 = vld [vmem:[%s8193_s1 + $0x200] sm:$0xff]   ;;  %v6690_v40 = vld [vmem:[%s8193_s1 + $0x28] sm:$0xff]  }
  0xa9   : > { %5912 = vmatpush3.bf16.msra.mxu1 %v6593_v47  ;;  %5733 = vmatprep.subr.bf16.mxu0 %v6842_v1  ;;  %v2092_v47 = vor.u32 %v2091_v44, %v2087_v43  ;;  %v6691_v41 = vld [vmem:[%s8193_s1 + $0x28] sm:$0xff]   ;;  %v6693_v43 = vld [vmem:[%s8193_s1 + $0x30] sm:$0xff]   ;;  %v6694_v44 = vld [vmem:[%s8193_s1 + $0x38] sm:$0xff]  }
  0xaa   : > { %5913 = vmatprep.subr.bf16.mxu1 %v6842_v1  ;;  %5747 = vmatprep.mubr.msk.bf16.mxu0 %vm6843_vm0, %v6842_v1 }
  0xab   : > { %5927 = vmatprep.mubr.msk.bf16.mxu1 %vm6843_vm0, %v6842_v1 }
  0xac   : > { %5734 = vmatpush3.bf16.msra.mxu0 %v6594_v48  ;;  %v6645_v48 = vld [vmem:[%s8193_s1 + $0x200] sm:$0xff]  }
  0xad   : > { %5914 = vmatpush3.bf16.msra.mxu1 %v6595_v49  ;;  %5735 = vmatprep.subr.bf16.mxu0 %v6842_v1  ;;  %v6646_v49 = vld [vmem:[%s8193_s1 + $0x208] sm:$0xff]  }
  0xae   : > { %5915 = vmatprep.subr.bf16.mxu1 %v6842_v1 }
  0xb0   : > { %5736 = vmatpush3.bf16.msra.mxu0 %v6596_v50  ;;  %v6647_v50 = vld [vmem:[%s8193_s1 + $0x208] sm:$0xff]  }
  0xb1   : > { %5916 = vmatpush3.bf16.msra.mxu1 %v6597_v51  ;;  %5737 = vmatprep.subr.bf16.mxu0 %v6842_v1  ;;  %v6648_v51 = vld [vmem:[%s8193_s1 + $0x210] sm:$0xff]  }
  0xb2   : > { %5917 = vmatprep.subr.bf16.mxu1 %v6842_v1 }
  0xb4   : > { %5738 = vmatpush3.bf16.msra.mxu0 %v6598_v52  ;;  %v6649_v52 = vld [vmem:[%s8193_s1 + $0x210] sm:$0xff]  }
  0xb5   : > { %5918 = vmatpush3.bf16.msra.mxu1 %v6599_v53  ;;  %5739 = vmatprep.subr.bf16.mxu0 %v6842_v1  ;;  %v6650_v53 = vld [vmem:[%s8193_s1 + $0x218] sm:$0xff]  }
  0xb6   : > { %5919 = vmatprep.subr.bf16.mxu1 %v6842_v1 }
  0xb8   : > { %5740 = vmatpush3.bf16.msra.mxu0 %v6600_v54  ;;  %v6651_v54 = vld [vmem:[%s8193_s1 + $0x218] sm:$0xff]  }
  0xb9   : > { %5920 = vmatpush3.bf16.msra.mxu1 %v6601_v55  ;;  %5741 = vmatprep.subr.bf16.mxu0 %v6842_v1  ;;  %v6652_v55 = vld [vmem:[%s8193_s1 + $0x220] sm:$0xff]  }
  0xba   : > { %5921 = vmatprep.subr.bf16.mxu1 %v6842_v1 }
  0xbc   : > { %5742 = vmatpush3.bf16.msra.mxu0 %v6602_v56  ;;  %v6653_v56 = vld [vmem:[%s8193_s1 + $0x220] sm:$0xff]  }
  0xbd   : > { %5922 = vmatpush3.bf16.msra.mxu1 %v6603_v57  ;;  %5743 = vmatprep.subr.bf16.mxu0 %v6842_v1  ;;  %v6654_v57 = vld [vmem:[%s8193_s1 + $0x228] sm:$0xff]  }
  0xbe   : > { %5923 = vmatprep.subr.bf16.mxu1 %v6842_v1 }
  0xc0   : > { %5744 = vmatpush3.bf16.msra.mxu0 %v6604_v58  ;;  %v6655_v58 = vld [vmem:[%s8193_s1 + $0x228] sm:$0xff]  }
  0xc1   : > { %5924 = vmatpush3.bf16.msra.mxu1 %v6605_v59  ;;  %5745 = vmatprep.subr.bf16.mxu0 %v6842_v1  ;;  %v6656_v59 = vld [vmem:[%s8193_s1 + $0x230] sm:$0xff]  }
  0xc2   : > { %5925 = vmatprep.subr.bf16.mxu1 %v6842_v1 }
  0xc4   : > { %5746 = vmatpush3.bf16.msra.mxu0 %v6606_v62  ;;  %v6658_v62 = vld [vmem:[%s8193_s1 + $0x238] sm:$0xff]  }
  0xc5   : > { %5926 = vmatpush3.bf16.msra.mxu1 %v6607_v63  ;;  %5751 = vmatprep.subr.bf16.mxu0 %v6842_v1  ;;  %v6661_v63 = vld [vmem:[%s6929_s12 + $0xc] ss:$0 sps:$4 sm:$0x66]  }
  0xc6   : > { %5931 = vmatprep.subr.bf16.mxu1 %v6842_v1 }
  0xc7   : > { %5748 = vmatmul.mubr.bf16.vlgmr.msra.gmra.mrb[0].mxu0 %v847_v0  ;;  %v6659_v0 = vld [vmem:[%s8193_s1 + $0x238] sm:$0xff]  }
  0xc8   : > { %5752 = vmatpush3.bf16.msra.mxu0 %v6609_v2  ;;  %5928 = vmatmul.mubr.bf16.vlgmr.msra.gmra.mrb[0].mxu1 %v1868_v3  ;;  %v1185_v2 = vrot.slane %v6660_v61, 1  ;;  %v2203_v3 = vrot.slane %v6661_v63, 1  ;;  %v6709_v61 = vld [vmem:[%s8193_s1 + $0xb0] sm:$0xff]   ;;  %v6710_v63 = vld [vmem:[%s8193_s1 + $0xb8] sm:$0xff]  }
  0xc9   : > { %5932 = vmatpush3.bf16.msra.mxu1 %v6611_v4  ;;  %5753 = vmatprep.subr.bf16.mxu0 %v6842_v1  ;;  %v6662_v4 = vld [vmem:[%s8193_s1 + $0x40] sm:$0xff]  }
  0xca   : > { %5933 = vmatprep.subr.bf16.mxu1 %v6842_v1  ;;  %5767 = vmatprep.mubr.msk.bf16.mxu0 %vm6843_vm0, %v6842_v1 }
  0xcb   : > { %5947 = vmatprep.mubr.msk.bf16.mxu1 %vm6843_vm0, %v6842_v1 }
  0xcc   : > { %5754 = vmatpush3.bf16.msra.mxu0 %v6612_v5  ;;  %v6663_v5 = vld [vmem:[%s8193_s1 + $0x40] sm:$0xff]  }
  0xcd   : > { %5934 = vmatpush3.bf16.msra.mxu1 %v6613_v6  ;;  %5755 = vmatprep.subr.bf16.mxu0 %v6842_v1  ;;  %v6664_v6 = vld [vmem:[%s8193_s1 + $0x48] sm:$0xff]  }
  0xce   : > { %5935 = vmatprep.subr.bf16.mxu1 %v6842_v1 }
  0xd0   : > { %5756 = vmatpush3.bf16.msra.mxu0 %v6614_v7  ;;  %v6665_v7 = vld [vmem:[%s8193_s1 + $0x48] sm:$0xff]  }
  0xd1   : > { %5936 = vmatpush3.bf16.msra.mxu1 %v6615_v8  ;;  %5757 = vmatprep.subr.bf16.mxu0 %v6842_v1  ;;  %v6666_v8 = vld [vmem:[%s8193_s1 + $0x50] sm:$0xff]  }
  0xd2   : > { %5937 = vmatprep.subr.bf16.mxu1 %v6842_v1 }
  0xd4   : > { %5758 = vmatpush3.bf16.msra.mxu0 %v6616_v9  ;;  %v6667_v9 = vld [vmem:[%s8193_s1 + $0x50] sm:$0xff]  }
  0xd5   : > { %5938 = vmatpush3.bf16.msra.mxu1 %v6617_v10  ;;  %5759 = vmatprep.subr.bf16.mxu0 %v6842_v1  ;;  %v6668_v10 = vld [vmem:[%s8193_s1 + $0x58] sm:$0xff]  }
  0xd6   : > { %5939 = vmatprep.subr.bf16.mxu1 %v6842_v1 }
  0xd8   : > { %5760 = vmatpush3.bf16.msra.mxu0 %v6618_v11  ;;  %v6669_v11 = vld [vmem:[%s8193_s1 + $0x58] sm:$0xff]  }
  0xd9   : > { %5940 = vmatpush3.bf16.msra.mxu1 %v6619_v12  ;;  %5761 = vmatprep.subr.bf16.mxu0 %v6842_v1  ;;  %v6670_v12 = vld [vmem:[%s8193_s1 + $0x60] sm:$0xff]  }
  0xda   : > { %5941 = vmatprep.subr.bf16.mxu1 %v6842_v1 }
  0xdc   : > { %5762 = vmatpush3.bf16.msra.mxu0 %v6620_v13  ;;  %v6671_v13 = vld [vmem:[%s8193_s1 + $0x60] sm:$0xff]  }
  0xdd   : > { %5942 = vmatpush3.bf16.msra.mxu1 %v6621_v14  ;;  %5763 = vmatprep.subr.bf16.mxu0 %v6842_v1  ;;  %v6678_v14 = vld [vmem:[%s6929_s12 + $0x8] ss:$0 sps:$4 sm:$0x77]  }
  0xde   : > { %5943 = vmatprep.subr.bf16.mxu1 %v6842_v1 }
  0xe0   : > { %5764 = vmatpush3.bf16.msra.mxu0 %v6622_v15  ;;  %v6672_v15 = vld [vmem:[%s8193_s1 + $0x68] sm:$0xff]  }
  0xe1   : > { %5944 = vmatpush3.bf16.msra.mxu1 %v6623_v16  ;;  %5765 = vmatprep.subr.bf16.mxu0 %v6842_v1  ;;  %v6680_v16 = vld [vmem:[%s6929_s12 + $0xc] ss:$0 sps:$4 sm:$0x77]  }
  0xe2   : > { %5945 = vmatprep.subr.bf16.mxu1 %v6842_v1 }
  0xe4   : > { %5766 = vmatpush3.bf16.msra.mxu0 %v6624_v17  ;;  %v6673_v17 = vld [vmem:[%s8193_s1 + $0x68] sm:$0xff]  }
  0xe5   : > { %5946 = vmatpush3.bf16.msra.mxu1 %v6625_v18  ;;  %5771 = vmatprep.subr.bf16.mxu0 %v6842_v1  ;;  %v2340_v18 = vshll.u32 %v6678_v14, 16 }
  0xe6   : > { %5951 = vmatprep.subr.bf16.mxu1 %v6842_v1 }
  0xe7   : > { %5768 = vmatmul.mubr.bf16.vlgmr.msra.gmra.mrb[0].mxu0 %v4577_v19  ;;  %v6674_v19 = vld [vmem:[%s8193_s1 + $0x70] sm:$0xff]  }
  0xe8   : > { %5772 = vmatpush3.bf16.msra.mxu0 %v6626_v20  ;;  %5948 = vmatmul.mubr.bf16.vlgmr.msra.gmra.mrb[0].mxu1 %v4794_v21  ;;  %v3347_v20 = vshll.u32 %v6680_v16, 16  ;;  %v6675_v21 = vld [vmem:[%s8193_s1 + $0x70] sm:$0xff]  }
  0xe9   : > { %5952 = vmatpush3.bf16.msra.mxu1 %v6627_v22  ;;  %5773 = vmatprep.subr.bf16.mxu0 %v6842_v1  ;;  %v2338_v22 = vshrl.u32 %v6678_v14, 16  ;;  %v6723_v14 = vld [vmem:[%s8193_s1 + $0xe0] sm:$0xff]  }
  0xea   : > { %5953 = vmatprep.subr.bf16.mxu1 %v6842_v1  ;;  %5787 = vmatprep.mubr.msk.bf16.mxu0 %vm6843_vm0, %v6842_v1 }
  0xeb   : > { %5967 = vmatprep.mubr.msk.bf16.mxu1 %vm6843_vm0, %v6842_v1 }
  0xec   : > { %5774 = vmatpush3.bf16.msra.mxu0 %v6628_v23  ;;  %v2342_v23 = vrot.slane %v2340_v18, 1  ;;  %v6727_v18 = vld [vmem:[%s8193_s1 + $0xf0] sm:$0xff]  }
  0xed   : > { %5954 = vmatpush3.bf16.msra.mxu1 %v6629_v24  ;;  %5775 = vmatprep.subr.bf16.mxu0 %v6842_v1  ;;  %v6676_v24 = vld [vmem:[%s8193_s1 + $0x78] sm:$0xff]  }
  0xee   : > { %5955 = vmatprep.subr.bf16.mxu1 %v6842_v1 }
  0xf0   : > { %5776 = vmatpush3.bf16.msra.mxu0 %v6630_v25  ;;  %v3345_v25 = vshrl.u32 %v6680_v16, 16  ;;  %v6725_v16 = vld [vmem:[%s8193_s1 + $0xe8] sm:$0xff]  }
  0xf1   : > { %5956 = vmatpush3.bf16.msra.mxu1 %v6631_v26  ;;  %5777 = vmatprep.subr.bf16.mxu0 %v6842_v1  ;;  %v3349_v26 = vrot.slane %v3347_v20, 1  ;;  %v6729_v20 = vld [vmem:[%s8193_s1 + $0xf8] sm:$0xff]  }
  0xf2   : > { %5957 = vmatprep.subr.bf16.mxu1 %v6842_v1 }
  0xf4   : > { %5778 = vmatpush3.bf16.msra.mxu0 %v6632_v27  ;;  %v6677_v27 = vld [vmem:[%s8193_s1 + $0x78] sm:$0xff]  }
  0xf5   : > { %5958 = vmatpush3.bf16.msra.mxu1 %v6633_v28  ;;  %5779 = vmatprep.subr.bf16.mxu0 %v6842_v1  ;;  %v2343_v28 = vor.u32 %v2342_v23, %v2338_v22  ;;  %v6730_v22 = vld [vmem:[%s8193_s1 + $0x100] sm:$0xff]   ;;  %v5149_v23 = vld [vmem:[%s6929_s12 + $0x10] sm:$0x3] }
  0xf6   : > { %5959 = vmatprep.subr.bf16.mxu1 %v6842_v1 }
  0xf8   : > { %5780 = vmatpush3.bf16.msra.mxu0 %v6634_v29  ;;  %v6679_v29 = vld [vmem:[%s8193_s1] sm:$0xff]  }
  0xf9   : > { %5960 = vmatpush3.bf16.msra.mxu1 %v6635_v30  ;;  %5781 = vmatprep.subr.bf16.mxu0 %v6842_v1  ;;  %v3350_v30 = vor.u32 %v3349_v26, %v3345_v25  ;;  %v6732_v25 = vld [vmem:[%s8193_s1 + $0x108] sm:$0xff]  }
  0xfa   : > { %5961 = vmatprep.subr.bf16.mxu1 %v6842_v1  ;;  %v6733_v26 = vld [vmem:[%s8193_s1 + $0x108] sm:$0xff]  }
  0xfc   : > { %5782 = vmatpush3.bf16.msra.mxu0 %v6636_v33  ;;  %v6683_v33 = vld [vmem:[%s8193_s1 + $0x8] sm:$0xff]  }
  0xfd   : > { %5962 = vmatpush3.bf16.msra.mxu1 %v6637_v34  ;;  %5783 = vmatprep.subr.bf16.mxu0 %v6842_v1  ;;  %v6684_v34 = vld [vmem:[%s8193_s1 + $0x10] sm:$0xff]  }
  0xfe   : > { %5963 = vmatprep.subr.bf16.mxu1 %v6842_v1 }
 0x100   : > { %5784 = vmatpush3.bf16.msra.mxu0 %v6638_v35  ;;  %v6685_v35 = vld [vmem:[%s8193_s1 + $0x10] sm:$0xff]  }
 0x101   : > { %5964 = vmatpush3.bf16.msra.mxu1 %v6639_v37  ;;  %5785 = vmatprep.subr.bf16.mxu0 %v6842_v1  ;;  %v6687_v37 = vld [vmem:[%s8193_s1 + $0x18] sm:$0xff]  }
 0x102   : > { %5965 = vmatprep.subr.bf16.mxu1 %v6842_v1 }
 0x104   : > { %5786 = vmatpush3.bf16.msra.mxu0 %v6640_v39  ;;  %v6689_v39 = vld [vmem:[%s8193_s1 + $0x20] sm:$0xff]  }
 0x105   : > { %5966 = vmatpush3.bf16.msra.mxu1 %v6641_v42  ;;  %5791 = vmatprep.subr.bf16.mxu0 %v6842_v1  ;;  %v6692_v42 = vld [vmem:[%s8193_s1 + $0x30] sm:$0xff]  }
 0x106   : > { %5971 = vmatprep.subr.bf16.mxu1 %v6842_v1 }
 0x107   : > { %5788 = vmatmul.mubr.bf16.vlgmr.msra.gmra.mrb[0].mxu0 %v1073_v45  ;;  %v6695_v45 = vld [vmem:[%s8193_s1 + $0x38] sm:$0xff]  }
 0x108   : > { %5792 = vmatpush3.bf16.msra.mxu0 %v6643_v46  ;;  %5968 = vmatmul.mubr.bf16.vlgmr.msra.gmra.mrb[0].mxu1 %v2092_v47  ;;  %v4872_v46 = vld [vmem:[%s6929_s12 + $0x8] sm:$0x3]  ;;  %v6696_v47 = vld [vmem:[%s8193_s1 + $0x80] sm:$0xff]  }
 0x109   : > { %5972 = vmatpush3.bf16.msra.mxu1 %v6645_v48  ;;  %5793 = vmatprep.subr.bf16.mxu0 %v6842_v1  ;;  %v5088_v48 = vld [vmem:[%s6929_s12 + $0xc] sm:$0x3] }
 0x10a   : > { %5973 = vmatprep.subr.bf16.mxu1 %v6842_v1  ;;  %5807 = vmatprep.mubr.msk.bf16.mxu0 %vm6843_vm0, %v6842_v1 }
 0x10b   : > { %5987 = vmatprep.mubr.msk.bf16.mxu1 %vm6843_vm0, %v6842_v1 }
 0x10c   : > { %5794 = vmatpush3.bf16.msra.mxu0 %v6646_v49  ;;  %v6697_v49 = vld [vmem:[%s8193_s1 + $0x80] sm:$0xff]  }
 0x10d   : > { %5974 = vmatpush3.bf16.msra.mxu1 %v6647_v50  ;;  %5795 = vmatprep.subr.bf16.mxu0 %v6842_v1  ;;  %v6698_v50 = vld [vmem:[%s8193_s1 + $0x88] sm:$0xff]  }
 0x10e   : > { %5975 = vmatprep.subr.bf16.mxu1 %v6842_v1 }
 0x110   : > { %5796 = vmatpush3.bf16.msra.mxu0 %v6648_v51  ;;  %v6699_v51 = vld [vmem:[%s8193_s1 + $0x88] sm:$0xff]  }
 0x111   : > { %5976 = vmatpush3.bf16.msra.mxu1 %v6649_v52  ;;  %5797 = vmatprep.subr.bf16.mxu0 %v6842_v1  ;;  %v6700_v52 = vld [vmem:[%s8193_s1 + $0x90] sm:$0xff]  }
 0x112   : > { %5977 = vmatprep.subr.bf16.mxu1 %v6842_v1 }
 0x114   : > { %5798 = vmatpush3.bf16.msra.mxu0 %v6650_v53  ;;  %v6701_v53 = vld [vmem:[%s8193_s1 + $0x90] sm:$0xff]  }
 0x115   : > { %5978 = vmatpush3.bf16.msra.mxu1 %v6651_v54  ;;  %5799 = vmatprep.subr.bf16.mxu0 %v6842_v1  ;;  %v6702_v54 = vld [vmem:[%s8193_s1 + $0x98] sm:$0xff]  }
 0x116   : > { %5979 = vmatprep.subr.bf16.mxu1 %v6842_v1 }
 0x118   : > { %5800 = vmatpush3.bf16.msra.mxu0 %v6652_v55  ;;  %v6703_v55 = vld [vmem:[%s8193_s1 + $0x98] sm:$0xff]  }
 0x119   : > { %5980 = vmatpush3.bf16.msra.mxu1 %v6653_v56  ;;  %5801 = vmatprep.subr.bf16.mxu0 %v6842_v1  ;;  %v6704_v56 = vld [vmem:[%s8193_s1 + $0xa0] sm:$0xff]  }
 0x11a   : > { %5981 = vmatprep.subr.bf16.mxu1 %v6842_v1 }
 0x11c   : > { %5802 = vmatpush3.bf16.msra.mxu0 %v6654_v57  ;;  %v6705_v57 = vld [vmem:[%s8193_s1 + $0xa0] sm:$0xff]  }
 0x11d   : > { %5982 = vmatpush3.bf16.msra.mxu1 %v6655_v58  ;;  %5803 = vmatprep.subr.bf16.mxu0 %v6842_v1  ;;  %v6706_v58 = vld [vmem:[%s8193_s1 + $0xa8] sm:$0xff]  }
 0x11e   : > { %5983 = vmatprep.subr.bf16.mxu1 %v6842_v1 }
 0x120   : > { %5804 = vmatpush3.bf16.msra.mxu0 %v6656_v59  ;;  %v6707_v59 = vld [vmem:[%s8193_s1 + $0xa8] sm:$0xff]  }
 0x121   : > { %5984 = vmatpush3.bf16.msra.mxu1 %v6657_v60  ;;  %5805 = vmatprep.subr.bf16.mxu0 %v6842_v1  ;;  %v6708_v60 = vld [vmem:[%s8193_s1 + $0xb0] sm:$0xff]  }
 0x122   : > { %5985 = vmatprep.subr.bf16.mxu1 %v6842_v1 }
 0x124   : > { %5806 = vmatpush3.bf16.msra.mxu0 %v6658_v62  ;;  %v6712_v62 = vld [vmem:[%s6929_s12 + $0x8] ss:$0 sps:$4 sm:$0x66]  }
 0x125   : > { %5986 = vmatpush3.bf16.msra.mxu1 %v6659_v0  ;;  %5991 = vmatprep.subr.bf16.mxu0 %v6842_v1  ;;  %v6714_v0 = vld [vmem:[%s6929_s12 + $0xc] ss:$0 sps:$4 sm:$0x66]  }
 0x126   : > { %6171 = vmatprep.subr.bf16.mxu1 %v6842_v1 }
 0x127   : > { %5808 = vmatmul.mubr.bf16.vlgmr.msra.gmra.mrb[0].mxu0 %v1185_v2  ;;  %v6711_v2 = vld [vmem:[%s8193_s1 + $0xb8] sm:$0xff]  }
 0x128   : > { %5988 = vmatmul.mubr.bf16.vlgmr.msra.gmra.mrb[0].mxu1 %v2203_v3  ;;  %5992 = vmatpush3.bf16.msra.mxu0 %v6662_v4  ;;  %v2541_v3 = vrot.slane %v6712_v62, 1  ;;  %v6713_v4 = vld [vmem:[%s8193_s1 + $0xc0] sm:$0xff]   ;;  %v6761_v62 = vld [vmem:[%s8193_s1 + $0x170] sm:$0xff]  }
 0x129   : > { %6172 = vmatpush3.bf16.msra.mxu1 %v6663_v5  ;;  %5993 = vmatprep.subr.bf16.mxu0 %v6842_v1  ;;  %v3548_v5 = vrot.slane %v6714_v0, 1  ;;  %v6762_v0 = vld [vmem:[%s8193_s1 + $0x178] sm:$0xff]  }
 0x12a   : > { %6173 = vmatprep.subr.bf16.mxu1 %v6842_v1  ;;  %6007 = vmatprep.mubr.msk.bf16.mxu0 %vm6843_vm0, %v6842_v1 }
 0x12b   : > { %6187 = vmatprep.mubr.msk.bf16.mxu1 %vm6843_vm0, %v6842_v1 }
 0x12c   : > { %5994 = vmatpush3.bf16.msra.mxu0 %v6664_v6  ;;  %v6715_v6 = vld [vmem:[%s8193_s1 + $0xc0] sm:$0xff]  }
 0x12d   : > { %6174 = vmatpush3.bf16.msra.mxu1 %v6665_v7  ;;  %5995 = vmatprep.subr.bf16.mxu0 %v6842_v1  ;;  %v6716_v7 = vld [vmem:[%s8193_s1 + $0xc8] sm:$0xff]  }
 0x12e   : > { %6175 = vmatprep.subr.bf16.mxu1 %v6842_v1 }
 0x130   : > { %5996 = vmatpush3.bf16.msra.mxu0 %v6666_v8  ;;  %v6717_v8 = vld [vmem:[%s8193_s1 + $0xc8] sm:$0xff]  }
 0x131   : > { %6176 = vmatpush3.bf16.msra.mxu1 %v6667_v9  ;;  %5997 = vmatprep.subr.bf16.mxu0 %v6842_v1  ;;  %v6718_v9 = vld [vmem:[%s8193_s1 + $0xd0] sm:$0xff]  }
 0x132   : > { %6177 = vmatprep.subr.bf16.mxu1 %v6842_v1 }
 0x134   : > { %5998 = vmatpush3.bf16.msra.mxu0 %v6668_v10  ;;  %v6719_v10 = vld [vmem:[%s8193_s1 + $0xd0] sm:$0xff]  }
 0x135   : > { %6178 = vmatpush3.bf16.msra.mxu1 %v6669_v11  ;;  %5999 = vmatprep.subr.bf16.mxu0 %v6842_v1  ;;  %v6720_v11 = vld [vmem:[%s8193_s1 + $0xd8] sm:$0xff]  }
 0x136   : > { %6179 = vmatprep.subr.bf16.mxu1 %v6842_v1 }
 0x138   : > { %6000 = vmatpush3.bf16.msra.mxu0 %v6670_v12  ;;  %v6721_v12 = vld [vmem:[%s8193_s1 + $0xd8] sm:$0xff]  }
 0x139   : > { %6180 = vmatpush3.bf16.msra.mxu1 %v6671_v13  ;;  %6001 = vmatprep.subr.bf16.mxu0 %v6842_v1  ;;  %v6722_v13 = vld [vmem:[%s8193_s1 + $0xe0] sm:$0xff]  }
 0x13a   : > { %6181 = vmatprep.subr.bf16.mxu1 %v6842_v1 }
 0x13c   : > { %6002 = vmatpush3.bf16.msra.mxu0 %v6672_v15  ;;  %v6724_v15 = vld [vmem:[%s8193_s1 + $0xe8] sm:$0xff]  }
 0x13d   : > { %6182 = vmatpush3.bf16.msra.mxu1 %v6673_v17  ;;  %6003 = vmatprep.subr.bf16.mxu0 %v6842_v1  ;;  %v6726_v17 = vld [vmem:[%s8193_s1 + $0xf0] sm:$0xff]  }
 0x13e   : > { %6183 = vmatprep.subr.bf16.mxu1 %v6842_v1 }
 0x140   : > { %6004 = vmatpush3.bf16.msra.mxu0 %v6674_v19  ;;  %v6728_v19 = vld [vmem:[%s8193_s1 + $0xf8] sm:$0xff]  }
 0x141   : > { %6184 = vmatpush3.bf16.msra.mxu1 %v6675_v21  ;;  %6005 = vmatprep.subr.bf16.mxu0 %v6842_v1  ;;  %v4933_v21 = vld [vmem:[%s6929_s12 + $0xc] sm:$0x3] }
 0x142   : > { %6185 = vmatprep.subr.bf16.mxu1 %v6842_v1 }
 0x144   : > { %6006 = vmatpush3.bf16.msra.mxu0 %v6676_v24  ;;  %v6731_v24 = vld [vmem:[%s8193_s1 + $0x100] sm:$0xff]  }
 0x145   : > { %6186 = vmatpush3.bf16.msra.mxu1 %v6677_v27  ;;  %6011 = vmatprep.subr.bf16.mxu0 %v6842_v1  ;;  %v6734_v27 = vld [vmem:[%s8193_s1 + $0x110] sm:$0xff]  }
 0x146   : > { %6191 = vmatprep.subr.bf16.mxu1 %v6842_v1 }
 0x147   : > { %6008 = vmatmul.mubr.bf16.vlgmr.msra.gmra.mrb[4].mxu0 %v2343_v28  ;;  %v6735_v28 = vld [vmem:[%s8193_s1 + $0x110] sm:$0xff]  }
 0x148   : > { %6012 = vmatpush3.bf16.msra.mxu0 %v6679_v29  ;;  %6188 = vmatmul.mubr.bf16.vlgmr.msra.gmra.mrb[4].mxu1 %v3350_v30  ;;  %v6736_v29 = vld [vmem:[%s8193_s1 + $0x118] sm:$0xff]  }
 0x149   : > { %6192 = vmatpush3.bf16.msra.mxu1 %v6681_v31  ;;  %6013 = vmatprep.subr.bf16.mxu0 %v6842_v1  ;;  %v6737_v30 = vld [vmem:[%s8193_s1 + $0x118] sm:$0xff]   ;;  %v6738_v31 = vld [vmem:[%s8193_s1 + $0x120] sm:$0xff]  }
 0x14a   : > { %6193 = vmatprep.subr.bf16.mxu1 %v6842_v1  ;;  %6027 = vmatprep.mubr.msk.bf16.mxu0 %vm6843_vm0, %v6842_v1 }
 0x14b   : > { %6207 = vmatprep.mubr.msk.bf16.mxu1 %vm6843_vm0, %v6842_v1 }
 0x14c   : > { %6014 = vmatpush3.bf16.msra.mxu0 %v6682_v32  ;;  %v6739_v32 = vld [vmem:[%s8193_s1 + $0x120] sm:$0xff]  }
 0x14d   : > { %6194 = vmatpush3.bf16.msra.mxu1 %v6683_v33  ;;  %6015 = vmatprep.subr.bf16.mxu0 %v6842_v1  ;;  %v6746_v33 = vld [vmem:[%s6929_s12 + $0xc] ss:$0 sps:$4 sm:$0x77]  }
 0x14e   : > { %6195 = vmatprep.subr.bf16.mxu1 %v6842_v1 }
 0x150   : > { %6016 = vmatpush3.bf16.msra.mxu0 %v6684_v34  ;;  %v6740_v34 = vld [vmem:[%s8193_s1 + $0x128] sm:$0xff]  }
 0x151   : > { %6196 = vmatpush3.bf16.msra.mxu1 %v6685_v35  ;;  %6017 = vmatprep.subr.bf16.mxu0 %v6842_v1  ;;  %v6748_v35 = vld [vmem:[%s6929_s12 + $0x10] ss:$0 sps:$4 sm:$0x77]  }
 0x152   : > { %6197 = vmatprep.subr.bf16.mxu1 %v6842_v1 }
 0x154   : > { %6018 = vmatpush3.bf16.msra.mxu0 %v6686_v36  ;;  %v6741_v36 = vld [vmem:[%s8193_s1 + $0x128] sm:$0xff]  }
 0x155   : > { %6198 = vmatpush3.bf16.msra.mxu1 %v6687_v37  ;;  %6019 = vmatprep.subr.bf16.mxu0 %v6842_v1  ;;  %v2761_v37 = vshll.u32 %v6746_v33, 16 }
 0x156   : > { %6199 = vmatprep.subr.bf16.mxu1 %v6842_v1 }
 0x158   : > { %6020 = vmatpush3.bf16.msra.mxu0 %v6688_v38  ;;  %v6742_v38 = vld [vmem:[%s8193_s1 + $0x130] sm:$0xff]  }
 0x159   : > { %6200 = vmatpush3.bf16.msra.mxu1 %v6689_v39  ;;  %6021 = vmatprep.subr.bf16.mxu0 %v6842_v1  ;;  %v3768_v39 = vshll.u32 %v6748_v35, 16 }
 0x15a   : > { %6201 = vmatprep.subr.bf16.mxu1 %v6842_v1 }
 0x15c   : > { %6022 = vmatpush3.bf16.msra.mxu0 %v6690_v40  ;;  %v6743_v40 = vld [vmem:[%s8193_s1 + $0x130] sm:$0xff]  }
 0x15d   : > { %6202 = vmatpush3.bf16.msra.mxu1 %v6691_v41  ;;  %6023 = vmatprep.subr.bf16.mxu0 %v6842_v1  ;;  %v2759_v41 = vshrl.u32 %v6746_v33, 16 }
 0x15e   : > { %6203 = vmatprep.subr.bf16.mxu1 %v6842_v1 }
 0x160   : > { %6024 = vmatpush3.bf16.msra.mxu0 %v6692_v42  ;;  %v2763_v42 = vrot.slane %v2761_v37, 1 }
 0x161   : > { %6204 = vmatpush3.bf16.msra.mxu1 %v6693_v43  ;;  %6025 = vmatprep.subr.bf16.mxu0 %v6842_v1  ;;  %v6744_v43 = vld [vmem:[%s8193_s1 + $0x138] sm:$0xff]  }
 0x162   : > { %6205 = vmatprep.subr.bf16.mxu1 %v6842_v1 }
 0x164   : > { %6026 = vmatpush3.bf16.msra.mxu0 %v6694_v44  ;;  %v3766_v44 = vshrl.u32 %v6748_v35, 16 }
 0x165   : > { %6206 = vmatpush3.bf16.msra.mxu1 %v6695_v45  ;;  %6031 = vmatprep.subr.bf16.mxu0 %v6842_v1  ;;  %v3770_v45 = vrot.slane %v3768_v39, 1 }
 0x166   : > { %6211 = vmatprep.subr.bf16.mxu1 %v6842_v1 }
 0x167   : > { %6028 = vmatmul.mubr.bf16.vlgmr.msra.gmra.mrb[4].mxu0 %v4872_v46  ;;  %v6745_v46 = vld [vmem:[%s8193_s1 + $0x138] sm:$0xff]  }
 0x168   : > { %6032 = vmatpush3.bf16.msra.mxu0 %v6696_v47  ;;  %6208 = vmatmul.mubr.bf16.vlgmr.msra.gmra.mrb[4].mxu1 %v5088_v48  ;;  %v2764_v47 = vor.u32 %v2763_v42, %v2759_v41  ;;  %v6747_v48 = vld [vmem:[%s8193_s1 + $0x140] sm:$0xff]   ;;  %v5226_v42 = vld [vmem:[%s6929_s12 + $0x14] sm:$0x3] }
 0x169   : > { %6212 = vmatpush3.bf16.msra.mxu1 %v6697_v49  ;;  %6033 = vmatprep.subr.bf16.mxu0 %v6842_v1  ;;  %v3771_v49 = vor.u32 %v3770_v45, %v3766_v44  ;;  %v6782_v41 = vld [vmem:[%s8193_s1 + $0x1c0] sm:$0xff]   ;;  %v6784_v44 = vld [vmem:[%s8193_s1 + $0x1c8] sm:$0xff]  }
 0x16a   : > { %6213 = vmatprep.subr.bf16.mxu1 %v6842_v1  ;;  %6047 = vmatprep.mubr.msk.bf16.mxu0 %vm6843_vm0, %v6842_v1  ;;  %v6785_v45 = vld [vmem:[%s8193_s1 + $0x1c8] sm:$0xff]  }
 0x16b   : > { %6227 = vmatprep.mubr.msk.bf16.mxu1 %vm6843_vm0, %v6842_v1 }
 0x16c   : > { %6034 = vmatpush3.bf16.msra.mxu0 %v6698_v50  ;;  %v6749_v50 = vld [vmem:[%s8193_s1 + $0x140] sm:$0xff]  }
 0x16d   : > { %6214 = vmatpush3.bf16.msra.mxu1 %v6699_v51  ;;  %6035 = vmatprep.subr.bf16.mxu0 %v6842_v1  ;;  %v6750_v51 = vld [vmem:[%s8193_s1 + $0x148] sm:$0xff]  }
 0x16e   : > { %6215 = vmatprep.subr.bf16.mxu1 %v6842_v1 }
 0x170   : > { %6036 = vmatpush3.bf16.msra.mxu0 %v6700_v52  ;;  %v6751_v52 = vld [vmem:[%s8193_s1 + $0x148] sm:$0xff]  }
 0x171   : > { %6216 = vmatpush3.bf16.msra.mxu1 %v6701_v53  ;;  %6037 = vmatprep.subr.bf16.mxu0 %v6842_v1  ;;  %v6752_v53 = vld [vmem:[%s8193_s1 + $0x150] sm:$0xff]  }
 0x172   : > { %6217 = vmatprep.subr.bf16.mxu1 %v6842_v1 }
 0x174   : > { %6038 = vmatpush3.bf16.msra.mxu0 %v6702_v54  ;;  %v6753_v54 = vld [vmem:[%s8193_s1 + $0x150] sm:$0xff]  }
 0x175   : > { %6218 = vmatpush3.bf16.msra.mxu1 %v6703_v55  ;;  %6039 = vmatprep.subr.bf16.mxu0 %v6842_v1  ;;  %v6754_v55 = vld [vmem:[%s8193_s1 + $0x158] sm:$0xff]  }
 0x176   : > { %6219 = vmatprep.subr.bf16.mxu1 %v6842_v1 }
 0x178   : > { %6040 = vmatpush3.bf16.msra.mxu0 %v6704_v56  ;;  %v6755_v56 = vld [vmem:[%s8193_s1 + $0x158] sm:$0xff]  }
 0x179   : > { %6220 = vmatpush3.bf16.msra.mxu1 %v6705_v57  ;;  %6041 = vmatprep.subr.bf16.mxu0 %v6842_v1  ;;  %v6756_v57 = vld [vmem:[%s8193_s1 + $0x160] sm:$0xff]  }
 0x17a   : > { %6221 = vmatprep.subr.bf16.mxu1 %v6842_v1 }
 0x17c   : > { %6042 = vmatpush3.bf16.msra.mxu0 %v6706_v58  ;;  %v6757_v58 = vld [vmem:[%s8193_s1 + $0x160] sm:$0xff]  }
 0x17d   : > { %6222 = vmatpush3.bf16.msra.mxu1 %v6707_v59  ;;  %6043 = vmatprep.subr.bf16.mxu0 %v6842_v1  ;;  %v6758_v59 = vld [vmem:[%s8193_s1 + $0x168] sm:$0xff]  }
 0x17e   : > { %6223 = vmatprep.subr.bf16.mxu1 %v6842_v1 }
 0x180   : > { %6044 = vmatpush3.bf16.msra.mxu0 %v6708_v60  ;;  %v6759_v60 = vld [vmem:[%s8193_s1 + $0x168] sm:$0xff]  }
 0x181   : > { %6224 = vmatpush3.bf16.msra.mxu1 %v6709_v61  ;;  %6045 = vmatprep.subr.bf16.mxu0 %v6842_v1  ;;  %v6760_v61 = vld [vmem:[%s8193_s1 + $0x170] sm:$0xff]  }
 0x182   : > { %6225 = vmatprep.subr.bf16.mxu1 %v6842_v1 }
 0x184   : > { %6046 = vmatpush3.bf16.msra.mxu0 %v6710_v63  ;;  %v6764_v63 = vld [vmem:[%s6929_s12 + $0xc] ss:$0 sps:$4 sm:$0x66]  }
 0x185   : > { %6226 = vmatpush3.bf16.msra.mxu1 %v6711_v2  ;;  %6051 = vmatprep.subr.bf16.mxu0 %v6842_v1  ;;  %v6766_v2 = vld [vmem:[%s6929_s12 + $0x10] ss:$0 sps:$4 sm:$0x66]  }
 0x186   : > { %6231 = vmatprep.subr.bf16.mxu1 %v6842_v1 }
 0x187   : > { %6048 = vmatmul.mubr.bf16.vlgmr.msra.gmra.mrb[4].mxu0 %v2541_v3  ;;  %v6763_v3 = vld [vmem:[%s8193_s1 + $0x178] sm:$0xff]  }
 0x188   : > { %6052 = vmatpush3.bf16.msra.mxu0 %v6713_v4  ;;  %6228 = vmatmul.mubr.bf16.vlgmr.msra.gmra.mrb[4].mxu1 %v3548_v5  ;;  %v2875_v4 = vrot.slane %v6764_v63, 1  ;;  %v6765_v5 = vld [vmem:[%s8193_s1 + $0x180] sm:$0xff]  }
 0x189   : > { %6232 = vmatpush3.bf16.msra.mxu1 %v6715_v6  ;;  %6053 = vmatprep.subr.bf16.mxu0 %v6842_v1  ;;  %v3882_v6 = vrot.slane %v6766_v2, 1  ;;  %v6797_v2 = vld [vmem:[%s8193_s1 + $0x1f8] sm:$0xff]  }
 0x18a   : > { %6233 = vmatprep.subr.bf16.mxu1 %v6842_v1  ;;  %6067 = vmatprep.mubr.msk.bf16.mxu0 %vm6843_vm0, %v6842_v1 }
 0x18b   : > { %6247 = vmatprep.mubr.msk.bf16.mxu1 %vm6843_vm0, %v6842_v1 }
 0x18c   : > { %6054 = vmatpush3.bf16.msra.mxu0 %v6716_v7  ;;  %v6767_v7 = vld [vmem:[%s8193_s1 + $0x180] sm:$0xff]  }
 0x18d   : > { %6234 = vmatpush3.bf16.msra.mxu1 %v6717_v8  ;;  %6055 = vmatprep.subr.bf16.mxu0 %v6842_v1  ;;  %v6768_v8 = vld [vmem:[%s8193_s1 + $0x188] sm:$0xff]  }
 0x18e   : > { %6235 = vmatprep.subr.bf16.mxu1 %v6842_v1 }
 0x190   : > { %6056 = vmatpush3.bf16.msra.mxu0 %v6718_v9  ;;  %v6769_v9 = vld [vmem:[%s8193_s1 + $0x188] sm:$0xff]  }
 0x191   : > { %6236 = vmatpush3.bf16.msra.mxu1 %v6719_v10  ;;  %6057 = vmatprep.subr.bf16.mxu0 %v6842_v1  ;;  %v6770_v10 = vld [vmem:[%s8193_s1 + $0x190] sm:$0xff]  }
 0x192   : > { %6237 = vmatprep.subr.bf16.mxu1 %v6842_v1 }
 0x194   : > { %6058 = vmatpush3.bf16.msra.mxu0 %v6720_v11  ;;  %v6771_v11 = vld [vmem:[%s8193_s1 + $0x190] sm:$0xff]  }
 0x195   : > { %6238 = vmatpush3.bf16.msra.mxu1 %v6721_v12  ;;  %6059 = vmatprep.subr.bf16.mxu0 %v6842_v1  ;;  %v6772_v12 = vld [vmem:[%s8193_s1 + $0x198] sm:$0xff]  }
 0x196   : > { %6239 = vmatprep.subr.bf16.mxu1 %v6842_v1 }
 0x198   : > { %6060 = vmatpush3.bf16.msra.mxu0 %v6722_v13  ;;  %v6773_v13 = vld [vmem:[%s8193_s1 + $0x198] sm:$0xff]  }
 0x199   : > { %6240 = vmatpush3.bf16.msra.mxu1 %v6723_v14  ;;  %6061 = vmatprep.subr.bf16.mxu0 %v6842_v1  ;;  %v6774_v14 = vld [vmem:[%s8193_s1 + $0x1a0] sm:$0xff]  }
 0x19a   : > { %6241 = vmatprep.subr.bf16.mxu1 %v6842_v1 }
 0x19c   : > { %6062 = vmatpush3.bf16.msra.mxu0 %v6724_v15  ;;  %v6775_v15 = vld [vmem:[%s8193_s1 + $0x1a0] sm:$0xff]  }
 0x19d   : > { %6242 = vmatpush3.bf16.msra.mxu1 %v6725_v16  ;;  %6063 = vmatprep.subr.bf16.mxu0 %v6842_v1  ;;  %v7992_v16 = vld [vmem:[%s8194_s2] ss:$0 sm:$0xff] }
 0x19e   : > { %6243 = vmatprep.subr.bf16.mxu1 %v6842_v1 }
 0x1a0   : > { %6064 = vmatpush3.bf16.msra.mxu0 %v6726_v17  ;;  %v6776_v17 = vld [vmem:[%s8193_s1 + $0x1a8] sm:$0xff]  }
 0x1a1   : > { %6244 = vmatpush3.bf16.msra.mxu1 %v6727_v18  ;;  %6065 = vmatprep.subr.bf16.mxu0 %v6842_v1  ;;  %v6777_v18 = vld [vmem:[%s8193_s1 + $0x1a8] sm:$0xff]  }
 0x1a2   : > { %6245 = vmatprep.subr.bf16.mxu1 %v6842_v1 }
 0x1a4   : > { %6066 = vmatpush3.bf16.msra.mxu0 %v6728_v19  ;;  %v8004_v19 = vld [vmem:[%s8195_s3] ss:$0 sm:$0xff] }
 0x1a5   : > { %6246 = vmatpush3.bf16.msra.mxu1 %v6729_v20  ;;  %6071 = vmatprep.subr.bf16.mxu0 %v6842_v1 }
 0x1a6   : > { %6251 = vmatprep.subr.bf16.mxu1 %v6842_v1 }
 0x1a7   : > { %6068 = vmatmul.mubr.bf16.vlgmr.msra.gmra.mrb[4].mxu0 %v4933_v21 }
 0x1a8   : > { %6072 = vmatpush3.bf16.msra.mxu0 %v6730_v22  ;;  %6248 = vmatmul.mubr.bf16.vlgmr.msra.gmra.mrb[4].mxu1 %v5149_v23 }
 0x1a9   : > { %6252 = vmatpush3.bf16.msra.mxu1 %v6731_v24  ;;  %6073 = vmatprep.subr.bf16.mxu0 %v6842_v1 }
 0x1aa   : > { %6253 = vmatprep.subr.bf16.mxu1 %v6842_v1  ;;  %6087 = vmatprep.mubr.msk.bf16.mxu0 %vm6843_vm0, %v6842_v1 }
 0x1ab   : > { %6267 = vmatprep.mubr.msk.bf16.mxu1 %vm6843_vm0, %v6842_v1 }
 0x1ac   : > { %6074 = vmatpush3.bf16.msra.mxu0 %v6732_v25 }
 0x1ad   : > { %6254 = vmatpush3.bf16.msra.mxu1 %v6733_v26  ;;  %6075 = vmatprep.subr.bf16.mxu0 %v6842_v1 }
 0x1ae   : > { %6255 = vmatprep.subr.bf16.mxu1 %v6842_v1 }
 0x1b0   : > { %6076 = vmatpush3.bf16.msra.mxu0 %v6734_v27  ;;  %v6778_v27 = vld [vmem:[%s8193_s1 + $0x1b0] sm:$0xff]  }
 0x1b1   : > { %6256 = vmatpush3.bf16.msra.mxu1 %v6735_v28  ;;  %6077 = vmatprep.subr.bf16.mxu0 %v6842_v1 }
 0x1b2   : > { %6257 = vmatprep.subr.bf16.mxu1 %v6842_v1 }
 0x1b4   : > { %6078 = vmatpush3.bf16.msra.mxu0 %v6736_v29 }
 0x1b5   : > { %6258 = vmatpush3.bf16.msra.mxu1 %v6737_v30  ;;  %6079 = vmatprep.subr.bf16.mxu0 %v6842_v1 }
 0x1b6   : > { %6259 = vmatprep.subr.bf16.mxu1 %v6842_v1 }
 0x1b8   : > { %6080 = vmatpush3.bf16.msra.mxu0 %v6738_v31  ;;  %v6779_v31 = vld [vmem:[%s8193_s1 + $0x1b0] sm:$0xff]  }
 0x1b9   : > { %6260 = vmatpush3.bf16.msra.mxu1 %v6739_v32  ;;  %6081 = vmatprep.subr.bf16.mxu0 %v6842_v1 }
 0x1ba   : > { %6261 = vmatprep.subr.bf16.mxu1 %v6842_v1 }
 0x1bc   : > { %6082 = vmatpush3.bf16.msra.mxu0 %v6740_v34 }
 0x1bd   : > { %6262 = vmatpush3.bf16.msra.mxu1 %v6741_v36  ;;  %6083 = vmatprep.subr.bf16.mxu0 %v6842_v1  ;;  %v6780_v36 = vld [vmem:[%s8193_s1 + $0x1b8] sm:$0xff]  }
 0x1be   : > { %6263 = vmatprep.subr.bf16.mxu1 %v6842_v1 }
 0x1c0   : > { %6084 = vmatpush3.bf16.msra.mxu0 %v6742_v38  ;;  %v6781_v38 = vld [vmem:[%s8193_s1 + $0x1b8] sm:$0xff]  }
 0x1c1   : > { %6264 = vmatpush3.bf16.msra.mxu1 %v6743_v40  ;;  %6085 = vmatprep.subr.bf16.mxu0 %v6842_v1  ;;  %v5010_v40 = vld [vmem:[%s6929_s12 + $0x10] sm:$0x3] }
 0x1c2   : > { %6265 = vmatprep.subr.bf16.mxu1 %v6842_v1 }
 0x1c4   : > { %6086 = vmatpush3.bf16.msra.mxu0 %v6744_v43  ;;  %v6783_v43 = vld [vmem:[%s8193_s1 + $0x1c0] sm:$0xff]  }
 0x1c5   : > { %6266 = vmatpush3.bf16.msra.mxu1 %v6745_v46  ;;  %6091 = vmatprep.subr.bf16.mxu0 %v6842_v1  ;;  %v6786_v46 = vld [vmem:[%s8193_s1 + $0x1d0] sm:$0xff]  }
 0x1c6   : > { %6271 = vmatprep.subr.bf16.mxu1 %v6842_v1 }
 0x1c7   : > { %6088 = vmatmul.mubr.bf16.vlgmr.msra.gmra.mrb[4].mxu0 %v2764_v47  ;;  %v6787_v47 = vld [vmem:[%s8193_s1 + $0x1d0] sm:$0xff]  }
 0x1c8   : > { %6092 = vmatpush3.bf16.msra.mxu0 %v6747_v48  ;;  %6268 = vmatmul.mubr.bf16.vlgmr.msra.gmra.mrb[4].mxu1 %v3771_v49  ;;  %v6788_v48 = vld [vmem:[%s8193_s1 + $0x1d8] sm:$0xff]  }
 0x1c9   : > { %6272 = vmatpush3.bf16.msra.mxu1 %v6749_v50  ;;  %6093 = vmatprep.subr.bf16.mxu0 %v6842_v1  ;;  %v6789_v49 = vld [vmem:[%s8193_s1 + $0x1d8] sm:$0xff]   ;;  %v6790_v50 = vld [vmem:[%s8193_s1 + $0x1e0] sm:$0xff]  }
 0x1ca   : > { %6273 = vmatprep.subr.bf16.mxu1 %v6842_v1  ;;  %6107 = vmatprep.mubr.msk.bf16.mxu0 %vm6843_vm0, %v6842_v1 }
 0x1cb   : > { %6287 = vmatprep.mubr.msk.bf16.mxu1 %vm6843_vm0, %v6842_v1 }
 0x1cc   : > { %6094 = vmatpush3.bf16.msra.mxu0 %v6750_v51  ;;  %v6791_v51 = vld [vmem:[%s8193_s1 + $0x1e0] sm:$0xff]  }
 0x1cd   : > { %6274 = vmatpush3.bf16.msra.mxu1 %v6751_v52  ;;  %6095 = vmatprep.subr.bf16.mxu0 %v6842_v1  ;;  %v6798_v52 = vld [vmem:[%s6929_s12 + $0x10] ss:$0 sps:$4 sm:$0x77]  }
 0x1ce   : > { %6275 = vmatprep.subr.bf16.mxu1 %v6842_v1 }
 0x1d0   : > { %6096 = vmatpush3.bf16.msra.mxu0 %v6752_v53  ;;  %v6792_v53 = vld [vmem:[%s8193_s1 + $0x1e8] sm:$0xff]  }
 0x1d1   : > { %6276 = vmatpush3.bf16.msra.mxu1 %v6753_v54  ;;  %6097 = vmatprep.subr.bf16.mxu0 %v6842_v1  ;;  %v6800_v54 = vld [vmem:[%s6929_s12 + $0x14] ss:$0 sps:$4 sm:$0x77]  }
 0x1d2   : > { %6277 = vmatprep.subr.bf16.mxu1 %v6842_v1  ;;  %v4101_v63 = vshrl.u32 %v6800_v54, 16 }
 0x1d4   : > { %6098 = vmatpush3.bf16.msra.mxu0 %v6754_v55  ;;  %v6793_v55 = vld [vmem:[%s8193_s1 + $0x1e8] sm:$0xff]  }
 0x1d5   : > { %6278 = vmatpush3.bf16.msra.mxu1 %v6755_v56  ;;  %6099 = vmatprep.subr.bf16.mxu0 %v6842_v1  ;;  %v3096_v56 = vshll.u32 %v6798_v52, 16 }
 0x1d6   : > { %6279 = vmatprep.subr.bf16.mxu1 %v6842_v1 }
 0x1d8   : > { %6100 = vmatpush3.bf16.msra.mxu0 %v6756_v57  ;;  %v6794_v57 = vld [vmem:[%s8193_s1 + $0x1f0] sm:$0xff]  }
 0x1d9   : > { %6280 = vmatpush3.bf16.msra.mxu1 %v6757_v58  ;;  %6101 = vmatprep.subr.bf16.mxu0 %v6842_v1  ;;  %v4103_v58 = vshll.u32 %v6800_v54, 16 }
 0x1da   : > { %6281 = vmatprep.subr.bf16.mxu1 %v6842_v1 }
 0x1dc   : > { %6102 = vmatpush3.bf16.msra.mxu0 %v6758_v59  ;;  %v6795_v59 = vld [vmem:[%s8193_s1 + $0x1f0] sm:$0xff]  }
 0x1dd   : > { %6282 = vmatpush3.bf16.msra.mxu1 %v6759_v60  ;;  %6103 = vmatprep.subr.bf16.mxu0 %v6842_v1  ;;  %v3094_v60 = vshrl.u32 %v6798_v52, 16 }
 0x1de   : > { %6283 = vmatprep.subr.bf16.mxu1 %v6842_v1 }
 0x1e0   : > { %6104 = vmatpush3.bf16.msra.mxu0 %v6760_v61  ;;  %v3098_v61 = vrot.slane %v3096_v56, 1 }
 0x1e1   : > { %6284 = vmatpush3.bf16.msra.mxu1 %v6761_v62  ;;  %6105 = vmatprep.subr.bf16.mxu0 %v6842_v1  ;;  %v6796_v62 = vld [vmem:[%s8193_s1 + $0x1f8] sm:$0xff]  }
 0x1e2   : > { %6285 = vmatprep.subr.bf16.mxu1 %v6842_v1 }
 0x1e4   : > { %6106 = vmatpush3.bf16.msra.mxu0 %v6762_v0  ;;  %v4105_v0 = vrot.slane %v4103_v58, 1 }
 0x1e5   : > { %6286 = vmatpush3.bf16.msra.mxu1 %v6763_v3  ;;  %6111 = vmatprep.subr.bf16.mxu0 %v6842_v1  ;;  %v3099_v3 = vor.u32 %v3098_v61, %v3094_v60 }
 0x1e6   : > { %6291 = vmatprep.subr.bf16.mxu1 %v6842_v1 }
 0x1e7   : > { %6108 = vmatmul.mubr.bf16.vlgmr.msra.gmra.mrb[4].mxu0 %v2875_v4  ;;  %v6799_v4 = vld [vmem:[%s8193_s1 + $0x200] sm:$0xff]  }
 0x1e8   : > { %6112 = vmatpush3.bf16.msra.mxu0 %v6765_v5  ;;  %6288 = vmatmul.mubr.bf16.vlgmr.msra.gmra.mrb[4].mxu1 %v3882_v6  ;;  %v4106_v5 = vor.u32 %v4105_v0, %v4101_v63  ;;  %v6801_v6 = vld [vmem:[%s8193_s1 + $0x200] sm:$0xff]  }
 0x1e9   : > { %6292 = vmatpush3.bf16.msra.mxu1 %v6767_v7  ;;  %6113 = vmatprep.subr.bf16.mxu0 %v6842_v1  ;;  %v6802_v7 = vld [vmem:[%s8193_s1 + $0x208] sm:$0xff]  }
 0x1ea   : > { %6293 = vmatprep.subr.bf16.mxu1 %v6842_v1  ;;  %6127 = vmatprep.mubr.msk.bf16.mxu0 %vm6843_vm0, %v6842_v1 }
 0x1eb   : > { %6307 = vmatprep.mubr.msk.bf16.mxu1 %vm6843_vm0, %v6842_v1 }
 0x1ec   : > { %6114 = vmatpush3.bf16.msra.mxu0 %v6768_v8  ;;  %v6803_v8 = vld [vmem:[%s8193_s1 + $0x208] sm:$0xff]  }
 0x1ed   : > { %6294 = vmatpush3.bf16.msra.mxu1 %v6769_v9  ;;  %6115 = vmatprep.subr.bf16.mxu0 %v6842_v1  ;;  %v6804_v9 = vld [vmem:[%s8193_s1 + $0x210] sm:$0xff]  }
 0x1ee   : > { %6295 = vmatprep.subr.bf16.mxu1 %v6842_v1 }
 0x1f0   : > { %6116 = vmatpush3.bf16.msra.mxu0 %v6770_v10  ;;  %v6805_v10 = vld [vmem:[%s8193_s1 + $0x210] sm:$0xff]  }
 0x1f1   : > { %6296 = vmatpush3.bf16.msra.mxu1 %v6771_v11  ;;  %6117 = vmatprep.subr.bf16.mxu0 %v6842_v1  ;;  %v6806_v11 = vld [vmem:[%s8193_s1 + $0x218] sm:$0xff]  }
 0x1f2   : > { %6297 = vmatprep.subr.bf16.mxu1 %v6842_v1 }
 0x1f4   : > { %6118 = vmatpush3.bf16.msra.mxu0 %v6772_v12  ;;  %v6807_v12 = vld [vmem:[%s8193_s1 + $0x218] sm:$0xff]  }
 0x1f5   : > { %6298 = vmatpush3.bf16.msra.mxu1 %v6773_v13  ;;  %6119 = vmatprep.subr.bf16.mxu0 %v6842_v1  ;;  %v6808_v13 = vld [vmem:[%s8193_s1 + $0x220] sm:$0xff]  }
 0x1f6   : > { %6299 = vmatprep.subr.bf16.mxu1 %v6842_v1 }
 0x1f8   : > { %6120 = vmatpush3.bf16.msra.mxu0 %v6774_v14  ;;  %v6809_v14 = vld [vmem:[%s8193_s1 + $0x220] sm:$0xff]  }
 0x1f9   : > { %6300 = vmatpush3.bf16.msra.mxu1 %v6775_v15  ;;  %6121 = vmatprep.subr.bf16.mxu0 %v6842_v1  ;;  %v6810_v15 = vld [vmem:[%s8193_s1 + $0x228] sm:$0xff]  }
 0x1fa   : > { %v1269_v20 = vpop.f32.mrb[0].mxu0  ;;  %6301 = vmatprep.subr.bf16.mxu1 %v6842_v1 }
 0x1fb   : > { %v1282_v21 = vmul.f32 %v7992_v16, %v1269_v20  ;;  %v2287_v22 = vpop.f32.mrb[0].mxu1  ;;  %v5809_v23 = vpop.f32.mrb[1].mxu0  ;;  %v6813_v20 = vld [vmem:[%s8193_s1 + $0x230] sm:$0xff]  }
 0x1fc   : > { %v2294_v24 = vmul.f32 %v7992_v16, %v2287_v22  ;;  %v5989_v25 = vpop.f32.mrb[1].mxu1  ;;  %v1272_v26 = vpop.f32.mrb[2].mxu0  ;;  %6122 = vmatpush3.bf16.msra.mxu0 %v6776_v17  ;;  %v6811_v17 = vld [vmem:[%s8193_s1 + $0x228] sm:$0xff]   ;;  %v6814_v22 = vld [vmem:[%s8193_s1 + $0x238] sm:$0xff]  }
 0x1fd   : > { %v1289_v28 = vadd.f32 %v8004_v19, %v1282_v21  ;;  %v2290_v29 = vpop.f32.mrb[2].mxu1  ;;  %6302 = vmatpush3.bf16.msra.mxu1 %v6777_v18  ;;  %v5810_v30 = vpop.f32.mrb[3].mxu0  ;;  %6123 = vmatprep.subr.bf16.mxu0 %v6842_v1  ;;  %v6812_v18 = vld [vmem:[%s8193_s1 + $0x230] sm:$0xff]  }
 0x1fe   : > { %v2295_v32 = vadd.f32 %v8004_v19, %v2294_v24  ;;  %v5990_v33 = vpop.f32.mrb[3].mxu1  ;;  %6303 = vmatprep.subr.bf16.mxu1 %v6842_v1  ;;  %v6816_v21 = vld [vmem:[%s6929_s12 + $0x10] ss:$0 sps:$4 sm:$0x66]   ;;  %v6815_v24 = vld [vmem:[%s8193_s1 + $0x238] sm:$0xff]  }
 0x1ff   : > { %v1290_v34 = vmax.f32 %v1289_v28, 0.0  ;;  %v6817_v23 = vld [vmem:[%s6929_s12 + $0x14] ss:$0 sps:$4 sm:$0x66]   ;;  %v3210_v25 = vrot.slane %v6816_v21, 1 }
 0x200   : > { %v2296_v35 = vmax.f32 %v2295_v32, 0.0  ;;  %6124 = vmatpush3.bf16.msra.mxu0 %v6778_v27  ;;  %v4217_v26 = vrot.slane %v6817_v23, 1 }
 0x201   : > { %v1291_v37 = vpack.c.bf16 %v1290_v34, %v1290_v34  ;;  %6304 = vmatpush3.bf16.msra.mxu1 %v6779_v31  ;;  %6125 = vmatprep.subr.bf16.mxu0 %v6842_v1 }
 0x202   : > { %v2297_v39 = vpack.c.bf16 %v2296_v35, %v2296_v35  ;;  %6305 = vmatprep.subr.bf16.mxu1 %v6842_v1 }
 0x203   : > { %1292 = vst [vmem:[%s8023_s6] sm:$0x3] %v1291_v37 }
 0x204   : > { %4871 = vst [vmem:[%s8023_s6 + $0x2] sm:$0x3] %v2297_v39  ;;  %6126 = vmatpush3.bf16.msra.mxu0 %v6780_v36 }
 0x205   : > { %6306 = vmatpush3.bf16.msra.mxu1 %v6781_v38  ;;  %6131 = vmatprep.subr.bf16.mxu0 %v6842_v1 }
 0x206   : > { %6311 = vmatprep.subr.bf16.mxu1 %v6842_v1 }
 0x207   : > { %6128 = vmatmul.mubr.bf16.vlgmr.msra.gmra.mrb[4].mxu0 %v5010_v40 }
 0x208   : > { %6132 = vmatpush3.bf16.msra.mxu0 %v6782_v41  ;;  %6308 = vmatmul.mubr.bf16.vlgmr.msra.gmra.mrb[4].mxu1 %v5226_v42 }
 0x209   : > { %6312 = vmatpush3.bf16.msra.mxu1 %v6783_v43  ;;  %6133 = vmatprep.subr.bf16.mxu0 %v6842_v1 }
 0x20a   : > { %6313 = vmatprep.subr.bf16.mxu1 %v6842_v1  ;;  %6147 = vmatprep.mubr.msk.bf16.mxu0 %vm6843_vm0, %v6842_v1 }
 0x20b   : > { %6327 = vmatprep.mubr.msk.bf16.mxu1 %vm6843_vm0, %v6842_v1 }
 0x20c   : > { %6134 = vmatpush3.bf16.msra.mxu0 %v6784_v44 }
 0x20d   : > { %6314 = vmatpush3.bf16.msra.mxu1 %v6785_v45  ;;  %6135 = vmatprep.subr.bf16.mxu0 %v6842_v1 }
 0x20e   : > { %6315 = vmatprep.subr.bf16.mxu1 %v6842_v1 }
 0x210   : > { %6136 = vmatpush3.bf16.msra.mxu0 %v6786_v46 }
 0x211   : > { %6316 = vmatpush3.bf16.msra.mxu1 %v6787_v47  ;;  %6137 = vmatprep.subr.bf16.mxu0 %v6842_v1 }
 0x212   : > { %6317 = vmatprep.subr.bf16.mxu1 %v6842_v1 }
 0x214   : > { %6138 = vmatpush3.bf16.msra.mxu0 %v6788_v48 }
 0x215   : > { %6318 = vmatpush3.bf16.msra.mxu1 %v6789_v49  ;;  %6139 = vmatprep.subr.bf16.mxu0 %v6842_v1 }
 0x216   : > { %6319 = vmatprep.subr.bf16.mxu1 %v6842_v1 }
 0x218   : > { %6140 = vmatpush3.bf16.msra.mxu0 %v6790_v50 }
 0x219   : > { %6320 = vmatpush3.bf16.msra.mxu1 %v6791_v51  ;;  %6141 = vmatprep.subr.bf16.mxu0 %v6842_v1 }
 0x21a   : > { %6321 = vmatprep.subr.bf16.mxu1 %v6842_v1 }
 0x21c   : > { %6142 = vmatpush3.bf16.msra.mxu0 %v6792_v53 }
 0x21d   : > { %6322 = vmatpush3.bf16.msra.mxu1 %v6793_v55  ;;  %6143 = vmatprep.subr.bf16.mxu0 %v6842_v1 }
 0x21e   : > { %6323 = vmatprep.subr.bf16.mxu1 %v6842_v1 }
 0x220   : > { %6144 = vmatpush3.bf16.msra.mxu0 %v6794_v57 }
 0x221   : > { %6324 = vmatpush3.bf16.msra.mxu1 %v6795_v59  ;;  %6145 = vmatprep.subr.bf16.mxu0 %v6842_v1 }
 0x222   : > { %6325 = vmatprep.subr.bf16.mxu1 %v6842_v1 }
 0x224   : > { %6146 = vmatpush3.bf16.msra.mxu0 %v6796_v62 }
 0x225   : > { %6326 = vmatpush3.bf16.msra.mxu1 %v6797_v2  ;;  %6151 = vmatprep.subr.bf16.mxu0 %v6842_v1 }
 0x226   : > { %6331 = vmatprep.subr.bf16.mxu1 %v6842_v1 }
 0x227   : > { %6148 = vmatmul.mubr.bf16.vlgmr.msra.gmra.mrb[4].mxu0 %v3099_v3 }
 0x228   : > { %6152 = vmatpush3.bf16.msra.mxu0 %v6799_v4  ;;  %6328 = vmatmul.mubr.bf16.vlgmr.msra.gmra.mrb[4].mxu1 %v4106_v5 }
 0x229   : > { %6332 = vmatpush3.bf16.msra.mxu1 %v6801_v6  ;;  %6153 = vmatprep.subr.bf16.mxu0 %v6842_v1 }
 0x22a   : > { %6333 = vmatprep.subr.bf16.mxu1 %v6842_v1  ;;  %6167 = vmatprep.mubr.msk.bf16.mxu0 %vm6843_vm0, %v6842_v1 }
 0x22b   : > { %6347 = vmatprep.mubr.msk.bf16.mxu1 %vm6843_vm0, %v6842_v1 }
 0x22c   : > { %6154 = vmatpush3.bf16.msra.mxu0 %v6802_v7 }
 0x22d   : > { %6334 = vmatpush3.bf16.msra.mxu1 %v6803_v8  ;;  %6155 = vmatprep.subr.bf16.mxu0 %v6842_v1 }
 0x22e   : > { %6335 = vmatprep.subr.bf16.mxu1 %v6842_v1 }
 0x230   : > { %6156 = vmatpush3.bf16.msra.mxu0 %v6804_v9 }
 0x231   : > { %6336 = vmatpush3.bf16.msra.mxu1 %v6805_v10  ;;  %6157 = vmatprep.subr.bf16.mxu0 %v6842_v1 }
 0x232   : > { %6337 = vmatprep.subr.bf16.mxu1 %v6842_v1 }
 0x234   : > { %6158 = vmatpush3.bf16.msra.mxu0 %v6806_v11 }
 0x235   : > { %6338 = vmatpush3.bf16.msra.mxu1 %v6807_v12  ;;  %6159 = vmatprep.subr.bf16.mxu0 %v6842_v1 }
 0x236   : > { %6339 = vmatprep.subr.bf16.mxu1 %v6842_v1 }
 0x238   : > { %6160 = vmatpush3.bf16.msra.mxu0 %v6808_v13 }
 0x239   : > { %6340 = vmatpush3.bf16.msra.mxu1 %v6809_v14  ;;  %6161 = vmatprep.subr.bf16.mxu0 %v6842_v1 }
 0x23a   : > { %6341 = vmatprep.subr.bf16.mxu1 %v6842_v1 }
 0x23c   : > { %6162 = vmatpush3.bf16.msra.mxu0 %v6810_v15 }
 0x23d   : > { %6342 = vmatpush3.bf16.msra.mxu1 %v6811_v17  ;;  %6163 = vmatprep.subr.bf16.mxu0 %v6842_v1 }
 0x23e   : > { %6343 = vmatprep.subr.bf16.mxu1 %v6842_v1 }
 0x240   : > { %6164 = vmatpush3.bf16.msra.mxu0 %v6812_v18 }
 0x241   : > { %6344 = vmatpush3.bf16.msra.mxu1 %v6813_v20  ;;  %6165 = vmatprep.subr.bf16.mxu0 %v6842_v1 }
 0x242   : > { %6345 = vmatprep.subr.bf16.mxu1 %v6842_v1 }
 0x244   : > { %6166 = vmatpush3.bf16.msra.mxu0 %v6814_v22 }
 0x245   : > { %6346 = vmatpush3.bf16.msra.mxu1 %v6815_v24 }
 0x247   : > { %6168 = vmatmul.mubr.bf16.vlgmr.msra.gmra.mrb[4].mxu0 %v3210_v25 }
 0x248   : > { %6348 = vmatmul.mubr.bf16.vlgmr.msra.gmra.mrb[4].mxu1 %v4217_v26 }
 0x31a   : > { %v3294_v27 = vpop.f32.mrb[4].mxu0 }
 0x31b   : > { %v3301_v28 = vmul.f32 %v7992_v16, %v3294_v27  ;;  %v4301_v29 = vpop.f32.mrb[4].mxu1  ;;  %v6169_v30 = vpop.f32.mrb[5].mxu0 }
 0x31c   : > { %v4308_v31 = vmul.f32 %v7992_v16, %v4301_v29  ;;  %v6349_v32 = vpop.f32.mrb[5].mxu1  ;;  %v3297_v33 = vpop.f32.mrb[6].mxu0 }
 0x31d   : > { %v3302_v34 = vadd.f32 %v8004_v19, %v3301_v28  ;;  %v4304_v1 = vpop.f32.mrb[6].mxu1  ;;  %v6170_v35 = vpop.f32.mrb[7].mxu0 }
 0x31e   : > { %v4309_v36 = vadd.f32 %v8004_v19, %v4308_v31  ;;  %v6350_v37 = vpop.f32.mrb[7].mxu1 }
 0x31f   : > { %v3303_v38 = vmax.f32 %v3302_v34, 0.0 }
 0x320   : > { %v4310_v39 = vmax.f32 %v4309_v36, 0.0 }
 0x321   : > { %v3304_v40 = vpack.c.bf16 %v3303_v38, %v3303_v38 }
 0x322   : > { %v4311_v41 = vpack.c.bf16 %v4310_v39, %v4310_v39 }
 0x323   : > { %5087 = vst [vmem:[%s8023_s6 + $0x4] sm:$0x3] %v3304_v40 }
 0x324   : > { %5303 = vst [vmem:[%s8023_s6 + $0x6] sm:$0x3] %v4311_v41 }
 0x325 PF: > { %s14_s17 = sadd.s32 1, %s6840_s17   ;;  %s8197_s15 = smov %s6836_s16 }
 0x326   : > { %p11_p5 = scmp.ge.s32.totalorder %s14_s17, 4   ;;  %s8198_s16 = smov %s8200_s18 }
 0x328   :  { %13 = sbr.rel (!%p11_p5) target bundleno = 2 (0x2), region = 91 }

// kernel: discriminator_forward.35
= control target key start
LH: loop header
LB: loop body
LE: loop exit
PB: predicated region body
PF: predicated region fallthrough
CT: control target
= control target key end

     0   :  { %v279_v1 = vmov 0   ;;  %v170_v18 = vlaneseq  ;;  %s379_s1 = inlined_call_operand.vmem [shape: bf16[128,256], index: 1, kind: input, shape index: {}]   ;;  %s380_s0 = inlined_call_operand.vmem [shape: bf16[16,128], index: 0, kind: input, shape index: {}]   ;;  %s381_s2 = inlined_call_operand.vmem [shape: f32[1,256], index: 2, kind: input, shape index: {}]   ;;  %s382_s3 = inlined_call_operand.vmem [shape: f32[1,256], index: 3, kind: input, shape index: {}]   ;;  %s383_s4 = inlined_call_operand.vmem [shape: bf16[16,256], index: 4, kind: input, shape index: {}]   ;;  %s384_s5 = inlined_call_operand.vmem [shape: bf16[16,256], index: 5, kind: output, shape index: {}]  }
   0x1   :  { %v254_v0 = vld [vmem:[%s379_s1 + $0x4] ss:$8 sps:$4 sm:$0xff]   ;;  %157 = vmatprep.mubr.bf16.mxu0 %v279_v1  ;;  %v256_v2 = vld [vmem:[%s379_s1] ss:$8 sps:$4 sm:$0xff]   ;;  %v257_v3 = vld [vmem:[%s379_s1 + $0x14] ss:$8 sps:$4 sm:$0xff]  }
   0x2   :  { %125 = vmatprep.subr.bf16.mxu0 %v254_v0  ;;  %v259_v4 = vld [vmem:[%s379_s1 + $0x10] ss:$8 sps:$4 sm:$0xff]   ;;  %v260_v5 = vld [vmem:[%s379_s1 + $0x24] ss:$8 sps:$4 sm:$0xff]   ;;  %v262_v6 = vld [vmem:[%s379_s1 + $0x20] ss:$8 sps:$4 sm:$0xff]  }
   0x3   :  { %126 = vmatpush1.bf16.msra.mxu0 %v256_v2  ;;  %v263_v7 = vld [vmem:[%s379_s1 + $0x34] ss:$8 sps:$4 sm:$0xff]   ;;  %v265_v8 = vld [vmem:[%s379_s1 + $0x30] ss:$8 sps:$4 sm:$0xff]   ;;  %v266_v9 = vld [vmem:[%s379_s1 + $0x44] ss:$8 sps:$4 sm:$0xff]  }
   0x4   :  { %127 = vmatprep.subr.bf16.mxu0 %v257_v3  ;;  %v268_v10 = vld [vmem:[%s379_s1 + $0x40] ss:$8 sps:$4 sm:$0xff]   ;;  %v269_v11 = vld [vmem:[%s379_s1 + $0x54] ss:$8 sps:$4 sm:$0xff]   ;;  %v271_v12 = vld [vmem:[%s379_s1 + $0x50] ss:$8 sps:$4 sm:$0xff]  }
   0x5   :  { %v272_v13 = vld [vmem:[%s379_s1 + $0x64] ss:$8 sps:$4 sm:$0xff]   ;;  %v274_v14 = vld [vmem:[%s379_s1 + $0x60] ss:$8 sps:$4 sm:$0xff]   ;;  %v275_v15 = vld [vmem:[%s379_s1 + $0x74] ss:$8 sps:$4 sm:$0xff]  }
   0x6   :  { %v277_v16 = vld [vmem:[%s379_s1 + $0x70] ss:$8 sps:$4 sm:$0xff]   ;;  %v278_v17 = vld [vmem:[%s380_s0] sm:$0xff]   ;;  %v171_v19 = vshrl.u32 %v170_v18, 7  ;;  %v201_v30 = vld [vmem:[%s383_s4 + $0x8] sm:$0xff] }
   0x7   :  { %128 = vmatpush1.bf16.msra.mxu0 %v259_v4  ;;  %v168_v21 = vld [vmem:[%s381_s2] sm:$0x3]  ;;  %v204_v39 = vunpack.c.l.bf16 %v201_v30  ;;  %v205_v43 = vunpack.c.h.bf16 %v201_v30 }
   0x8   :  { %129 = vmatprep.subr.bf16.mxu0 %v260_v5  ;;  %v172_v20 = vsub.s32 0, %v171_v19  ;;  %v176_v22 = vsub.s32 1, %v171_v19  ;;  %v184_v23 = vld [vmem:[%s382_s3] sm:$0x3] }
   0x9   :  { %v200_v25 = vld [vmem:[%s383_s4] sm:$0xff] }
   0xa   :  { %v173_v24 = vrot.slane %v168_v21, %v172_v20  ;;  %v177_v26 = vrot.slane %v168_v21, %v176_v22  ;;  %v189_v27 = vrot.slane %v184_v23, %v172_v20  ;;  %v193_v29 = vrot.slane %v184_v23, %v176_v22 }
   0xb   :  { %130 = vmatpush1.bf16.msra.mxu0 %v262_v6  ;;  %v202_v32 = vunpack.c.l.bf16 %v200_v25  ;;  %v203_v35 = vunpack.c.h.bf16 %v200_v25 }
   0xc   :  { %131 = vmatprep.subr.bf16.mxu0 %v263_v7 }
   0xf   :  { %132 = vmatpush1.bf16.msra.mxu0 %v265_v8 }
  0x10   :  { %133 = vmatprep.subr.bf16.mxu0 %v266_v9 }
  0x13   :  { %134 = vmatpush1.bf16.msra.mxu0 %v268_v10 }
  0x14   :  { %135 = vmatprep.subr.bf16.mxu0 %v269_v11 }
  0x17   :  { %136 = vmatpush1.bf16.msra.mxu0 %v271_v12 }
  0x18   :  { %137 = vmatprep.subr.bf16.mxu0 %v272_v13 }
  0x1b   :  { %138 = vmatpush1.bf16.msra.mxu0 %v274_v14 }
  0x1c   :  { %139 = vmatprep.subr.bf16.mxu0 %v275_v15 }
  0x1f   :  { %140 = vmatpush1.bf16.msra.mxu0 %v277_v16 }
  0x22   :  { %158 = vmatmul.mubr.bf16.vlgmr.msra.gmra.mrb[0].mxu0 %v278_v17 }
  0xf5   :  { %v159_v28 = vpop.f32.mrb[0].mxu0 }
  0xf6   :  { %v180_v31 = vmul.f32 %v173_v24, %v159_v28  ;;  %v161_v33 = vpop.f32.mrb[1].mxu0 }
  0xf7   :  { %v181_v34 = vmul.f32 %v177_v26, %v161_v33  ;;  %v163_v36 = vpop.f32.mrb[2].mxu0 }
  0xf8   :  { %v196_v37 = vadd.f32 %v189_v27, %v180_v31  ;;  %v182_v38 = vmul.f32 %v173_v24, %v163_v36  ;;  %v165_v40 = vpop.f32.mrb[3].mxu0 }
  0xf9   :  { %v197_v41 = vadd.f32 %v193_v29, %v181_v34  ;;  %v183_v42 = vmul.f32 %v177_v26, %v165_v40 }
  0xfa   :  { %v206_v44 = vadd.f32 %v202_v32, %v196_v37  ;;  %v198_v45 = vadd.f32 %v189_v27, %v182_v38 }
  0xfb   :  { %v207_v46 = vadd.f32 %v203_v35, %v197_v41  ;;  %v199_v47 = vadd.f32 %v193_v29, %v183_v42 }
  0xfc   :  { %v210_v48 = vmax.f32 %v206_v44, 0.0  ;;  %v208_v49 = vadd.f32 %v204_v39, %v198_v45 }
  0xfd   :  { %v211_v50 = vmax.f32 %v207_v46, 0.0  ;;  %v209_v51 = vadd.f32 %v205_v43, %v199_v47 }
  0xfe   :  { %v212_v52 = vmax.f32 %v208_v49, 0.0 }
  0xff   :  { %v251_v53 = vpack.c.bf16 %v211_v50, %v210_v48  ;;  %v213_v54 = vmax.f32 %v209_v51, 0.0 }
 0x101   :  { %226 = vst [vmem:[%s384_s5] sm:$0xff] %v251_v53  ;;  %v252_v55 = vpack.c.bf16 %v213_v54, %v212_v52 }
 0x103   :  { %227 = vst [vmem:[%s384_s5 + $0x8] sm:$0xff] %v252_v55 }

// kernel: discriminator_forward.33
= control target key start
LH: loop header
LB: loop body
LE: loop exit
PB: predicated region body
PF: predicated region fallthrough
CT: control target
= control target key end

     0   :  { %s2038_s15 = smov 0   ;;  %s2040_s16 = smov 0   ;;  %s2402_s0 = inlined_call_operand.vmem [shape: bf16[2,5,5,128], index: 0, kind: input, shape index: {}]   ;;  %s2403_s1 = inlined_call_operand.vmem [shape: bf16[9,128,128], index: 1, kind: input, shape index: {}]   ;;  %s2404_s2 = inlined_call_operand.vmem [shape: f32[1,128], index: 2, kind: input, shape index: {}]   ;;  %s2405_s3 = inlined_call_operand.vmem [shape: f32[1,128], index: 3, kind: input, shape index: {}]   ;;  %s2406_s4 = inlined_call_operand.vmem [shape: bf16[2,1,1,128], index: 4, kind: output, shape index: {}]  }
   0x1   :  { %s2042_s17 = smov 0  }
   0x2 LB: > { %s26_s18 = sadd.s32 1, %s2005_s16  ;;  %p1376_p0 = scmp.ge.s32.totalorder %s2009_s17, 1  ;;  %s2009_s17 = sphi %s2042_s17, %s14_s17   ;;  %s2005_s16 = sphi %s2040_s16, %s2408_s16   ;;  %s2001_s15 = sphi %s2038_s15, %s2407_s15  }
   0x3   : > { %p28_p1 = scmp.ge.s32.totalorder %s26_s18, 2  ;;  %p201_p2 = scmp.lt.s32.totalorder %s2009_s17, 3 }
   0x5   : > { %s2410_s18 = smov (%p28_p1, %s26_s18), 0  ;;  %p202_p3 = pnand %p1376_p0, %p201_p2 }
   0x6   : > { %v1909_v0 = vld [vmem:[%s2403_s1 + $0x40] sm:$0xff] (!%p202_p3)   ;;  %v2011_v1 = vmov (!%p202_p3), 0.0   ;;  %v1911_v3 = vld [vmem:[%s2403_s1 + $0x48] sm:$0xff] (!%p202_p3)   ;;  %vm2012_vm0 = vmmov (!%p202_p3), 0   ;;  %p238_p4 = scmp.lt.s32.totalorder (!%p202_p3), %s2001_s15, 1  ;;  %v1913_v5 = vld [vmem:[%s2403_s1 + $0x50] sm:$0xff] (!%p202_p3)  }
   0x7   : > { %205 = sbr.rel (%p202_p3) target bundleno = 392 (0x188), region = 36  ;;  %1673 = vmatprep.subr.bf16.mxu1 (!%p202_p3), %v2011_v1  ;;  %1753 = vmatprep.subr.bf16.mxu0 (!%p202_p3), %v2011_v1  ;;  %v1910_v2 = vld [vmem:[%s2403_s1 + $0x100] sm:$0xff] (!%p202_p3)   ;;  %v1912_v4 = vld [vmem:[%s2403_s1 + $0x108] sm:$0xff] (!%p202_p3)   ;;  %v1914_v6 = vld [vmem:[%s2403_s1 + $0x110] sm:$0xff] (!%p202_p3)   ;;  %vm1258_vm1 = vcmask (!%p202_p3), 1040384  }
   0x8   : > { %1674 = vmatpush3.bf16.msra.mxu1 (!%p202_p3), %v1909_v0  ;;  %1689 = vmatprep.mubr.msk.bf16.mxu1 (!%p202_p3), %vm2012_vm0, %v2011_v1  ;;  %v1915_v7 = vld [vmem:[%s2403_s1 + $0x58] sm:$0xff] (!%p202_p3)   ;;  %v1917_v9 = vld [vmem:[%s2403_s1 + $0x60] sm:$0xff] (!%p202_p3)   ;;  %v1919_v11 = vld [vmem:[%s2403_s1 + $0x68] sm:$0xff] (!%p202_p3)   ;;  %vm1259_vm2 = vsmask.f32 (!%p202_p3), 256 }
   0x9   : > { %1754 = vmatpush3.bf16.msra.mxu0 (!%p202_p3), %v1910_v2  ;;  %1675 = vmatprep.subr.bf16.mxu1 (!%p202_p3), %v2011_v1  ;;  %v1916_v8 = vld [vmem:[%s2403_s1 + $0x118] sm:$0xff] (!%p202_p3)   ;;  %v1918_v10 = vld [vmem:[%s2403_s1 + $0x120] sm:$0xff] (!%p202_p3)   ;;  %v1920_v12 = vld [vmem:[%s2403_s1 + $0x128] sm:$0xff] (!%p202_p3)  }
   0xa   : > { %1755 = vmatprep.subr.bf16.mxu0 (!%p202_p3), %v2011_v1  ;;  %1769 = vmatprep.mubr.msk.bf16.mxu0 (!%p202_p3), %vm2012_vm0, %v2011_v1  ;;  %v1921_v13 = vld [vmem:[%s2403_s1 + $0x70] sm:$0xff] (!%p202_p3)   ;;  %v1923_v17 = vld [vmem:[%s2403_s1 + $0x78] sm:$0xff] (!%p202_p3)   ;;  %v1926_v20 = vld [vmem:[%s2403_s1] sm:$0xff] (!%p202_p3)  }
   0xb   : > { %v1922_v14 = vld [vmem:[%s2403_s1 + $0x130] sm:$0xff] (!%p202_p3)   ;;  %v1924_v18 = vld [vmem:[%s2403_s1 + $0x138] sm:$0xff] (!%p202_p3)   ;;  %v1928_v22 = vld [vmem:[%s2403_s1 + $0x140] sm:$0xff] (!%p202_p3)  }
   0xc   : > { %1676 = vmatpush3.bf16.msra.mxu1 (!%p202_p3), %v1911_v3  ;;  %v1929_v23 = vld [vmem:[%s2403_s1 + $0x8] sm:$0xff] (!%p202_p3)   ;;  %v1931_v25 = vld [vmem:[%s2403_s1 + $0x10] sm:$0xff] (!%p202_p3)   ;;  %v1933_v27 = vld [vmem:[%s2403_s1 + $0x18] sm:$0xff] (!%p202_p3)  }
   0xd   : > { %1756 = vmatpush3.bf16.msra.mxu0 (!%p202_p3), %v1912_v4  ;;  %1677 = vmatprep.subr.bf16.mxu1 (!%p202_p3), %v2011_v1  ;;  %v1930_v24 = vld [vmem:[%s2403_s1 + $0x148] sm:$0xff] (!%p202_p3)   ;;  %v1932_v26 = vld [vmem:[%s2403_s1 + $0x150] sm:$0xff] (!%p202_p3)   ;;  %v1934_v28 = vld [vmem:[%s2403_s1 + $0x158] sm:$0xff] (!%p202_p3)  }
   0xe   : > { %s2412_s15 = smov (!%p238_p4, %s2001_s15), 1  ;;  %1757 = vmatprep.subr.bf16.mxu0 %v2011_v1  ;;  %v1935_v29 = vld [vmem:[%s2403_s1 + $0x20] sm:$0xff]   ;;  %v1937_v31 = vld [vmem:[%s2403_s1 + $0x28] sm:$0xff]   ;;  %v1939_v33 = vld [vmem:[%s2403_s1 + $0x30] sm:$0xff]  }
   0xf   : > { %s1882_s9 = smul.u32 20, %s2412_s15  ;;  %v1936_v30 = vld [vmem:[%s2403_s1 + $0x160] sm:$0xff]   ;;  %v1938_v32 = vld [vmem:[%s2403_s1 + $0x168] sm:$0xff]   ;;  %v1940_v34 = vld [vmem:[%s2403_s1 + $0x170] sm:$0xff]   ;;  %s258_s24 = scalar_lea.vmem %s2406_s4, %s2412_s15 }
  0x10   : > { %1678 = vmatpush3.bf16.msra.mxu1 %v1913_v5  ;;  %v1941_v36 = vld [vmem:[%s2403_s1 + $0x38] sm:$0xff]   ;;  %v1943_v39 = vld [vmem:[%s2403_s1 + $0x80] sm:$0xff]   ;;  %v1946_v42 = vld [vmem:[%s2403_s1 + $0x88] sm:$0xff]  }
  0x11   : > { %1758 = vmatpush3.bf16.msra.mxu0 %v1914_v6  ;;  %1679 = vmatprep.subr.bf16.mxu1 %v2011_v1  ;;  %s2109_s20 = scalar_lea.vmem %s2402_s0, %s1882_s9  ;;  %v1942_v37 = vld [vmem:[%s2403_s1 + $0x178] sm:$0xff]   ;;  %v1945_v41 = vld [vmem:[%s2403_s1 + $0x180] sm:$0xff]   ;;  %v1947_v43 = vld [vmem:[%s2403_s1 + $0x188] sm:$0xff]  }
  0x12   : > { %1759 = vmatprep.subr.bf16.mxu0 %v2011_v1  ;;  %v1925_v15 = vld [vmem:[%s2109_s20] ss:$0 sps:$4 sm:$0x22]   ;;  %v1927_v16 = vld [vmem:[%s2109_s20 + $0x8] ss:$0 sps:$4 sm:$0x22]   ;;  %vm1260_vm3 = vmand %vm1258_vm1, %vm1259_vm2 }
  0x13   : > { %v300_v19 = vrot.slane %v1925_v15, 1  ;;  %v719_v21 = vrot.slane %v1927_v16, 1  ;;  %v1944_v35 = vld [vmem:[%s2109_s20 + $0x8] ss:$0 sps:$4 sm:$0x44]   ;;  %v1948_v44 = vld [vmem:[%s2403_s1 + $0x90] sm:$0xff]  }
  0x14   : > { %1680 = vmatpush3.bf16.msra.mxu1 %v1915_v7  ;;  %v262_v38 = vld [vmem:[%s2109_s20] sm:$0x1]  ;;  %v831_v40 = vrot.slane %v1944_v35, 2  ;;  %v1949_v45 = vld [vmem:[%s2403_s1 + $0x190] sm:$0xff]   ;;  %v1950_v46 = vld [vmem:[%s2403_s1 + $0x98] sm:$0xff]  }
  0x15   : > { %1760 = vmatpush3.bf16.msra.mxu0 %v1916_v8  ;;  %1681 = vmatprep.subr.bf16.mxu1 %v2011_v1  ;;  %v1951_v47 = vld [vmem:[%s2403_s1 + $0x198] sm:$0xff]   ;;  %v1952_v48 = vld [vmem:[%s2403_s1 + $0xa0] sm:$0xff]   ;;  %v1954_v50 = vld [vmem:[%s2403_s1 + $0xa8] sm:$0xff]  }
  0x16   : > { %1761 = vmatprep.subr.bf16.mxu0 %v2011_v1  ;;  %v1953_v49 = vld [vmem:[%s2403_s1 + $0x1a0] sm:$0xff]   ;;  %v1955_v51 = vld [vmem:[%s2403_s1 + $0x1a8] sm:$0xff]   ;;  %v1956_v52 = vld [vmem:[%s2403_s1 + $0xb0] sm:$0xff]  }
  0x17   : > { %v1957_v53 = vld [vmem:[%s2403_s1 + $0x1b0] sm:$0xff]   ;;  %v1960_v54 = vld [vmem:[%s2109_s20] ss:$0 sps:$4 sm:$0x44]   ;;  %v1958_v55 = vld [vmem:[%s2403_s1 + $0xb8] sm:$0xff]  }
  0x18   : > { %1682 = vmatpush3.bf16.msra.mxu1 %v1917_v9  ;;  %v1959_v56 = vld [vmem:[%s2403_s1 + $0x1b8] sm:$0xff]   ;;  %v499_v57 = vrot.slane %v1960_v54, 2  ;;  %v1961_v58 = vld [vmem:[%s2403_s1 + $0xc0] sm:$0xff]   ;;  %v1513_v59 = vld [vmem:[%s2109_s20 + $0x10] sm:$0x1] }
  0x19   : > { %1762 = vmatpush3.bf16.msra.mxu0 %v1918_v10  ;;  %1683 = vmatprep.subr.bf16.mxu1 %v2011_v1  ;;  %v1962_v60 = vld [vmem:[%s2403_s1 + $0x1c0] sm:$0xff]   ;;  %v1963_v61 = vld [vmem:[%s2403_s1 + $0xc8] sm:$0xff]   ;;  %v1965_v63 = vld [vmem:[%s2403_s1 + $0xd0] sm:$0xff]  }
  0x1a   : > { %1763 = vmatprep.subr.bf16.mxu0 %v2011_v1  ;;  %v1964_v62 = vld [vmem:[%s2403_s1 + $0x1c8] sm:$0xff]   ;;  %v1966_v0 = vld [vmem:[%s2403_s1 + $0x1d0] sm:$0xff]   ;;  %v1967_v2 = vld [vmem:[%s2403_s1 + $0xd8] sm:$0xff]  }
  0x1b   : > { %v1968_v3 = vld [vmem:[%s2403_s1 + $0x1d8] sm:$0xff]   ;;  %v1969_v4 = vld [vmem:[%s2403_s1 + $0xe0] sm:$0xff]   ;;  %v1971_v6 = vld [vmem:[%s2403_s1 + $0xe8] sm:$0xff]  }
  0x1c   : > { %1684 = vmatpush3.bf16.msra.mxu1 %v1919_v11  ;;  %v1970_v5 = vld [vmem:[%s2403_s1 + $0x1e0] sm:$0xff]   ;;  %v1972_v7 = vld [vmem:[%s2403_s1 + $0x1e8] sm:$0xff]   ;;  %v1973_v8 = vld [vmem:[%s2403_s1 + $0xf0] sm:$0xff]  }
  0x1d   : > { %1764 = vmatpush3.bf16.msra.mxu0 %v1920_v12  ;;  %1685 = vmatprep.subr.bf16.mxu1 %v2011_v1  ;;  %v1974_v9 = vld [vmem:[%s2403_s1 + $0x1f0] sm:$0xff]   ;;  %v1975_v10 = vld [vmem:[%s2403_s1 + $0xf8] sm:$0xff]   ;;  %v1978_v15 = vld [vmem:[%s2403_s1 + $0x200] sm:$0xff]  }
  0x1e   : > { %1765 = vmatprep.subr.bf16.mxu0 %v2011_v1  ;;  %v1977_v11 = vld [vmem:[%s2109_s20 + $0x10] ss:$0 sps:$4 sm:$0x22]   ;;  %v1976_v12 = vld [vmem:[%s2403_s1 + $0x1f8] sm:$0xff]   ;;  %v1979_v16 = vld [vmem:[%s2403_s1 + $0x208] sm:$0xff]  }
  0x20   : > { %1686 = vmatpush3.bf16.msra.mxu1 %v1921_v13  ;;  %v1436_v13 = vld [vmem:[%s2109_s20 + $0x8] sm:$0x1] }
  0x21   : > { %1766 = vmatpush3.bf16.msra.mxu0 %v1922_v14  ;;  %1687 = vmatprep.subr.bf16.mxu1 %v2011_v1  ;;  %v1051_v14 = vrot.slane %v1977_v11, 1 }
  0x22   : > { %1767 = vmatprep.subr.bf16.mxu0 %v2011_v1 }
  0x24   : > { %1688 = vmatpush3.bf16.msra.mxu1 %v1923_v17  ;;  %v1980_v17 = vld [vmem:[%s2403_s1 + $0x210] sm:$0xff]  }
  0x25   : > { %1768 = vmatpush3.bf16.msra.mxu0 %v1924_v18  ;;  %1693 = vmatprep.subr.bf16.mxu1 %v2011_v1  ;;  %v1981_v18 = vld [vmem:[%s2403_s1 + $0x218] sm:$0xff]  }
  0x26   : > { %1773 = vmatprep.subr.bf16.mxu0 %v2011_v1 }
  0x27   : > { %1690 = vmatmul.mubr.bf16.vlgmr.msra.gmra.mrb[0].mxu1 %v300_v19  ;;  %v1982_v19 = vld [vmem:[%s2403_s1 + $0x220] sm:$0xff]  }
  0x28   : > { %1694 = vmatpush3.bf16.msra.mxu1 %v1926_v20  ;;  %1770 = vmatmul.mubr.bf16.vlgmr.msra.gmra.mrb[0].mxu0 %v719_v21  ;;  %v1983_v20 = vld [vmem:[%s2403_s1 + $0x228] sm:$0xff]   ;;  %v1984_v21 = vld [vmem:[%s2403_s1 + $0x230] sm:$0xff]  }
  0x29   : > { %1774 = vmatpush3.bf16.msra.mxu0 %v1928_v22  ;;  %1695 = vmatprep.subr.bf16.mxu1 %v2011_v1  ;;  %v1986_v22 = vld [vmem:[%s2109_s20 + $0x10] ss:$0 sps:$4 sm:$0x44]  }
  0x2a   : > { %1775 = vmatprep.subr.bf16.mxu0 %v2011_v1  ;;  %1709 = vmatprep.mubr.msk.bf16.mxu1 %vm2012_vm0, %v2011_v1 }
  0x2b   : > { %1789 = vmatprep.mubr.msk.bf16.mxu0 %vm2012_vm0, %v2011_v1 }
  0x2c   : > { %1696 = vmatpush3.bf16.msra.mxu1 %v1929_v23  ;;  %v1985_v23 = vld [vmem:[%s2403_s1 + $0x238] sm:$0xff]  }
  0x2d   : > { %1776 = vmatpush3.bf16.msra.mxu0 %v1930_v24  ;;  %1697 = vmatprep.subr.bf16.mxu1 %v2011_v1  ;;  %v1163_v24 = vrot.slane %v1986_v22, 2 }
  0x2e   : > { %1777 = vmatprep.subr.bf16.mxu0 %v2011_v1 }
  0x30   : > { %1698 = vmatpush3.bf16.msra.mxu1 %v1931_v25 }
  0x31   : > { %1778 = vmatpush3.bf16.msra.mxu0 %v1932_v26  ;;  %1699 = vmatprep.subr.bf16.mxu1 %v2011_v1 }
  0x32   : > { %1779 = vmatprep.subr.bf16.mxu0 %v2011_v1 }
  0x34   : > { %1700 = vmatpush3.bf16.msra.mxu1 %v1933_v27 }
  0x35   : > { %1780 = vmatpush3.bf16.msra.mxu0 %v1934_v28  ;;  %1701 = vmatprep.subr.bf16.mxu1 %v2011_v1 }
  0x36   : > { %1781 = vmatprep.subr.bf16.mxu0 %v2011_v1 }
  0x38   : > { %1702 = vmatpush3.bf16.msra.mxu1 %v1935_v29  ;;  %v260_v29 = vld [vmem:[%s2404_s2] sm:$0x1] }
  0x39   : > { %1782 = vmatpush3.bf16.msra.mxu0 %v1936_v30  ;;  %1703 = vmatprep.subr.bf16.mxu1 %v2011_v1 }
  0x3a   : > { %1783 = vmatprep.subr.bf16.mxu0 %v2011_v1 }
  0x3c   : > { %1704 = vmatpush3.bf16.msra.mxu1 %v1937_v31 }
  0x3d   : > { %1784 = vmatpush3.bf16.msra.mxu0 %v1938_v32  ;;  %1705 = vmatprep.subr.bf16.mxu1 %v2011_v1 }
  0x3e   : > { %1785 = vmatprep.subr.bf16.mxu0 %v2011_v1 }
  0x40   : > { %1706 = vmatpush3.bf16.msra.mxu1 %v1939_v33  ;;  %v261_v33 = vld [vmem:[%s2405_s3] sm:$0x1] }
  0x41   : > { %1786 = vmatpush3.bf16.msra.mxu0 %v1940_v34  ;;  %1707 = vmatprep.subr.bf16.mxu1 %v2011_v1 }
  0x42   : > { %1787 = vmatprep.subr.bf16.mxu0 %v2011_v1 }
  0x44   : > { %1708 = vmatpush3.bf16.msra.mxu1 %v1941_v36 }
  0x45   : > { %1788 = vmatpush3.bf16.msra.mxu0 %v1942_v37  ;;  %1713 = vmatprep.subr.bf16.mxu1 %v2011_v1 }
  0x46   : > { %1793 = vmatprep.subr.bf16.mxu0 %v2011_v1 }
  0x47   : > { %1710 = vmatmul.mubr.bf16.vlgmr.msra.gmra.mrb[0].mxu1 %v262_v38  ;;  %v1261_v38 = vld [vmem:[%s258_s24] sm:$0x1] }
  0x48   : > { %1714 = vmatpush3.bf16.msra.mxu1 %v1943_v39  ;;  %1790 = vmatmul.mubr.bf16.vlgmr.msra.gmra.mrb[0].mxu0 %v831_v40 }
  0x49   : > { %1794 = vmatpush3.bf16.msra.mxu0 %v1945_v41  ;;  %1715 = vmatprep.subr.bf16.mxu1 %v2011_v1 }
  0x4a   : > { %1795 = vmatprep.subr.bf16.mxu0 %v2011_v1  ;;  %1729 = vmatprep.mubr.msk.bf16.mxu1 %vm2012_vm0, %v2011_v1 }
  0x4b   : > { %1809 = vmatprep.mubr.msk.bf16.mxu0 %vm2012_vm0, %v2011_v1 }
  0x4c   : > { %1716 = vmatpush3.bf16.msra.mxu1 %v1946_v42 }
  0x4d   : > { %1796 = vmatpush3.bf16.msra.mxu0 %v1947_v43  ;;  %1717 = vmatprep.subr.bf16.mxu1 %v2011_v1 }
  0x4e   : > { %1797 = vmatprep.subr.bf16.mxu0 %v2011_v1 }
  0x50   : > { %1718 = vmatpush3.bf16.msra.mxu1 %v1948_v44 }
  0x51   : > { %1798 = vmatpush3.bf16.msra.mxu0 %v1949_v45  ;;  %1719 = vmatprep.subr.bf16.mxu1 %v2011_v1 }
  0x52   : > { %1799 = vmatprep.subr.bf16.mxu0 %v2011_v1 }
  0x54   : > { %1720 = vmatpush3.bf16.msra.mxu1 %v1950_v46 }
  0x55   : > { %1800 = vmatpush3.bf16.msra.mxu0 %v1951_v47  ;;  %1721 = vmatprep.subr.bf16.mxu1 %v2011_v1 }
  0x56   : > { %1801 = vmatprep.subr.bf16.mxu0 %v2011_v1 }
  0x58   : > { %1722 = vmatpush3.bf16.msra.mxu1 %v1952_v48 }
  0x59   : > { %1802 = vmatpush3.bf16.msra.mxu0 %v1953_v49  ;;  %1723 = vmatprep.subr.bf16.mxu1 %v2011_v1 }
  0x5a   : > { %1803 = vmatprep.subr.bf16.mxu0 %v2011_v1 }
  0x5c   : > { %1724 = vmatpush3.bf16.msra.mxu1 %v1954_v50 }
  0x5d   : > { %1804 = vmatpush3.bf16.msra.mxu0 %v1955_v51  ;;  %1725 = vmatprep.subr.bf16.mxu1 %v2011_v1 }
  0x5e   : > { %1805 = vmatprep.subr.bf16.mxu0 %v2011_v1 }
  0x60   : > { %1726 = vmatpush3.bf16.msra.mxu1 %v1956_v52 }
  0x61   : > { %1806 = vmatpush3.bf16.msra.mxu0 %v1957_v53  ;;  %1727 = vmatprep.subr.bf16.mxu1 %v2011_v1 }
  0x62   : > { %1807 = vmatprep.subr.bf16.mxu0 %v2011_v1 }
  0x64   : > { %1728 = vmatpush3.bf16.msra.mxu1 %v1958_v55 }
  0x65   : > { %1808 = vmatpush3.bf16.msra.mxu0 %v1959_v56  ;;  %1733 = vmatprep.subr.bf16.mxu1 %v2011_v1 }
  0x66   : > { %1813 = vmatprep.subr.bf16.mxu0 %v2011_v1 }
  0x67   : > { %1730 = vmatmul.mubr.bf16.vlgmr.msra.gmra.mrb[0].mxu1 %v499_v57 }
  0x68   : > { %1734 = vmatpush3.bf16.msra.mxu1 %v1961_v58  ;;  %1810 = vmatmul.mubr.bf16.vlgmr.msra.gmra.mrb[0].mxu0 %v1513_v59 }
  0x69   : > { %1814 = vmatpush3.bf16.msra.mxu0 %v1962_v60  ;;  %1735 = vmatprep.subr.bf16.mxu1 %v2011_v1 }
  0x6a   : > { %1815 = vmatprep.subr.bf16.mxu0 %v2011_v1  ;;  %1749 = vmatprep.mubr.msk.bf16.mxu1 %vm2012_vm0, %v2011_v1 }
  0x6b   : > { %1829 = vmatprep.mubr.msk.bf16.mxu0 %vm2012_vm0, %v2011_v1 }
  0x6c   : > { %1736 = vmatpush3.bf16.msra.mxu1 %v1963_v61 }
  0x6d   : > { %1816 = vmatpush3.bf16.msra.mxu0 %v1964_v62  ;;  %1737 = vmatprep.subr.bf16.mxu1 %v2011_v1 }
  0x6e   : > { %1817 = vmatprep.subr.bf16.mxu0 %v2011_v1 }
  0x70   : > { %1738 = vmatpush3.bf16.msra.mxu1 %v1965_v63 }
  0x71   : > { %1818 = vmatpush3.bf16.msra.mxu0 %v1966_v0  ;;  %1739 = vmatprep.subr.bf16.mxu1 %v2011_v1 }
  0x72   : > { %1819 = vmatprep.subr.bf16.mxu0 %v2011_v1 }
  0x74   : > { %1740 = vmatpush3.bf16.msra.mxu1 %v1967_v2 }
  0x75   : > { %1820 = vmatpush3.bf16.msra.mxu0 %v1968_v3  ;;  %1741 = vmatprep.subr.bf16.mxu1 %v2011_v1 }
  0x76   : > { %1821 = vmatprep.subr.bf16.mxu0 %v2011_v1 }
  0x78   : > { %1742 = vmatpush3.bf16.msra.mxu1 %v1969_v4 }
  0x79   : > { %1822 = vmatpush3.bf16.msra.mxu0 %v1970_v5  ;;  %1743 = vmatprep.subr.bf16.mxu1 %v2011_v1 }
  0x7a   : > { %1823 = vmatprep.subr.bf16.mxu0 %v2011_v1 }
  0x7c   : > { %1744 = vmatpush3.bf16.msra.mxu1 %v1971_v6 }
  0x7d   : > { %1824 = vmatpush3.bf16.msra.mxu0 %v1972_v7  ;;  %1745 = vmatprep.subr.bf16.mxu1 %v2011_v1 }
  0x7e   : > { %1825 = vmatprep.subr.bf16.mxu0 %v2011_v1 }
  0x80   : > { %1746 = vmatpush3.bf16.msra.mxu1 %v1973_v8 }
  0x81   : > { %1826 = vmatpush3.bf16.msra.mxu0 %v1974_v9  ;;  %1747 = vmatprep.subr.bf16.mxu1 %v2011_v1 }
  0x82   : > { %1827 = vmatprep.subr.bf16.mxu0 %v2011_v1 }
  0x84   : > { %1748 = vmatpush3.bf16.msra.mxu1 %v1975_v10 }
  0x85   : > { %1828 = vmatpush3.bf16.msra.mxu0 %v1976_v12 }
  0x86   : > { %1833 = vmatprep.subr.bf16.mxu0 %v2011_v1 }
  0x87   : > { %1750 = vmatmul.mubr.bf16.vlgmr.msra.gmra.mrb[0].mxu1 %v1436_v13 }
  0x88   : > { %1830 = vmatmul.mubr.bf16.vlgmr.msra.gmra.mrb[0].mxu0 %v1051_v14 }
  0x89   : > { %1834 = vmatpush3.bf16.msra.mxu0 %v1978_v15  ;;  %1849 = vmatprep.mubr.msk.bf16.mxu0 %vm2012_vm0, %v2011_v1 }
  0x8a   : > { %1835 = vmatprep.subr.bf16.mxu0 %v2011_v1 }
  0x8d   : > { %1836 = vmatpush3.bf16.msra.mxu0 %v1979_v16 }
  0x8e   : > { %1837 = vmatprep.subr.bf16.mxu0 %v2011_v1 }
  0x91   : > { %1838 = vmatpush3.bf16.msra.mxu0 %v1980_v17 }
  0x92   : > { %1839 = vmatprep.subr.bf16.mxu0 %v2011_v1 }
  0x95   : > { %1840 = vmatpush3.bf16.msra.mxu0 %v1981_v18 }
  0x96   : > { %1841 = vmatprep.subr.bf16.mxu0 %v2011_v1 }
  0x99   : > { %1842 = vmatpush3.bf16.msra.mxu0 %v1982_v19 }
  0x9a   : > { %1843 = vmatprep.subr.bf16.mxu0 %v2011_v1 }
  0x9d   : > { %1844 = vmatpush3.bf16.msra.mxu0 %v1983_v20 }
  0x9e   : > { %1845 = vmatprep.subr.bf16.mxu0 %v2011_v1 }
  0xa1   : > { %1846 = vmatpush3.bf16.msra.mxu0 %v1984_v21 }
  0xa2   : > { %1847 = vmatprep.subr.bf16.mxu0 %v2011_v1 }
  0xa5   : > { %1848 = vmatpush3.bf16.msra.mxu0 %v1985_v23 }
  0xa8   : > { %1850 = vmatmul.mubr.bf16.vlgmr.msra.gmra.mrb[0].mxu0 %v1163_v24 }
 0x15a   : > { %v691_v25 = vpop.f32.mrb[0].mxu1 }
 0x15b   : > { %v1751_v26 = vpop.f32.mrb[1].mxu1 }
 0x15c   : > { %v694_v27 = vpop.f32.mrb[2].mxu1 }
 0x15d   : > { %v1752_v28 = vpop.f32.mrb[3].mxu1 }
 0x17b   : > { %v1247_v30 = vpop.f32.mrb[0].mxu0 }
 0x17c   : > { %v1853_v31 = vadd.f32 %v1247_v30, %v691_v25  ;;  %v1851_v32 = vpop.f32.mrb[1].mxu0 }
 0x17d   : > { %v1250_v1 = vpop.f32.mrb[2].mxu0 }
 0x17e   : > { %v1254_v34 = vmul.f32 %v1853_v31, %v260_v29  ;;  %v1852_v35 = vpop.f32.mrb[3].mxu0 }
 0x180   : > { %v1255_v36 = vadd.f32 %v1254_v34, %v261_v33 }
 0x182   : > { %v1256_v37 = vmax.f32 %v1255_v36, 0.0 }
 0x184   : > { %v1257_v39 = vpack.c.bf16 %v1256_v37, %v1256_v37 }
 0x186   : > { %v1262_v40 = vsel %vm1260_vm3, %v1257_v39, %v1261_v38 }
 0x187   : > { %1263 = vst [vmem:[%s258_s24] sm:$0x1] %v1262_v40 }
 0x188 PF: > { %s14_s17 = sadd.s32 1, %s2009_s17   ;;  %s2407_s15 = smov %s2005_s16 }
 0x189   : > { %p11_p5 = scmp.ge.s32.totalorder %s14_s17, 4   ;;  %s2408_s16 = smov %s2410_s18 }
 0x18b   :  { %13 = sbr.rel (!%p11_p5) target bundleno = 2 (0x2), region = 85 }

</bundles_post_ra>
